<compile_context>
chip_gen: v7x
topology: tpu7x:2x2x1
jax: 0.10.0
libtpu: 0.0.40
codegen_flags: <defaults>
</compile_context>

<pallas_src>
import jax
import jax.numpy as jnp
from jax.experimental import pallas as pl
from jax.experimental.pallas import tpu as pltpu

# ---- config (matches DiscreteReMatchingLoss.__init__ defaults, small hidden) ----
T_MULTIRES = 6
TIME_INPUT_CH = 1 + 2 * T_MULTIRES        # = 13 (NeRF embedder, include_input=True)
K = 5                                     # prior['adaptive_prior.K']
W_HIDDEN = 32                             # prior['adaptive_prior.W_hidden_dim'] (small)
DEFORM_HIDDEN = 64                        # hidden width of synthetic deformation MLP
SOFTPLUS_BETA = 100.0                     # torch.nn.Softplus(beta=100)
RM_WEIGHT = 1e-3                          # loss weights: unused in forward()
ENTROPY_WEIGHT = 1e-4
PROJECTED_WEIGHT = 0.3
V_PRIOR = jnp.array([[0.0, 0.0, 1.0]], dtype=jnp.float32)  # self.V (P1.V)

TILE_N = 4096                             # gaussians per grid step (lane axis)

# ---- packed-weight layout: 8-row-aligned blocks inside one (152,128) array ----
assert DEFORM_HIDDEN % 8 == 0 and W_HIDDEN % 8 == 0
_R_W2BLK = DEFORM_HIDDEN + W_HIDDEN       # 96 : rows 0:96   = [W_xyz | B_xyz]   (96, 4)
_R_WG    = _R_W2BLK + 8                   # 104: rows 96:104 = blockdiag[w2T,w2d] (8, 128)
_R_WN2   = _R_WG + W_HIDDEN               # 136: rows 104:136= wgT                (32, 3)
_R_B2    = _R_WN2 + 8                     # 144: rows 136:144= [wn2T | bn2T]      (5, 33)
_W_ROWS  = _R_B2 + 8                      # 152: rows 144:152= b2 column          (3, 1)
_W_LANES = 2 * DEFORM_HIDDEN              # 128 (block-diag width)
assert _W_LANES == 128 and W_HIDDEN + 1 <= _W_LANES
OUT_ROWS = 6 + 2 * K                      # 16 = [d_xyz(3); d_der(3); W_un(K); W_soft(K)]
assert OUT_ROWS % 8 == 0


# ------------------------- time embedder (glue, scalar) -------------------------
def embed_time(t):
    """NeRF positional embedding of time, t: (1,1) -> (1,13)."""
    feats = [t]
    for k in range(T_MULTIRES):
        f = 2.0 ** k
        feats.append(jnp.sin(t * f))
        feats.append(jnp.cos(t * f))
    return jnp.concatenate(feats, axis=-1)


def embed_time_tangent(t):
    """d/dt of embed_time with tangent = ones_like(t) (fwAD.make_dual)."""
    feats = [jnp.ones_like(t)]
    for k in range(T_MULTIRES):
        f = 2.0 ** k
        feats.append(f * jnp.cos(t * f))
        feats.append(-f * jnp.sin(t * f))
    return jnp.concatenate(feats, axis=-1)


# -------------------- fused kernel: deform JVP + W_net + softmax --------------------
def _fused_kernel(xyzT_ref, wpack_ref, out_ref):
    xyzT = xyzT_ref[...]                                             # (3, T)

    # --- shared first layer over xyzT: rows 0:64 deform-z1, rows 64:96 W_net xyz/time part ---
    w_xyz = wpack_ref[0:_R_W2BLK, 0:3]                               # (96, 3)
    b_xyz = wpack_ref[0:_R_W2BLK, 3:4]                               # (96, 1) time-folded biases
    zz = jnp.dot(w_xyz, xyzT, preferred_element_type=jnp.float32) + b_xyz   # (96, T)
    z1 = zz[0:DEFORM_HIDDEN, :]                                      # (64, T)
    zx = zz[DEFORM_HIDDEN:_R_W2BLK, :]                               # (32, T)

    # --- deform layer 2, primal + JVP tangent in one block-diag matmul over [h; mask] ---
    h = jnp.maximum(z1, 0.0)                                         # ReLU primal
    mask = (z1 > 0.0).astype(jnp.float32)                            # ReLU tangent mask
    hm = jnp.concatenate([h, mask], axis=0)                          # (128, T) aligned concat
    w2blk = wpack_ref[_R_W2BLK:_R_WG, :]                             # (8, 128) [[w2T,0],[0,w2d],0,0]
    b2col = wpack_ref[_R_B2:_W_ROWS, 0:1]                            # (8, 1)   [b2; 0...] (tangent bias = 0)
    dd8 = jnp.dot(w2blk, hm, preferred_element_type=jnp.float32) + b2col     # (8, T)
    dxyzT = dd8[0:3, :]                                              # d_xyz   (rows 3:6 = d_xyz_der)

    # --- W_net layer 1 (gamma = xyz + d_xyz folded) + Softplus(beta=100) ---
    wgT = wpack_ref[_R_WG:_R_WN2, 0:3]                               # (32, 3)
    z = zx + jnp.dot(wgT, dxyzT, preferred_element_type=jnp.float32)         # (32, T)
    bz = SOFTPLUS_BETA * z
    hsp = jnp.where(bz > 20.0, z,
                    jnp.log1p(jnp.exp(jnp.minimum(bz, 20.0))) / SOFTPLUS_BETA)

    # --- W_net layer 2 + softmax over K (sublane axis) ---
    wn2T = wpack_ref[_R_WN2:_R_WN2 + K, 0:W_HIDDEN]                  # (K, 32)
    bn2T = wpack_ref[_R_WN2:_R_WN2 + K, W_HIDDEN:W_HIDDEN + 1]       # (K, 1)
    logits = jnp.dot(wn2T, hsp, preferred_element_type=jnp.float32) + bn2T   # (K, T)
    m = jnp.max(logits, axis=0, keepdims=True)
    e = jnp.exp(logits - m)
    wsoft = e * pl.reciprocal(jnp.sum(e, axis=0, keepdims=True), approx=True)

    # --- one packed lane-dense (16, T) output slab ---
    out_ref[0:6, :] = dd8[0:6, :]                                    # d_xyz ; d_xyz_der
    out_ref[6:6 + K, :] = logits                                     # W_unnorm
    out_ref[6 + K:OUT_ROWS, :] = wsoft                               # W_softmax


def _pack_weights(deform_params, w_net_params, time):
    """Hoist all grid-invariant / time-only (M=1) work out of the kernel and
    pack every weight/bias into one pre-padded (152, 128) f32 constant."""
    w1x, w1t, b1, w2, b2 = deform_params
    wn1, bn1, wn2, bn2 = w_net_params
    t_emb = embed_time(time)                    # (1, 13)
    t_emb_dot = embed_time_tangent(time)        # (1, 13)

    # deform layer 1: time part folded into the bias column
    w1xT = w1x.T                                # (64, 3)
    tbias = (t_emb @ w1t + b1).T                # (64, 1)

    # W_net layer 1: torch.cat([gamma, xyz, t_emb]) @ wn1 split; gamma = xyz + d_xyz folded
    wg, wx, wt = wn1[0:3], wn1[3:6], wn1[6:6 + TIME_INPUT_CH]
    wgxT = (wg + wx).T                          # (32, 3)  acts on xyz
    wgT = wg.T                                  # (32, 3)  acts on d_xyz
    tb1 = (t_emb @ wt + bn1).T                  # (32, 1)

    # stacked first-layer LHS acting on xyzT (rows 0:64 deform, 64:96 W_net)
    blk_xyz = jnp.concatenate(
        [jnp.concatenate([w1xT, wgxT], axis=0),
         jnp.concatenate([tbias, tb1], axis=0)], axis=1)             # (96, 4)

    # deform layer 2: block-diag [[w2T, 0], [0, w2d]] over [h; mask]
    t_dot = t_emb_dot @ w1t                     # (1, 64) tangent of layer 1
    w2T = w2.T                                  # (3, 64)
    w2d = w2.T * t_dot                          # (3, 64) tangent folded into w2
    zero3 = jnp.zeros_like(w2T)
    w2blk = jnp.concatenate(
        [jnp.concatenate([w2T, zero3], axis=1),
         jnp.concatenate([zero3, w2d], axis=1),
         jnp.zeros((2, 2 * DEFORM_HIDDEN), jnp.float32)], axis=0)    # (8, 128)

    blk_wn2 = jnp.concatenate([wn2.T, bn2.T], axis=1)                # (K, 33)

    def pad_block(a, rows):
        a = a.astype(jnp.float32)
        return jnp.pad(a, ((0, rows - a.shape[0]), (0, _W_LANES - a.shape[1])))

    wpack = jnp.concatenate([
        pad_block(blk_xyz, _R_W2BLK),           # rows   0: 96
        pad_block(w2blk, 8),                    # rows  96:104
        pad_block(wgT, W_HIDDEN),               # rows 104:136
        pad_block(blk_wn2, 8),                  # rows 136:144
        pad_block(b2.T, 8),                     # rows 144:152
    ], axis=0)
    return wpack                                # (152, 128)


@jax.jit
def fused_forward(xyz, deform_params, w_net_params, time):
    """Returns d_xyz, d_xyz_der, W_unnorm, W_softmax, each (N, C)."""
    N = xyz.shape[0]
    n_tiles = pl.cdiv(N, TILE_N)
    n_pad = n_tiles * TILE_N
    # (C, N) lane-dense layout; the ragged last tile is handled by Pallas
    # (garbage lanes are computed and sliced off below) — no wrapper-side pad.
    xyzT = xyz.astype(jnp.float32).T
    wpack = _pack_weights(deform_params, w_net_params, time)

    packed = pl.pallas_call(
        _fused_kernel,
        out_shape=jax.ShapeDtypeStruct((OUT_ROWS, n_pad), jnp.float32),
        grid=(n_tiles,),
        in_specs=[pl.BlockSpec((3, TILE_N), lambda i: (0, i)),
                  pl.BlockSpec((_W_ROWS, _W_LANES), lambda i: (0, 0))],
        out_specs=pl.BlockSpec((OUT_ROWS, TILE_N), lambda i: (0, i)),
        compiler_params=pltpu.CompilerParams(
            dimension_semantics=("parallel",),
            vmem_limit_bytes=48 * 1024 * 1024),
        cost_estimate=pl.CostEstimate(
            flops=3600 * n_pad,
            transcendentals=70 * n_pad,
            bytes_accessed=(3 + OUT_ROWS) * 4 * n_pad + _W_ROWS * _W_LANES * 4),
    )(xyzT, wpack)

    out = packed[:, :N].T                       # single slice + transpose -> (N, 16)
    d_xyz = out[:, 0:3]
    d_xyz_der = out[:, 3:6]
    W_unnorm = out[:, 6:6 + K]
    W_soft = out[:, 6 + K:OUT_ROWS]
    return d_xyz, d_xyz_der, W_unnorm, W_soft


# -------------------------- DiscreteReMatchingLoss.forward --------------------------
def discrete_rematching_forward(xyz, deform_params, w_net_params, time, W=None):
    """Mirrors DiscreteReMatchingLoss.forward (fwAD dual pass -> d_xyz, d_xyz_der)
    and additionally returns the get_W_unnorm + softmax result that
    rematching_loss computes when W is None — all from one fused Pallas call."""
    d_xyz, d_xyz_der, W_unnorm, W_soft = fused_forward(
        xyz, deform_params, w_net_params, time)
    psi = (xyz[None], d_xyz[None], d_xyz_der[None], time[None], W)
    return psi, 1, (W_unnorm[None], W_soft[None])


# ---------------------------------- references ----------------------------------
def deform_ref(xyz, time, params):
    w1x, w1t, b1, w2, b2 = params

    def f(t):
        te = embed_time(t)
        z1 = xyz @ w1x + te @ w1t + b1
        h = jnp.maximum(z1, 0.0)
        return h @ w2 + b2

    return jax.jvp(f, (time,), (jnp.ones_like(time),))


def w_net_ref(gamma, xyz, t_emb, params):
    wn1, bn1, wn2, bn2 = params
    x = jnp.concatenate(
        [gamma, xyz, jnp.broadcast_to(t_emb, (gamma.shape[0], TIME_INPUT_CH))], axis=1)
    z = x @ wn1 + bn1
    bz = SOFTPLUS_BETA * z
    h = jnp.where(bz > 20.0, z,
                  jnp.log1p(jnp.exp(jnp.minimum(bz, 20.0))) / SOFTPLUS_BETA)
    logits = h @ wn2 + bn2
    return logits, jax.nn.softmax(logits, axis=-1)


# ------------------------------------- main -------------------------------------
if __name__ == "__main__":
    key = jax.random.PRNGKey(0)
    keys = jax.random.split(key, 12)
    N = 1000   # not a multiple of TILE_N: exercises the ragged last tile

    xyz = jax.random.normal(keys[0], (N, 3), jnp.float32)            # gaussians.get_xyz
    time = jax.random.uniform(keys[1], (1, 1), jnp.float32)          # sampled time

    # synthetic deformation model parameters (external deformation.step MLP)
    s = 0.2
    w1x = s * jax.random.normal(keys[2], (3, DEFORM_HIDDEN), jnp.float32)
    w1t = s * jax.random.normal(keys[3], (TIME_INPUT_CH, DEFORM_HIDDEN), jnp.float32)
    b1 = s * jax.random.normal(keys[4], (1, DEFORM_HIDDEN), jnp.float32)
    w2 = s * jax.random.normal(keys[5], (DEFORM_HIDDEN, 3), jnp.float32)
    b2 = s * jax.random.normal(keys[6], (1, 3), jnp.float32)
    deform_params = (w1x, w1t, b1, w2, b2)

    # module parameters from __init__: W_net = [Linear(3+3+13, H), Linear(H, K)]
    wn1 = s * jax.random.normal(keys[7], (3 + 3 + TIME_INPUT_CH, W_HIDDEN), jnp.float32)
    bn1 = s * jax.random.normal(keys[8], (1, W_HIDDEN), jnp.float32)
    wn2 = s * jax.random.normal(keys[9], (W_HIDDEN, K), jnp.float32)
    bn2 = s * jax.random.normal(keys[10], (1, K), jnp.float32)
    w_net_params = (wn1, bn1, wn2, bn2)

    # ---- forward pass (one fused Pallas kernel) ----
    psi, reg, (W_unnorm_b, W_soft_b) = discrete_rematching_forward(
        xyz, deform_params, w_net_params, time, W=None)
    xyz_b, d_xyz_b, d_der_b, time_b, W_passed = psi
    jax.block_until_ready((d_xyz_b, d_der_b, W_unnorm_b, W_soft_b))

    # correctness vs. plain-JAX jvp reference (== torch fwAD dual semantics)
    d_ref, dd_ref = deform_ref(xyz, time, deform_params)
    assert d_xyz_b.shape == (1, N, 3) and d_der_b.shape == (1, N, 3)
    assert time_b.shape == (1, 1, 1)
    assert W_passed is None and reg == 1
    assert jnp.allclose(d_xyz_b[0], d_ref, atol=1e-4, rtol=1e-4)
    assert jnp.allclose(d_der_b[0], dd_ref, atol=1e-4, rtol=1e-4)

    # get_W_unnorm + softmax (what rematching_loss does when W is None)
    gamma = xyz + d_ref
    t_emb = embed_time(time)
    Wun_ref, Wsm_ref = w_net_ref(gamma, xyz, t_emb, w_net_params)
    assert W_unnorm_b.shape == (1, N, K) and W_soft_b.shape == (1, N, K)
    assert jnp.allclose(W_unnorm_b[0], Wun_ref, atol=1e-4, rtol=1e-4)
    # softmax uses the EUP approx reciprocal -> looser tolerance on probabilities
    assert jnp.allclose(W_soft_b[0], Wsm_ref, atol=1e-2, rtol=1e-2)

    print("KERNEL_OK")
</pallas_src>

<mosaic_0001>
module attributes {stable_mosaic.version = 11 : i64} {
  func.func @_fused_kernel(%arg0: i32, %arg1: memref<3x4096xf32, #tpu.memory_space<vmem>>, %arg2: memref<152x128xf32, #tpu.memory_space<vmem>>, %arg3: memref<16x4096xf32, #tpu.memory_space<vmem>>) attributes {dimension_semantics = [#tpu.dimension_semantics<parallel>], iteration_bounds = array<i64: 1>, scalar_prefetch = 0 : i64, scratch_operands = 0 : i64, tpu.core_type = #tpu.core_type<tc>, window_params = [{transform_indices = @transform_0, window_bounds = array<i64: 3, 4096>}, {pipeline_mode = #tpu.pipeline_mode<synchronous>, transform_indices = @transform_1, window_bounds = array<i64: 152, 128>}, {transform_indices = @transform_2, window_bounds = array<i64: 16, 4096>}]} {
    %c0 = arith.constant 0 : index
    %c0_0 = arith.constant 0 : index
    %0 = vector.load %arg1[%c0, %c0_0] : memref<3x4096xf32, #tpu.memory_space<vmem>>, vector<3x4096xf32>
    %c0_1 = arith.constant 0 : index
    %c0_2 = arith.constant 0 : index
    %1 = vector.load %arg2[%c0_1, %c0_2] : memref<152x128xf32, #tpu.memory_space<vmem>>, vector<96x3xf32>
    %c0_3 = arith.constant 0 : index
    %c3 = arith.constant 3 : index
    %2 = vector.load %arg2[%c0_3, %c3] : memref<152x128xf32, #tpu.memory_space<vmem>>, vector<96x1xf32>
    %cst = arith.constant dense<0.000000e+00> : vector<96x4096xf32>
    %3 = tpu.matmul %1, %0, %cst {dimension_numbers = #tpu.dot_dimension_numbers<[1], [0], [0], [1], [0, 0, 1, 1], [], []>} : vector<96x3xf32>, vector<3x4096xf32>, vector<96x4096xf32> -> vector<96x4096xf32>
    %4 = vector.broadcast %2 : vector<96x1xf32> to vector<96x4096xf32>
    %5 = arith.addf %3, %4 : vector<96x4096xf32>
    %6 = vector.extract_strided_slice %5 {offsets = [0, 0], sizes = [64, 4096], strides = [1, 1]} : vector<96x4096xf32> to vector<64x4096xf32>
    %7 = vector.extract_strided_slice %5 {offsets = [64, 0], sizes = [32, 4096], strides = [1, 1]} : vector<96x4096xf32> to vector<32x4096xf32>
    %cst_4 = arith.constant 0.000000e+00 : f32
    %8 = vector.broadcast %cst_4 : f32 to vector<64x4096xf32>
    %9 = arith.maximumf %6, %8 : vector<64x4096xf32>
    %cst_5 = arith.constant 0.000000e+00 : f32
    %10 = vector.broadcast %cst_5 : f32 to vector<64x4096xf32>
    %11 = arith.cmpf ogt, %6, %10 : vector<64x4096xf32>
    %12 = arith.extui %11 : vector<64x4096xi1> to vector<64x4096xi32>
    %13 = arith.sitofp %12 : vector<64x4096xi32> to vector<64x4096xf32>
    %14 = tpu.concatenate %9, %13 in 0 : vector<64x4096xf32>, vector<64x4096xf32> -> vector<128x4096xf32>
    %c96 = arith.constant 96 : index
    %c0_6 = arith.constant 0 : index
    %15 = vector.load %arg2[%c96, %c0_6] : memref<152x128xf32, #tpu.memory_space<vmem>>, vector<8x128xf32>
    %c144 = arith.constant 144 : index
    %c0_7 = arith.constant 0 : index
    %16 = vector.load %arg2[%c144, %c0_7] : memref<152x128xf32, #tpu.memory_space<vmem>>, vector<8x1xf32>
    %cst_8 = arith.constant dense<0.000000e+00> : vector<8x4096xf32>
    %17 = tpu.matmul %15, %14, %cst_8 {dimension_numbers = #tpu.dot_dimension_numbers<[1], [0], [0], [1], [0, 0, 1, 1], [], []>} : vector<8x128xf32>, vector<128x4096xf32>, vector<8x4096xf32> -> vector<8x4096xf32>
    %18 = vector.broadcast %16 : vector<8x1xf32> to vector<8x4096xf32>
    %19 = arith.addf %17, %18 : vector<8x4096xf32>
    %20 = vector.extract_strided_slice %19 {offsets = [0, 0], sizes = [3, 4096], strides = [1, 1]} : vector<8x4096xf32> to vector<3x4096xf32>
    %c104 = arith.constant 104 : index
    %c0_9 = arith.constant 0 : index
    %21 = vector.load %arg2[%c104, %c0_9] : memref<152x128xf32, #tpu.memory_space<vmem>>, vector<32x3xf32>
    %cst_10 = arith.constant dense<0.000000e+00> : vector<32x4096xf32>
    %22 = tpu.matmul %21, %20, %cst_10 {dimension_numbers = #tpu.dot_dimension_numbers<[1], [0], [0], [1], [0, 0, 1, 1], [], []>} : vector<32x3xf32>, vector<3x4096xf32>, vector<32x4096xf32> -> vector<32x4096xf32>
    %23 = arith.addf %7, %22 : vector<32x4096xf32>
    %cst_11 = arith.constant 1.000000e+02 : f32
    %24 = vector.broadcast %cst_11 : f32 to vector<32x4096xf32>
    %25 = arith.mulf %24, %23 : vector<32x4096xf32>
    %cst_12 = arith.constant 2.000000e+01 : f32
    %26 = vector.broadcast %cst_12 : f32 to vector<32x4096xf32>
    %27 = arith.cmpf ogt, %25, %26 : vector<32x4096xf32>
    %cst_13 = arith.constant 2.000000e+01 : f32
    %28 = vector.broadcast %cst_13 : f32 to vector<32x4096xf32>
    %29 = arith.minimumf %25, %28 : vector<32x4096xf32>
    %30 = math.exp %29 : vector<32x4096xf32>
    %31 = math.log1p %30 : vector<32x4096xf32>
    %cst_14 = arith.constant 1.000000e+02 : f32
    %32 = vector.broadcast %cst_14 : f32 to vector<32x4096xf32>
    %33 = arith.divf %31, %32 : vector<32x4096xf32>
    %34 = arith.select %27, %23, %33 : vector<32x4096xi1>, vector<32x4096xf32>
    %c136 = arith.constant 136 : index
    %c0_15 = arith.constant 0 : index
    %35 = vector.load %arg2[%c136, %c0_15] : memref<152x128xf32, #tpu.memory_space<vmem>>, vector<5x32xf32>
    %c136_16 = arith.constant 136 : index
    %c32 = arith.constant 32 : index
    %36 = vector.load %arg2[%c136_16, %c32] : memref<152x128xf32, #tpu.memory_space<vmem>>, vector<5x1xf32>
    %cst_17 = arith.constant dense<0.000000e+00> : vector<5x4096xf32>
    %37 = tpu.matmul %35, %34, %cst_17 {dimension_numbers = #tpu.dot_dimension_numbers<[1], [0], [0], [1], [0, 0, 1, 1], [], []>} : vector<5x32xf32>, vector<32x4096xf32>, vector<5x4096xf32> -> vector<5x4096xf32>
    %38 = vector.broadcast %36 : vector<5x1xf32> to vector<5x4096xf32>
    %39 = arith.addf %37, %38 : vector<5x4096xf32>
    %cst_18 = arith.constant dense<0xFF800000> : vector<4096xf32>
    %40 = vector.multi_reduction <maximumf>, %39, %cst_18 [0] : vector<5x4096xf32> to vector<4096xf32>
    %41 = vector.shape_cast %40 : vector<4096xf32> to vector<1x4096xf32>
    %42 = vector.broadcast %41 : vector<1x4096xf32> to vector<5x4096xf32>
    %43 = arith.subf %39, %42 : vector<5x4096xf32>
    %44 = math.exp %43 : vector<5x4096xf32>
    %cst_19 = arith.constant dense<0.000000e+00> : vector<4096xf32>
    %45 = vector.multi_reduction <add>, %44, %cst_19 [0] : vector<5x4096xf32> to vector<4096xf32>
    %46 = vector.shape_cast %45 : vector<4096xf32> to vector<1x4096xf32>
    %47 = tpu.reciprocal %46 {approx = true} : vector<1x4096xf32> -> vector<1x4096xf32>
    %48 = vector.broadcast %47 : vector<1x4096xf32> to vector<5x4096xf32>
    %49 = arith.mulf %44, %48 : vector<5x4096xf32>
    %50 = vector.extract_strided_slice %19 {offsets = [0, 0], sizes = [6, 4096], strides = [1, 1]} : vector<8x4096xf32> to vector<6x4096xf32>
    %c0_20 = arith.constant 0 : index
    %c0_21 = arith.constant 0 : index
    %51 = vector.load %arg3[%c0_20, %c0_21] : memref<16x4096xf32, #tpu.memory_space<vmem>>, vector<6x4096xf32>
    tpu.vector_store %arg3[%c0_20, %c0_21], %50 {strides = array<i32>} : memref<16x4096xf32, #tpu.memory_space<vmem>>, vector<6x4096xf32>,
    %c6 = arith.constant 6 : index
    %c0_22 = arith.constant 0 : index
    %52 = vector.load %arg3[%c6, %c0_22] : memref<16x4096xf32, #tpu.memory_space<vmem>>, vector<5x4096xf32>
    tpu.vector_store %arg3[%c6, %c0_22], %39 {strides = array<i32>} : memref<16x4096xf32, #tpu.memory_space<vmem>>, vector<5x4096xf32>,
    %c11 = arith.constant 11 : index
    %c0_23 = arith.constant 0 : index
    %53 = vector.load %arg3[%c11, %c0_23] : memref<16x4096xf32, #tpu.memory_space<vmem>>, vector<5x4096xf32>
    tpu.vector_store %arg3[%c11, %c0_23], %49 {strides = array<i32>} : memref<16x4096xf32, #tpu.memory_space<vmem>>, vector<5x4096xf32>,
    return
  }
  func.func @transform_0(%arg0: i32) -> (i32, i32) {
    %c0_i32 = arith.constant 0 : i32
    %c0_i32_0 = arith.constant 0 : i32
    return %c0_i32, %arg0 : i32, i32
  }
  func.func @transform_1(%arg0: i32) -> (i32, i32) {
    %c0_i32 = arith.constant 0 : i32
    %c0_i32_0 = arith.constant 0 : i32
    %c0_i32_1 = arith.constant 0 : i32
    return %c0_i32, %c0_i32_0 : i32, i32
  }
  func.func @transform_2(%arg0: i32) -> (i32, i32) {
    %c0_i32 = arith.constant 0 : i32
    %c0_i32_0 = arith.constant 0 : i32
    return %c0_i32, %arg0 : i32, i32
  }
}

</mosaic_0001>

<bundles_post_ra>
// kernel: fused_forward.1
= control target key start
LH: loop header
LB: loop body
LE: loop exit
PB: predicated region body
PF: predicated region fallthrough
CT: control target
= control target key end

     0   :  { %vm19831_vm0 = vcmask 1042432   ;;  %v19834_v2 = vmov 0.0   ;;  %v19833_v7 = vmov 3   ;;  %vm19832_vm1 = vcmask 23552   ;;  %s19828_s0 = inlined_call_operand.vmem [shape: f32[3,1000], index: 0, kind: input, shape index: {}]   ;;  %s19829_s1 = inlined_call_operand.vmem [shape: f32[152,128], index: 1, kind: input, shape index: {}]   ;;  %s19830_s2 = inlined_call_operand.vmem [shape: f32[16,4096], index: 2, kind: output, shape index: {}]  }
   0x1   :  { %v11_v0 = vld [vmem:[%s19828_s0] sm:$0x77]  ;;  %v12_v1 = vld [vmem:[%s19828_s0 + $0x8] sm:$0x77]  ;;  %285 = vmatprep.mubr.f32.mxu0 %v19834_v2  ;;  %422 = vmatprep.mubr.f32.mxu1 %v19834_v2  ;;  %v12834_v6 = vld [vmem:[%s19829_s1 + $0x10] sm:$0xff] }
   0x2   :  { %v115_v3 = vcombine.high %v11_v0, %v11_v0  ;;  %v116_v4 = vcombine.high %v12_v1, %v12_v1  ;;  %v12829_v5 = vld [vmem:[%s19829_s1] sm:$0xff]  ;;  %12120 = vset.pattern.permute.xlu0 %v19833_v7  ;;  %12121 = vset.pattern.permute.xlu1 %v19833_v7  ;;  %v13_v8 = vld [vmem:[%s19828_s0 + $0x10] sm:$0x77]  ;;  %v14_v9 = vld [vmem:[%s19828_s0 + $0x18] sm:$0x77] }
   0x3   :  { %41 = vperm.xlu0 %12120, %v12829_v5   ;;  %51 = vperm.xlu1 %12121, %v12834_v6   ;;  %v117_v10 = vcombine.high %v13_v8, %v13_v8  ;;  %v118_v11 = vcombine.high %v14_v9, %v14_v9  ;;  %v12857_v12 = vld [vmem:[%s19828_s0 + $0x20] sm:$0x77]  ;;  %v12862_v13 = vld [vmem:[%s19828_s0 + $0x28] sm:$0x77]  ;;  %v12888_v17 = vld [vmem:[%s19829_s1 + $0x18] sm:$0xff] }
   0x4   :  { %10371 = vmatprep.subr.msk.mxu0 %vm19831_vm0, %v115_v3  ;;  %10385 = vmatprep.subr.msk.mxu1 %vm19831_vm0, %v116_v4  ;;  %v12869_v14 = vld [vmem:[%s19829_s1 + $0x8] sm:$0xff]  ;;  %v119_v15 = vcombine.high %v12857_v12, %v12857_v12  ;;  %v120_v16 = vcombine.high %v12862_v13, %v12862_v13  ;;  %v12903_v18 = vld [vmem:[%s19829_s1 + $0x20] sm:$0xff]  ;;  %v12921_v20 = vld [vmem:[%s19829_s1 + $0x30] sm:$0xff] }
   0x5   :  { %10372 = vmatpush1.msk.msra.mxu0 %vm19831_vm0, %v11_v0  ;;  %10386 = vmatpush1.msk.msra.mxu1 %vm19831_vm0, %v12_v1  ;;  %v12908_v19 = vld [vmem:[%s19829_s1 + $0x28] sm:$0xff]  ;;  %v12926_v21 = vld [vmem:[%s19829_s1 + $0x38] sm:$0xff]  ;;  %v12939_v22 = vld [vmem:[%s19829_s1 + $0x40] sm:$0xff] }
   0x6   :  { %10373 = vmatmul.mubr.msk.f32.vlgmr.msra.gmra.mrb[0].mxu0 %vm19832_vm1, %v12829_v5  ;;  %10387 = vmatmul.mubr.msk.f32.vlgmr.msra.gmra.mrb[0].mxu1 %vm19832_vm1, %v12829_v5  ;;  %v12951_v23 = vld [vmem:[%s19829_s1 + $0x48] sm:$0xff]  ;;  %v12963_v24 = vld [vmem:[%s19829_s1 + $0x58] sm:$0xff]  ;;  %v12987_v25 = vld [vmem:[%s19829_s1 + $0x50] sm:$0xff] }
   0x7   :  { %291 = vmatprep.mubr.f32.mxu0 %v19834_v2  ;;  %428 = vmatprep.mubr.f32.mxu1 %v19834_v2  ;;  %v13002_v26 = vld [vmem:[%s19828_s0 + $0x30] sm:$0x77]  ;;  %v13007_v27 = vld [vmem:[%s19828_s0 + $0x38] sm:$0x77]  ;;  %v13094_v30 = vld [vmem:[%s19828_s0 + $0x40] sm:$0x77] }
   0x8   :  { %10399 = vmatprep.subr.msk.mxu0 %vm19831_vm0, %v117_v10  ;;  %10413 = vmatprep.subr.msk.mxu1 %vm19831_vm0, %v118_v11  ;;  %v121_v28 = vcombine.high %v13002_v26, %v13002_v26  ;;  %v122_v29 = vcombine.high %v13007_v27, %v13007_v27  ;;  %v13099_v31 = vld [vmem:[%s19828_s0 + $0x48] sm:$0x77]  ;;  %v123_v32 = vcombine.high %v13094_v30, %v13094_v30  ;;  %v13186_v34 = vld [vmem:[%s19828_s0 + $0x50] sm:$0x77]  ;;  %v13191_v35 = vld [vmem:[%s19828_s0 + $0x58] sm:$0x77] }
   0x9   :  { %10400 = vmatpush1.msk.msra.mxu0 %vm19831_vm0, %v13_v8  ;;  %10414 = vmatpush1.msk.msra.mxu1 %vm19831_vm0, %v14_v9  ;;  %v124_v33 = vcombine.high %v13099_v31, %v13099_v31  ;;  %v125_v36 = vcombine.high %v13186_v34, %v13186_v34  ;;  %v126_v37 = vcombine.high %v13191_v35, %v13191_v35  ;;  %v13278_v38 = vld [vmem:[%s19828_s0 + $0x60] sm:$0x77]  ;;  %v13283_v39 = vld [vmem:[%s19828_s0 + $0x68] sm:$0x77] }
   0xa   :  { %10374 = vmatmul.mubr.msk.f32.gmra.mrb[2].mxu0 %vm19832_vm1, %v12869_v14  ;;  %10388 = vmatmul.mubr.msk.f32.gmra.mrb[2].mxu1 %vm19832_vm1, %v12869_v14  ;;  %v127_v40 = vcombine.high %v13278_v38, %v13278_v38  ;;  %v128_v41 = vcombine.high %v13283_v39, %v13283_v39 }
   0xb   :  { %297 = vmatprep.mubr.f32.mxu0 %v19834_v2  ;;  %434 = vmatprep.mubr.f32.mxu1 %v19834_v2 }
   0xc   :  { %10427 = vmatprep.subr.msk.mxu0 %vm19831_vm0, %v119_v15  ;;  %10441 = vmatprep.subr.msk.mxu1 %vm19831_vm0, %v120_v16 }
   0xd   :  { %46 = vperm.xlu0 %12120, %v12869_v14   ;;  %56 = vperm.xlu1 %12121, %v12888_v17  }
   0xe   :  { %10375 = vmatmul.mubr.msk.f32.gmra.mrb[4].mxu0 %vm19832_vm1, %v12834_v6  ;;  %10389 = vmatmul.mubr.msk.f32.gmra.mrb[4].mxu1 %vm19832_vm1, %v12834_v6 }
   0xf   :  { %303 = vmatprep.mubr.f32.mxu0 %v19834_v2  ;;  %440 = vmatprep.mubr.f32.mxu1 %v19834_v2 }
  0x11   :  { %61 = vperm.xlu0 %12120, %v12903_v18   ;;  %66 = vperm.xlu1 %12121, %v12908_v19  }
  0x12   :  { %10376 = vmatmul.mubr.msk.f32.gmra.mrb[6].mxu0 %vm19832_vm1, %v12888_v17  ;;  %10390 = vmatmul.mubr.msk.f32.gmra.mrb[6].mxu1 %vm19832_vm1, %v12888_v17 }
  0x13   :  { %309 = vmatprep.mubr.f32.mxu0 %v19834_v2  ;;  %446 = vmatprep.mubr.f32.mxu1 %v19834_v2 }
  0x15   :  { %71 = vperm.xlu0 %12120, %v12921_v20   ;;  %76 = vperm.xlu1 %12121, %v12926_v21  }
  0x16   :  { %10377 = vmatmul.mubr.msk.f32.gmra.mrb[8].mxu0 %vm19832_vm1, %v12903_v18  ;;  %10391 = vmatmul.mubr.msk.f32.gmra.mrb[8].mxu1 %vm19832_vm1, %v12903_v18 }
  0x17   :  { %315 = vmatprep.mubr.f32.mxu0 %v19834_v2  ;;  %452 = vmatprep.mubr.f32.mxu1 %v19834_v2 }
  0x19   :  { %81 = vperm.xlu1 %12121, %v12939_v22  }
  0x1a   :  { %10378 = vmatmul.mubr.msk.f32.gmra.mrb[10].mxu0 %vm19832_vm1, %v12908_v19  ;;  %10392 = vmatmul.mubr.msk.f32.gmra.mrb[10].mxu1 %vm19832_vm1, %v12908_v19 }
  0x1b   :  { %321 = vmatprep.mubr.f32.mxu0 %v19834_v2  ;;  %458 = vmatprep.mubr.f32.mxu1 %v19834_v2 }
  0x1d   :  { %86 = vperm.xlu1 %12121, %v12951_v23  }
  0x1e   :  { %10379 = vmatmul.mubr.msk.f32.gmra.mrb[12].mxu0 %vm19832_vm1, %v12921_v20  ;;  %10393 = vmatmul.mubr.msk.f32.gmra.mrb[12].mxu1 %vm19832_vm1, %v12921_v20 }
  0x1f   :  { %327 = vmatprep.mubr.f32.mxu0 %v19834_v2  ;;  %464 = vmatprep.mubr.f32.mxu1 %v19834_v2 }
  0x21   :  { %96 = vperm.xlu1 %12121, %v12963_v24  }
  0x22   :  { %10380 = vmatmul.mubr.msk.f32.gmra.mrb[14].mxu0 %vm19832_vm1, %v12926_v21  ;;  %10394 = vmatmul.mubr.msk.f32.gmra.mrb[14].mxu1 %vm19832_vm1, %v12926_v21 }
  0x23   :  { %333 = vmatprep.mubr.f32.mxu0 %v19834_v2  ;;  %470 = vmatprep.mubr.f32.mxu1 %v19834_v2 }
  0x26   :  { %10381 = vmatmul.mubr.msk.f32.gmra.mrb[16].mxu0 %vm19832_vm1, %v12939_v22  ;;  %10395 = vmatmul.mubr.msk.f32.gmra.mrb[16].mxu1 %vm19832_vm1, %v12939_v22 }
  0x27   :  { %339 = vmatprep.mubr.f32.mxu0 %v19834_v2  ;;  %476 = vmatprep.mubr.f32.mxu1 %v19834_v2 }
  0x2a   :  { %10382 = vmatmul.mubr.msk.f32.gmra.mrb[18].mxu0 %vm19832_vm1, %v12951_v23  ;;  %10396 = vmatmul.mubr.msk.f32.gmra.mrb[18].mxu1 %vm19832_vm1, %v12951_v23 }
  0x2b   :  { %345 = vmatprep.mubr.f32.mxu0 %v19834_v2  ;;  %482 = vmatprep.mubr.f32.mxu1 %v19834_v2 }
  0x2e   :  { %10383 = vmatmul.mubr.msk.f32.gmra.mrb[20].mxu0 %vm19832_vm1, %v12987_v25  ;;  %10397 = vmatmul.mubr.msk.f32.gmra.mrb[20].mxu1 %vm19832_vm1, %v12987_v25 }
  0x2f   :  { %351 = vmatprep.mubr.f32.mxu0 %v19834_v2  ;;  %488 = vmatprep.mubr.f32.mxu1 %v19834_v2 }
  0x32   :  { %10384 = vmatmul.mubr.msk.f32.gmra.mrb[22].mxu0 %vm19832_vm1, %v12963_v24  ;;  %10398 = vmatmul.mubr.msk.f32.gmra.mrb[22].mxu1 %vm19832_vm1, %v12963_v24 }
  0x33   :  { %559 = vmatprep.mubr.f32.mxu0 %v19834_v2  ;;  %696 = vmatprep.mubr.f32.mxu1 %v19834_v2 }
  0x36   :  { %10401 = vmatmul.mubr.msk.f32.vlgmr.msra.gmra.mrb[24].mxu0 %vm19832_vm1, %v12829_v5  ;;  %10415 = vmatmul.mubr.msk.f32.vlgmr.msra.gmra.mrb[24].mxu1 %vm19832_vm1, %v12829_v5 }
  0x37   :  { %565 = vmatprep.mubr.f32.mxu0 %v19834_v2  ;;  %702 = vmatprep.mubr.f32.mxu1 %v19834_v2 }
  0x38   :  { %10428 = vmatpush1.msk.msra.mxu0 %vm19831_vm0, %v12857_v12  ;;  %10442 = vmatpush1.msk.msra.mxu1 %vm19831_vm0, %v12862_v13 }
  0x39   :  { %10455 = vmatprep.subr.msk.mxu0 %vm19831_vm0, %v121_v28  ;;  %10469 = vmatprep.subr.msk.mxu1 %vm19831_vm0, %v122_v29 }
  0x3a   :  { %10402 = vmatmul.mubr.msk.f32.gmra.mrb[26].mxu0 %vm19832_vm1, %v12869_v14  ;;  %10416 = vmatmul.mubr.msk.f32.gmra.mrb[26].mxu1 %vm19832_vm1, %v12869_v14 }
  0x3b   :  { %571 = vmatprep.mubr.f32.mxu0 %v19834_v2  ;;  %708 = vmatprep.mubr.f32.mxu1 %v19834_v2 }
  0x3e   :  { %10403 = vmatmul.mubr.msk.f32.gmra.mrb[28].mxu0 %vm19832_vm1, %v12834_v6  ;;  %10417 = vmatmul.mubr.msk.f32.gmra.mrb[28].mxu1 %vm19832_vm1, %v12834_v6 }
  0x3f   :  { %577 = vmatprep.mubr.f32.mxu0 %v19834_v2  ;;  %714 = vmatprep.mubr.f32.mxu1 %v19834_v2 }
  0x42   :  { %10404 = vmatmul.mubr.msk.f32.gmra.mrb[30].mxu0 %vm19832_vm1, %v12888_v17  ;;  %10418 = vmatmul.mubr.msk.f32.gmra.mrb[30].mxu1 %vm19832_vm1, %v12888_v17 }
  0x43   :  { %583 = vmatprep.mubr.f32.mxu0 %v19834_v2  ;;  %720 = vmatprep.mubr.f32.mxu1 %v19834_v2 }
  0x46   :  { %10405 = vmatmul.mubr.msk.f32.gmra.mrb[32].mxu0 %vm19832_vm1, %v12903_v18  ;;  %10419 = vmatmul.mubr.msk.f32.gmra.mrb[32].mxu1 %vm19832_vm1, %v12903_v18 }
  0x47   :  { %589 = vmatprep.mubr.f32.mxu0 %v19834_v2  ;;  %726 = vmatprep.mubr.f32.mxu1 %v19834_v2 }
  0x4a   :  { %10406 = vmatmul.mubr.msk.f32.gmra.mrb[34].mxu0 %vm19832_vm1, %v12908_v19  ;;  %10420 = vmatmul.mubr.msk.f32.gmra.mrb[34].mxu1 %vm19832_vm1, %v12908_v19 }
  0x4b   :  { %595 = vmatprep.mubr.f32.mxu0 %v19834_v2  ;;  %732 = vmatprep.mubr.f32.mxu1 %v19834_v2 }
  0x4e   :  { %10407 = vmatmul.mubr.msk.f32.gmra.mrb[36].mxu0 %vm19832_vm1, %v12921_v20  ;;  %10421 = vmatmul.mubr.msk.f32.gmra.mrb[36].mxu1 %vm19832_vm1, %v12921_v20 }
  0x4f   :  { %601 = vmatprep.mubr.f32.mxu0 %v19834_v2  ;;  %738 = vmatprep.mubr.f32.mxu1 %v19834_v2 }
  0x52   :  { %10408 = vmatmul.mubr.msk.f32.gmra.mrb[38].mxu0 %vm19832_vm1, %v12926_v21  ;;  %10422 = vmatmul.mubr.msk.f32.gmra.mrb[38].mxu1 %vm19832_vm1, %v12926_v21 }
  0x53   :  { %607 = vmatprep.mubr.f32.mxu0 %v19834_v2  ;;  %744 = vmatprep.mubr.f32.mxu1 %v19834_v2 }
  0x56   :  { %10409 = vmatmul.mubr.msk.f32.gmra.mrb[40].mxu0 %vm19832_vm1, %v12939_v22  ;;  %10423 = vmatmul.mubr.msk.f32.gmra.mrb[40].mxu1 %vm19832_vm1, %v12939_v22 }
  0x57   :  { %613 = vmatprep.mubr.f32.mxu0 %v19834_v2  ;;  %750 = vmatprep.mubr.f32.mxu1 %v19834_v2 }
  0x5a   :  { %10410 = vmatmul.mubr.msk.f32.gmra.mrb[42].mxu0 %vm19832_vm1, %v12951_v23  ;;  %10424 = vmatmul.mubr.msk.f32.gmra.mrb[42].mxu1 %vm19832_vm1, %v12951_v23 }
  0x5b   :  { %619 = vmatprep.mubr.f32.mxu0 %v19834_v2  ;;  %756 = vmatprep.mubr.f32.mxu1 %v19834_v2 }
  0x5e   :  { %10411 = vmatmul.mubr.msk.f32.gmra.mrb[44].mxu0 %vm19832_vm1, %v12987_v25  ;;  %10425 = vmatmul.mubr.msk.f32.gmra.mrb[44].mxu1 %vm19832_vm1, %v12987_v25 }
  0x5f   :  { %625 = vmatprep.mubr.f32.mxu0 %v19834_v2  ;;  %762 = vmatprep.mubr.f32.mxu1 %v19834_v2 }
  0x62   :  { %10412 = vmatmul.mubr.msk.f32.gmra.mrb[46].mxu0 %vm19832_vm1, %v12963_v24  ;;  %10426 = vmatmul.mubr.msk.f32.gmra.mrb[46].mxu1 %vm19832_vm1, %v12963_v24 }
  0x63   :  { %833 = vmatprep.mubr.f32.mxu0 %v19834_v2  ;;  %970 = vmatprep.mubr.f32.mxu1 %v19834_v2 }
  0x66   :  { %10429 = vmatmul.mubr.msk.f32.vlgmr.msra.gmra.mrb[48].mxu0 %vm19832_vm1, %v12829_v5  ;;  %10443 = vmatmul.mubr.msk.f32.vlgmr.msra.gmra.mrb[48].mxu1 %vm19832_vm1, %v12829_v5 }
  0x67   :  { %839 = vmatprep.mubr.f32.mxu0 %v19834_v2  ;;  %976 = vmatprep.mubr.f32.mxu1 %v19834_v2 }
  0x68   :  { %10456 = vmatpush1.msk.msra.mxu0 %vm19831_vm0, %v13002_v26  ;;  %10470 = vmatpush1.msk.msra.mxu1 %vm19831_vm0, %v13007_v27 }
  0x69   :  { %10483 = vmatprep.subr.msk.mxu0 %vm19831_vm0, %v123_v32  ;;  %10497 = vmatprep.subr.msk.mxu1 %vm19831_vm0, %v124_v33 }
  0x6a   :  { %10430 = vmatmul.mubr.msk.f32.gmra.mrb[50].mxu0 %vm19832_vm1, %v12869_v14  ;;  %10444 = vmatmul.mubr.msk.f32.gmra.mrb[50].mxu1 %vm19832_vm1, %v12869_v14 }
  0x6b   :  { %845 = vmatprep.mubr.f32.mxu0 %v19834_v2  ;;  %982 = vmatprep.mubr.f32.mxu1 %v19834_v2 }
  0x6e   :  { %10431 = vmatmul.mubr.msk.f32.gmra.mrb[52].mxu0 %vm19832_vm1, %v12834_v6  ;;  %10445 = vmatmul.mubr.msk.f32.gmra.mrb[52].mxu1 %vm19832_vm1, %v12834_v6 }
  0x6f   :  { %851 = vmatprep.mubr.f32.mxu0 %v19834_v2  ;;  %988 = vmatprep.mubr.f32.mxu1 %v19834_v2 }
  0x72   :  { %10432 = vmatmul.mubr.msk.f32.gmra.mrb[54].mxu0 %vm19832_vm1, %v12888_v17  ;;  %10446 = vmatmul.mubr.msk.f32.gmra.mrb[54].mxu1 %vm19832_vm1, %v12888_v17 }
  0x73   :  { %857 = vmatprep.mubr.f32.mxu0 %v19834_v2  ;;  %994 = vmatprep.mubr.f32.mxu1 %v19834_v2 }
  0x76   :  { %10433 = vmatmul.mubr.msk.f32.gmra.mrb[56].mxu0 %vm19832_vm1, %v12903_v18  ;;  %10447 = vmatmul.mubr.msk.f32.gmra.mrb[56].mxu1 %vm19832_vm1, %v12903_v18 }
  0x77   :  { %863 = vmatprep.mubr.f32.mxu0 %v19834_v2  ;;  %1000 = vmatprep.mubr.f32.mxu1 %v19834_v2 }
  0x7a   :  { %10434 = vmatmul.mubr.msk.f32.gmra.mrb[58].mxu0 %vm19832_vm1, %v12908_v19  ;;  %10448 = vmatmul.mubr.msk.f32.gmra.mrb[58].mxu1 %vm19832_vm1, %v12908_v19 }
  0x7b   :  { %869 = vmatprep.mubr.f32.mxu0 %v19834_v2  ;;  %1006 = vmatprep.mubr.f32.mxu1 %v19834_v2 }
  0x7e   :  { %10435 = vmatmul.mubr.msk.f32.gmra.mrb[60].mxu0 %vm19832_vm1, %v12921_v20  ;;  %10449 = vmatmul.mubr.msk.f32.gmra.mrb[60].mxu1 %vm19832_vm1, %v12921_v20 }
  0x7f   :  { %875 = vmatprep.mubr.f32.mxu0 %v19834_v2  ;;  %1012 = vmatprep.mubr.f32.mxu1 %v19834_v2 }
  0x82   :  { %10436 = vmatmul.mubr.msk.f32.gmra.mrb[62].mxu0 %vm19832_vm1, %v12926_v21  ;;  %10450 = vmatmul.mubr.msk.f32.gmra.mrb[62].mxu1 %vm19832_vm1, %v12926_v21  ;;  %v13321_v42 = vpop.permute.xlu0 %41  ;;  %v13340_v51 = vpop.permute.xlu1 %51 }
  0x83   :  { %881 = vmatprep.mubr.f32.mxu0 %v19834_v2  ;;  %1018 = vmatprep.mubr.f32.mxu1 %v19834_v2 }
  0x86   :  { %10437 = vmatmul.mubr.msk.f32.gmra.mrb[64].mxu0 %vm19832_vm1, %v12939_v22  ;;  %10451 = vmatmul.mubr.msk.f32.gmra.mrb[64].mxu1 %vm19832_vm1, %v12939_v22 }
  0x87   :  { %887 = vmatprep.mubr.f32.mxu0 %v19834_v2  ;;  %1024 = vmatprep.mubr.f32.mxu1 %v19834_v2 }
  0x8a   :  { %10438 = vmatmul.mubr.msk.f32.gmra.mrb[66].mxu0 %vm19832_vm1, %v12951_v23  ;;  %10452 = vmatmul.mubr.msk.f32.gmra.mrb[66].mxu1 %vm19832_vm1, %v12951_v23 }
  0x8b   :  { %893 = vmatprep.mubr.f32.mxu0 %v19834_v2  ;;  %1030 = vmatprep.mubr.f32.mxu1 %v19834_v2 }
  0x8c   :  { %v13336_v50 = vpop.permute.xlu0 %46  ;;  %v13374_v29 = vpop.permute.xlu1 %56 }
  0x8d   :  { %20057 = vst [vmem:[#allocation2_spill] sm:$0xff] %v13336_v50 }
  0x8e   :  { %10439 = vmatmul.mubr.msk.f32.gmra.mrb[68].mxu0 %vm19832_vm1, %v12987_v25  ;;  %10453 = vmatmul.mubr.msk.f32.gmra.mrb[68].mxu1 %vm19832_vm1, %v12987_v25 }
  0x8f   :  { %899 = vmatprep.mubr.f32.mxu0 %v19834_v2  ;;  %1036 = vmatprep.mubr.f32.mxu1 %v19834_v2 }
  0x92   :  { %10440 = vmatmul.mubr.msk.f32.gmra.mrb[70].mxu0 %vm19832_vm1, %v12963_v24  ;;  %10454 = vmatmul.mubr.msk.f32.gmra.mrb[70].mxu1 %vm19832_vm1, %v12963_v24 }
  0x93   :  { %1107 = vmatprep.mubr.f32.mxu0 %v19834_v2  ;;  %1244 = vmatprep.mubr.f32.mxu1 %v19834_v2 }
  0x96   :  { %10457 = vmatmul.mubr.msk.f32.vlgmr.msra.gmra.mrb[72].mxu0 %vm19832_vm1, %v12829_v5  ;;  %10471 = vmatmul.mubr.msk.f32.vlgmr.msra.gmra.mrb[72].mxu1 %vm19832_vm1, %v12829_v5 }
  0x97   :  { %1113 = vmatprep.mubr.f32.mxu0 %v19834_v2  ;;  %1250 = vmatprep.mubr.f32.mxu1 %v19834_v2 }
  0x98   :  { %10484 = vmatpush1.msk.msra.mxu0 %vm19831_vm0, %v13094_v30  ;;  %10498 = vmatpush1.msk.msra.mxu1 %vm19831_vm0, %v13099_v31 }
  0x99   :  { %10511 = vmatprep.subr.msk.mxu0 %vm19831_vm0, %v125_v36  ;;  %10525 = vmatprep.subr.msk.mxu1 %vm19831_vm0, %v126_v37 }
  0x9a   :  { %10458 = vmatmul.mubr.msk.f32.gmra.mrb[74].mxu0 %vm19832_vm1, %v12869_v14  ;;  %10472 = vmatmul.mubr.msk.f32.gmra.mrb[74].mxu1 %vm19832_vm1, %v12869_v14 }
  0x9b   :  { %1119 = vmatprep.mubr.f32.mxu0 %v19834_v2  ;;  %1256 = vmatprep.mubr.f32.mxu1 %v19834_v2 }
  0x9e   :  { %10459 = vmatmul.mubr.msk.f32.gmra.mrb[76].mxu0 %vm19832_vm1, %v12834_v6  ;;  %10473 = vmatmul.mubr.msk.f32.gmra.mrb[76].mxu1 %vm19832_vm1, %v12834_v6 }
  0x9f   :  { %1125 = vmatprep.mubr.f32.mxu0 %v19834_v2  ;;  %1262 = vmatprep.mubr.f32.mxu1 %v19834_v2 }
  0xa2   :  { %10460 = vmatmul.mubr.msk.f32.gmra.mrb[78].mxu0 %vm19832_vm1, %v12888_v17  ;;  %10474 = vmatmul.mubr.msk.f32.gmra.mrb[78].mxu1 %vm19832_vm1, %v12888_v17 }
  0xa3   :  { %1131 = vmatprep.mubr.f32.mxu0 %v19834_v2  ;;  %1268 = vmatprep.mubr.f32.mxu1 %v19834_v2 }
  0xa6   :  { %10461 = vmatmul.mubr.msk.f32.gmra.mrb[80].mxu0 %vm19832_vm1, %v12903_v18  ;;  %10475 = vmatmul.mubr.msk.f32.gmra.mrb[80].mxu1 %vm19832_vm1, %v12903_v18 }
  0xa7   :  { %1137 = vmatprep.mubr.f32.mxu0 %v19834_v2  ;;  %1274 = vmatprep.mubr.f32.mxu1 %v19834_v2 }
  0xaa   :  { %10462 = vmatmul.mubr.msk.f32.gmra.mrb[82].mxu0 %vm19832_vm1, %v12908_v19  ;;  %10476 = vmatmul.mubr.msk.f32.gmra.mrb[82].mxu1 %vm19832_vm1, %v12908_v19 }
  0xab   :  { %1143 = vmatprep.mubr.f32.mxu0 %v19834_v2  ;;  %1280 = vmatprep.mubr.f32.mxu1 %v19834_v2 }
  0xae   :  { %10463 = vmatmul.mubr.msk.f32.gmra.mrb[84].mxu0 %vm19832_vm1, %v12921_v20  ;;  %10477 = vmatmul.mubr.msk.f32.gmra.mrb[84].mxu1 %vm19832_vm1, %v12921_v20 }
  0xaf   :  { %1149 = vmatprep.mubr.f32.mxu0 %v19834_v2  ;;  %1286 = vmatprep.mubr.f32.mxu1 %v19834_v2 }
  0xb2   :  { %10464 = vmatmul.mubr.msk.f32.gmra.mrb[86].mxu0 %vm19832_vm1, %v12926_v21  ;;  %10478 = vmatmul.mubr.msk.f32.gmra.mrb[86].mxu1 %vm19832_vm1, %v12926_v21 }
  0xb3   :  { %1155 = vmatprep.mubr.f32.mxu0 %v19834_v2  ;;  %1292 = vmatprep.mubr.f32.mxu1 %v19834_v2 }
  0xb6   :  { %10465 = vmatmul.mubr.msk.f32.gmra.mrb[88].mxu0 %vm19832_vm1, %v12939_v22  ;;  %10479 = vmatmul.mubr.msk.f32.gmra.mrb[88].mxu1 %vm19832_vm1, %v12939_v22 }
  0xb7   :  { %1161 = vmatprep.mubr.f32.mxu0 %v19834_v2  ;;  %1298 = vmatprep.mubr.f32.mxu1 %v19834_v2 }
  0xba   :  { %10466 = vmatmul.mubr.msk.f32.gmra.mrb[90].mxu0 %vm19832_vm1, %v12951_v23  ;;  %10480 = vmatmul.mubr.msk.f32.gmra.mrb[90].mxu1 %vm19832_vm1, %v12951_v23 }
  0xbb   :  { %1167 = vmatprep.mubr.f32.mxu0 %v19834_v2  ;;  %1304 = vmatprep.mubr.f32.mxu1 %v19834_v2 }
  0xbe   :  { %10467 = vmatmul.mubr.msk.f32.gmra.mrb[92].mxu0 %vm19832_vm1, %v12987_v25  ;;  %10481 = vmatmul.mubr.msk.f32.gmra.mrb[92].mxu1 %vm19832_vm1, %v12987_v25 }
  0xbf   :  { %1173 = vmatprep.mubr.f32.mxu0 %v19834_v2  ;;  %1310 = vmatprep.mubr.f32.mxu1 %v19834_v2 }
  0xc2   :  { %10468 = vmatmul.mubr.msk.f32.gmra.mrb[94].mxu0 %vm19832_vm1, %v12963_v24  ;;  %10482 = vmatmul.mubr.msk.f32.gmra.mrb[94].mxu1 %vm19832_vm1, %v12963_v24 }
  0xc3   :  { %1381 = vmatprep.mubr.f32.mxu0 %v19834_v2  ;;  %1518 = vmatprep.mubr.f32.mxu1 %v19834_v2 }
  0xc6   :  { %10485 = vmatmul.mubr.msk.f32.vlgmr.msra.gmra.mrb[96].mxu0 %vm19832_vm1, %v12829_v5  ;;  %10499 = vmatmul.mubr.msk.f32.vlgmr.msra.gmra.mrb[96].mxu1 %vm19832_vm1, %v12829_v5 }
  0xc7   :  { %1387 = vmatprep.mubr.f32.mxu0 %v19834_v2  ;;  %1524 = vmatprep.mubr.f32.mxu1 %v19834_v2 }
  0xc8   :  { %10512 = vmatpush1.msk.msra.mxu0 %vm19831_vm0, %v13186_v34  ;;  %10526 = vmatpush1.msk.msra.mxu1 %vm19831_vm0, %v13191_v35 }
  0xc9   :  { %10539 = vmatprep.subr.msk.mxu0 %vm19831_vm0, %v127_v40  ;;  %10553 = vmatprep.subr.msk.mxu1 %vm19831_vm0, %v128_v41 }
  0xca   :  { %10486 = vmatmul.mubr.msk.f32.gmra.mrb[98].mxu0 %vm19832_vm1, %v12869_v14  ;;  %10500 = vmatmul.mubr.msk.f32.gmra.mrb[98].mxu1 %vm19832_vm1, %v12869_v14 }
  0xcb   :  { %1393 = vmatprep.mubr.f32.mxu0 %v19834_v2  ;;  %1530 = vmatprep.mubr.f32.mxu1 %v19834_v2 }
  0xce   :  { %10487 = vmatmul.mubr.msk.f32.gmra.mrb[100].mxu0 %vm19832_vm1, %v12834_v6  ;;  %10501 = vmatmul.mubr.msk.f32.gmra.mrb[100].mxu1 %vm19832_vm1, %v12834_v6 }
  0xcf   :  { %1399 = vmatprep.mubr.f32.mxu0 %v19834_v2  ;;  %1536 = vmatprep.mubr.f32.mxu1 %v19834_v2 }
  0xd2   :  { %10488 = vmatmul.mubr.msk.f32.gmra.mrb[102].mxu0 %vm19832_vm1, %v12888_v17  ;;  %10502 = vmatmul.mubr.msk.f32.gmra.mrb[102].mxu1 %vm19832_vm1, %v12888_v17 }
  0xd3   :  { %1405 = vmatprep.mubr.f32.mxu0 %v19834_v2  ;;  %1542 = vmatprep.mubr.f32.mxu1 %v19834_v2 }
  0xd6   :  { %10489 = vmatmul.mubr.msk.f32.gmra.mrb[104].mxu0 %vm19832_vm1, %v12903_v18  ;;  %10503 = vmatmul.mubr.msk.f32.gmra.mrb[104].mxu1 %vm19832_vm1, %v12903_v18 }
  0xd7   :  { %1411 = vmatprep.mubr.f32.mxu0 %v19834_v2  ;;  %1548 = vmatprep.mubr.f32.mxu1 %v19834_v2 }
  0xd9   :  { %v287_v43 = vpop.f32.mrb[0].mxu0  ;;  %v424_v44 = vpop.f32.mrb[0].mxu1 }
  0xda   :  { %v288_v45 = vadd.f32 %v287_v43, %v13321_v42  ;;  %v425_v46 = vadd.f32 %v424_v44, %v13321_v42  ;;  %v289_v47 = vpop.f32.mrb[1].mxu0  ;;  %v426_v48 = vpop.f32.mrb[1].mxu1  ;;  %10490 = vmatmul.mubr.msk.f32.gmra.mrb[106].mxu0 %vm19832_vm1, %v12908_v19  ;;  %10504 = vmatmul.mubr.msk.f32.gmra.mrb[106].mxu1 %vm19832_vm1, %v12908_v19 }
  0xdb   :  { %v290_v49 = vadd.f32 %v289_v47, %v13321_v42  ;;  %1417 = vmatprep.mubr.f32.mxu0 %v19834_v2  ;;  %1554 = vmatprep.mubr.f32.mxu1 %v19834_v2  ;;  %v427_v53 = vadd.f32 %v426_v48, %v13321_v42 }
  0xdc   :  { %v2413_v52 = vmax.f32 %v288_v45, 0.0  ;;  %vm2669_vm2 = vcmp.gt.f32.partialorder %v288_v45, 0.0  ;;  %v2415_v56 = vmax.f32 %v425_v46, 0.0  ;;  %vm2671_vm3 = vcmp.gt.f32.partialorder %v425_v46, 0.0 }
  0xdd   :  { %v293_v54 = vpop.f32.mrb[2].mxu0  ;;  %v430_v55 = vpop.f32.mrb[2].mxu1  ;;  %v2414_v61 = vmax.f32 %v290_v49, 0.0  ;;  %vm2670_vm4 = vcmp.gt.f32.partialorder %v290_v49, 0.0  ;;  %vm2672_vm11 = vcmp.gt.f32.partialorder %v427_v53, 0.0  ;;  %v2416_v32 = vmax.f32 %v427_v53, 0.0 }
  0xde   :  { %v294_v57 = vadd.f32 %v293_v54, %v13336_v50  ;;  %v431_v58 = vadd.f32 %v430_v55, %v13336_v50  ;;  %v295_v59 = vpop.f32.mrb[3].mxu0  ;;  %v432_v60 = vpop.f32.mrb[3].mxu1  ;;  %10491 = vmatmul.mubr.msk.f32.gmra.mrb[108].mxu0 %vm19832_vm1, %v12921_v20  ;;  %10505 = vmatmul.mubr.msk.f32.gmra.mrb[108].mxu1 %vm19832_vm1, %v12921_v20  ;;  %v20066_v55 = vmov 0 }
  0xdf   :  { %v296_v62 = vadd.f32 %v295_v59, %v13336_v50  ;;  %v433_v63 = vadd.f32 %v432_v60, %v13336_v50  ;;  %1423 = vmatprep.mubr.f32.mxu0 %v19834_v2  ;;  %1560 = vmatprep.mubr.f32.mxu1 %v19834_v2 }
  0xe0   :  { %v2445_v0 = vmax.f32 %v294_v57, 0.0  ;;  %vm2701_vm5 = vcmp.gt.f32.partialorder %v294_v57, 0.0  ;;  %v2447_v1 = vmax.f32 %v431_v58, 0.0  ;;  %vm2703_vm6 = vcmp.gt.f32.partialorder %v431_v58, 0.0 }
  0xe1   :  { %vm13354_vm7 = vmpackc.low %vm2701_vm5, %vm2669_vm2  ;;  %v2446_v4 = vmax.f32 %v296_v62, 0.0  ;;  %vm2702_vm8 = vcmp.gt.f32.partialorder %v296_v62, 0.0  ;;  %v2448_v8 = vmax.f32 %v433_v63, 0.0  ;;  %vm2704_vm9 = vcmp.gt.f32.partialorder %v433_v63, 0.0  ;;  %v299_v9 = vpop.f32.mrb[4].mxu0  ;;  %v436_v10 = vpop.f32.mrb[4].mxu1 }
  0xe2   :  { %v13358_v11 = vpack.c.bf16 %v2445_v0, %v2413_v52  ;;  %v13360_v12 = vpack.c.bf16 %v2447_v1, %v2415_v56  ;;  %vm13363_vm10 = vmpackc.low %vm2703_vm6, %vm2671_vm3  ;;  %v300_v15 = vadd.f32 %v299_v9, %v13340_v51  ;;  %v437_v16 = vadd.f32 %v436_v10, %v13340_v51  ;;  %v301_v26 = vpop.f32.mrb[5].mxu0  ;;  %v438_v27 = vpop.f32.mrb[5].mxu1  ;;  %10492 = vmatmul.mubr.msk.f32.gmra.mrb[110].mxu0 %vm19832_vm1, %v12926_v21 }
  0xe3   :  { %v302_v28 = vadd.f32 %v301_v26, %v13340_v51  ;;  %10506 = vmatmul.mubr.msk.f32.gmra.mrb[110].mxu1 %vm19832_vm1, %v12926_v21  ;;  %1429 = vmatprep.mubr.f32.mxu0 %v19834_v2  ;;  %v13377_v30 = vpack.c.bf16 %v2446_v4, %v2414_v61  ;;  %vm13381_vm12 = vmpackc.low %vm2702_vm8, %vm2670_vm4  ;;  %v439_v36 = vadd.f32 %v438_v27, %v13340_v51  ;;  %v13402_v52 = vpop.permute.xlu0 %61  ;;  %v20068_v61 = vmov 0 }
  0xe4   :  { %1566 = vmatprep.mubr.f32.mxu1 %v19834_v2  ;;  %vm13387_vm13 = vmpackc.low %vm2704_vm9, %vm2672_vm11  ;;  %v2477_v34 = vmax.f32 %v300_v15, 0.0  ;;  %vm2733_vm14 = vcmp.gt.f32.partialorder %v300_v15, 0.0  ;;  %v2479_v35 = vmax.f32 %v437_v16, 0.0  ;;  %vm2735_vm15 = vcmp.gt.f32.partialorder %v437_v16, 0.0 }
  0xe5   :  { %v305_v37 = vpop.f32.mrb[6].mxu0  ;;  %v442_v40 = vpop.f32.mrb[6].mxu1  ;;  %v13396_v46 = vpack.c.bf16 %v2448_v8, %v2416_v32  ;;  %v2478_v47 = vmax.f32 %v302_v28, 0.0  ;;  %vm2734_vm2 = vcmp.gt.f32.partialorder %v302_v28, 0.0  ;;  %vm2736_vm11 = vcmp.gt.f32.partialorder %v439_v36, 0.0 }
  0xe6   :  { %v306_v41 = vadd.f32 %v305_v37, %v13374_v29  ;;  %v443_v43 = vadd.f32 %v442_v40, %v13374_v29  ;;  %v307_v44 = vpop.f32.mrb[7].mxu0  ;;  %v444_v45 = vpop.f32.mrb[7].mxu1  ;;  %10493 = vmatmul.mubr.msk.f32.gmra.mrb[112].mxu0 %vm19832_vm1, %v12939_v22  ;;  %v2480_v15 = vmax.f32 %v439_v36, 0.0  ;;  %v20072_v16 = vmov 0 }
  0xe7   :  { %v308_v48 = vadd.f32 %v307_v44, %v13374_v29  ;;  %v445_v49 = vadd.f32 %v444_v45, %v13374_v29  ;;  %10507 = vmatmul.mubr.msk.f32.gmra.mrb[112].mxu1 %vm19832_vm1, %v12939_v22  ;;  %1435 = vmatprep.mubr.f32.mxu0 %v19834_v2  ;;  %v13427_v8 = vpop.permute.xlu1 %66  ;;  %v13457_v45 = vpop.permute.xlu0 %71 }
  0xe8   :  { %v2509_v53 = vmax.f32 %v306_v41, 0.0  ;;  %vm2765_vm3 = vcmp.gt.f32.partialorder %v306_v41, 0.0  ;;  %v2511_v54 = vmax.f32 %v443_v43, 0.0  ;;  %vm2767_vm4 = vcmp.gt.f32.partialorder %v443_v43, 0.0  ;;  %1572 = vmatprep.mubr.f32.mxu1 %v19834_v2 }
  0xe9   :  { %vm13407_vm5 = vmpackc.low %vm2765_vm3, %vm2733_vm14  ;;  %v2510_v56 = vmax.f32 %v308_v48, 0.0  ;;  %vm2766_vm6 = vcmp.gt.f32.partialorder %v308_v48, 0.0  ;;  %v2512_v57 = vmax.f32 %v445_v49, 0.0  ;;  %vm2768_vm8 = vcmp.gt.f32.partialorder %v445_v49, 0.0  ;;  %v311_v22 = vpop.f32.mrb[8].mxu0  ;;  %v448_v58 = vpop.f32.mrb[8].mxu1 }
  0xea   :  { %v20067_v55 = vsel %vm13407_vm5, 4294967295, %v20066_v55  ;;  %v13411_v59 = vpack.c.bf16 %v2509_v53, %v2477_v34  ;;  %v13413_v60 = vpack.c.bf16 %v2511_v54, %v2479_v35  ;;  %vm13416_vm9 = vmpackc.low %vm2767_vm4, %vm2735_vm15  ;;  %v312_v62 = vadd.f32 %v311_v22, %v13402_v52  ;;  %v313_v0 = vpop.f32.mrb[9].mxu0  ;;  %v450_v1 = vpop.f32.mrb[9].mxu1  ;;  %10494 = vmatmul.mubr.msk.f32.gmra.mrb[114].mxu0 %vm19832_vm1, %v12951_v23  ;;  %v13464_v49 = vld [vmem:[%s19828_s0 + $0x70] sm:$0x77] }
  0xeb   :  { %v20069_v61 = vsel %vm13416_vm9, 4294967295, %v20068_v61  ;;  %v449_v63 = vadd.f32 %v448_v58, %v13402_v52  ;;  %v314_v4 = vadd.f32 %v313_v0, %v13402_v52  ;;  %10508 = vmatmul.mubr.msk.f32.gmra.mrb[114].mxu1 %vm19832_vm1, %v12951_v23  ;;  %1441 = vmatprep.mubr.f32.mxu0 %v19834_v2  ;;  %v13430_v9 = vpack.c.bf16 %v2510_v56, %v2478_v47  ;;  %vm13434_vm14 = vmpackc.low %vm2766_vm6, %vm2734_vm2 }
  0xec   :  { %1578 = vmatprep.mubr.f32.mxu1 %v19834_v2  ;;  %vm13440_vm15 = vmpackc.low %vm2768_vm8, %vm2736_vm11  ;;  %v2541_v23 = vmax.f32 %v312_v62, 0.0  ;;  %vm2797_vm3 = vcmp.gt.f32.partialorder %v312_v62, 0.0  ;;  %v13445_v27 = vadd.f32 %v450_v1, %v13402_v52  ;;  %v13451_v40 = vpack.c.bf16 %v2512_v57, %v2480_v15 }
  0xed   :  { %v20073_v16 = vsel %vm13440_vm15, 4294967295, %v20072_v16  ;;  %v2543_v26 = vmax.f32 %v449_v63, 0.0  ;;  %v317_v28 = vpop.f32.mrb[10].mxu0  ;;  %v454_v32 = vpop.f32.mrb[10].mxu1  ;;  %vm2799_vm2 = vcmp.gt.f32.partialorder %v449_v63, 0.0  ;;  %v2542_v41 = vmax.f32 %v314_v4, 0.0 }
  0xee   :  { %v318_v34 = vadd.f32 %v317_v28, %v13427_v8  ;;  %v455_v35 = vadd.f32 %v454_v32, %v13427_v8  ;;  %v319_v36 = vpop.f32.mrb[11].mxu0  ;;  %v456_v37 = vpop.f32.mrb[11].mxu1  ;;  %10495 = vmatmul.mubr.msk.f32.gmra.mrb[116].mxu0 %vm19832_vm1, %v12987_v25  ;;  %v20074_v53 = vmov 0  ;;  %v20077_v0 = vmov 0 }
  0xef   :  { %v320_v43 = vadd.f32 %v319_v36, %v13427_v8  ;;  %v457_v44 = vadd.f32 %v456_v37, %v13427_v8  ;;  %10509 = vmatmul.mubr.msk.f32.gmra.mrb[116].mxu1 %vm19832_vm1, %v12987_v25  ;;  %1447 = vmatprep.mubr.f32.mxu0 %v19834_v2  ;;  %v13494_v32 = vpop.permute.xlu1 %76  ;;  %v2544_v36 = vmax.f32 %v13445_v27, 0.0  ;;  %v129_v37 = vcombine.high %v13464_v49, %v13464_v49 }
  0xf0   :  { %v2573_v47 = vmax.f32 %v318_v34, 0.0  ;;  %vm2829_vm6 = vcmp.gt.f32.partialorder %v318_v34, 0.0  ;;  %v2575_v48 = vmax.f32 %v455_v35, 0.0  ;;  %vm2831_vm8 = vcmp.gt.f32.partialorder %v455_v35, 0.0  ;;  %1584 = vmatprep.mubr.f32.mxu1 %v19834_v2 }
  0xf1   :  { %vm13467_vm11 = vmpackc.low %vm2829_vm6, %vm2797_vm3  ;;  %v2574_v25 = vmax.f32 %v320_v43, 0.0  ;;  %vm2830_vm0 = vcmp.gt.f32.partialorder %v320_v43, 0.0  ;;  %v2576_v54 = vmax.f32 %v457_v44, 0.0  ;;  %vm2832_vm4 = vcmp.gt.f32.partialorder %v457_v44, 0.0  ;;  %v323_v56 = vpop.f32.mrb[12].mxu0  ;;  %v460_v57 = vpop.f32.mrb[12].mxu1 }
  0xf2   :  { %v20075_v53 = vsel %vm13467_vm11, 4294967295, %v20074_v53  ;;  %v13471_v22 = vpack.c.bf16 %v2573_v47, %v2541_v23  ;;  %v13473_v58 = vpack.c.bf16 %v2575_v48, %v2543_v26  ;;  %vm13476_vm1 = vmpackc.low %vm2831_vm8, %vm2799_vm2  ;;  %v324_v62 = vadd.f32 %v323_v56, %v13457_v45  ;;  %v325_v15 = vpop.f32.mrb[13].mxu0  ;;  %v462_v28 = vpop.f32.mrb[13].mxu1  ;;  %v13487_v23 = vld [vmem:[%s19828_s0 + $0x78] sm:$0x77] }
  0xf3   :  { %20076 = vst [vmem:[#allocation3_spill] sm:$0xff] %v20075_v53  ;;  %v20078_v0 = vsel %vm13476_vm1, 4294967295, %v20077_v0  ;;  %v461_v1 = vadd.f32 %v460_v57, %v13457_v45  ;;  %vm20080_vm3 = vcmask 23552   ;;  %vm2800_vm6 = vcmp.gt.f32.partialorder %v13445_v27, 0.0 }
  0xf4   :  { %20079 = vst [vmem:[#allocation4_spill] sm:$0xff] %v20078_v0  ;;  %10496 = vmatmul.mubr.msk.f32.gmra.mrb[118].mxu0 %vm20080_vm3, %v12963_v24  ;;  %v326_v63 = vadd.f32 %v325_v15, %v13457_v45  ;;  %v463_v26 = vadd.f32 %v462_v28, %v13457_v45  ;;  %vm20081_vm2 = vmmov %vm20080_vm3  ;;  %v13497_v34 = vpack.c.bf16 %v2574_v25, %v2542_v41  ;;  %vm20082_vm8 = vcmp.gt.f32.partialorder %v314_v4, 0.0 }
  0xf5   :  { %10510 = vmatmul.mubr.msk.f32.gmra.mrb[118].mxu1 %vm20081_vm2, %v12963_v24  ;;  %1655 = vmatprep.mubr.f32.mxu0 %v19834_v2  ;;  %vm13501_vm3 = vmpackc.low %vm2830_vm0, %vm20082_vm8  ;;  %v20083_v35 = vmov 0  ;;  %v20085_v24 = vmov 0  ;;  %v2605_v41 = vmax.f32 %v324_v62, 0.0  ;;  %vm2861_vm1 = vcmp.gt.f32.partialorder %v324_v62, 0.0  ;;  %v329_v43 = vpop.f32.mrb[14].mxu0  ;;  %v466_v47 = vpop.f32.mrb[14].mxu1 }
  0xf6   :  { %v20084_v35 = vsel %vm13501_vm3, 4294967295, %v20083_v35  ;;  %1792 = vmatprep.mubr.f32.mxu1 %v19834_v2  ;;  %vm13510_vm2 = vmpackc.low %vm2832_vm4, %vm2800_vm6  ;;  %v2607_v4 = vmax.f32 %v461_v1, 0.0  ;;  %v130_v48 = vcombine.high %v13487_v23, %v13487_v23  ;;  %v330_v27 = vadd.f32 %v329_v43, %v13494_v32  ;;  %v331_v56 = vpop.f32.mrb[15].mxu0  ;;  %v468_v57 = vpop.f32.mrb[15].mxu1 }
  0xf7   :  { %v20086_v24 = vsel %vm13510_vm2, 4294967295, %v20085_v24  ;;  %v467_v25 = vadd.f32 %v466_v47, %v13494_v32  ;;  %vm20087_vm4 = vcmask 23552   ;;  %v13520_v44 = vpack.c.bf16 %v2576_v54, %v2544_v36 }
  0xf8   :  { %10513 = vmatmul.mubr.msk.f32.vlgmr.msra.gmra.mrb[120].mxu0 %vm20087_vm4, %v12829_v5  ;;  %v2606_v15 = vmax.f32 %v326_v63, 0.0  ;;  %v2608_v28 = vmax.f32 %v463_v26, 0.0  ;;  %v332_v7 = vadd.f32 %v331_v56, %v13494_v32  ;;  %v469_v2 = vadd.f32 %v468_v57, %v13494_v32  ;;  %vm20088_vm6 = vmmov %vm20087_vm4 }
  0xf9   :  { %10527 = vmatmul.mubr.msk.f32.vlgmr.msra.gmra.mrb[120].mxu1 %vm20088_vm6, %v12829_v5  ;;  %v20089_v0 = vmov 0.0   ;;  %v2637_v43 = vmax.f32 %v330_v27, 0.0  ;;  %vm2893_vm8 = vcmp.gt.f32.partialorder %v330_v27, 0.0  ;;  %v2639_v47 = vmax.f32 %v467_v25, 0.0 }
  0xfa   :  { %1661 = vmatprep.mubr.f32.mxu0 %v20089_v0  ;;  %vm2895_vm0 = vcmp.gt.f32.partialorder %v467_v25, 0.0  ;;  %1798 = vmatprep.mubr.f32.mxu1 %v20089_v0  ;;  %vm20090_vm4 = vcmask 1042432   ;;  %vm13531_vm11 = vmpackc.low %vm2893_vm8, %vm2861_vm1  ;;  %v20091_v54 = vmov 0  ;;  %v2638_v36 = vmax.f32 %v332_v7, 0.0 }
  0xfb   :  { %10540 = vmatpush1.msk.msra.mxu0 %vm20090_vm4, %v13278_v38  ;;  %v20092_v54 = vsel %vm13531_vm11, 4294967295, %v20091_v54  ;;  %vm2894_vm2 = vcmp.gt.f32.partialorder %v332_v7, 0.0  ;;  %v2640_v56 = vmax.f32 %v469_v2, 0.0  ;;  %vm20094_vm3 = vmmov %vm20090_vm4  ;;  %vm2862_vm5 = vcmp.gt.f32.partialorder %v326_v63, 0.0 }
  0xfc   :  { %20093 = vst [vmem:[#allocation5_spill] sm:$0xff] %v20092_v54  ;;  %10554 = vmatpush1.msk.msra.mxu1 %vm20094_vm3, %v13283_v39  ;;  %vm20095_vm9 = vmmov %vm20094_vm3  ;;  %v13538_v5 = vpack.c.bf16 %v2637_v43, %v2605_v41  ;;  %v13540_v27 = vpack.c.bf16 %v2639_v47, %v2607_v4  ;;  %vm20096_vm4 = vcmp.gt.f32.partialorder %v461_v1, 0.0  ;;  %v20097_v38 = vmov 0  ;;  %v13684_v54 = vld [vmem:[%s19829_s1 + $0x48] sm:$0xff] }
  0xfd   :  { %10567 = vmatprep.subr.msk.mxu0 %vm20095_vm9, %v129_v37  ;;  %vm13543_vm15 = vmpackc.low %vm2895_vm0, %vm20096_vm4  ;;  %v13553_v39 = vpack.c.bf16 %v2638_v36, %v2606_v15  ;;  %v13555_v62 = vpack.c.bf16 %v2640_v56, %v2608_v28  ;;  %v20103_v1 = vmov 0  ;;  %vm20106_vm0 = vcmp.gt.f32.partialorder %v469_v2, 0.0 }
  0xfe   :  { %v20098_v38 = vsel %vm13543_vm15, 4294967295, %v20097_v38  ;;  %vm20100_vm1 = vmmov %vm20088_vm6  ;;  %vm2864_vm6 = vcmp.gt.f32.partialorder %v463_v26, 0.0  ;;  %v20107_v63 = vmov 0 }
  0xff   :  { %20099 = vst [vmem:[#allocation6_spill] sm:$0xff] %v20098_v38  ;;  %10514 = vmatmul.mubr.msk.f32.gmra.mrb[122].mxu0 %vm20100_vm1, %v12869_v14  ;;  %vm20101_vm8 = vmmov %vm20094_vm3 }
 0x100   :  { %10581 = vmatprep.subr.msk.mxu1 %vm20101_vm8, %v130_v48  ;;  %vm20102_vm3 = vmmov %vm20100_vm1  ;;  %1667 = vmatprep.mubr.f32.mxu0 %v20089_v0 }
 0x101   :  { %10528 = vmatmul.mubr.msk.f32.gmra.mrb[122].mxu1 %vm20102_vm3, %v12869_v14  ;;  %vm13558_vm9 = vmpackc.low %vm2894_vm2, %vm2862_vm5 }
 0x102   :  { %v20104_v1 = vsel %vm13558_vm9, 4294967295, %v20103_v1  ;;  %1804 = vmatprep.mubr.f32.mxu1 %v20089_v0  ;;  %vm13564_vm4 = vmpackc.low %vm20106_vm0, %vm2864_vm6 }
 0x103   :  { %20105 = vst [vmem:[#allocation7_spill] sm:$0xff] %v20104_v1  ;;  %v20108_v63 = vsel %vm13564_vm4, 4294967295, %v20107_v63  ;;  %10515 = vmatmul.mubr.msk.f32.gmra.mrb[124].mxu0 %vm20100_vm1, %v12834_v6  ;;  %vm20110_vm8 = vmmov %vm20100_vm1  ;;  %v13743_v1 = vld [vmem:[%s19829_s1 + $0x58] sm:$0xff] }
 0x104   :  { %20109 = vst [vmem:[#allocation8_spill] sm:$0xff] %v20108_v63  ;;  %1673 = vmatprep.mubr.f32.mxu0 %v20089_v0  ;;  %vm20111_vm5 = vmmov %vm20100_vm1 }
 0x105   :  { %10529 = vmatmul.mubr.msk.f32.gmra.mrb[124].mxu1 %vm20110_vm8, %v12834_v6  ;;  %vm20112_vm2 = vmmov %vm20100_vm1 }
 0x106   :  { %1810 = vmatprep.mubr.f32.mxu1 %v20089_v0  ;;  %vm20113_vm6 = vmmov %vm20100_vm1 }
 0x107   :  { %10516 = vmatmul.mubr.msk.f32.gmra.mrb[126].mxu0 %vm20111_vm5, %v12888_v17  ;;  %vm20114_vm3 = vmmov %vm20100_vm1 }
 0x108   :  { %1679 = vmatprep.mubr.f32.mxu0 %v20089_v0  ;;  %vm20115_vm0 = vmmov %vm20100_vm1 }
 0x109   :  { %10530 = vmatmul.mubr.msk.f32.gmra.mrb[126].mxu1 %vm20112_vm2, %v12888_v17  ;;  %v561_v2 = vpop.f32.mrb[24].mxu0  ;;  %v698_v6 = vpop.f32.mrb[24].mxu1  ;;  %vm20116_vm1 = vmmov %vm20115_vm0 }
 0x10a   :  { %1816 = vmatprep.mubr.f32.mxu1 %v20089_v0  ;;  %v562_v7 = vadd.f32 %v561_v2, %v13321_v42  ;;  %v699_v14 = vadd.f32 %v698_v6, %v13321_v42  ;;  %v563_v17 = vpop.f32.mrb[25].mxu0  ;;  %v700_v26 = vpop.f32.mrb[25].mxu1  ;;  %vm20117_vm2 = vmmov %vm20115_vm0  ;;  %v20119_v6 = vmov 0 }
 0x10b   :  { %10517 = vmatmul.mubr.msk.f32.gmra.mrb[128].mxu0 %vm20113_vm6, %v12903_v18  ;;  %v564_v37 = vadd.f32 %v563_v17, %v13321_v42  ;;  %v701_v41 = vadd.f32 %v700_v26, %v13321_v42 }
 0x10c   :  { %1685 = vmatprep.mubr.f32.mxu0 %v20089_v0  ;;  %vm2673_vm8 = vcmp.gt.f32.partialorder %v562_v7, 0.0  ;;  %v2419_v25 = vmax.f32 %v699_v14, 0.0 }
 0x10d   :  { %10531 = vmatmul.mubr.msk.f32.gmra.mrb[128].mxu1 %vm20114_vm3, %v12903_v18  ;;  %v2417_v18 = vmax.f32 %v562_v7, 0.0  ;;  %v567_v4 = vpop.f32.mrb[26].mxu0  ;;  %v704_v48 = vpop.f32.mrb[26].mxu1  ;;  %vm20118_vm3 = vmmov %vm20115_vm0 }
 0x10e   :  { %1822 = vmatprep.mubr.f32.mxu1 %v20089_v0  ;;  %v568_v57 = vadd.f32 %v567_v4, %v13336_v50  ;;  %v705_v15 = vadd.f32 %v704_v48, %v13336_v50  ;;  %v569_v28 = vpop.f32.mrb[27].mxu0  ;;  %v706_v43 = vpop.f32.mrb[27].mxu1 }
 0x10f   :  { %10518 = vmatmul.mubr.msk.f32.gmra.mrb[130].mxu0 %vm20115_vm0, %v12908_v19  ;;  %v570_v47 = vadd.f32 %v569_v28, %v13336_v50  ;;  %v707_v36 = vadd.f32 %v706_v43, %v13336_v50 }
 0x110   :  { %1691 = vmatprep.mubr.f32.mxu0 %v20089_v0  ;;  %v2449_v56 = vmax.f32 %v568_v57, 0.0  ;;  %vm2705_vm0 = vcmp.gt.f32.partialorder %v568_v57, 0.0  ;;  %v2451_v2 = vmax.f32 %v705_v15, 0.0  ;;  %v20125_v57 = vmov 0 }
 0x111   :  { %10532 = vmatmul.mubr.msk.f32.gmra.mrb[130].mxu1 %vm20116_vm1, %v12908_v19  ;;  %v2418_v19 = vmax.f32 %v564_v37, 0.0  ;;  %vm2707_vm1 = vcmp.gt.f32.partialorder %v705_v15, 0.0  ;;  %vm13607_vm5 = vmpackc.low %vm2705_vm0, %vm2673_vm8  ;;  %v2450_v17 = vmax.f32 %v570_v47, 0.0  ;;  %v2452_v26 = vmax.f32 %v707_v36, 0.0  ;;  %v573_v4 = vpop.f32.mrb[28].mxu0  ;;  %v710_v48 = vpop.f32.mrb[28].mxu1 }
 0x112   :  { %1828 = vmatprep.mubr.f32.mxu1 %v20089_v0  ;;  %v20120_v6 = vsel %vm13607_vm5, 4294967295, %v20119_v6  ;;  %v13613_v28 = vpack.c.bf16 %v2451_v2, %v2419_v25  ;;  %v574_v7 = vadd.f32 %v573_v4, %v13340_v51  ;;  %v711_v15 = vadd.f32 %v710_v48, %v13340_v51  ;;  %v575_v43 = vpop.f32.mrb[29].mxu0  ;;  %vm20128_vm8 = vmmov %vm20113_vm6 }
 0x113   :  { %10519 = vmatmul.mubr.msk.f32.gmra.mrb[132].mxu0 %vm20117_vm2, %v12921_v20  ;;  %20121 = vst [vmem:[#allocation9_spill] sm:$0xff] %v20120_v6  ;;  %vm2706_vm2 = vcmp.gt.f32.partialorder %v570_v47, 0.0  ;;  %v712_v6 = vpop.f32.mrb[29].mxu1  ;;  %vm2676_vm0 = vcmp.gt.f32.partialorder %v701_v41, 0.0  ;;  %v13633_v25 = vpack.c.bf16 %v2450_v17, %v2418_v19  ;;  %v20136_v2 = vmov 0 }
 0x114   :  { %1697 = vmatprep.mubr.f32.mxu0 %v20089_v0  ;;  %20123 = vst [vmem:[#allocation11_spill] sm:$0xff] %v13613_v28  ;;  %v2481_v4 = vmax.f32 %v574_v7, 0.0  ;;  %v2483_v48 = vmax.f32 %v711_v15, 0.0  ;;  %v713_v19 = vadd.f32 %v712_v6, %v13340_v51 }
 0x115   :  { %10533 = vmatmul.mubr.msk.f32.gmra.mrb[132].mxu1 %vm20118_vm3, %v12921_v20  ;;  %v13611_v20 = vpack.c.bf16 %v2449_v56, %v2417_v18  ;;  %vm20124_vm3 = vcmp.gt.f32.partialorder %v699_v14, 0.0  ;;  %v576_v18 = vadd.f32 %v575_v43, %v13340_v51  ;;  %v13628_v14 = vld [vmem:[%s19829_s1 + $0x38] sm:$0xff]  ;;  %20130 = vst [vmem:[#allocation13_spill] sm:$0xff] %v13633_v25  ;;  %v20132_v56 = vmov 0  ;;  %v579_v17 = vpop.f32.mrb[30].mxu0 }
 0x116   :  { %1834 = vmatprep.mubr.f32.mxu1 %v20089_v0  ;;  %vm13616_vm15 = vmpackc.low %vm2707_vm1, %vm20124_vm3  ;;  %vm20131_vm3 = vcmp.gt.f32.partialorder %v564_v37, 0.0  ;;  %v716_v37 = vpop.f32.mrb[30].mxu1  ;;  %v580_v47 = vadd.f32 %v579_v17, %v13374_v29 }
 0x117   :  { %20122 = vst [vmem:[#allocation10_spill] sm:$0xff] %v13611_v20  ;;  %v20126_v57 = vsel %vm13616_vm15, 4294967295, %v20125_v57  ;;  %10520 = vmatmul.mubr.msk.f32.gmra.mrb[134].mxu0 %vm20128_vm8, %v12926_v21  ;;  %vm20129_vm1 = vmmov %vm20113_vm6  ;;  %v2420_v21 = vmax.f32 %v701_v41, 0.0  ;;  %vm20135_vm8 = vcmp.gt.f32.partialorder %v707_v36, 0.0  ;;  %v717_v43 = vadd.f32 %v716_v37, %v13374_v29  ;;  %v581_v41 = vpop.f32.mrb[31].mxu0  ;;  %v13653_v36 = vld [vmem:[%s19829_s1 + $0x40] sm:$0xff] }
 0x118   :  { %20127 = vst [vmem:[#allocation12_spill] sm:$0xff] %v20126_v57  ;;  %1703 = vmatprep.mubr.f32.mxu0 %v20089_v0  ;;  %vm13637_vm6 = vmpackc.low %vm2706_vm2, %vm20131_vm3  ;;  %v718_v57 = vpop.f32.mrb[31].mxu1  ;;  %vm20139_vm2 = vcmask 23552   ;;  %v2482_v6 = vmax.f32 %v576_v18, 0.0  ;;  %v2513_v37 = vmax.f32 %v580_v47, 0.0 }
 0x119   :  { %10534 = vmatmul.mubr.msk.f32.gmra.mrb[134].mxu1 %vm20129_vm1, %v13628_v14  ;;  %v20133_v56 = vsel %vm13637_vm6, 4294967295, %v20132_v56  ;;  %vm13643_vm15 = vmpackc.low %vm20135_vm8, %vm2676_vm0  ;;  %vm2737_vm1 = vcmp.gt.f32.partialorder %v574_v7, 0.0  ;;  %v719_v17 = vadd.f32 %v718_v57, %v13374_v29  ;;  %vm2769_vm8 = vcmp.gt.f32.partialorder %v580_v47, 0.0  ;;  %v585_v57 = vpop.f32.mrb[32].mxu0  ;;  %v722_v20 = vpop.f32.mrb[32].mxu1 }
 0x11a   :  { %20134 = vst [vmem:[#allocation14_spill] sm:$0xff] %v20133_v56  ;;  %1840 = vmatprep.mubr.f32.mxu1 %v20089_v0  ;;  %v20137_v2 = vsel %vm13643_vm15, 4294967295, %v20136_v2  ;;  %v582_v56 = vadd.f32 %v581_v41, %v13374_v29  ;;  %vm20141_vm3 = vmmov %vm20139_vm2  ;;  %v2515_v28 = vmax.f32 %v717_v43, 0.0  ;;  %vm2771_vm5 = vcmp.gt.f32.partialorder %v717_v43, 0.0  ;;  %v724_v38 = vpop.f32.mrb[33].mxu1 }
 0x11b   :  { %20138 = vst [vmem:[#allocation15_spill] sm:$0xff] %v20137_v2  ;;  %10521 = vmatmul.mubr.msk.f32.gmra.mrb[136].mxu0 %vm20139_vm2, %v13653_v36  ;;  %v13657_v2 = vpack.c.bf16 %v2452_v26, %v2420_v21  ;;  %vm13666_vm2 = vmpackc.low %vm2769_vm8, %vm2737_vm1  ;;  %v20142_v26 = vmov 0  ;;  %v2516_v41 = vmax.f32 %v719_v17, 0.0  ;;  %v20148_v47 = vmov 0 }
 0x11c   :  { %1709 = vmatprep.mubr.f32.mxu0 %v20089_v0  ;;  %v20143_v26 = vsel %vm13666_vm2, 4294967295, %v20142_v26  ;;  %v2514_v21 = vmax.f32 %v582_v56, 0.0  ;;  %vm2770_vm0 = vcmp.gt.f32.partialorder %v582_v56, 0.0  ;;  %v13672_v25 = vpack.c.bf16 %v2515_v28, %v2483_v48 }
 0x11d   :  { %20140 = vst [vmem:[#allocation16_spill] sm:$0xff] %v13657_v2  ;;  %10535 = vmatmul.mubr.msk.f32.gmra.mrb[136].mxu1 %vm20141_vm3, %v13653_v36  ;;  %20144 = vst [vmem:[#allocation17_spill] sm:$0xff] %v20143_v26  ;;  %v13670_v2 = vpack.c.bf16 %v2513_v37, %v2481_v4  ;;  %vm20147_vm3 = vcmp.gt.f32.partialorder %v711_v15, 0.0  ;;  %v586_v7 = vadd.f32 %v585_v57, %v13402_v52  ;;  %v587_v26 = vpop.f32.mrb[33].mxu0  ;;  %vm20151_vm1 = vcmask 23552  }
 0x11e   :  { %1846 = vmatprep.mubr.f32.mxu1 %v20089_v0  ;;  %20146 = vst [vmem:[#allocation19_spill] sm:$0xff] %v13672_v25  ;;  %vm13675_vm6 = vmpackc.low %vm2771_vm5, %vm20147_vm3  ;;  %v723_v43 = vadd.f32 %v722_v20, %v13402_v52  ;;  %vm2740_vm8 = vcmp.gt.f32.partialorder %v713_v19, 0.0  ;;  %v588_v28 = vadd.f32 %v587_v26, %v13402_v52  ;;  %v13692_v15 = vpack.c.bf16 %v2514_v21, %v2482_v6  ;;  %v591_v21 = vpop.f32.mrb[34].mxu0 }
 0x11f   :  { %20145 = vst [vmem:[#allocation18_spill] sm:$0xff] %v13670_v2  ;;  %v20149_v47 = vsel %vm13675_vm6, 4294967295, %v20148_v47  ;;  %10522 = vmatmul.mubr.msk.f32.gmra.mrb[138].mxu0 %vm20151_vm1, %v13684_v54  ;;  %vm20152_vm5 = vmmov %vm20151_vm1  ;;  %vm20154_vm3 = vcmp.gt.f32.partialorder %v576_v18, 0.0  ;;  %v20155_v20 = vmov 0  ;;  %v2484_v4 = vmax.f32 %v713_v19, 0.0  ;;  %v728_v18 = vpop.f32.mrb[34].mxu1 }
 0x120   :  { %20150 = vst [vmem:[#allocation20_spill] sm:$0xff] %v20149_v47  ;;  %1715 = vmatprep.mubr.f32.mxu0 %v20089_v0  ;;  %20153 = vst [vmem:[#allocation21_spill] sm:$0xff] %v13692_v15  ;;  %vm20158_vm1 = vcmp.gt.f32.partialorder %v719_v17, 0.0  ;;  %v20159_v48 = vmov 0  ;;  %v2545_v37 = vmax.f32 %v586_v7, 0.0  ;;  %v2547_v26 = vmax.f32 %v723_v43, 0.0 }
 0x121   :  { %10536 = vmatmul.mubr.msk.f32.gmra.mrb[138].mxu1 %vm20152_vm5, %v13684_v54  ;;  %vm13696_vm15 = vmpackc.low %vm2770_vm0, %vm20154_vm3  ;;  %vm2801_vm5 = vcmp.gt.f32.partialorder %v586_v7, 0.0  ;;  %v725_v6 = vadd.f32 %v724_v38, %v13402_v52  ;;  %v592_v56 = vadd.f32 %v591_v21, %v13427_v8  ;;  %v729_v57 = vadd.f32 %v728_v18, %v13427_v8  ;;  %v593_v19 = vpop.f32.mrb[35].mxu0  ;;  %v730_v47 = vpop.f32.mrb[35].mxu1  ;;  %v13712_v17 = vld [vmem:[%s19829_s1 + $0x50] sm:$0xff] }
 0x122   :  { %v20156_v20 = vsel %vm13696_vm15, 4294967295, %v20155_v20  ;;  %1852 = vmatprep.mubr.f32.mxu1 %v20089_v0  ;;  %vm13702_vm6 = vmpackc.low %vm20158_vm1, %vm2740_vm8  ;;  %vm20162_vm0 = vcmask 23552   ;;  %v2546_v38 = vmax.f32 %v588_v28, 0.0  ;;  %v731_v21 = vadd.f32 %v730_v47, %v13427_v8  ;;  %v597_v47 = vpop.f32.mrb[36].mxu0  ;;  %v734_v2 = vpop.f32.mrb[36].mxu1 }
 0x123   :  { %20157 = vst [vmem:[#allocation22_spill] sm:$0xff] %v20156_v20  ;;  %v20160_v48 = vsel %vm13702_vm6, 4294967295, %v20159_v48  ;;  %10523 = vmatmul.mubr.msk.f32.gmra.mrb[140].mxu0 %vm20162_vm0, %v13712_v17  ;;  %v594_v20 = vadd.f32 %v593_v19, %v13427_v8  ;;  %vm20164_vm3 = vmmov %vm20162_vm0  ;;  %v2577_v18 = vmax.f32 %v592_v56, 0.0  ;;  %vm2833_vm1 = vcmp.gt.f32.partialorder %v592_v56, 0.0  ;;  %v736_v63 = vpop.f32.mrb[37].mxu1 }
 0x124   :  { %20161 = vst [vmem:[#allocation23_spill] sm:$0xff] %v20160_v48  ;;  %v13716_v48 = vpack.c.bf16 %v2516_v41, %v2484_v4  ;;  %1721 = vmatprep.mubr.f32.mxu0 %v20089_v0  ;;  %v2579_v25 = vmax.f32 %v729_v57, 0.0  ;;  %vm2835_vm2 = vcmp.gt.f32.partialorder %v729_v57, 0.0  ;;  %vm13725_vm0 = vmpackc.low %vm2833_vm1, %vm2801_vm5  ;;  %v20165_v41 = vmov 0 }
 0x125   :  { %10537 = vmatmul.mubr.msk.f32.gmra.mrb[140].mxu1 %vm20164_vm3, %v13712_v17  ;;  %v20166_v41 = vsel %vm13725_vm0, 4294967295, %v20165_v41  ;;  %v2578_v4 = vmax.f32 %v594_v20, 0.0  ;;  %vm2834_vm8 = vcmp.gt.f32.partialorder %v594_v20, 0.0  ;;  %v2580_v19 = vmax.f32 %v731_v21, 0.0 }
 0x126   :  { %20163 = vst [vmem:[#allocation24_spill] sm:$0xff] %v13716_v48  ;;  %1858 = vmatprep.mubr.f32.mxu1 %v20089_v0  ;;  %20167 = vst [vmem:[#allocation25_spill] sm:$0xff] %v20166_v41  ;;  %v13729_v48 = vpack.c.bf16 %v2577_v18, %v2545_v37  ;;  %v13731_v15 = vpack.c.bf16 %v2579_v25, %v2547_v26  ;;  %vm20170_vm3 = vcmp.gt.f32.partialorder %v723_v43, 0.0  ;;  %v20171_v56 = vmov 0  ;;  %v599_v41 = vpop.f32.mrb[37].mxu0 }
 0x127   :  { %vm13734_vm15 = vmpackc.low %vm2835_vm2, %vm20170_vm3  ;;  %v598_v7 = vadd.f32 %v597_v47, %v13457_v45  ;;  %v735_v57 = vadd.f32 %v734_v2, %v13457_v45  ;;  %vm20174_vm5 = vcmask 23552   ;;  %vm2804_vm1 = vcmp.gt.f32.partialorder %v725_v6, 0.0  ;;  %v603_v47 = vpop.f32.mrb[38].mxu0 }
 0x128   :  { %20168 = vst [vmem:[#allocation26_spill] sm:$0xff] %v13729_v48  ;;  %20169 = vst [vmem:[#allocation27_spill] sm:$0xff] %v13731_v15  ;;  %v20172_v56 = vsel %vm13734_vm15, 4294967295, %v20171_v56  ;;  %10524 = vmatmul.mubr.msk.f32.gmra.mrb[142].mxu0 %vm20174_vm5, %v13743_v1  ;;  %v600_v25 = vadd.f32 %v599_v41, %v13457_v45  ;;  %v737_v43 = vadd.f32 %v736_v63, %v13457_v45  ;;  %vm20177_vm3 = vcmp.gt.f32.partialorder %v588_v28, 0.0 }
 0x129   :  { %20173 = vst [vmem:[#allocation28_spill] sm:$0xff] %v20172_v56  ;;  %vm20175_vm2 = vmmov %vm20174_vm5  ;;  %1929 = vmatprep.mubr.f32.mxu0 %v20089_v0  ;;  %v13752_v2 = vpack.c.bf16 %v2578_v4, %v2546_v38  ;;  %v20178_v37 = vmov 0  ;;  %v2548_v26 = vmax.f32 %v725_v6, 0.0  ;;  %vm20181_vm5 = vcmp.gt.f32.partialorder %v731_v21, 0.0  ;;  %v740_v38 = vpop.f32.mrb[38].mxu1  ;;  %v605_v4 = vpop.f32.mrb[39].mxu0 }
 0x12a   :  { %10538 = vmatmul.mubr.msk.f32.gmra.mrb[142].mxu1 %vm20175_vm2, %v13743_v1  ;;  %vm13756_vm6 = vmpackc.low %vm2834_vm8, %vm20177_vm3  ;;  %v20182_v18 = vmov 0  ;;  %v2609_v63 = vmax.f32 %v598_v7, 0.0  ;;  %vm2865_vm2 = vcmp.gt.f32.partialorder %v598_v7, 0.0  ;;  %v2611_v41 = vmax.f32 %v735_v57, 0.0  ;;  %v742_v56 = vpop.f32.mrb[39].mxu1  ;;  %v13771_v6 = vld [vmem:[%s19829_s1] sm:$0xff] }
 0x12b   :  { %20176 = vst [vmem:[#allocation29_spill] sm:$0xff] %v13752_v2  ;;  %v20179_v37 = vsel %vm13756_vm6, 4294967295, %v20178_v37  ;;  %2066 = vmatprep.mubr.f32.mxu1 %v20089_v0  ;;  %vm13762_vm15 = vmpackc.low %vm20181_vm5, %vm2804_vm1  ;;  %v604_v28 = vadd.f32 %v603_v47, %v13494_v32  ;;  %v741_v20 = vadd.f32 %v740_v38, %v13494_v32  ;;  %vm20185_vm8 = vcmask 23552  }
 0x12c   :  { %20180 = vst [vmem:[#allocation30_spill] sm:$0xff] %v20179_v37  ;;  %v20183_v18 = vsel %vm13762_vm15, 4294967295, %v20182_v18  ;;  %10541 = vmatmul.mubr.msk.f32.vlgmr.msra.gmra.mrb[144].mxu0 %vm20185_vm8, %v13771_v6  ;;  %v13775_v21 = vpack.c.bf16 %v2580_v19, %v2548_v26  ;;  %v2612_v37 = vmax.f32 %v737_v43, 0.0  ;;  %v606_v15 = vadd.f32 %v605_v4, %v13494_v32  ;;  %vm20187_vm1 = vmmov %vm20185_vm8 }
 0x12d   :  { %20184 = vst [vmem:[#allocation31_spill] sm:$0xff] %v20183_v18  ;;  %v2610_v18 = vmax.f32 %v600_v25, 0.0  ;;  %v743_v47 = vadd.f32 %v742_v56, %v13494_v32  ;;  %vm20188_vm3 = vcmask 1042432   ;;  %v2641_v38 = vmax.f32 %v604_v28, 0.0  ;;  %1935 = vmatprep.mubr.f32.mxu0 %v20089_v0 }
 0x12e   :  { %20186 = vst [vmem:[#allocation32_spill] sm:$0xff] %v13775_v21  ;;  %10555 = vmatmul.mubr.msk.f32.vlgmr.msra.gmra.mrb[144].mxu1 %vm20187_vm1, %v13771_v6  ;;  %10568 = vmatpush1.msk.msra.mxu0 %vm20188_vm3, %v13464_v49  ;;  %vm2897_vm5 = vcmp.gt.f32.partialorder %v604_v28, 0.0  ;;  %v2643_v48 = vmax.f32 %v741_v20, 0.0  ;;  %vm2899_vm0 = vcmp.gt.f32.partialorder %v741_v20, 0.0  ;;  %vm20189_vm8 = vmmov %vm20188_vm3  ;;  %v20190_v19 = vmov 0 }
 0x12f   :  { %10582 = vmatpush1.msk.msra.mxu1 %vm20189_vm8, %v13487_v23  ;;  %11220 = vmatprep.subr.bf16.mxu0 %v13377_v30  ;;  %vm13787_vm15 = vmpackc.low %vm2897_vm5, %vm2865_vm2  ;;  %v2642_v56 = vmax.f32 %v606_v15, 0.0  ;;  %vm2898_vm6 = vcmp.gt.f32.partialorder %v606_v15, 0.0  ;;  %v2644_v26 = vmax.f32 %v743_v47, 0.0  ;;  %vm2866_vm3 = vcmp.gt.f32.partialorder %v600_v25, 0.0  ;;  %v13806_v23 = vld [vmem:[%s19829_s1 + $0x8] sm:$0xff]  ;;  %v13831_v25 = vld [vmem:[%s19829_s1 + $0x10] sm:$0xff] }
 0x130   :  { %v20191_v19 = vsel %vm13787_vm15, 4294967295, %v20190_v19  ;;  %11252 = vmatprep.subr.bf16.mxu1 %v13396_v46  ;;  %v13793_v49 = vpack.c.bf16 %v2641_v38, %v2609_v63  ;;  %v13795_v28 = vpack.c.bf16 %v2643_v48, %v2611_v41  ;;  %vm20195_vm8 = vcmp.gt.f32.partialorder %v735_v57, 0.0  ;;  %2072 = vmatprep.mubr.f32.mxu1 %v20089_v0  ;;  %vm20199_vm2 = vmmov %vm20187_vm1  ;;  %v13842_v15 = vld [vmem:[%s19829_s1 + $0x18] sm:$0xff] }
 0x131   :  { %20192 = vst [vmem:[#allocation33_spill] sm:$0xff] %v20191_v19  ;;  %vm13798_vm11 = vmpackc.low %vm2899_vm0, %vm20195_vm8  ;;  %v20196_v30 = vmov 0  ;;  %10542 = vmatmul.mubr.msk.f32.gmra.mrb[146].mxu0 %vm20199_vm2, %v13806_v23  ;;  %vm2868_vm5 = vcmp.gt.f32.partialorder %v737_v43, 0.0  ;;  %v13813_v46 = vpack.c.bf16 %v2642_v56, %v2610_v18  ;;  %v13815_v48 = vpack.c.bf16 %v2644_v26, %v2612_v37  ;;  %v13853_v43 = vld [vmem:[%s19829_s1 + $0x20] sm:$0xff] }
 0x132   :  { %20193 = vst [vmem:[#allocation34_spill] sm:$0xff] %v13793_v49  ;;  %20194 = vst [vmem:[#allocation35_spill] sm:$0xff] %v13795_v28  ;;  %v20197_v30 = vsel %vm13798_vm11, 4294967295, %v20196_v30  ;;  %10556 = vmatmul.mubr.msk.f32.gmra.mrb[146].mxu1 %vm20187_vm1, %v13806_v23  ;;  %1941 = vmatprep.mubr.f32.mxu0 %v20089_v0  ;;  %v20202_v7 = vmov 0  ;;  %vm20205_vm8 = vcmp.gt.f32.partialorder %v743_v47, 0.0  ;;  %v20206_v57 = vmov 0 }
 0x133   :  { %20198 = vst [vmem:[#allocation36_spill] sm:$0xff] %v20197_v30  ;;  %20200 = vst [vmem:[#allocation37_spill] sm:$0xff] %v13813_v46  ;;  %2078 = vmatprep.mubr.f32.mxu1 %v20089_v0  ;;  %v13866_v47 = vld [vmem:[%s19829_s1 + $0x28] sm:$0xff]  ;;  %v13881_v28 = vld [vmem:[%s19829_s1 + $0x30] sm:$0xff]  ;;  %v20217_v46 = vmov 0 }
 0x134   :  { %20201 = vst [vmem:[#allocation38_spill] sm:$0xff] %v13815_v48  ;;  %vm13818_vm0 = vmpackc.low %vm2898_vm6, %vm2866_vm3 }
 0x135   :  { %v20203_v7 = vsel %vm13818_vm0, 4294967295, %v20202_v7  ;;  %vm13824_vm11 = vmpackc.low %vm20205_vm8, %vm2868_vm5  ;;  %10543 = vmatmul.mubr.msk.f32.gmra.mrb[148].mxu0 %vm20187_vm1, %v13831_v25  ;;  %20215 = vst [vmem:[#allocation41_spill] sm:$0xff] %v13881_v28 }
 0x136   :  { %20204 = vst [vmem:[#allocation39_spill] sm:$0xff] %v20203_v7  ;;  %v20207_v57 = vsel %vm13824_vm11, 4294967295, %v20206_v57  ;;  %vm20209_vm6 = vmmov %vm20187_vm1  ;;  %1947 = vmatprep.mubr.f32.mxu0 %v20089_v0 }
 0x137   :  { %20208 = vst [vmem:[#allocation40_spill] sm:$0xff] %v20207_v57  ;;  %10557 = vmatmul.mubr.msk.f32.gmra.mrb[148].mxu1 %vm20209_vm6, %v13831_v25  ;;  %vm20210_vm3 = vmmov %vm20187_vm1 }
 0x138   :  { %2084 = vmatprep.mubr.f32.mxu1 %v20089_v0  ;;  %vm20211_vm2 = vmmov %vm20187_vm1 }
 0x139   :  { %10544 = vmatmul.mubr.msk.f32.gmra.mrb[150].mxu0 %vm20210_vm3, %v13842_v15  ;;  %vm20212_vm5 = vmmov %vm20187_vm1  ;;  %v835_v37 = vpop.f32.mrb[48].mxu0  ;;  %v972_v18 = vpop.f32.mrb[48].mxu1 }
 0x13a   :  { %1953 = vmatprep.mubr.f32.mxu0 %v20089_v0  ;;  %vm20213_vm8 = vmmov %vm20187_vm1  ;;  %v836_v63 = vadd.f32 %v835_v37, %v13321_v42  ;;  %v973_v41 = vadd.f32 %v972_v18, %v13321_v42  ;;  %v837_v20 = vpop.f32.mrb[49].mxu0  ;;  %v974_v4 = vpop.f32.mrb[49].mxu1 }
 0x13b   :  { %10558 = vmatmul.mubr.msk.f32.gmra.mrb[150].mxu1 %vm20211_vm2, %v13842_v15  ;;  %v838_v38 = vadd.f32 %v837_v20, %v13321_v42  ;;  %vm20214_vm6 = vmmov %vm20187_vm1  ;;  %v975_v26 = vadd.f32 %v974_v4, %v13321_v42 }
 0x13c   :  { %2090 = vmatprep.mubr.f32.mxu1 %v20089_v0  ;;  %v2421_v56 = vmax.f32 %v836_v63, 0.0  ;;  %vm2677_vm3 = vcmp.gt.f32.partialorder %v836_v63, 0.0  ;;  %v2423_v30 = vmax.f32 %v973_v41, 0.0 }
 0x13d   :  { %10545 = vmatmul.mubr.msk.f32.gmra.mrb[152].mxu0 %vm20212_vm5, %v13853_v43  ;;  %v841_v37 = vpop.f32.mrb[50].mxu0  ;;  %v978_v18 = vpop.f32.mrb[50].mxu1  ;;  %vm20216_vm5 = vmmov %vm20187_vm1  ;;  %v2422_v49 = vmax.f32 %v838_v38, 0.0 }
 0x13e   :  { %1959 = vmatprep.mubr.f32.mxu0 %v20089_v0  ;;  %v842_v19 = vadd.f32 %v841_v37, %v13336_v50  ;;  %v979_v57 = vadd.f32 %v978_v18, %v13336_v50  ;;  %v843_v20 = vpop.f32.mrb[51].mxu0  ;;  %v980_v7 = vpop.f32.mrb[51].mxu1 }
 0x13f   :  { %10559 = vmatmul.mubr.msk.f32.gmra.mrb[152].mxu1 %vm20213_vm8, %v13853_v43  ;;  %v844_v4 = vadd.f32 %v843_v20, %v13336_v50  ;;  %v981_v48 = vadd.f32 %v980_v7, %v13336_v50 }
 0x140   :  { %2096 = vmatprep.mubr.f32.mxu1 %v20089_v0  ;;  %v2453_v37 = vmax.f32 %v842_v19, 0.0  ;;  %v2455_v18 = vmax.f32 %v979_v57, 0.0  ;;  %vm2711_vm2 = vcmp.gt.f32.partialorder %v979_v57, 0.0 }
 0x141   :  { %10546 = vmatmul.mubr.msk.f32.gmra.mrb[154].mxu0 %vm20187_vm1, %v13866_v47  ;;  %v2454_v21 = vmax.f32 %v844_v4, 0.0  ;;  %v2456_v20 = vmax.f32 %v981_v48, 0.0  ;;  %v847_v7 = vpop.f32.mrb[52].mxu0  ;;  %v984_v2 = vpop.f32.mrb[52].mxu1 }
 0x142   :  { %1965 = vmatprep.mubr.f32.mxu0 %v20089_v0  ;;  %v13896_v53 = vpack.c.bf16 %v2453_v37, %v2421_v56  ;;  %v848_v57 = vadd.f32 %v847_v7, %v13340_v51  ;;  %v985_v63 = vadd.f32 %v984_v2, %v13340_v51  ;;  %v986_v50 = vpop.f32.mrb[53].mxu1  ;;  %v2424_v2 = vmax.f32 %v975_v26, 0.0 }
 0x143   :  { %10560 = vmatmul.mubr.msk.f32.gmra.mrb[154].mxu1 %vm20214_vm6, %v13866_v47  ;;  %vm2709_vm6 = vcmp.gt.f32.partialorder %v842_v19, 0.0  ;;  %v20223_v19 = vmov 0  ;;  %v20234_v37 = vmov 0 }
 0x144   :  { %2102 = vmatprep.mubr.f32.mxu1 %v20089_v0  ;;  %vm13892_vm15 = vmpackc.low %vm2709_vm6, %vm2677_vm3  ;;  %20220 = vst [vmem:[#allocation43_spill] sm:$0xff] %v13896_v53  ;;  %vm2680_vm6 = vcmp.gt.f32.partialorder %v975_v26, 0.0 }
 0x145   :  { %10547 = vmatmul.mubr.msk.f32.gmra.mrb[156].mxu0 %vm20216_vm5, %v13881_v28  ;;  %v20218_v46 = vsel %vm13892_vm15, 4294967295, %v20217_v46  ;;  %vm2710_vm5 = vcmp.gt.f32.partialorder %v844_v4, 0.0  ;;  %vm20226_vm3 = vmmov %vm20213_vm8 }
 0x146   :  { %1971 = vmatprep.mubr.f32.mxu0 %v20089_v0  ;;  %20219 = vst [vmem:[#allocation42_spill] sm:$0xff] %v20218_v46  ;;  %v849_v46 = vpop.f32.mrb[53].mxu0  ;;  %vm20227_vm8 = vmmov %vm20226_vm3 }
 0x147   :  { %10561 = vmatmul.mubr.msk.f32.gmra.mrb[156].mxu1 %vm20187_vm1, %v13881_v28  ;;  %v13898_v28 = vpack.c.bf16 %v2455_v18, %v2423_v30  ;;  %vm20222_vm1 = vcmp.gt.f32.partialorder %v973_v41, 0.0  ;;  %v850_v56 = vadd.f32 %v849_v46, %v13340_v51  ;;  %v13913_v30 = vpack.c.bf16 %v2454_v21, %v2422_v49  ;;  %v853_v49 = vpop.f32.mrb[54].mxu0 }
 0x148   :  { %2108 = vmatprep.mubr.f32.mxu1 %v20089_v0  ;;  %vm13901_vm11 = vmpackc.low %vm2711_vm2, %vm20222_vm1  ;;  %vm20229_vm2 = vcmp.gt.f32.partialorder %v838_v38, 0.0  ;;  %v20230_v41 = vmov 0  ;;  %v2485_v46 = vmax.f32 %v848_v57, 0.0  ;;  %v2487_v18 = vmax.f32 %v985_v63, 0.0  ;;  %v990_v38 = vpop.f32.mrb[54].mxu1  ;;  %v855_v26 = vpop.f32.mrb[55].mxu0 }
 0x149   :  { %20221 = vst [vmem:[#allocation44_spill] sm:$0xff] %v13898_v28  ;;  %v20224_v19 = vsel %vm13901_vm11, 4294967295, %v20223_v19  ;;  %10548 = vmatmul.mubr.msk.f32.gmra.mrb[158].mxu0 %vm20226_vm3, %v13628_v14  ;;  %20228 = vst [vmem:[#allocation46_spill] sm:$0xff] %v13913_v30  ;;  %vm20233_vm3 = vcmp.gt.f32.partialorder %v981_v48, 0.0  ;;  %v987_v21 = vadd.f32 %v986_v50, %v13340_v51  ;;  %v854_v4 = vadd.f32 %v853_v49, %v13374_v29 }
 0x14a   :  { %20225 = vst [vmem:[#allocation45_spill] sm:$0xff] %v20224_v19  ;;  %1977 = vmatprep.mubr.f32.mxu0 %v20089_v0  ;;  %vm13917_vm1 = vmpackc.low %vm2710_vm5, %vm20229_vm2  ;;  %v991_v7 = vadd.f32 %v990_v38, %v13374_v29  ;;  %v992_v19 = vpop.f32.mrb[55].mxu1  ;;  %vm20237_vm5 = vcmask 23552   ;;  %v13932_v48 = vpack.c.bf16 %v2456_v20, %v2424_v2  ;;  %v20240_v20 = vmov 0 }
 0x14b   :  { %10562 = vmatmul.mubr.msk.f32.gmra.mrb[158].mxu1 %vm20227_vm8, %v13628_v14  ;;  %v20231_v41 = vsel %vm13917_vm1, 4294967295, %v20230_v41  ;;  %vm13923_vm11 = vmpackc.low %vm20233_vm3, %vm2680_vm6  ;;  %vm2741_vm8 = vcmp.gt.f32.partialorder %v848_v57, 0.0  ;;  %v993_v50 = vadd.f32 %v992_v19, %v13374_v29  ;;  %v2517_v49 = vmax.f32 %v854_v4, 0.0  ;;  %v859_v19 = vpop.f32.mrb[56].mxu0  ;;  %v996_v28 = vpop.f32.mrb[56].mxu1 }
 0x14c   :  { %20232 = vst [vmem:[#allocation47_spill] sm:$0xff] %v20231_v41  ;;  %2114 = vmatprep.mubr.f32.mxu1 %v20089_v0  ;;  %v20235_v37 = vsel %vm13923_vm11, 4294967295, %v20234_v37  ;;  %20238 = vst [vmem:[#allocation49_spill] sm:$0xff] %v13932_v48  ;;  %v856_v41 = vadd.f32 %v855_v26, %v13374_v29  ;;  %vm2773_vm3 = vcmp.gt.f32.partialorder %v854_v4, 0.0  ;;  %v2519_v38 = vmax.f32 %v991_v7, 0.0  ;;  %v998_v30 = vpop.f32.mrb[57].mxu1 }
 0x14d   :  { %20236 = vst [vmem:[#allocation48_spill] sm:$0xff] %v20235_v37  ;;  %10549 = vmatmul.mubr.msk.f32.gmra.mrb[160].mxu0 %vm20237_vm5, %v13653_v36  ;;  %v2486_v37 = vmax.f32 %v850_v56, 0.0  ;;  %vm20239_vm2 = vmmov %vm20237_vm5  ;;  %vm2775_vm15 = vcmp.gt.f32.partialorder %v991_v7, 0.0  ;;  %v2520_v26 = vmax.f32 %v993_v50, 0.0  ;;  %v13945_v53 = vpack.c.bf16 %v2517_v49, %v2485_v46 }
 0x14e   :  { %1983 = vmatprep.mubr.f32.mxu0 %v20089_v0  ;;  %vm13941_vm5 = vmpackc.low %vm2773_vm3, %vm2741_vm8  ;;  %v2518_v2 = vmax.f32 %v856_v41, 0.0  ;;  %vm2774_vm6 = vcmp.gt.f32.partialorder %v856_v41, 0.0  ;;  %v13947_v48 = vpack.c.bf16 %v2519_v38, %v2487_v18  ;;  %v20246_v4 = vmov 0 }
 0x14f   :  { %10563 = vmatmul.mubr.msk.f32.gmra.mrb[160].mxu1 %vm20239_vm2, %v13653_v36  ;;  %v20241_v20 = vsel %vm13941_vm5, 4294967295, %v20240_v20  ;;  %20243 = vst [vmem:[#allocation51_spill] sm:$0xff] %v13945_v53  ;;  %vm20245_vm2 = vcmp.gt.f32.partialorder %v985_v63, 0.0  ;;  %v860_v57 = vadd.f32 %v859_v19, %v13402_v52  ;;  %v997_v7 = vadd.f32 %v996_v28, %v13402_v52 }
 0x150   :  { %2120 = vmatprep.mubr.f32.mxu1 %v20089_v0  ;;  %20242 = vst [vmem:[#allocation50_spill] sm:$0xff] %v20241_v20  ;;  %20244 = vst [vmem:[#allocation52_spill] sm:$0xff] %v13947_v48  ;;  %v861_v20 = vpop.f32.mrb[57].mxu0  ;;  %vm20249_vm8 = vcmask 23552   ;;  %vm2744_vm3 = vcmp.gt.f32.partialorder %v987_v21, 0.0  ;;  %v13962_v63 = vpack.c.bf16 %v2518_v2, %v2486_v37  ;;  %v20253_v18 = vmov 0 }
 0x151   :  { %vm13950_vm1 = vmpackc.low %vm2775_vm15, %vm20245_vm2  ;;  %10550 = vmatmul.mubr.msk.f32.gmra.mrb[162].mxu0 %vm20249_vm8, %v13684_v54  ;;  %v862_v46 = vadd.f32 %v861_v20, %v13402_v52  ;;  %vm20252_vm15 = vcmp.gt.f32.partialorder %v850_v56, 0.0  ;;  %v2488_v28 = vmax.f32 %v987_v21, 0.0  ;;  %v20257_v49 = vmov 0  ;;  %v865_v2 = vpop.f32.mrb[58].mxu0  ;;  %v1002_v56 = vpop.f32.mrb[58].mxu1 }
 0x152   :  { %v20247_v4 = vsel %vm13950_vm1, 4294967295, %v20246_v4  ;;  %vm20250_vm11 = vmmov %vm20249_vm8  ;;  %1989 = vmatprep.mubr.f32.mxu0 %v20089_v0  ;;  %20251 = vst [vmem:[#allocation54_spill] sm:$0xff] %v13962_v63  ;;  %vm20256_vm8 = vcmp.gt.f32.partialorder %v993_v50, 0.0  ;;  %v2549_v38 = vmax.f32 %v860_v57, 0.0  ;;  %v2551_v20 = vmax.f32 %v997_v7, 0.0  ;;  %v867_v21 = vpop.f32.mrb[59].mxu0 }
 0x153   :  { %20248 = vst [vmem:[#allocation53_spill] sm:$0xff] %v20247_v4  ;;  %10564 = vmatmul.mubr.msk.f32.gmra.mrb[162].mxu1 %vm20250_vm11, %v13684_v54  ;;  %vm13966_vm2 = vmpackc.low %vm2774_vm6, %vm20252_vm15  ;;  %vm2805_vm11 = vcmp.gt.f32.partialorder %v860_v57, 0.0  ;;  %v999_v37 = vadd.f32 %v998_v30, %v13402_v52  ;;  %v866_v41 = vadd.f32 %v865_v2, %v13427_v8  ;;  %v1003_v19 = vadd.f32 %v1002_v56, %v13427_v8  ;;  %v1004_v4 = vpop.f32.mrb[59].mxu1 }
 0x154   :  { %v20254_v18 = vsel %vm13966_vm2, 4294967295, %v20253_v18  ;;  %2126 = vmatprep.mubr.f32.mxu1 %v20089_v0  ;;  %vm13972_vm1 = vmpackc.low %vm20256_vm8, %vm2744_vm3  ;;  %vm20260_vm6 = vcmask 23552   ;;  %v13981_v50 = vpack.c.bf16 %v2520_v26, %v2488_v28  ;;  %v1005_v30 = vadd.f32 %v1004_v4, %v13427_v8  ;;  %v871_v4 = vpop.f32.mrb[60].mxu0  ;;  %v1008_v48 = vpop.f32.mrb[60].mxu1 }
 0x155   :  { %20255 = vst [vmem:[#allocation55_spill] sm:$0xff] %v20254_v18  ;;  %v20258_v49 = vsel %vm13972_vm1, 4294967295, %v20257_v49  ;;  %10551 = vmatmul.mubr.msk.f32.gmra.mrb[164].mxu0 %vm20260_vm6, %v13712_v17  ;;  %v868_v18 = vadd.f32 %v867_v21, %v13427_v8  ;;  %vm20262_vm15 = vmmov %vm20260_vm6  ;;  %v2581_v2 = vmax.f32 %v866_v41, 0.0  ;;  %vm2837_vm8 = vcmp.gt.f32.partialorder %v866_v41, 0.0  ;;  %v1010_v63 = vpop.f32.mrb[61].mxu1 }
 0x156   :  { %20259 = vst [vmem:[#allocation56_spill] sm:$0xff] %v20258_v49  ;;  %20261 = vst [vmem:[#allocation57_spill] sm:$0xff] %v13981_v50  ;;  %v2550_v49 = vmax.f32 %v862_v46, 0.0  ;;  %1995 = vmatprep.mubr.f32.mxu0 %v20089_v0  ;;  %v2583_v56 = vmax.f32 %v1003_v19, 0.0  ;;  %vm2839_vm5 = vcmp.gt.f32.partialorder %v1003_v19, 0.0  ;;  %v20263_v26 = vmov 0 }
 0x157   :  { %10565 = vmatmul.mubr.msk.f32.gmra.mrb[164].mxu1 %vm20262_vm15, %v13712_v17  ;;  %vm13990_vm6 = vmpackc.low %vm2837_vm8, %vm2805_vm11  ;;  %v2582_v28 = vmax.f32 %v868_v18, 0.0  ;;  %vm2838_vm3 = vcmp.gt.f32.partialorder %v868_v18, 0.0  ;;  %v2584_v21 = vmax.f32 %v1005_v30, 0.0  ;;  %v13994_v53 = vpack.c.bf16 %v2581_v2, %v2549_v38 }
 0x158   :  { %2132 = vmatprep.mubr.f32.mxu1 %v20089_v0  ;;  %v20264_v26 = vsel %vm13990_vm6, 4294967295, %v20263_v26  ;;  %v13996_v50 = vpack.c.bf16 %v2583_v56, %v2551_v20  ;;  %vm20267_vm15 = vcmp.gt.f32.partialorder %v997_v7, 0.0  ;;  %v20268_v41 = vmov 0 }
 0x159   :  { %20265 = vst [vmem:[#allocation58_spill] sm:$0xff] %v20264_v26  ;;  %vm13999_vm2 = vmpackc.low %vm2839_vm5, %vm20267_vm15  ;;  %v872_v57 = vadd.f32 %v871_v4, %v13457_v45  ;;  %v1009_v19 = vadd.f32 %v1008_v48, %v13457_v45  ;;  %v873_v26 = vpop.f32.mrb[61].mxu0  ;;  %vm20271_vm11 = vcmask 23552   ;;  %vm2808_vm8 = vcmp.gt.f32.partialorder %v999_v37, 0.0 }
 0x15a   :  { %20266 = vst [vmem:[#allocation59_spill] sm:$0xff] %v13996_v50  ;;  %v20269_v41 = vsel %vm13999_vm2, 4294967295, %v20268_v41  ;;  %10552 = vmatmul.mubr.msk.f32.gmra.mrb[166].mxu0 %vm20271_vm11, %v13743_v1  ;;  %v874_v38 = vadd.f32 %v873_v26, %v13457_v45  ;;  %v1011_v20 = vadd.f32 %v1010_v63, %v13457_v45  ;;  %vm20272_vm1 = vmmov %vm20271_vm11  ;;  %v14012_v7 = vpack.c.bf16 %v2582_v28, %v2550_v49  ;;  %v877_v4 = vpop.f32.mrb[62].mxu0  ;;  %v1014_v49 = vpop.f32.mrb[62].mxu1 }
 0x15b   :  { %20270 = vst [vmem:[#allocation60_spill] sm:$0xff] %v20269_v41  ;;  %10566 = vmatmul.mubr.msk.f32.gmra.mrb[166].mxu1 %vm20272_vm1, %v13743_v1  ;;  %2203 = vmatprep.mubr.f32.mxu0 %v20089_v0  ;;  %vm20273_vm5 = vcmp.gt.f32.partialorder %v862_v46, 0.0  ;;  %v20274_v48 = vmov 0  ;;  %v2552_v2 = vmax.f32 %v999_v37, 0.0  ;;  %vm20277_vm11 = vcmp.gt.f32.partialorder %v1005_v30, 0.0  ;;  %v879_v28 = vpop.f32.mrb[63].mxu0 }
 0x15c   :  { %vm14016_vm15 = vmpackc.low %vm2838_vm3, %vm20273_vm5  ;;  %2340 = vmatprep.mubr.f32.mxu1 %v20089_v0  ;;  %v20278_v56 = vmov 0  ;;  %v2613_v63 = vmax.f32 %v872_v57, 0.0  ;;  %vm2869_vm1 = vcmp.gt.f32.partialorder %v872_v57, 0.0  ;;  %v2615_v26 = vmax.f32 %v1009_v19, 0.0  ;;  %v1016_v41 = vpop.f32.mrb[63].mxu1 }
 0x15d   :  { %v20275_v48 = vsel %vm14016_vm15, 4294967295, %v20274_v48  ;;  %vm14022_vm2 = vmpackc.low %vm20277_vm11, %vm2808_vm8  ;;  %v878_v46 = vadd.f32 %v877_v4, %v13494_v32  ;;  %v1015_v18 = vadd.f32 %v1014_v49, %v13494_v32  ;;  %vm20281_vm3 = vcmask 23552  }
 0x15e   :  { %20276 = vst [vmem:[#allocation61_spill] sm:$0xff] %v20275_v48  ;;  %v20279_v56 = vsel %vm14022_vm2, 4294967295, %v20278_v56  ;;  %10569 = vmatmul.mubr.msk.f32.vlgmr.msra.gmra.mrb[168].mxu0 %vm20281_vm3, %v13771_v6  ;;  %v14030_v37 = vpack.c.bf16 %v2584_v21, %v2552_v2  ;;  %v2614_v30 = vmax.f32 %v874_v38, 0.0  ;;  %v2616_v48 = vmax.f32 %v1011_v20, 0.0  ;;  %vm20282_vm8 = vmmov %vm20281_vm3 }
 0x15f   :  { %20280 = vst [vmem:[#allocation62_spill] sm:$0xff] %v20279_v56  ;;  %v880_v56 = vadd.f32 %v879_v28, %v13494_v32  ;;  %v1017_v50 = vadd.f32 %v1016_v41, %v13494_v32  ;;  %10583 = vmatmul.mubr.msk.f32.vlgmr.msra.gmra.mrb[168].mxu1 %vm20282_vm8, %v13771_v6  ;;  %11222 = vmatpush1.bf16.msra.mxu0 %v13358_v11  ;;  %v2645_v4 = vmax.f32 %v878_v46, 0.0  ;;  %vm2901_vm5 = vcmp.gt.f32.partialorder %v878_v46, 0.0 }
 0x160   :  { %v2647_v49 = vmax.f32 %v1015_v18, 0.0  ;;  %vm2903_vm11 = vcmp.gt.f32.partialorder %v1015_v18, 0.0  ;;  %11254 = vmatpush1.bf16.msra.mxu1 %v13360_v12  ;;  %11224 = vmatprep.subr.bf16.mxu0 %v13430_v9  ;;  %vm14040_vm3 = vmpackc.low %vm2901_vm5, %vm2869_vm1  ;;  %vm2870_vm8 = vcmp.gt.f32.partialorder %v874_v38, 0.0  ;;  %vm20285_vm15 = vcmp.gt.f32.partialorder %v1009_v19, 0.0 }
 0x161   :  { %v2646_v2 = vmax.f32 %v880_v56, 0.0  ;;  %vm2902_vm6 = vcmp.gt.f32.partialorder %v880_v56, 0.0  ;;  %v2648_v41 = vmax.f32 %v1017_v50, 0.0  ;;  %11256 = vmatprep.subr.bf16.mxu1 %v13451_v40  ;;  %2209 = vmatprep.mubr.f32.mxu0 %v20089_v0  ;;  %v14046_v11 = vpack.c.bf16 %v2645_v4, %v2613_v63  ;;  %vm14051_vm0 = vmpackc.low %vm2903_vm11, %vm20285_vm15 }
 0x162   :  { %v14048_v6 = vpack.c.bf16 %v2647_v49, %v2615_v26  ;;  %2346 = vmatprep.mubr.f32.mxu1 %v20089_v0  ;;  %vm20288_vm1 = vcmask 23552   ;;  %vm2872_vm5 = vcmp.gt.f32.partialorder %v1011_v20, 0.0  ;;  %vm14066_vm15 = vmpackc.low %vm2902_vm6, %vm2870_vm8  ;;  %vm20292_vm11 = vcmp.gt.f32.partialorder %v1017_v50, 0.0  ;;  %v20311_v50 = vld [vmem:[#allocation4_spill] sm:$0xff] }
 0x163   :  { %10570 = vmatmul.mubr.msk.f32.gmra.mrb[170].mxu0 %vm20288_vm1, %v13806_v23  ;;  %vm20289_vm2 = vmmov %vm20288_vm1  ;;  %v14061_v9 = vpack.c.bf16 %v2646_v2, %v2614_v30  ;;  %v14063_v40 = vpack.c.bf16 %v2648_v41, %v2616_v48  ;;  %v20314_v20 = vmov 0  ;;  %v20318_v30 = vmov 0 }
 0x164   :  { %10584 = vmatmul.mubr.msk.f32.gmra.mrb[170].mxu1 %vm20289_vm2, %v13806_v23  ;;  %11226 = vmatpush1.bf16.msra.mxu0 %v13411_v59  ;;  %vm14073_vm1 = vmpackc.low %vm20292_vm11, %vm2872_vm5  ;;  %v19874_v59 = vmov 1.0|1.0   ;;  %v20336_v38 = vmov 0 }
 0x165   :  { %11258 = vmatpush1.bf16.msra.mxu1 %v13413_v60  ;;  %11228 = vmatprep.subr.bf16.mxu0 %v13497_v34  ;;  %vm20295_vm6 = vmmov %vm20289_vm2 }
 0x166   :  { %11260 = vmatprep.subr.bf16.mxu1 %v13520_v44  ;;  %2215 = vmatprep.mubr.f32.mxu0 %v20089_v0  ;;  %vm20296_vm8 = vmmov %vm20289_vm2 }
 0x167   :  { %2352 = vmatprep.mubr.f32.mxu1 %v20089_v0  ;;  %10571 = vmatmul.mubr.msk.f32.gmra.mrb[172].mxu0 %vm20289_vm2, %v13831_v25  ;;  %vm20297_vm5 = vmmov %vm20289_vm2 }
 0x168   :  { %10585 = vmatmul.mubr.msk.f32.gmra.mrb[172].mxu1 %vm20295_vm6, %v13831_v25  ;;  %11230 = vmatpush1.bf16.msra.mxu0 %v13471_v22  ;;  %vm20298_vm11 = vmmov %vm20289_vm2  ;;  %vm20304_vm6 = vnez %v20084_v35 }
 0x169   :  { %11262 = vmatpush1.bf16.msra.mxu1 %v13473_v58  ;;  %11232 = vmatprep.subr.bf16.mxu0 %v13553_v39  ;;  %v1109_v31 = vpop.f32.mrb[72].mxu0  ;;  %v1246_v33 = vpop.f32.mrb[72].mxu1 }
 0x16a   :  { %11264 = vmatprep.subr.bf16.mxu1 %v13555_v62  ;;  %2221 = vmatprep.mubr.f32.mxu0 %v20089_v0  ;;  %v1110_v60 = vadd.f32 %v1109_v31, %v13321_v42  ;;  %v1247_v3 = vadd.f32 %v1246_v33, %v13321_v42  ;;  %v1111_v13 = vpop.f32.mrb[73].mxu0  ;;  %v1248_v22 = vpop.f32.mrb[73].mxu1  ;;  %v20307_v62 = vld [vmem:[#allocation41_spill] sm:$0xff] }
 0x16b   :  { %2358 = vmatprep.mubr.f32.mxu1 %v20089_v0  ;;  %10572 = vmatmul.mubr.msk.f32.gmra.mrb[174].mxu0 %vm20296_vm8, %v13842_v15  ;;  %v1112_v10 = vadd.f32 %v1111_v13, %v13321_v42  ;;  %v14139_v58 = vadd.f32 %v1248_v22, %v13321_v42  ;;  %v20325_v13 = vld [vmem:[#allocation5_spill] sm:$0xff]  ;;  %v20327_v22 = vld [vmem:[#allocation6_spill] sm:$0xff] }
 0x16c   :  { %10586 = vmatmul.mubr.msk.f32.gmra.mrb[174].mxu1 %vm20297_vm5, %v13842_v15  ;;  %11234 = vmatpush1.bf16.msra.mxu0 %v13538_v5  ;;  %vm2681_vm8 = vcmp.gt.f32.partialorder %v1110_v60, 0.0  ;;  %vm20305_vm5 = vnez %v20086_v24  ;;  %v2427_v44 = vmax.f32 %v1247_v3, 0.0  ;;  %v20309_v15 = vld [vmem:[#allocation3_spill] sm:$0xff] }
 0x16d   :  { %11266 = vmatpush1.bf16.msra.mxu1 %v13540_v27  ;;  %11236 = vmatprep.subr.msk.bf16.mxu0 %vm13381_vm12, %v19874_v59  ;;  %vm20299_vm12 = vnez %v20073_v16  ;;  %v2425_v16 = vmax.f32 %v1110_v60, 0.0  ;;  %v1115_v34 = vpop.f32.mrb[74].mxu0  ;;  %v2426_v23 = vmax.f32 %v1112_v10, 0.0 }
 0x16e   :  { %11268 = vmatprep.subr.msk.bf16.mxu1 %vm13387_vm13, %v19874_v59  ;;  %2227 = vmatprep.mubr.f32.mxu0 %v20089_v0  ;;  %vm20302_vm13 = vnez %v20067_v55  ;;  %v1252_v55 = vpop.f32.mrb[74].mxu1  ;;  %v1117_v27 = vpop.f32.mrb[75].mxu0 }
 0x16f   :  { %2364 = vmatprep.mubr.f32.mxu1 %v20089_v0  ;;  %10573 = vmatmul.mubr.msk.f32.gmra.mrb[176].mxu0 %vm20298_vm11, %v13853_v43  ;;  %vm2683_vm11 = vcmp.gt.f32.partialorder %v1247_v3, 0.0  ;;  %v1254_v39 = vpop.f32.mrb[75].mxu1  ;;  %v2428_v3 = vmax.f32 %v14139_v58, 0.0 }
 0x170   :  { %10587 = vmatmul.mubr.msk.f32.gmra.mrb[176].mxu1 %vm20289_vm2, %v13853_v43  ;;  %11238 = vmatpush1.bf16.msk.msra.mxu0 %vm13354_vm7, %v19874_v59  ;;  %vm20300_vm7 = vmmov %vm20289_vm2 }
 0x171   :  { %11270 = vmatpush1.bf16.msk.msra.mxu1 %vm13363_vm10, %v19874_v59  ;;  %11240 = vmatprep.subr.msk.bf16.mxu0 %vm13434_vm14, %v19874_v59  ;;  %vm20301_vm10 = vmmov %vm20289_vm2  ;;  %vm20303_vm14 = vnez %v20069_v61  ;;  %v20306_v61 = vld [vmem:[#allocation2_spill] sm:$0xff]  ;;  %v1121_v26 = vpop.f32.mrb[76].mxu0  ;;  %v1258_v46 = vpop.f32.mrb[76].mxu1 }
 0x172   :  { %11272 = vmatprep.subr.msk.bf16.mxu1 %vm20299_vm12, %v19874_v59  ;;  %2233 = vmatprep.mubr.f32.mxu0 %v20089_v0  ;;  %v1116_v5 = vadd.f32 %v1115_v34, %v20306_v61  ;;  %v1253_v35 = vadd.f32 %v1252_v55, %v20306_v61  ;;  %vm2682_vm12 = vcmp.gt.f32.partialorder %v1112_v10, 0.0  ;;  %v1118_v24 = vadd.f32 %v1117_v27, %v20306_v61  ;;  %v1123_v2 = vpop.f32.mrb[77].mxu0  ;;  %v1260_v41 = vpop.f32.mrb[77].mxu1  ;;  %v20333_v55 = vld [vmem:[#allocation16_spill] sm:$0xff] }
 0x173   :  { %2370 = vmatprep.mubr.f32.mxu1 %v20089_v0  ;;  %10574 = vmatmul.mubr.msk.f32.gmra.mrb[178].mxu0 %vm20300_vm7, %v13866_v47  ;;  %v1255_v25 = vadd.f32 %v1254_v39, %v20306_v61  ;;  %vm20308_vm7 = vmmov %vm20289_vm2  ;;  %v1122_v4 = vadd.f32 %v1121_v26, %v13340_v51  ;;  %v1259_v49 = vadd.f32 %v1258_v46, %v13340_v51  ;;  %v12801_v26 = vmov 0  }
 0x174   :  { %10588 = vmatmul.mubr.msk.f32.gmra.mrb[178].mxu1 %vm20301_vm10, %v13866_v47  ;;  %11242 = vmatpush1.bf16.msk.msra.mxu0 %vm20302_vm13, %v19874_v59  ;;  %vm20310_vm10 = vnez %v20309_v15  ;;  %v2457_v43 = vmax.f32 %v1116_v5, 0.0  ;;  %vm2713_vm13 = vcmp.gt.f32.partialorder %v1116_v5, 0.0  ;;  %v2459_v47 = vmax.f32 %v1253_v35, 0.0 }
 0x175   :  { %11274 = vmatpush1.bf16.msk.msra.mxu1 %vm20303_vm14, %v19874_v59  ;;  %11244 = vmatprep.subr.msk.bf16.mxu0 %vm20304_vm6, %v19874_v59  ;;  %vm2715_vm14 = vcmp.gt.f32.partialorder %v1253_v35, 0.0  ;;  %vm20312_vm6 = vnez %v20311_v50  ;;  %v2458_v48 = vmax.f32 %v1118_v24, 0.0  ;;  %v2460_v56 = vmax.f32 %v1255_v25, 0.0  ;;  %v1264_v5 = vpop.f32.mrb[78].mxu1 }
 0x176   :  { %11276 = vmatprep.subr.msk.bf16.mxu1 %vm20305_vm5, %v19874_v59  ;;  %2239 = vmatprep.mubr.f32.mxu0 %v20089_v0  ;;  %vm14164_vm5 = vmpackc.low %vm2713_vm13, %vm2681_vm8  ;;  %v14172_v18 = vpack.c.bf16 %v2457_v43, %v2425_v16  ;;  %v14174_v28 = vpack.c.bf16 %v2459_v47, %v2427_v44  ;;  %v1124_v31 = vadd.f32 %v1123_v2, %v13340_v51  ;;  %vm20321_vm8 = vcmask 23552   ;;  %v1127_v44 = vpop.f32.mrb[78].mxu0  ;;  %v3438_v43 = vld [vmem:[%s19829_s1 + $0x90] sm:$0xff] }
 0x177   :  { %2376 = vmatprep.mubr.f32.mxu1 %v20089_v0  ;;  %10575 = vmatmul.mubr.msk.f32.gmra.mrb[180].mxu0 %vm20289_vm2, %v20307_v62  ;;  %v20315_v20 = vsel %vm14164_vm5, 4294967295, %v20314_v20  ;;  %vm2714_vm2 = vcmp.gt.f32.partialorder %v1118_v24, 0.0  ;;  %v14190_v33 = vpack.c.bf16 %v2458_v48, %v2426_v23  ;;  %vm20326_vm13 = vnez %v20325_v13  ;;  %v1129_v39 = vpop.f32.mrb[79].mxu0 }
 0x178   :  { %10589 = vmatmul.mubr.msk.f32.gmra.mrb[180].mxu1 %vm20308_vm7, %v20307_v62  ;;  %11246 = vmatpush1.bf16.msk.msra.mxu0 %vm20310_vm10, %v19874_v59  ;;  %20316 = vst [vmem:[#allocation2_spill] sm:$0xff] %v20315_v20  ;;  %vm2716_vm7 = vcmp.gt.f32.partialorder %v1255_v25, 0.0  ;;  %vm14194_vm10 = vmpackc.low %vm2714_vm2, %vm2682_vm12  ;;  %v2489_v10 = vmax.f32 %v1122_v4, 0.0  ;;  %vm2745_vm12 = vcmp.gt.f32.partialorder %v1122_v4, 0.0  ;;  %v2491_v16 = vmax.f32 %v1259_v49, 0.0  ;;  %v1266_v62 = vpop.f32.mrb[79].mxu1 }
 0x179   :  { %11278 = vmatpush1.bf16.msk.msra.mxu1 %vm20312_vm6, %v19874_v59  ;;  %11248 = vmatprep.subr.msk.bf16.mxu0 %vm13558_vm9, %v19874_v59  ;;  %vm14177_vm9 = vmpackc.low %vm2715_vm14, %vm2683_vm11  ;;  %vm20328_vm14 = vnez %v20327_v22  ;;  %v14211_v34 = vadd.f32 %v1260_v41, %v13340_v51  ;;  %vm2747_vm2 = vcmp.gt.f32.partialorder %v1259_v49, 0.0  ;;  %v1128_v35 = vadd.f32 %v1127_v44, %v13374_v29  ;;  %v1270_v63 = vpop.f32.mrb[80].mxu1 }
 0x17a   :  { %11280 = vmatprep.subr.msk.bf16.mxu1 %vm13564_vm4, %v19874_v59  ;;  %2245 = vmatprep.mubr.f32.mxu0 %v20089_v0  ;;  %v20319_v30 = vsel %vm14177_vm9, 4294967295, %v20318_v30  ;;  %vm2684_vm4 = vcmp.gt.f32.partialorder %v14139_v58, 0.0  ;;  %vm20322_vm11 = vmmov %vm20321_vm8  ;;  %v20332_v58 = vld [vmem:[#allocation13_spill] sm:$0xff]  ;;  %v1265_v27 = vadd.f32 %v1264_v5, %v13374_v29  ;;  %v14219_v23 = vpack.c.bf16 %v2460_v56, %v2428_v3  ;;  %v1133_v56 = vpop.f32.mrb[80].mxu0  ;;  %v1272_v22 = vpop.f32.mrb[81].mxu1 }
 0x17b   :  { %20320 = vst [vmem:[#allocation41_spill] sm:$0xff] %v20319_v30  ;;  %2382 = vmatprep.mubr.f32.mxu1 %v20089_v0  ;;  %10576 = vmatmul.mubr.msk.f32.gmra.mrb[182].mxu0 %vm20321_vm8, %v13628_v14  ;;  %vm14206_vm6 = vmpackc.low %vm2716_vm7, %vm2684_vm4  ;;  %v2490_v24 = vmax.f32 %v1124_v31, 0.0  ;;  %v1130_v25 = vadd.f32 %v1129_v39, %v13374_v29  ;;  %v1267_v15 = vadd.f32 %v1266_v62, %v13374_v29  ;;  %v2521_v47 = vmax.f32 %v1128_v35, 0.0  ;;  %v1135_v13 = vpop.f32.mrb[81].mxu0 }
 0x17c   :  { %10590 = vmatmul.mubr.msk.f32.gmra.mrb[182].mxu1 %vm20322_vm11, %v13628_v14  ;;  %11250 = vmatpush1.bf16.msk.msra.mxu0 %vm20326_vm13, %v19874_v59  ;;  %v20329_v14 = vmov 0  ;;  %vm20334_vm4 = vmmov %vm20321_vm8  ;;  %vm2777_vm11 = vcmp.gt.f32.partialorder %v1128_v35, 0.0  ;;  %v2523_v50 = vmax.f32 %v1265_v27, 0.0  ;;  %vm2779_vm13 = vcmp.gt.f32.partialorder %v1265_v27, 0.0 }
 0x17d   :  { %11282 = vmatpush1.bf16.msk.msra.mxu1 %vm20328_vm14, %v19874_v59  ;;  %v20330_v14 = vsel %vm14206_vm6, 4294967295, %v20329_v14  ;;  %11284 = vmatprep.subr.bf16.mxu0 %v20332_v58  ;;  %vm20335_vm8 = vmmov %vm20334_vm4  ;;  %v2522_v48 = vmax.f32 %v1130_v25, 0.0  ;;  %v14237_v46 = vpack.c.bf16 %v2521_v47, %v2489_v10  ;;  %v20339_v41 = vmov 0  ;;  %v1139_v5 = vpop.f32.mrb[82].mxu0  ;;  %v1276_v35 = vpop.f32.mrb[82].mxu1 }
 0x17e   :  { %20331 = vst [vmem:[#allocation3_spill] sm:$0xff] %v20330_v14  ;;  %11316 = vmatprep.subr.bf16.mxu1 %v20333_v55  ;;  %2251 = vmatprep.mubr.f32.mxu0 %v20089_v0  ;;  %vm14233_vm14 = vmpackc.low %vm2777_vm11, %vm2745_vm12  ;;  %v14239_v2 = vpack.c.bf16 %v2523_v50, %v2491_v16  ;;  %v1134_v4 = vadd.f32 %v1133_v56, %v13402_v52  ;;  %vm2748_vm12 = vcmp.gt.f32.partialorder %v14211_v34, 0.0  ;;  %v20344_v10 = vmov 0  ;;  %v1141_v39 = vpop.f32.mrb[83].mxu0  ;;  %v1278_v62 = vpop.f32.mrb[83].mxu1 }
 0x17f   :  { %2388 = vmatprep.mubr.f32.mxu1 %v20089_v0  ;;  %10577 = vmatmul.mubr.msk.f32.gmra.mrb[184].mxu0 %vm20334_vm4, %v13653_v36  ;;  %v20337_v38 = vsel %vm14233_vm14, 4294967295, %v20336_v38  ;;  %vm2778_vm4 = vcmp.gt.f32.partialorder %v1130_v25, 0.0  ;;  %vm14242_vm7 = vmpackc.low %vm2779_vm13, %vm2747_vm2  ;;  %v1271_v3 = vadd.f32 %v1270_v63, %v13402_v52  ;;  %v1136_v58 = vadd.f32 %v1135_v13, %v13402_v52 }
 0x180   :  { %10591 = vmatmul.mubr.msk.f32.gmra.mrb[184].mxu1 %vm20335_vm8, %v13653_v36  ;;  %2257 = vmatprep.mubr.f32.mxu0 %v20089_v0  ;;  %20338 = vst [vmem:[#allocation4_spill] sm:$0xff] %v20337_v38  ;;  %v2524_v36 = vmax.f32 %v1267_v15, 0.0  ;;  %v20340_v41 = vsel %vm14242_vm7, 4294967295, %v20339_v41  ;;  %vm20342_vm11 = vmmov %vm20335_vm8  ;;  %v14254_v49 = vpack.c.bf16 %v2522_v48, %v2490_v24  ;;  %vm20343_vm2 = vcmp.gt.f32.partialorder %v1124_v31, 0.0 }
 0x181   :  { %2394 = vmatprep.mubr.f32.mxu1 %v20089_v0  ;;  %12122 = vset.pattern.permute.xlu0 %v12801_v26  ;;  %20341 = vst [vmem:[#allocation7_spill] sm:$0xff] %v20340_v41  ;;  %vm14258_vm13 = vmpackc.low %vm2778_vm4, %vm20343_vm2  ;;  %v2492_v16 = vmax.f32 %v14211_v34, 0.0  ;;  %vm20347_vm7 = vcmp.gt.f32.partialorder %v1267_v15, 0.0  ;;  %v20348_v55 = vmov 0  ;;  %v2555_v44 = vmax.f32 %v1271_v3, 0.0  ;;  %v1145_v26 = vpop.f32.mrb[84].mxu0 }
 0x182   :  { %3441 = vperm.xlu0 %12122, %v3438_v43   ;;  %v20345_v10 = vsel %vm14258_vm13, 4294967295, %v20344_v10  ;;  %vm14266_vm14 = vmpackc.low %vm20347_vm7, %vm2748_vm12  ;;  %v1273_v31 = vadd.f32 %v1272_v22, %v13402_v52  ;;  %v1140_v27 = vadd.f32 %v1139_v5, %v13427_v8  ;;  %v1277_v34 = vadd.f32 %v1276_v35, %v13427_v8  ;;  %v1282_v13 = vpop.f32.mrb[84].mxu1  ;;  %v20418_v41 = vld [vmem:[#allocation25_spill] sm:$0xff] }
 0x183   :  { %10578 = vmatmul.mubr.msk.f32.gmra.mrb[186].mxu0 %vm20342_vm11, %v13684_v54  ;;  %20346 = vst [vmem:[#allocation8_spill] sm:$0xff] %v20345_v10  ;;  %v20349_v55 = vsel %vm14266_vm14, 4294967295, %v20348_v55  ;;  %v14273_v24 = vpack.c.bf16 %v2524_v36, %v2492_v16  ;;  %v20351_v25 = vmov 3   ;;  %v2554_v15 = vmax.f32 %v1136_v58, 0.0  ;;  %vm20352_vm12 = vmmov %vm20342_vm11 }
 0x184   :  { %10592 = vmatmul.mubr.msk.f32.gmra.mrb[186].mxu1 %vm20335_vm8, %v13684_v54  ;;  %2263 = vmatprep.mubr.f32.mxu0 %v20089_v0  ;;  %20350 = vst [vmem:[#allocation5_spill] sm:$0xff] %v20349_v55  ;;  %v2553_v54 = vmax.f32 %v1134_v4, 0.0  ;;  %vm2809_vm8 = vcmp.gt.f32.partialorder %v1134_v4, 0.0  ;;  %v1142_v43 = vadd.f32 %v1141_v39, %v13427_v8  ;;  %v1279_v47 = vadd.f32 %v1278_v62, %v13427_v8  ;;  %v14320_v62 = vld [vmem:[%s19829_s1 + $0x60] sm:$0xff] }
 0x185   :  { %2400 = vmatprep.mubr.f32.mxu1 %v20089_v0  ;;  %v2585_v50 = vmax.f32 %v1140_v27, 0.0  ;;  %vm2841_vm2 = vcmp.gt.f32.partialorder %v1140_v27, 0.0  ;;  %v2587_v48 = vmax.f32 %v1277_v34, 0.0  ;;  %vm2843_vm4 = vcmp.gt.f32.partialorder %v1277_v34, 0.0  ;;  %v1147_v27 = vpop.f32.mrb[85].mxu0  ;;  %v1284_v34 = vpop.f32.mrb[85].mxu1 }
 0x186   :  { %12123 = vset.pattern.permute.xlu0 %v20351_v25  ;;  %vm14285_vm7 = vmpackc.low %vm2841_vm2, %vm2809_vm8  ;;  %v20353_v36 = vmov 0  ;;  %v2586_v56 = vmax.f32 %v1142_v43, 0.0  ;;  %vm2842_vm14 = vcmp.gt.f32.partialorder %v1142_v43, 0.0  ;;  %v2588_v63 = vmax.f32 %v1279_v47, 0.0  ;;  %v1288_v43 = vpop.f32.mrb[86].mxu1 }
 0x187   :  { %10579 = vmatmul.mubr.msk.f32.gmra.mrb[188].mxu0 %vm20352_vm12, %v13712_v17  ;;  %v20354_v36 = vsel %vm14285_vm7, 4294967295, %v20353_v36  ;;  %91 = vperm.xlu0 %12123, %v13712_v17   ;;  %v14290_v22 = vpack.c.bf16 %v2585_v50, %v2553_v54  ;;  %v14292_v16 = vpack.c.bf16 %v2587_v48, %v2555_v44  ;;  %v20357_v5 = vmov 0  ;;  %vm20360_vm2 = vmmov %vm20352_vm12 }
 0x188   :  { %10593 = vmatmul.mubr.msk.f32.gmra.mrb[188].mxu1 %vm20342_vm11, %v13712_v17  ;;  %2269 = vmatprep.mubr.f32.mxu0 %v20089_v0  ;;  %20355 = vst [vmem:[#allocation6_spill] sm:$0xff] %v20354_v36  ;;  %vm20356_vm11 = vcmp.gt.f32.partialorder %v1271_v3, 0.0  ;;  %v1146_v4 = vadd.f32 %v1145_v26, %v13457_v45  ;;  %v1283_v35 = vadd.f32 %v1282_v13, %v13457_v45  ;;  %vm2812_vm8 = vcmp.gt.f32.partialorder %v1273_v31, 0.0  ;;  %vm20361_vm12 = vmmov %vm20360_vm2  ;;  %v20376_v36 = vld [vmem:[#allocation24_spill] sm:$0xff] }
 0x189   :  { %2406 = vmatprep.mubr.f32.mxu1 %v20089_v0  ;;  %vm14295_vm13 = vmpackc.low %vm2843_vm4, %vm20356_vm11  ;;  %v1148_v39 = vadd.f32 %v1147_v27, %v13457_v45  ;;  %v1285_v17 = vadd.f32 %v1284_v34, %v13457_v45  ;;  %v14307_v3 = vpack.c.bf16 %v2586_v56, %v2554_v15  ;;  %vm20362_vm4 = vcmp.gt.f32.partialorder %v1136_v58, 0.0  ;;  %v1151_v15 = vpop.f32.mrb[86].mxu0  ;;  %v1290_v56 = vpop.f32.mrb[87].mxu1 }
 0x18a   :  { %v20358_v5 = vsel %vm14295_vm13, 4294967295, %v20357_v5  ;;  %vm14311_vm11 = vmpackc.low %vm2842_vm14, %vm20362_vm4  ;;  %v20363_v54 = vmov 0  ;;  %v2556_v44 = vmax.f32 %v1273_v31, 0.0  ;;  %v2617_v58 = vmax.f32 %v1146_v4, 0.0  ;;  %v1153_v48 = vpop.f32.mrb[87].mxu0 }
 0x18b   :  { %20359 = vst [vmem:[#allocation13_spill] sm:$0xff] %v20358_v5  ;;  %10580 = vmatmul.mubr.msk.f32.gmra.mrb[190].mxu0 %vm20360_vm2, %v13743_v1  ;;  %v20364_v54 = vsel %vm14311_vm11, 4294967295, %v20363_v54  ;;  %vm20366_vm2 = vcmp.gt.f32.partialorder %v1279_v47, 0.0  ;;  %vm2873_vm14 = vcmp.gt.f32.partialorder %v1146_v4, 0.0  ;;  %v2619_v25 = vmax.f32 %v1283_v35, 0.0 }
 0x18c   :  { %10594 = vmatmul.mubr.msk.f32.gmra.mrb[190].mxu1 %vm20361_vm12, %v13743_v1  ;;  %20365 = vst [vmem:[#allocation16_spill] sm:$0xff] %v20364_v54  ;;  %3508 = vmatprep.mubr.f32.mxu0 %v20089_v0  ;;  %vm14323_vm12 = vmpackc.low %vm20366_vm2, %vm2812_vm8  ;;  %v20367_v1 = vmov 0  ;;  %v1152_v31 = vadd.f32 %v1151_v15, %v13494_v32  ;;  %v1289_v50 = vadd.f32 %v1288_v43, %v13494_v32  ;;  %v2618_v13 = vmax.f32 %v1148_v39, 0.0  ;;  %v20370_v15 = vld [vmem:[#allocation10_spill] sm:$0xff]  ;;  %v20371_v43 = vld [vmem:[#allocation11_spill] sm:$0xff] }
 0x18d   :  { %3579 = vmatprep.mubr.f32.mxu1 %v20089_v0  ;;  %v20368_v1 = vsel %vm14323_vm12, 4294967295, %v20367_v1  ;;  %v14329_v26 = vpack.c.bf16 %v2588_v63, %v2556_v44  ;;  %v2620_v47 = vmax.f32 %v1285_v17, 0.0  ;;  %v1154_v27 = vadd.f32 %v1153_v48, %v13494_v32 }
 0x18e   :  { %20369 = vst [vmem:[#allocation63_spill] sm:$0xff] %v20368_v1  ;;  %v1291_v34 = vadd.f32 %v1290_v56, %v13494_v32  ;;  %v2649_v59 = vmax.f32 %v1152_v31, 0.0  ;;  %vm2905_vm8 = vcmp.gt.f32.partialorder %v1152_v31, 0.0  ;;  %v2651_v5 = vmax.f32 %v1289_v50, 0.0  ;;  %v20375_v56 = vld [vmem:[#allocation21_spill] sm:$0xff] }
 0x18f   :  { %3509 = vmatmul.mubr.f32.vlgmr.msra.gmra.mrb[192].mxu0 %v14320_v62  ;;  %vm2907_vm2 = vcmp.gt.f32.partialorder %v1289_v50, 0.0  ;;  %vm14338_vm4 = vmpackc.low %vm2905_vm8, %vm2873_vm14  ;;  %v20372_v63 = vmov 0  ;;  %v2650_v44 = vmax.f32 %v1154_v27, 0.0  ;;  %vm2906_vm13 = vcmp.gt.f32.partialorder %v1154_v27, 0.0 }
 0x190   :  { %3580 = vmatmul.mubr.f32.vlgmr.msra.gmra.mrb[192].mxu1 %v14320_v62  ;;  %11286 = vmatpush1.bf16.msra.mxu0 %v20370_v15  ;;  %v20373_v63 = vsel %vm14338_vm4, 4294967295, %v20372_v63  ;;  %v2652_v48 = vmax.f32 %v1291_v34, 0.0  ;;  %vm2908_vm7 = vcmp.gt.f32.partialorder %v1291_v34, 0.0  ;;  %vm2874_vm12 = vcmp.gt.f32.partialorder %v1148_v39, 0.0  ;;  %v20389_v39 = vld [vmem:[#allocation29_spill] sm:$0xff] }
 0x191   :  { %11318 = vmatpush1.bf16.msra.mxu1 %v20371_v43  ;;  %20374 = vst [vmem:[#allocation10_spill] sm:$0xff] %v20373_v63  ;;  %11288 = vmatprep.subr.bf16.mxu0 %v20375_v56  ;;  %v14344_v31 = vpack.c.bf16 %v2649_v59, %v2617_v58  ;;  %v14346_v50 = vpack.c.bf16 %v2651_v5, %v2619_v25  ;;  %vm20377_vm11 = vcmp.gt.f32.partialorder %v1283_v35, 0.0  ;;  %v20378_v4 = vmov 0  ;;  %vm14359_vm8 = vmpackc.low %vm2906_vm13, %vm2874_vm12  ;;  %v20384_v59 = vld [vmem:[#allocation18_spill] sm:$0xff]  ;;  %v20385_v5 = vld [vmem:[#allocation19_spill] sm:$0xff] }
 0x192   :  { %11320 = vmatprep.subr.bf16.mxu1 %v20376_v36  ;;  %vm14349_vm9 = vmpackc.low %vm2907_vm2, %vm20377_vm11  ;;  %3650 = vmatprep.mubr.f32.mxu0 %v20089_v0  ;;  %vm2876_vm14 = vcmp.gt.f32.partialorder %v1285_v17, 0.0  ;;  %v14355_v27 = vpack.c.bf16 %v2650_v44, %v2618_v13  ;;  %v14357_v15 = vpack.c.bf16 %v2652_v48, %v2620_v47  ;;  %v20381_v36 = vmov 0  ;;  %v20390_v17 = vld [vmem:[#allocation32_spill] sm:$0xff]  ;;  %v20391_v58 = vld [vmem:[#allocation26_spill] sm:$0xff] }
 0x193   :  { %v20379_v4 = vsel %vm14349_vm9, 4294967295, %v20378_v4  ;;  %3721 = vmatprep.mubr.f32.mxu1 %v20089_v0  ;;  %v20382_v36 = vsel %vm14359_vm8, 4294967295, %v20381_v36  ;;  %vm14366_vm11 = vmpackc.low %vm2908_vm7, %vm2876_vm14  ;;  %v20386_v35 = vmov 0  ;;  %v20392_v25 = vld [vmem:[#allocation27_spill] sm:$0xff]  ;;  %v20393_v13 = vld [vmem:[#allocation37_spill] sm:$0xff] }
 0x194   :  { %20380 = vst [vmem:[#allocation11_spill] sm:$0xff] %v20379_v4  ;;  %20383 = vst [vmem:[#allocation21_spill] sm:$0xff] %v20382_v36  ;;  %11290 = vmatpush1.bf16.msra.mxu0 %v20384_v59  ;;  %v20387_v35 = vsel %vm14366_vm11, 4294967295, %v20386_v35  ;;  %v20394_v47 = vld [vmem:[#allocation38_spill] sm:$0xff]  ;;  %v20396_v44 = vld [vmem:[#allocation35_spill] sm:$0xff] }
 0x195   :  { %11322 = vmatpush1.bf16.msra.mxu1 %v20385_v5  ;;  %20388 = vst [vmem:[#allocation24_spill] sm:$0xff] %v20387_v35  ;;  %11292 = vmatprep.subr.bf16.mxu0 %v20389_v39  ;;  %v20395_v43 = vld [vmem:[#allocation34_spill] sm:$0xff]  ;;  %v20397_v34 = vmov 1.0|1.0   ;;  %v20400_v56 = vld [vmem:[#allocation15_spill] sm:$0xff]  ;;  %v20402_v59 = vld [vmem:[#allocation9_spill] sm:$0xff] }
 0x196   :  { %11324 = vmatprep.subr.bf16.mxu1 %v20390_v17  ;;  %v20398_v48 = vld [vmem:[#allocation14_spill] sm:$0xff]  ;;  %vm20401_vm7 = vnez %v20400_v56  ;;  %vm20403_vm12 = vnez %v20402_v59  ;;  %v20404_v5 = vld [vmem:[#allocation12_spill] sm:$0xff]  ;;  %v20408_v17 = vld [vmem:[#allocation23_spill] sm:$0xff] }
 0x197   :  { %vm20399_vm13 = vnez %v20398_v48  ;;  %vm20405_vm2 = vnez %v20404_v5  ;;  %v20406_v39 = vld [vmem:[#allocation22_spill] sm:$0xff]  ;;  %vm20409_vm9 = vnez %v20408_v17  ;;  %v20410_v59 = vld [vmem:[#allocation17_spill] sm:$0xff]  ;;  %v20412_v5 = vld [vmem:[#allocation20_spill] sm:$0xff] }
 0x198   :  { %11294 = vmatpush1.bf16.msra.mxu0 %v20391_v58  ;;  %vm20407_vm14 = vnez %v20406_v39 }
 0x199   :  { %11326 = vmatpush1.bf16.msra.mxu1 %v20392_v25  ;;  %11296 = vmatprep.subr.bf16.mxu0 %v20393_v13  ;;  %v1383_v58 = vpop.f32.mrb[96].mxu0  ;;  %v1520_v25 = vpop.f32.mrb[96].mxu1 }
 0x19a   :  { %11328 = vmatprep.subr.bf16.mxu1 %v20394_v47  ;;  %v1384_v13 = vadd.f32 %v1383_v58, %v13321_v42  ;;  %v1521_v47 = vadd.f32 %v1520_v25, %v13321_v42  ;;  %v20414_v58 = vld [vmem:[#allocation30_spill] sm:$0xff]  ;;  %v20416_v25 = vld [vmem:[#allocation31_spill] sm:$0xff] }
 0x19c   :  { %11298 = vmatpush1.bf16.msra.mxu0 %v20395_v43  ;;  %v1385_v43 = vpop.f32.mrb[97].mxu0  ;;  %v2429_v39 = vmax.f32 %v1384_v13, 0.0  ;;  %v2431_v17 = vmax.f32 %v1521_v47, 0.0 }
 0x19d   :  { %11330 = vmatpush1.bf16.msra.mxu1 %v20396_v44  ;;  %11300 = vmatprep.subr.msk.bf16.mxu0 %vm20399_vm13, %v20397_v34  ;;  %v1522_v44 = vpop.f32.mrb[97].mxu1  ;;  %v1386_v48 = vadd.f32 %v1385_v43, %v13321_v42  ;;  %vm20411_vm13 = vnez %v20410_v59  ;;  %v1389_v43 = vpop.f32.mrb[98].mxu0 }
 0x19e   :  { %11332 = vmatprep.subr.msk.bf16.mxu1 %vm20401_vm7, %v20397_v34  ;;  %v1523_v56 = vadd.f32 %v1522_v44, %v13321_v42  ;;  %vm20413_vm7 = vnez %v20412_v5  ;;  %v1526_v44 = vpop.f32.mrb[98].mxu1  ;;  %v1390_v4 = vadd.f32 %v1389_v43, %v20306_v61  ;;  %v1391_v63 = vpop.f32.mrb[99].mxu0  ;;  %v20420_v43 = vld [vmem:[#allocation28_spill] sm:$0xff] }
 0x19f   :  { %v2430_v59 = vmax.f32 %v1386_v48, 0.0  ;;  %v1527_v5 = vadd.f32 %v1526_v44, %v20306_v61  ;;  %v1528_v35 = vpop.f32.mrb[99].mxu1  ;;  %v1392_v1 = vadd.f32 %v1391_v63, %v20306_v61  ;;  %v20422_v44 = vmov 0 }
 0x1a0   :  { %11302 = vmatpush1.bf16.msk.msra.mxu0 %vm20403_vm12, %v20397_v34  ;;  %v2432_v36 = vmax.f32 %v1523_v56, 0.0  ;;  %v2461_v54 = vmax.f32 %v1390_v4, 0.0  ;;  %vm20419_vm12 = vnez %v20418_v41  ;;  %v20427_v41 = vld [vmem:[#allocation40_spill] sm:$0xff] }
 0x1a1   :  { %11334 = vmatpush1.bf16.msk.msra.mxu1 %vm20405_vm2, %v20397_v34  ;;  %11304 = vmatprep.subr.msk.bf16.mxu0 %vm20407_vm14, %v20397_v34  ;;  %vm20415_vm2 = vnez %v20414_v58  ;;  %vm20417_vm14 = vnez %v20416_v25  ;;  %v1529_v58 = vadd.f32 %v1528_v35, %v20306_v61  ;;  %v2463_v25 = vmax.f32 %v1527_v5, 0.0 }
 0x1a2   :  { %11336 = vmatprep.subr.msk.bf16.mxu1 %vm20409_vm9, %v20397_v34  ;;  %vm2685_vm9 = vcmp.gt.f32.partialorder %v1384_v13, 0.0  ;;  %v2462_v63 = vmax.f32 %v1392_v1, 0.0  ;;  %v14433_v38 = vpack.c.bf16 %v2461_v54, %v2429_v39  ;;  %v20440_v39 = vld [vmem:[#allocation33_spill] sm:$0xff] }
 0x1a3   :  { %v2464_v35 = vmax.f32 %v1529_v58, 0.0  ;;  %vm2720_vm11 = vcmp.gt.f32.partialorder %v1529_v58, 0.0  ;;  %v14435_v13 = vpack.c.bf16 %v2463_v25, %v2431_v17  ;;  %v20442_v17 = vld [vmem:[#allocation36_spill] sm:$0xff] }
 0x1a4   :  { %11306 = vmatpush1.bf16.msk.msra.mxu0 %vm20411_vm13, %v20397_v34  ;;  %vm20421_vm13 = vnez %v20420_v43  ;;  %v1532_v43 = vpop.f32.mrb[100].mxu1  ;;  %20429 = vst [vmem:[#allocation19_spill] sm:$0xff] %v14433_v38  ;;  %v14446_v14 = vpack.c.bf16 %v2462_v63, %v2430_v59 }
 0x1a5   :  { %11338 = vmatpush1.bf16.msk.msra.mxu1 %vm20413_vm7, %v20397_v34  ;;  %11308 = vmatprep.subr.msk.bf16.mxu0 %vm20415_vm2, %v20397_v34  ;;  %vm2717_vm2 = vcmp.gt.f32.partialorder %v1390_v4, 0.0  ;;  %vm2718_vm7 = vcmp.gt.f32.partialorder %v1392_v1, 0.0  ;;  %v20425_v4 = vld [vmem:[#allocation39_spill] sm:$0xff]  ;;  %20430 = vst [vmem:[#allocation29_spill] sm:$0xff] %v14435_v13  ;;  %v1534_v30 = vpop.f32.mrb[101].mxu1  ;;  %v14448_v54 = vpack.c.bf16 %v2464_v35, %v2432_v36  ;;  %v20448_v36 = vld [vmem:[#allocation46_spill] sm:$0xff] }
 0x1a6   :  { %11340 = vmatprep.subr.msk.bf16.mxu1 %vm20417_vm14, %v20397_v34  ;;  %vm2719_vm14 = vcmp.gt.f32.partialorder %v1527_v5, 0.0  ;;  %vm14423_vm4 = vmpackc.low %vm2717_vm2, %vm2685_vm9  ;;  %vm20426_vm8 = vnez %v20425_v4  ;;  %v1395_v5 = vpop.f32.mrb[100].mxu0  ;;  %vm20431_vm9 = vcmp.gt.f32.partialorder %v1521_v47, 0.0  ;;  %v1533_v4 = vadd.f32 %v1532_v43, %v13340_v51  ;;  %v1538_v25 = vpop.f32.mrb[102].mxu1 }
 0x1a7   :  { %v20423_v44 = vsel %vm14423_vm4, 4294967295, %v20422_v44  ;;  %v1396_v55 = vadd.f32 %v1395_v5, %v13340_v51  ;;  %v1397_v10 = vpop.f32.mrb[101].mxu0  ;;  %v1535_v20 = vadd.f32 %v1534_v30, %v13340_v51  ;;  %20435 = vst [vmem:[#allocation26_spill] sm:$0xff] %v14448_v54  ;;  %v20437_v47 = vmov 0  ;;  %v1540_v5 = vpop.f32.mrb[103].mxu1 }
 0x1a8   :  { %11310 = vmatpush1.bf16.msk.msra.mxu0 %vm20419_vm12, %v20397_v34  ;;  %20424 = vst [vmem:[#allocation18_spill] sm:$0xff] %v20423_v44  ;;  %vm20428_vm12 = vnez %v20427_v41  ;;  %v20432_v44 = vmov 0  ;;  %v1398_v41 = vadd.f32 %v1397_v10, %v13340_v51  ;;  %v20445_v30 = vmov 0  ;;  %v1401_v59 = vpop.f32.mrb[102].mxu0 }
 0x1a9   :  { %11342 = vmatpush1.bf16.msk.msra.mxu1 %vm20421_vm13, %v20397_v34  ;;  %11312 = vmatprep.subr.msk.bf16.mxu0 %vm20426_vm8, %v20397_v34  ;;  %vm14438_vm13 = vmpackc.low %vm2719_vm14, %vm20431_vm9  ;;  %vm20436_vm8 = vcmp.gt.f32.partialorder %v1386_v48, 0.0  ;;  %vm20441_vm14 = vnez %v20440_v39  ;;  %vm20444_vm9 = vcmp.gt.f32.partialorder %v1523_v56, 0.0  ;;  %v2493_v10 = vmax.f32 %v1396_v55, 0.0  ;;  %v20449_v48 = vld [vmem:[#allocation49_spill] sm:$0xff]  ;;  %v1403_v58 = vpop.f32.mrb[103].mxu0  ;;  %v1544_v13 = vpop.f32.mrb[104].mxu1 }
 0x1aa   :  { %11344 = vmatprep.subr.msk.bf16.mxu1 %vm20428_vm12, %v20397_v34  ;;  %v20433_v44 = vsel %vm14438_vm13, 4294967295, %v20432_v44  ;;  %vm14452_vm2 = vmpackc.low %vm2718_vm7, %vm20436_vm8  ;;  %vm20443_vm12 = vnez %v20442_v17  ;;  %vm2749_vm4 = vcmp.gt.f32.partialorder %v1396_v55, 0.0  ;;  %v2495_v1 = vmax.f32 %v1533_v4, 0.0  ;;  %v1546_v54 = vpop.f32.mrb[105].mxu1 }
 0x1ab   :  { %20434 = vst [vmem:[#allocation32_spill] sm:$0xff] %v20433_v44  ;;  %v20438_v47 = vsel %vm14452_vm2, 4294967295, %v20437_v47  ;;  %vm14464_vm13 = vmpackc.low %vm2720_vm11, %vm20444_vm9  ;;  %vm2751_vm7 = vcmp.gt.f32.partialorder %v1533_v4, 0.0  ;;  %v2494_v63 = vmax.f32 %v1398_v41, 0.0  ;;  %v1402_v35 = vadd.f32 %v1401_v59, %v13374_v29  ;;  %v20450_v44 = vld [vmem:[#allocation43_spill] sm:$0xff]  ;;  %v20451_v59 = vld [vmem:[#allocation44_spill] sm:$0xff] }
 0x1ac   :  { %20439 = vst [vmem:[#allocation27_spill] sm:$0xff] %v20438_v47  ;;  %11314 = vmatpush1.bf16.msk.msra.mxu0 %vm20441_vm14, %v20397_v34  ;;  %v20446_v30 = vsel %vm14464_vm13, 4294967295, %v20445_v30  ;;  %v1539_v56 = vadd.f32 %v1538_v25, %v13374_v29  ;;  %v2496_v43 = vmax.f32 %v1535_v20, 0.0  ;;  %v1404_v39 = vadd.f32 %v1403_v58, %v13374_v29  ;;  %v20455_v58 = vld [vmem:[#allocation54_spill] sm:$0xff] }
 0x1ad   :  { %11346 = vmatpush1.bf16.msk.msra.mxu1 %vm20443_vm12, %v20397_v34  ;;  %20447 = vst [vmem:[#allocation37_spill] sm:$0xff] %v20446_v30  ;;  %11348 = vmatprep.subr.bf16.mxu0 %v20448_v36  ;;  %v1541_v17 = vadd.f32 %v1540_v5, %v13374_v29  ;;  %v2525_v36 = vmax.f32 %v1402_v35, 0.0  ;;  %vm2781_vm14 = vcmp.gt.f32.partialorder %v1402_v35, 0.0  ;;  %v20452_v25 = vmov 0  ;;  %v20456_v5 = vld [vmem:[#allocation57_spill] sm:$0xff]  ;;  %v1407_v35 = vpop.f32.mrb[104].mxu0 }
 0x1ae   :  { %11380 = vmatprep.subr.bf16.mxu1 %v20449_v48  ;;  %v2527_v48 = vmax.f32 %v1539_v56, 0.0  ;;  %vm2783_vm12 = vcmp.gt.f32.partialorder %v1539_v56, 0.0  ;;  %vm14479_vm9 = vmpackc.low %vm2781_vm14, %vm2749_vm4  ;;  %v2526_v30 = vmax.f32 %v1404_v39, 0.0  ;;  %vm2782_vm11 = vcmp.gt.f32.partialorder %v1404_v39, 0.0  ;;  %v1409_v38 = vpop.f32.mrb[105].mxu0 }
 0x1af   :  { %3651 = vmatmul.mubr.f32.vlgmr.msra.gmra.mrb[194].mxu0 %v14320_v62  ;;  %v20453_v25 = vsel %vm14479_vm9, 4294967295, %v20452_v25  ;;  %v2528_v47 = vmax.f32 %v1541_v17, 0.0  ;;  %vm2784_vm8 = vcmp.gt.f32.partialorder %v1541_v17, 0.0  ;;  %v14485_v56 = vpack.c.bf16 %v2525_v36, %v2493_v10  ;;  %vm14490_vm13 = vmpackc.low %vm2783_vm12, %vm2751_vm7 }
 0x1b0   :  { %3722 = vmatmul.mubr.f32.vlgmr.msra.gmra.mrb[194].mxu1 %v14320_v62  ;;  %11350 = vmatpush1.bf16.msra.mxu0 %v20450_v44  ;;  %20454 = vst [vmem:[#allocation38_spill] sm:$0xff] %v20453_v25  ;;  %v14487_v44 = vpack.c.bf16 %v2527_v48, %v2495_v1  ;;  %v20457_v55 = vmov 0  ;;  %v1545_v25 = vadd.f32 %v1544_v13, %v13402_v52  ;;  %vm20460_vm4 = vcmp.gt.f32.partialorder %v1398_v41, 0.0  ;;  %v20463_v13 = vld [vmem:[#allocation51_spill] sm:$0xff]  ;;  %v20464_v48 = vld [vmem:[#allocation52_spill] sm:$0xff]  ;;  %v1413_v41 = vpop.f32.mrb[106].mxu0 }
 0x1b1   :  { %11382 = vmatpush1.bf16.msra.mxu1 %v20451_v59  ;;  %11352 = vmatprep.subr.bf16.mxu0 %v20455_v58  ;;  %v20458_v55 = vsel %vm14490_vm13, 4294967295, %v20457_v55  ;;  %v1408_v59 = vadd.f32 %v1407_v35, %v13402_v52  ;;  %v1410_v58 = vadd.f32 %v1409_v38, %v13402_v52  ;;  %v1547_v10 = vadd.f32 %v1546_v54, %v13402_v52  ;;  %vm14506_vm7 = vmpackc.low %vm2782_vm11, %vm20460_vm4  ;;  %v1415_v39 = vpop.f32.mrb[107].mxu0 }
 0x1b2   :  { %11384 = vmatprep.subr.bf16.mxu1 %v20456_v5  ;;  %20459 = vst [vmem:[#allocation34_spill] sm:$0xff] %v20458_v55  ;;  %3792 = vmatprep.mubr.f32.mxu0 %v20089_v0  ;;  %v14500_v1 = vpack.c.bf16 %v2526_v30, %v2494_v63  ;;  %v14502_v4 = vpack.c.bf16 %v2528_v47, %v2496_v43  ;;  %v20461_v36 = vmov 0  ;;  %vm20465_vm14 = vcmp.gt.f32.partialorder %v1535_v20, 0.0  ;;  %v1550_v30 = vpop.f32.mrb[106].mxu1 }
 0x1b3   :  { %3863 = vmatprep.mubr.f32.mxu1 %v20089_v0  ;;  %v20462_v36 = vsel %vm14506_vm7, 4294967295, %v20461_v36  ;;  %vm14514_vm12 = vmpackc.low %vm2784_vm8, %vm20465_vm14  ;;  %v20466_v38 = vmov 0  ;;  %v2557_v54 = vmax.f32 %v1408_v59, 0.0  ;;  %vm2813_vm13 = vcmp.gt.f32.partialorder %v1408_v59, 0.0  ;;  %v1552_v17 = vpop.f32.mrb[107].mxu1 }
 0x1b4   :  { %11354 = vmatpush1.bf16.msra.mxu0 %v20463_v13  ;;  %v20467_v38 = vsel %vm14514_vm12, 4294967295, %v20466_v38  ;;  %v2559_v47 = vmax.f32 %v1545_v25, 0.0  ;;  %v2558_v63 = vmax.f32 %v1410_v58, 0.0  ;;  %v1414_v43 = vadd.f32 %v1413_v41, %v13427_v8 }
 0x1b5   :  { %11386 = vmatpush1.bf16.msra.mxu1 %v20464_v48  ;;  %20468 = vst [vmem:[#allocation35_spill] sm:$0xff] %v20467_v38  ;;  %11356 = vmatprep.subr.bf16.mxu0 %v14012_v7  ;;  %v1551_v20 = vadd.f32 %v1550_v30, %v13427_v8  ;;  %v2560_v5 = vmax.f32 %v1547_v10, 0.0  ;;  %v1416_v35 = vadd.f32 %v1415_v39, %v13427_v8  ;;  %v20470_v41 = vmov 0  ;;  %v1556_v39 = vpop.f32.mrb[108].mxu1 }
 0x1b6   :  { %11388 = vmatprep.subr.bf16.mxu1 %v14030_v37  ;;  %v1553_v13 = vadd.f32 %v1552_v17, %v13427_v8  ;;  %v2589_v48 = vmax.f32 %v1414_v43, 0.0  ;;  %vm2845_vm4 = vcmp.gt.f32.partialorder %v1414_v43, 0.0  ;;  %v20469_v37 = vld [vmem:[#allocation59_spill] sm:$0xff]  ;;  %v1419_v43 = vpop.f32.mrb[108].mxu0  ;;  %vm20473_vm12 = vcmp.gt.f32.partialorder %v1545_v25, 0.0  ;;  %v1558_v38 = vpop.f32.mrb[109].mxu1 }
 0x1b7   :  { %v2591_v7 = vmax.f32 %v1551_v20, 0.0  ;;  %vm2847_vm14 = vcmp.gt.f32.partialorder %v1551_v20, 0.0  ;;  %vm14527_vm11 = vmpackc.low %vm2845_vm4, %vm2813_vm13  ;;  %v2590_v30 = vmax.f32 %v1416_v35, 0.0  ;;  %vm2846_vm8 = vcmp.gt.f32.partialorder %v1416_v35, 0.0  ;;  %v1562_v35 = vpop.f32.mrb[110].mxu1 }
 0x1b8   :  { %11358 = vmatpush1.bf16.msra.mxu0 %v13994_v53  ;;  %v20471_v41 = vsel %vm14527_vm11, 4294967295, %v20470_v41  ;;  %v2592_v55 = vmax.f32 %v1553_v13, 0.0  ;;  %v14533_v20 = vpack.c.bf16 %v2589_v48, %v2557_v54  ;;  %vm14538_vm7 = vmpackc.low %vm2847_vm14, %vm20473_vm12  ;;  %v20474_v59 = vmov 0 }
 0x1b9   :  { %11390 = vmatpush1.bf16.msra.mxu1 %v20469_v37  ;;  %20472 = vst [vmem:[#allocation14_spill] sm:$0xff] %v20471_v41  ;;  %11360 = vmatprep.subr.bf16.mxu0 %v14061_v9  ;;  %v14535_v53 = vpack.c.bf16 %v2591_v7, %v2559_v47  ;;  %v20475_v59 = vsel %vm14538_vm7, 4294967295, %v20474_v59  ;;  %v1420_v17 = vadd.f32 %v1419_v43, %v13457_v45  ;;  %v1421_v41 = vpop.f32.mrb[109].mxu0  ;;  %vm2816_vm13 = vcmp.gt.f32.partialorder %v1547_v10, 0.0 }
 0x1ba   :  { %11392 = vmatprep.subr.bf16.mxu1 %v14063_v40  ;;  %v1557_v37 = vadd.f32 %v1556_v39, %v13457_v45  ;;  %v1422_v9 = vadd.f32 %v1421_v41, %v13457_v45  ;;  %v14545_v40 = vpack.c.bf16 %v2590_v30, %v2558_v63  ;;  %v14547_v54 = vpack.c.bf16 %v2592_v55, %v2560_v5  ;;  %v20482_v55 = vld [vmem:[#allocation47_spill] sm:$0xff]  ;;  %v1425_v63 = vpop.f32.mrb[110].mxu0  ;;  %v1564_v41 = vpop.f32.mrb[111].mxu1  ;;  %v20486_v39 = vld [vmem:[#allocation42_spill] sm:$0xff] }
 0x1bb   :  { %vm20476_vm4 = vcmp.gt.f32.partialorder %v1410_v58, 0.0  ;;  %v20477_v25 = vmov 0  ;;  %vm20479_vm12 = vcmp.gt.f32.partialorder %v1553_v13, 0.0  ;;  %v20480_v47 = vmov 0  ;;  %v20484_v58 = vld [vmem:[#allocation48_spill] sm:$0xff]  ;;  %v1427_v13 = vpop.f32.mrb[111].mxu0 }
 0x1bc   :  { %vm14551_vm9 = vmpackc.low %vm2846_vm8, %vm20476_vm4  ;;  %11362 = vmatpush1.bf16.msra.mxu0 %v14046_v11  ;;  %v1559_v10 = vadd.f32 %v1558_v38, %v13457_v45  ;;  %vm20483_vm7 = vnez %v20482_v55  ;;  %vm20485_vm8 = vnez %v20484_v58  ;;  %v2621_v5 = vmax.f32 %v1420_v17, 0.0  ;;  %v20488_v55 = vld [vmem:[#allocation45_spill] sm:$0xff] }
 0x1bd   :  { %v20478_v25 = vsel %vm14551_vm9, 4294967295, %v20477_v25  ;;  %11394 = vmatpush1.bf16.msra.mxu1 %v14048_v6  ;;  %vm14558_vm14 = vmpackc.low %vm20479_vm12, %vm2816_vm13  ;;  %11364 = vmatprep.subr.msk.bf16.mxu0 %vm20483_vm7, %v20397_v34  ;;  %v2623_v11 = vmax.f32 %v1557_v37, 0.0  ;;  %v1426_v6 = vadd.f32 %v1425_v63, %v13494_v32  ;;  %v2622_v48 = vmax.f32 %v1422_v9, 0.0 }
 0x1be   :  { %v20481_v47 = vsel %vm14558_vm14, 4294967295, %v20480_v47  ;;  %11396 = vmatprep.subr.msk.bf16.mxu1 %vm20485_vm8, %v20397_v34  ;;  %v1563_v38 = vadd.f32 %v1562_v35, %v13494_v32  ;;  %v1428_v7 = vadd.f32 %v1427_v13, %v13494_v32  ;;  %v1565_v43 = vadd.f32 %v1564_v41, %v13494_v32  ;;  %v20495_v13 = vld [vmem:[#allocation56_spill] sm:$0xff] }
 0x1bf   :  { %v2653_v30 = vmax.f32 %v1426_v6, 0.0  ;;  %vm2909_vm12 = vcmp.gt.f32.partialorder %v1426_v6, 0.0  ;;  %vm20487_vm8 = vnez %v20486_v39  ;;  %vm20489_vm4 = vnez %v20488_v55  ;;  %v20493_v6 = vld [vmem:[#allocation55_spill] sm:$0xff] }
 0x1c0   :  { %11366 = vmatpush1.bf16.msk.msra.mxu0 %vm20487_vm8, %v20397_v34  ;;  %vm20490_vm13 = vcmp.gt.f32.partialorder %v1420_v17, 0.0  ;;  %v20491_v58 = vmov 0  ;;  %v2655_v63 = vmax.f32 %v1563_v38, 0.0  ;;  %vm2911_vm14 = vcmp.gt.f32.partialorder %v1563_v38, 0.0 }
 0x1c1   :  { %11398 = vmatpush1.bf16.msk.msra.mxu1 %vm20489_vm4, %v20397_v34  ;;  %vm14580_vm11 = vmpackc.low %vm2909_vm12, %vm20490_vm13  ;;  %v2654_v35 = vmax.f32 %v1428_v7, 0.0  ;;  %vm2910_vm7 = vcmp.gt.f32.partialorder %v1428_v7, 0.0  ;;  %vm20494_vm9 = vnez %v20493_v6  ;;  %vm20496_vm8 = vnez %v20495_v13 }
 0x1c2   :  { %v20492_v58 = vsel %vm14580_vm11, 4294967295, %v20491_v58  ;;  %11368 = vmatprep.subr.msk.bf16.mxu0 %vm20494_vm9, %v20397_v34  ;;  %11400 = vmatprep.subr.msk.bf16.mxu1 %vm20496_vm8, %v20397_v34  ;;  %v2624_v41 = vmax.f32 %v1559_v10, 0.0  ;;  %v14590_v39 = vpack.c.bf16 %v2653_v30, %v2621_v5  ;;  %vm20497_vm4 = vcmp.gt.f32.partialorder %v1557_v37, 0.0  ;;  %v20503_v5 = vld [vmem:[#allocation50_spill] sm:$0xff]  ;;  %v20505_v37 = vld [vmem:[#allocation53_spill] sm:$0xff] }
 0x1c3   :  { %vm14593_vm13 = vmpackc.low %vm2911_vm14, %vm20497_vm4  ;;  %v2656_v55 = vmax.f32 %v1565_v43, 0.0  ;;  %vm2912_vm12 = vcmp.gt.f32.partialorder %v1565_v43, 0.0  ;;  %vm2880_vm11 = vcmp.gt.f32.partialorder %v1559_v10, 0.0  ;;  %v14597_v38 = vpack.c.bf16 %v2655_v63, %v2623_v11  ;;  %v20511_v11 = vld [vmem:[#allocation62_spill] sm:$0xff]  ;;  %v20515_v43 = vld [vmem:[#allocation60_spill] sm:$0xff] }
 0x1c4   :  { %v14599_v7 = vpack.c.bf16 %v2654_v35, %v2622_v48  ;;  %vm20500_vm9 = vcmp.gt.f32.partialorder %v1422_v9, 0.0  ;;  %vm20504_vm8 = vnez %v20503_v5  ;;  %vm20506_vm14 = vnez %v20505_v37  ;;  %vm14614_vm4 = vmpackc.low %vm2912_vm12, %vm2880_vm11  ;;  %v20509_v9 = vld [vmem:[#allocation61_spill] sm:$0xff]  ;;  %v20513_v48 = vld [vmem:[#allocation58_spill] sm:$0xff] }
 0x1c5   :  { %vm14602_vm2 = vmpackc.low %vm2910_vm7, %vm20500_vm9  ;;  %11370 = vmatpush1.bf16.msk.msra.mxu0 %vm20504_vm8, %v20397_v34  ;;  %11402 = vmatpush1.bf16.msk.msra.mxu1 %vm20506_vm14, %v20397_v34  ;;  %v14612_v30 = vpack.c.bf16 %v2656_v55, %v2624_v41  ;;  %vm20510_vm7 = vnez %v20509_v9  ;;  %vm20512_vm9 = vnez %v20511_v11  ;;  %vm20514_vm8 = vnez %v20513_v48 }
 0x1c6   :  { %11372 = vmatprep.subr.msk.bf16.mxu0 %vm20510_vm7, %v20397_v34  ;;  %11404 = vmatprep.subr.msk.bf16.mxu1 %vm20512_vm9, %v20397_v34  ;;  %vm20516_vm14 = vnez %v20515_v43 }
 0x1c9   :  { %11374 = vmatpush1.bf16.msk.msra.mxu0 %vm20514_vm8, %v20397_v34  ;;  %11406 = vmatpush1.bf16.msk.msra.mxu1 %vm20516_vm14, %v20397_v34 }
 0x1ca   :  { %11376 = vmatprep.subr.msk.bf16.mxu0 %vm14066_vm15, %v20397_v34  ;;  %11408 = vmatprep.subr.msk.bf16.mxu1 %vm14073_vm1, %v20397_v34 }
 0x1cb   :  { %v1657_v21 = vpop.f32.mrb[120].mxu0 }
 0x1cc   :  { %v1658_v12 = vadd.f32 %v1657_v21, %v13321_v42  ;;  %v1794_v57 = vpop.f32.mrb[120].mxu1  ;;  %v1659_v19 = vpop.f32.mrb[121].mxu0 }
 0x1cd   :  { %11378 = vmatpush1.bf16.msk.msra.mxu0 %vm14040_vm3, %v20397_v34  ;;  %11410 = vmatpush1.bf16.msk.msra.mxu1 %vm14051_vm0, %v20397_v34 }
 0x1ce   :  { %11412 = vmatprep.subr.bf16.mxu0 %v14190_v33  ;;  %11444 = vmatprep.subr.bf16.mxu1 %v14219_v23  ;;  %v1795_v33 = vadd.f32 %v1794_v57, %v13321_v42  ;;  %v1660_v23 = vadd.f32 %v1659_v19, %v13321_v42  ;;  %vm2689_vm0 = vcmp.gt.f32.partialorder %v1658_v12, 0.0 }
 0x1d0   :  { %3793 = vmatmul.mubr.f32.vlgmr.msra.gmra.mrb[196].mxu0 %v14320_v62  ;;  %3864 = vmatmul.mubr.f32.vlgmr.msra.gmra.mrb[196].mxu1 %v14320_v62  ;;  %v2435_v63 = vmax.f32 %v1795_v33, 0.0  ;;  %vm2691_vm3 = vcmp.gt.f32.partialorder %v1795_v33, 0.0  ;;  %v2434_v35 = vmax.f32 %v1660_v23, 0.0  ;;  %vm2690_vm15 = vcmp.gt.f32.partialorder %v1660_v23, 0.0  ;;  %v20537_v23 = vld [vmem:[#allocation5_spill] sm:$0xff] }
 0x1d1   :  { %11414 = vmatpush1.bf16.msra.mxu0 %v14172_v18  ;;  %11446 = vmatpush1.bf16.msra.mxu1 %v14174_v28  ;;  %v1796_v18 = vpop.f32.mrb[121].mxu1 }
 0x1d2   :  { %11416 = vmatprep.subr.bf16.mxu0 %v14254_v49  ;;  %11448 = vmatprep.subr.bf16.mxu1 %v14273_v24  ;;  %v1797_v28 = vadd.f32 %v1796_v18, %v13321_v42  ;;  %v2433_v49 = vmax.f32 %v1658_v12, 0.0  ;;  %v1663_v24 = vpop.f32.mrb[122].mxu0 }
 0x1d3   :  { %3934 = vmatprep.mubr.f32.mxu0 %v20089_v0  ;;  %4005 = vmatprep.mubr.f32.mxu1 %v20089_v0  ;;  %v1664_v13 = vadd.f32 %v1663_v24, %v20306_v61  ;;  %v1665_v55 = vpop.f32.mrb[123].mxu0 }
 0x1d4   :  { %v1800_v41 = vpop.f32.mrb[122].mxu1  ;;  %v2436_v5 = vmax.f32 %v1797_v28, 0.0  ;;  %vm2692_vm1 = vcmp.gt.f32.partialorder %v1797_v28, 0.0 }
 0x1d5   :  { %11418 = vmatpush1.bf16.msra.mxu0 %v14237_v46  ;;  %11450 = vmatpush1.bf16.msra.mxu1 %v14239_v2  ;;  %v1801_v46 = vadd.f32 %v1800_v41, %v20306_v61  ;;  %v1666_v2 = vadd.f32 %v1665_v55, %v20306_v61  ;;  %v1802_v37 = vpop.f32.mrb[123].mxu1  ;;  %v2465_v9 = vmax.f32 %v1664_v13, 0.0  ;;  %vm2721_vm11 = vcmp.gt.f32.partialorder %v1664_v13, 0.0 }
 0x1d6   :  { %11420 = vmatprep.subr.bf16.mxu0 %v14307_v3  ;;  %11452 = vmatprep.subr.bf16.mxu1 %v14329_v26  ;;  %v1803_v3 = vadd.f32 %v1802_v37, %v20306_v61  ;;  %vm14667_vm12 = vmpackc.low %vm2721_vm11, %vm2689_vm0  ;;  %v20517_v26 = vmov 0  ;;  %v1669_v43 = vpop.f32.mrb[124].mxu0  ;;  %v20525_v41 = vmov 0 }
 0x1d7   :  { %v20518_v26 = vsel %vm14667_vm12, 4294967295, %v20517_v26  ;;  %v2467_v11 = vmax.f32 %v1801_v46, 0.0  ;;  %vm2723_vm7 = vcmp.gt.f32.partialorder %v1801_v46, 0.0  ;;  %v2466_v48 = vmax.f32 %v1666_v2, 0.0  ;;  %v1671_v19 = vpop.f32.mrb[125].mxu0 }
 0x1d8   :  { %20519 = vst [vmem:[#allocation15_spill] sm:$0xff] %v20518_v26  ;;  %vm2722_vm9 = vcmp.gt.f32.partialorder %v1666_v2, 0.0  ;;  %v14673_v21 = vpack.c.bf16 %v2465_v9, %v2433_v49  ;;  %vm14676_vm8 = vmpackc.low %vm2723_vm7, %vm2691_vm3  ;;  %vm2724_vm14 = vcmp.gt.f32.partialorder %v1803_v3, 0.0  ;;  %v1670_v12 = vadd.f32 %v1669_v43, %v13340_v51  ;;  %v1806_v57 = vpop.f32.mrb[124].mxu1  ;;  %v20530_v43 = vld [vmem:[#allocation41_spill] sm:$0xff] }
 0x1d9   :  { %11422 = vmatpush1.bf16.msra.mxu0 %v14290_v22  ;;  %11454 = vmatpush1.bf16.msra.mxu1 %v14292_v16  ;;  %v20520_v22 = vmov 0  ;;  %v2468_v16 = vmax.f32 %v1803_v3, 0.0  ;;  %v14681_v18 = vpack.c.bf16 %v2467_v11, %v2435_v63  ;;  %v1808_v24 = vpop.f32.mrb[125].mxu1  ;;  %v14685_v49 = vpack.c.bf16 %v2466_v48, %v2434_v35  ;;  %vm14689_vm0 = vmpackc.low %vm2722_vm9, %vm2690_vm15 }
 0x1da   :  { %11424 = vmatprep.subr.bf16.mxu0 %v14355_v27  ;;  %11456 = vmatprep.subr.bf16.mxu1 %v14357_v15  ;;  %v20521_v22 = vsel %vm14676_vm8, 4294967295, %v20520_v22  ;;  %v1807_v27 = vadd.f32 %v1806_v57, %v13340_v51  ;;  %v1672_v15 = vadd.f32 %v1671_v19, %v13340_v51  ;;  %v1809_v13 = vadd.f32 %v1808_v24, %v13340_v51  ;;  %vm14699_vm3 = vmpackc.low %vm2724_vm14, %vm2692_vm1  ;;  %v20535_v24 = vld [vmem:[#allocation8_spill] sm:$0xff] }
 0x1db   :  { %20522 = vst [vmem:[#allocation9_spill] sm:$0xff] %v20521_v22  ;;  %v14696_v63 = vpack.c.bf16 %v2468_v16, %v2436_v5  ;;  %v20526_v41 = vsel %vm14699_vm3, 4294967295, %v20525_v41  ;;  %v2497_v35 = vmax.f32 %v1670_v12, 0.0  ;;  %vm2753_vm11 = vcmp.gt.f32.partialorder %v1670_v12, 0.0 }
 0x1dc   :  { %20527 = vst [vmem:[#allocation12_spill] sm:$0xff] %v20526_v41  ;;  %v2499_v55 = vmax.f32 %v1807_v27, 0.0  ;;  %vm2755_vm15 = vcmp.gt.f32.partialorder %v1807_v27, 0.0  ;;  %v1812_v5 = vpop.f32.mrb[126].mxu1  ;;  %v2500_v2 = vmax.f32 %v1809_v13, 0.0  ;;  %v20532_v16 = vmov 0 }
 0x1dd   :  { %11426 = vmatpush1.bf16.msra.mxu0 %v14344_v31  ;;  %11458 = vmatpush1.bf16.msra.mxu1 %v14346_v50  ;;  %v1675_v31 = vpop.f32.mrb[126].mxu0  ;;  %v2498_v50 = vmax.f32 %v1672_v15, 0.0  ;;  %v1813_v37 = vadd.f32 %v1812_v5, %v13374_v29  ;;  %v1814_v60 = vpop.f32.mrb[127].mxu1  ;;  %vm20536_vm1 = vnez %v20535_v24  ;;  %v20539_v12 = vmov 0 }
 0x1de   :  { %11428 = vmatprep.subr.msk.bf16.mxu0 %vm14194_vm10, %v20397_v34  ;;  %11460 = vmatprep.subr.msk.bf16.mxu1 %vm14206_vm6, %v20397_v34  ;;  %v1676_v28 = vadd.f32 %v1675_v31, %v13374_v29  ;;  %v1677_v46 = vpop.f32.mrb[127].mxu0  ;;  %v1815_v11 = vadd.f32 %v1814_v60, %v13374_v29  ;;  %vm20531_vm6 = vnez %v20530_v43  ;;  %v20543_v27 = vmov 0 }
 0x1df   :  { %v1678_v9 = vadd.f32 %v1677_v46, %v13374_v29  ;;  %v2531_v57 = vmax.f32 %v1813_v37, 0.0  ;;  %vm2787_vm14 = vcmp.gt.f32.partialorder %v1813_v37, 0.0  ;;  %v1681_v31 = vpop.f32.mrb[128].mxu0 }
 0x1e0   :  { %v2529_v3 = vmax.f32 %v1676_v28, 0.0  ;;  %vm2785_vm7 = vcmp.gt.f32.partialorder %v1676_v28, 0.0  ;;  %v2532_v5 = vmax.f32 %v1815_v11, 0.0  ;;  %v1682_v46 = vadd.f32 %v1681_v31, %v13402_v52  ;;  %v1818_v37 = vpop.f32.mrb[128].mxu1  ;;  %v1683_v60 = vpop.f32.mrb[129].mxu0 }
 0x1e1   :  { %11430 = vmatpush1.bf16.msk.msra.mxu0 %vm14164_vm5, %v20397_v34  ;;  %11462 = vmatpush1.bf16.msk.msra.mxu1 %vm20531_vm6, %v20397_v34  ;;  %vm14720_vm9 = vmpackc.low %vm2785_vm7, %vm2753_vm11  ;;  %v2530_v19 = vmax.f32 %v1678_v9, 0.0  ;;  %vm2786_vm10 = vcmp.gt.f32.partialorder %v1678_v9, 0.0  ;;  %vm20538_vm5 = vnez %v20537_v23  ;;  %vm2788_vm7 = vcmp.gt.f32.partialorder %v1815_v11, 0.0  ;;  %v1820_v23 = vpop.f32.mrb[129].mxu1  ;;  %v20546_v11 = vld [vmem:[#allocation4_spill] sm:$0xff] }
 0x1e2   :  { %v20533_v16 = vsel %vm14720_vm9, 4294967295, %v20532_v16  ;;  %11432 = vmatprep.subr.msk.bf16.mxu0 %vm20536_vm1, %v20397_v34  ;;  %11464 = vmatprep.subr.msk.bf16.mxu1 %vm20538_vm5, %v20397_v34  ;;  %v14730_v28 = vpack.c.bf16 %v2529_v3, %v2497_v35  ;;  %vm14733_vm11 = vmpackc.low %vm2787_vm14, %vm2755_vm15  ;;  %v14738_v48 = vpack.c.bf16 %v2531_v57, %v2499_v55  ;;  %v1819_v43 = vadd.f32 %v1818_v37, %v13402_v52  ;;  %v20548_v55 = vld [vmem:[#allocation7_spill] sm:$0xff]  ;;  %v20554_v9 = vld [vmem:[#allocation16_spill] sm:$0xff]  ;;  %v1687_v31 = vpop.f32.mrb[130].mxu0 }
 0x1e3   :  { %20534 = vst [vmem:[#allocation22_spill] sm:$0xff] %v20533_v16  ;;  %v20540_v12 = vsel %vm14733_vm11, 4294967295, %v20539_v12  ;;  %v1684_v24 = vadd.f32 %v1683_v60, %v13402_v52  ;;  %v14742_v35 = vpack.c.bf16 %v2530_v19, %v2498_v50  ;;  %vm20542_vm1 = vcmp.gt.f32.partialorder %v1672_v15, 0.0  ;;  %v20556_v19 = vld [vmem:[#allocation63_spill] sm:$0xff]  ;;  %v1689_v60 = vpop.f32.mrb[131].mxu0  ;;  %v20558_v16 = vld [vmem:[#allocation6_spill] sm:$0xff] }
 0x1e4   :  { %20541 = vst [vmem:[#allocation23_spill] sm:$0xff] %v20540_v12  ;;  %vm14746_vm15 = vmpackc.low %vm2786_vm10, %vm20542_vm1  ;;  %v1821_v3 = vadd.f32 %v1820_v23, %v13402_v52  ;;  %vm20547_vm6 = vnez %v20546_v11  ;;  %vm20549_vm14 = vnez %v20548_v55  ;;  %v14757_v57 = vpack.c.bf16 %v2532_v5, %v2500_v2  ;;  %v1824_v5 = vpop.f32.mrb[130].mxu1 }
 0x1e5   :  { %v20544_v27 = vsel %vm14746_vm15, 4294967295, %v20543_v27  ;;  %11434 = vmatpush1.bf16.msk.msra.mxu0 %vm20547_vm6, %v20397_v34  ;;  %11466 = vmatpush1.bf16.msk.msra.mxu1 %vm20549_vm14, %v20397_v34  ;;  %vm20550_vm5 = vcmp.gt.f32.partialorder %v1809_v13, 0.0  ;;  %v20551_v15 = vmov 0  ;;  %v2561_v50 = vmax.f32 %v1682_v46, 0.0 }
 0x1e6   :  { %20545 = vst [vmem:[#allocation17_spill] sm:$0xff] %v20544_v27  ;;  %vm14760_vm11 = vmpackc.low %vm2788_vm7, %vm20550_vm5  ;;  %vm2817_vm10 = vcmp.gt.f32.partialorder %v1682_v46, 0.0  ;;  %vm20555_vm1 = vnez %v20554_v9  ;;  %vm20557_vm6 = vnez %v20556_v19  ;;  %v2563_v37 = vmax.f32 %v1819_v43, 0.0  ;;  %v1826_v9 = vpop.f32.mrb[131].mxu1 }
 0x1e7   :  { %v20552_v15 = vsel %vm14760_vm11, 4294967295, %v20551_v15  ;;  %11436 = vmatprep.subr.msk.bf16.mxu0 %vm20555_vm1, %v20397_v34  ;;  %11468 = vmatprep.subr.msk.bf16.mxu1 %vm20557_vm6, %v20397_v34  ;;  %v2562_v2 = vmax.f32 %v1684_v24, 0.0  ;;  %v1688_v13 = vadd.f32 %v1687_v31, %v13427_v8  ;;  %v2564_v23 = vmax.f32 %v1821_v3, 0.0  ;;  %v20560_v31 = vld [vmem:[#allocation13_spill] sm:$0xff] }
 0x1e8   :  { %20553 = vst [vmem:[#allocation20_spill] sm:$0xff] %v20552_v15  ;;  %v1825_v11 = vadd.f32 %v1824_v5, %v13427_v8  ;;  %v1690_v55 = vadd.f32 %v1689_v60, %v13427_v8  ;;  %v1827_v19 = vadd.f32 %v1826_v9, %v13427_v8  ;;  %vm20559_vm6 = vnez %v20558_v16  ;;  %v20567_v16 = vld [vmem:[#allocation24_spill] sm:$0xff]  ;;  %v1693_v9 = vpop.f32.mrb[132].mxu0  ;;  %v1830_v27 = vpop.f32.mrb[132].mxu1 }
 0x1e9   :  { %v2593_v12 = vmax.f32 %v1688_v13, 0.0  ;;  %vm2849_vm1 = vcmp.gt.f32.partialorder %v1688_v13, 0.0  ;;  %11438 = vmatpush1.bf16.msk.msra.mxu0 %vm20559_vm6, %v20397_v34  ;;  %vm20561_vm14 = vnez %v20560_v31  ;;  %v20562_v15 = vmov 0  ;;  %v20565_v13 = vld [vmem:[#allocation21_spill] sm:$0xff]  ;;  %v1695_v22 = vpop.f32.mrb[133].mxu0  ;;  %v1832_v41 = vpop.f32.mrb[133].mxu1 }
 0x1ea   :  { %11470 = vmatpush1.bf16.msk.msra.mxu1 %vm20561_vm14, %v20397_v34  ;;  %vm14781_vm7 = vmpackc.low %vm2849_vm1, %vm2817_vm10  ;;  %v2595_v5 = vmax.f32 %v1825_v11, 0.0  ;;  %vm2851_vm9 = vcmp.gt.f32.partialorder %v1825_v11, 0.0  ;;  %v2594_v60 = vmax.f32 %v1690_v55, 0.0  ;;  %vm2850_vm5 = vcmp.gt.f32.partialorder %v1690_v55, 0.0  ;;  %v1699_v55 = vpop.f32.mrb[134].mxu0 }
 0x1eb   :  { %v20563_v15 = vsel %vm14781_vm7, 4294967295, %v20562_v15  ;;  %vm20566_vm11 = vnez %v20565_v13  ;;  %vm20568_vm6 = vnez %v20567_v16  ;;  %v14791_v31 = vpack.c.bf16 %v2593_v12, %v2561_v50  ;;  %v20576_v50 = vld [vmem:[#allocation10_spill] sm:$0xff] }
 0x1ec   :  { %20564 = vst [vmem:[#allocation30_spill] sm:$0xff] %v20563_v15  ;;  %11440 = vmatprep.subr.msk.bf16.mxu0 %vm20566_vm11, %v20397_v34  ;;  %11472 = vmatprep.subr.msk.bf16.mxu1 %vm20568_vm6, %v20397_v34  ;;  %vm20569_vm14 = vcmp.gt.f32.partialorder %v1819_v43, 0.0  ;;  %v20570_v46 = vmov 0  ;;  %v2596_v15 = vmax.f32 %v1827_v19, 0.0  ;;  %vm2852_vm1 = vcmp.gt.f32.partialorder %v1827_v19, 0.0 }
 0x1ed   :  { %vm14794_vm10 = vmpackc.low %vm2851_vm9, %vm20569_vm14  ;;  %v1694_v11 = vadd.f32 %v1693_v9, %v13457_v45  ;;  %v14799_v13 = vpack.c.bf16 %v2595_v5, %v2563_v37  ;;  %v1831_v26 = vadd.f32 %v1830_v27, %v13457_v45  ;;  %v1696_v16 = vadd.f32 %v1695_v22, %v13457_v45  ;;  %v20578_v37 = vld [vmem:[#allocation11_spill] sm:$0xff]  ;;  %v1836_v9 = vpop.f32.mrb[134].mxu1 }
 0x1ee   :  { %v20571_v46 = vsel %vm14794_vm10, 4294967295, %v20570_v46  ;;  %v14803_v12 = vpack.c.bf16 %v2594_v60, %v2562_v2  ;;  %vm20573_vm11 = vcmp.gt.f32.partialorder %v1684_v24, 0.0  ;;  %v20574_v43 = vmov 0  ;;  %v20583_v2 = vld [vmem:[#allocation26_spill] sm:$0xff] }
 0x1ef   :  { %20572 = vst [vmem:[#allocation31_spill] sm:$0xff] %v20571_v46  ;;  %vm14807_vm9 = vmpackc.low %vm2850_vm5, %vm20573_vm11  ;;  %vm20577_vm6 = vnez %v20576_v50  ;;  %vm20579_vm14 = vnez %v20578_v37  ;;  %v14817_v27 = vpack.c.bf16 %v2596_v15, %v2564_v23  ;;  %vm20580_vm10 = vcmp.gt.f32.partialorder %v1821_v3, 0.0  ;;  %v1701_v15 = vpop.f32.mrb[135].mxu0  ;;  %v1838_v50 = vpop.f32.mrb[135].mxu1 }
 0x1f0   :  { %v20575_v43 = vsel %vm14807_vm9, 4294967295, %v20574_v43  ;;  %11442 = vmatpush1.bf16.msk.msra.mxu0 %vm20577_vm6, %v20397_v34  ;;  %11474 = vmatpush1.bf16.msk.msra.mxu1 %vm20579_vm14, %v20397_v34  ;;  %vm14820_vm7 = vmpackc.low %vm2852_vm1, %vm20580_vm10  ;;  %v20581_v22 = vmov 0  ;;  %v2625_v24 = vmax.f32 %v1694_v11, 0.0  ;;  %vm2881_vm5 = vcmp.gt.f32.partialorder %v1694_v11, 0.0 }
 0x1f1   :  { %v20582_v22 = vsel %vm14820_vm7, 4294967295, %v20581_v22  ;;  %11476 = vmatprep.subr.bf16.mxu0 %v14446_v14  ;;  %11508 = vmatprep.subr.bf16.mxu1 %v20583_v2  ;;  %v2627_v19 = vmax.f32 %v1831_v26, 0.0  ;;  %v1833_v5 = vadd.f32 %v1832_v41, %v13457_v45  ;;  %v1700_v60 = vadd.f32 %v1699_v55, %v13494_v32  ;;  %v20584_v2 = vld [vmem:[#allocation19_spill] sm:$0xff]  ;;  %v20585_v55 = vld [vmem:[#allocation29_spill] sm:$0xff] }
 0x1f2   :  { %v2626_v3 = vmax.f32 %v1696_v16, 0.0  ;;  %v1837_v23 = vadd.f32 %v1836_v9, %v13494_v32  ;;  %v1702_v14 = vadd.f32 %v1701_v15, %v13494_v32  ;;  %v1839_v41 = vadd.f32 %v1838_v50, %v13494_v32 }
 0x1f3   :  { %3935 = vmatmul.mubr.f32.vlgmr.msra.gmra.mrb[198].mxu0 %v14320_v62  ;;  %4006 = vmatmul.mubr.f32.vlgmr.msra.gmra.mrb[198].mxu1 %v14320_v62  ;;  %v2657_v37 = vmax.f32 %v1700_v60, 0.0  ;;  %vm2913_vm1 = vcmp.gt.f32.partialorder %v1700_v60, 0.0  ;;  %v20586_v46 = vmov 0  ;;  %v2628_v60 = vmax.f32 %v1833_v5, 0.0 }
 0x1f4   :  { %11478 = vmatpush1.bf16.msra.mxu0 %v20584_v2  ;;  %11510 = vmatpush1.bf16.msra.mxu1 %v20585_v55  ;;  %vm14836_vm6 = vmpackc.low %vm2913_vm1, %vm2881_vm5  ;;  %v2659_v9 = vmax.f32 %v1837_v23, 0.0  ;;  %vm2915_vm14 = vcmp.gt.f32.partialorder %v1837_v23, 0.0  ;;  %v2658_v62 = vmax.f32 %v1702_v14, 0.0  ;;  %vm2914_vm11 = vcmp.gt.f32.partialorder %v1702_v14, 0.0 }
 0x1f5   :  { %v20587_v46 = vsel %vm14836_vm6, 4294967295, %v20586_v46  ;;  %11480 = vmatprep.subr.bf16.mxu0 %v14500_v1  ;;  %11512 = vmatprep.subr.bf16.mxu1 %v14502_v4  ;;  %v14842_v15 = vpack.c.bf16 %v2657_v37, %v2625_v24  ;;  %vm20588_vm10 = vcmp.gt.f32.partialorder %v1831_v26, 0.0  ;;  %v20589_v50 = vmov 0 }
 0x1f6   :  { %vm14845_vm7 = vmpackc.low %vm2915_vm14, %vm20588_vm10  ;;  %v2660_v11 = vmax.f32 %v1839_v41, 0.0  ;;  %vm2916_vm5 = vcmp.gt.f32.partialorder %v1839_v41, 0.0  ;;  %4076 = vmatprep.mubr.f32.mxu0 %v20089_v0  ;;  %4147 = vmatprep.mubr.f32.mxu1 %v20089_v0  ;;  %vm2884_vm1 = vcmp.gt.f32.partialorder %v1833_v5, 0.0  ;;  %v14851_v23 = vpack.c.bf16 %v2659_v9, %v2627_v19 }
 0x1f7   :  { %v20590_v50 = vsel %vm14845_vm7, 4294967295, %v20589_v50  ;;  %v14853_v1 = vpack.c.bf16 %v2658_v62, %v2626_v3  ;;  %vm20591_vm6 = vcmp.gt.f32.partialorder %v1696_v16, 0.0  ;;  %vm14864_vm10 = vmpackc.low %vm2916_vm5, %vm2884_vm1  ;;  %v20594_v24 = vmov 0  ;;  %v20607_v3 = vld [vmem:[#allocation38_spill] sm:$0xff] }
 0x1f8   :  { %vm14856_vm9 = vmpackc.low %vm2914_vm11, %vm20591_vm6  ;;  %11482 = vmatpush1.bf16.msra.mxu0 %v14485_v56  ;;  %11514 = vmatpush1.bf16.msra.mxu1 %v14487_v44  ;;  %v14862_v26 = vpack.c.bf16 %v2660_v11, %v2628_v60  ;;  %v20595_v24 = vsel %vm14864_vm10, 4294967295, %v20594_v24  ;;  %v20596_v56 = vld [vmem:[#allocation27_spill] sm:$0xff]  ;;  %v20598_v44 = vld [vmem:[#allocation37_spill] sm:$0xff]  ;;  %vm20604_vm1 = vnez %v20462_v36 }
 0x1f9   :  { %11484 = vmatprep.subr.bf16.mxu0 %v14545_v40  ;;  %11516 = vmatprep.subr.bf16.mxu1 %v14547_v54  ;;  %vm20597_vm11 = vnez %v20596_v56  ;;  %vm20599_vm6 = vnez %v20598_v44  ;;  %v20605_v40 = vld [vmem:[#allocation35_spill] sm:$0xff]  ;;  %v20609_v36 = vld [vmem:[#allocation34_spill] sm:$0xff] }
 0x1fa   :  { %vm20606_vm7 = vnez %v20605_v40 }
 0x1fc   :  { %11486 = vmatpush1.bf16.msra.mxu0 %v14533_v20  ;;  %11518 = vmatpush1.bf16.msra.mxu1 %v14535_v53  ;;  %v20600_v20 = vld [vmem:[#allocation18_spill] sm:$0xff]  ;;  %v20602_v53 = vld [vmem:[#allocation32_spill] sm:$0xff] }
 0x1fd   :  { %11488 = vmatprep.subr.bf16.mxu0 %v14599_v7  ;;  %11520 = vmatprep.subr.bf16.mxu1 %v14612_v30  ;;  %vm20601_vm14 = vnez %v20600_v20  ;;  %vm20603_vm5 = vnez %v20602_v53  ;;  %v20613_v20 = vld [vmem:[#allocation14_spill] sm:$0xff] }
 0x1ff   :  { %v1931_v54 = vpop.f32.mrb[144].mxu0 }
 0x200   :  { %11490 = vmatpush1.bf16.msra.mxu0 %v14590_v39  ;;  %11522 = vmatpush1.bf16.msra.mxu1 %v14597_v38  ;;  %v1932_v39 = vadd.f32 %v1931_v54, %v13321_v42  ;;  %v1933_v7 = vpop.f32.mrb[145].mxu0 }
 0x201   :  { %11492 = vmatprep.subr.msk.bf16.mxu0 %vm20597_vm11, %v20397_v34  ;;  %11524 = vmatprep.subr.msk.bf16.mxu1 %vm20599_vm6, %v20397_v34  ;;  %v2068_v38 = vpop.f32.mrb[144].mxu1  ;;  %v1934_v16 = vadd.f32 %v1933_v7, %v13321_v42  ;;  %vm20608_vm11 = vnez %v20607_v3  ;;  %vm20610_vm6 = vnez %v20609_v36 }
 0x202   :  { %v2069_v30 = vadd.f32 %v2068_v38, %v13321_v42  ;;  %v2070_v19 = vpop.f32.mrb[145].mxu1  ;;  %v2437_v14 = vmax.f32 %v1932_v39, 0.0 }
 0x203   :  { %v2071_v5 = vadd.f32 %v2070_v19, %v13321_v42  ;;  %v2438_v2 = vmax.f32 %v1934_v16, 0.0 }
 0x204   :  { %11494 = vmatpush1.bf16.msk.msra.mxu0 %vm20601_vm14, %v20397_v34  ;;  %11526 = vmatpush1.bf16.msk.msra.mxu1 %vm20603_vm5, %v20397_v34  ;;  %vm20611_vm14 = vnez %v20478_v25  ;;  %vm20612_vm5 = vnez %v20481_v47  ;;  %v1937_v37 = vpop.f32.mrb[146].mxu0  ;;  %v2439_v41 = vmax.f32 %v2069_v30, 0.0 }
 0x205   :  { %11496 = vmatprep.subr.msk.bf16.mxu0 %vm20604_vm1, %v20397_v34  ;;  %11528 = vmatprep.subr.msk.bf16.mxu1 %vm20606_vm7, %v20397_v34  ;;  %vm2693_vm7 = vcmp.gt.f32.partialorder %v1932_v39, 0.0  ;;  %v1938_v55 = vadd.f32 %v1937_v37, %v20306_v61  ;;  %v2074_v9 = vpop.f32.mrb[146].mxu1  ;;  %v1939_v62 = vpop.f32.mrb[147].mxu0  ;;  %v2440_v60 = vmax.f32 %v2071_v5, 0.0  ;;  %vm20615_vm1 = vnez %v20475_v59 }
 0x206   :  { %v2075_v11 = vadd.f32 %v2074_v9, %v20306_v61  ;;  %v1940_v56 = vadd.f32 %v1939_v62, %v20306_v61  ;;  %v2076_v25 = vpop.f32.mrb[147].mxu1  ;;  %v20619_v39 = vmov 0 }
 0x207   :  { %v2469_v44 = vmax.f32 %v1938_v55, 0.0  ;;  %v2077_v47 = vadd.f32 %v2076_v25, %v20306_v61 }
 0x208   :  { %11498 = vmatpush1.bf16.msk.msra.mxu0 %vm20608_vm11, %v20397_v34  ;;  %11530 = vmatpush1.bf16.msk.msra.mxu1 %vm20610_vm6, %v20397_v34  ;;  %v2471_v40 = vmax.f32 %v2075_v11, 0.0  ;;  %vm2727_vm10 = vcmp.gt.f32.partialorder %v2075_v11, 0.0  ;;  %v2470_v54 = vmax.f32 %v1940_v56, 0.0  ;;  %vm2726_vm6 = vcmp.gt.f32.partialorder %v1940_v56, 0.0  ;;  %v1943_v38 = vpop.f32.mrb[148].mxu0 }
 0x209   :  { %11500 = vmatprep.subr.msk.bf16.mxu0 %vm20611_vm14, %v20397_v34  ;;  %11532 = vmatprep.subr.msk.bf16.mxu1 %vm20612_vm5, %v20397_v34  ;;  %vm2725_vm14 = vcmp.gt.f32.partialorder %v1938_v55, 0.0  ;;  %vm20614_vm5 = vnez %v20613_v20  ;;  %v14931_v59 = vpack.c.bf16 %v2469_v44, %v2437_v14  ;;  %v2472_v7 = vmax.f32 %v2077_v47, 0.0  ;;  %v1945_v36 = vpop.f32.mrb[149].mxu0  ;;  %v14972_v44 = vld [vmem:[%s19829_s1 + $0x60] sm:$0xff] }
 0x20a   :  { %vm14921_vm11 = vmpackc.low %vm2725_vm14, %vm2693_vm7  ;;  %vm2728_vm14 = vcmp.gt.f32.partialorder %v2077_v47, 0.0  ;;  %v1944_v19 = vadd.f32 %v1943_v38, %v13340_v51  ;;  %v2080_v3 = vpop.f32.mrb[148].mxu1  ;;  %v14939_v6 = vpack.c.bf16 %v2471_v40, %v2439_v41  ;;  %v1946_v10 = vadd.f32 %v1945_v36, %v13340_v51 }
 0x20b   :  { %v2081_v37 = vadd.f32 %v2080_v3, %v13340_v51  ;;  %v2082_v55 = vpop.f32.mrb[149].mxu1  ;;  %v14943_v14 = vpack.c.bf16 %v2470_v54, %v2438_v2  ;;  %v14958_v41 = vpack.c.bf16 %v2472_v7, %v2440_v60  ;;  %v20628_v40 = vmov 0 }
 0x20c   :  { %11502 = vmatpush1.bf16.msk.msra.mxu0 %vm20614_vm5, %v20397_v34  ;;  %11534 = vmatpush1.bf16.msk.msra.mxu1 %vm20615_vm1, %v20397_v34  ;;  %vm20618_vm1 = vcmp.gt.f32.partialorder %v2069_v30, 0.0  ;;  %v2083_v9 = vadd.f32 %v2082_v55, %v13340_v51  ;;  %vm20625_vm5 = vcmp.gt.f32.partialorder %v2071_v5, 0.0  ;;  %v2501_v2 = vmax.f32 %v1944_v19, 0.0  ;;  %v1949_v62 = vpop.f32.mrb[150].mxu0 }
 0x20d   :  { %11504 = vmatprep.subr.msk.bf16.mxu0 %vm14602_vm2, %v20397_v34  ;;  %11536 = vmatprep.subr.msk.bf16.mxu1 %vm14614_vm4, %v20397_v34  ;;  %vm14934_vm7 = vmpackc.low %vm2727_vm10, %vm20618_vm1  ;;  %vm20621_vm2 = vcmp.gt.f32.partialorder %v1934_v16, 0.0  ;;  %vm20624_vm10 = vnez %v20492_v58  ;;  %v2503_v58 = vmax.f32 %v2081_v37, 0.0  ;;  %v2502_v11 = vmax.f32 %v1946_v10, 0.0  ;;  %v1951_v60 = vpop.f32.mrb[151].mxu0 }
 0x20e   :  { %v20620_v39 = vsel %vm14934_vm7, 4294967295, %v20619_v39  ;;  %vm14947_vm4 = vmpackc.low %vm2726_vm6, %vm20621_vm2  ;;  %vm2757_vm6 = vcmp.gt.f32.partialorder %v1944_v19, 0.0  ;;  %v1950_v17 = vadd.f32 %v1949_v62, %v13374_v29  ;;  %v2086_v56 = vpop.f32.mrb[150].mxu1  ;;  %v2504_v5 = vmax.f32 %v2083_v9, 0.0 }
 0x20f   :  { %vm14961_vm1 = vmpackc.low %vm2728_vm14, %vm20625_vm5  ;;  %v2087_v25 = vadd.f32 %v2086_v56, %v13374_v29  ;;  %vm20630_vm14 = vcmp.gt.f32.partialorder %v2081_v37, 0.0 }
 0x210   :  { %11506 = vmatpush1.bf16.msk.msra.mxu0 %vm20624_vm10, %v20397_v34  ;;  %11538 = vmatpush1.bf16.msk.msra.mxu1 %vm14593_vm13, %v20397_v34  ;;  %v2533_v47 = vmax.f32 %v1950_v17, 0.0  ;;  %vm2789_vm10 = vcmp.gt.f32.partialorder %v1950_v17, 0.0  ;;  %v1955_v7 = vpop.f32.mrb[152].mxu0  ;;  %v20634_v17 = vmov 0 }
 0x211   :  { %11540 = vmatprep.subr.bf16.mxu0 %v14685_v49  ;;  %11572 = vmatprep.subr.bf16.mxu1 %v14696_v63  ;;  %v1952_v49 = vadd.f32 %v1951_v60, %v13374_v29  ;;  %v2088_v63 = vpop.f32.mrb[151].mxu1  ;;  %vm14981_vm5 = vmpackc.low %vm2789_vm10, %vm2757_vm6  ;;  %v2535_v54 = vmax.f32 %v2087_v25, 0.0  ;;  %vm2791_vm13 = vcmp.gt.f32.partialorder %v2087_v25, 0.0  ;;  %v1956_v19 = vadd.f32 %v1955_v7, %v13402_v52  ;;  %v1957_v55 = vpop.f32.mrb[153].mxu0 }
 0x212   :  { %v2089_v20 = vadd.f32 %v2088_v63, %v13374_v29  ;;  %v20629_v40 = vsel %vm14981_vm5, 4294967295, %v20628_v40  ;;  %v14987_v3 = vpack.c.bf16 %v2533_v47, %v2501_v2  ;;  %vm14990_vm7 = vmpackc.low %vm2791_vm13, %vm20630_vm14  ;;  %v2092_v36 = vpop.f32.mrb[152].mxu1  ;;  %v1958_v37 = vadd.f32 %v1957_v55, %v13402_v52 }
 0x213   :  { %4077 = vmatmul.mubr.f32.vlgmr.msra.gmra.mrb[200].mxu0 %v14972_v44  ;;  %4148 = vmatmul.mubr.f32.vlgmr.msra.gmra.mrb[200].mxu1 %v14972_v44  ;;  %v2534_v38 = vmax.f32 %v1952_v49, 0.0  ;;  %vm2790_vm2 = vcmp.gt.f32.partialorder %v1952_v49, 0.0  ;;  %v2094_v2 = vpop.f32.mrb[153].mxu1  ;;  %vm20633_vm13 = vcmp.gt.f32.partialorder %v1946_v10, 0.0  ;;  %vm20636_vm10 = vcmp.gt.f32.partialorder %v2083_v9, 0.0 }
 0x214   :  { %11542 = vmatpush1.bf16.msra.mxu0 %v14673_v21  ;;  %11574 = vmatpush1.bf16.msra.mxu1 %v14681_v18  ;;  %v20631_v21 = vmov 0  ;;  %v2536_v18 = vmax.f32 %v2089_v20, 0.0  ;;  %vm2792_vm6 = vcmp.gt.f32.partialorder %v2089_v20, 0.0  ;;  %vm15005_vm14 = vmpackc.low %vm2790_vm2, %vm20633_vm13  ;;  %v2095_v56 = vadd.f32 %v2094_v2, %v13402_v52 }
 0x215   :  { %11544 = vmatprep.subr.bf16.mxu0 %v14742_v35  ;;  %11576 = vmatprep.subr.bf16.mxu1 %v14757_v57  ;;  %v20632_v21 = vsel %vm14990_vm7, 4294967295, %v20631_v21  ;;  %v14997_v35 = vpack.c.bf16 %v2535_v54, %v2503_v58  ;;  %v2093_v57 = vadd.f32 %v2092_v36, %v13402_v52  ;;  %v15001_v62 = vpack.c.bf16 %v2534_v38, %v2502_v11  ;;  %vm15016_vm7 = vmpackc.low %vm2792_vm6, %vm20636_vm10  ;;  %v1961_v11 = vpop.f32.mrb[154].mxu0 }
 0x216   :  { %4218 = vmatprep.mubr.f32.mxu0 %v20089_v0  ;;  %4289 = vmatprep.mubr.f32.mxu1 %v20089_v0  ;;  %v20635_v17 = vsel %vm15005_vm14, 4294967295, %v20634_v17  ;;  %v15012_v58 = vpack.c.bf16 %v2536_v18, %v2504_v5  ;;  %v20637_v60 = vmov 0  ;;  %v2565_v10 = vmax.f32 %v1956_v19, 0.0  ;;  %v2098_v5 = vpop.f32.mrb[154].mxu1  ;;  %v1963_v49 = vpop.f32.mrb[155].mxu0 }
 0x217   :  { %v20638_v60 = vsel %vm15016_vm7, 4294967295, %v20637_v60  ;;  %vm2821_vm5 = vcmp.gt.f32.partialorder %v1956_v19, 0.0  ;;  %v2567_v25 = vmax.f32 %v2093_v57, 0.0  ;;  %v2568_v9 = vmax.f32 %v2095_v56, 0.0  ;;  %v2100_v20 = vpop.f32.mrb[155].mxu1 }
 0x218   :  { %11546 = vmatpush1.bf16.msra.mxu0 %v14730_v28  ;;  %11578 = vmatpush1.bf16.msra.mxu1 %v14738_v48  ;;  %v2566_v28 = vmax.f32 %v1958_v37, 0.0  ;;  %v1962_v48 = vadd.f32 %v1961_v11, %v13427_v8  ;;  %v2099_v63 = vadd.f32 %v2098_v5, %v13427_v8  ;;  %v1964_v47 = vadd.f32 %v1963_v49, %v13427_v8  ;;  %v1967_v18 = vpop.f32.mrb[156].mxu0 }
 0x219   :  { %11548 = vmatprep.subr.bf16.mxu0 %v14803_v12  ;;  %11580 = vmatprep.subr.bf16.mxu1 %v14817_v27  ;;  %v2101_v12 = vadd.f32 %v2100_v20, %v13427_v8  ;;  %vm20641_vm6 = vcmp.gt.f32.partialorder %v2093_v57, 0.0  ;;  %v1968_v19 = vadd.f32 %v1967_v18, %v13457_v45  ;;  %v1969_v2 = vpop.f32.mrb[157].mxu0 }
 0x21a   :  { %v2597_v54 = vmax.f32 %v1962_v48, 0.0  ;;  %vm2853_vm10 = vcmp.gt.f32.partialorder %v1962_v48, 0.0  ;;  %v2599_v38 = vmax.f32 %v2099_v63, 0.0  ;;  %vm2855_vm13 = vcmp.gt.f32.partialorder %v2099_v63, 0.0  ;;  %v2104_v55 = vpop.f32.mrb[156].mxu1 }
 0x21b   :  { %vm15029_vm2 = vmpackc.low %vm2853_vm10, %vm2821_vm5  ;;  %v2598_v7 = vmax.f32 %v1964_v47, 0.0  ;;  %vm2854_vm7 = vcmp.gt.f32.partialorder %v1964_v47, 0.0  ;;  %vm2856_vm5 = vcmp.gt.f32.partialorder %v2101_v12, 0.0  ;;  %v2106_v48 = vpop.f32.mrb[157].mxu1  ;;  %vm20644_vm10 = vcmp.gt.f32.partialorder %v1958_v37, 0.0  ;;  %v20656_v37 = vld [vmem:[#allocation20_spill] sm:$0xff] }
 0x21c   :  { %11550 = vmatpush1.bf16.msra.mxu0 %v14791_v31  ;;  %11582 = vmatpush1.bf16.msra.mxu1 %v14799_v13  ;;  %v15035_v36 = vpack.c.bf16 %v2597_v54, %v2565_v10  ;;  %vm15038_vm14 = vmpackc.low %vm2855_vm13, %vm20641_vm6  ;;  %v20642_v31 = vmov 0  ;;  %v2600_v13 = vmax.f32 %v2101_v12, 0.0  ;;  %v15043_v11 = vpack.c.bf16 %v2599_v38, %v2567_v25 }
 0x21d   :  { %11552 = vmatprep.subr.bf16.mxu0 %v14853_v1  ;;  %11584 = vmatprep.subr.bf16.mxu1 %v14862_v26  ;;  %v20643_v31 = vsel %vm15038_vm14, 4294967295, %v20642_v31  ;;  %v2105_v1 = vadd.f32 %v2104_v55, %v13457_v45  ;;  %v1970_v26 = vadd.f32 %v1969_v2, %v13457_v45  ;;  %v15047_v10 = vpack.c.bf16 %v2598_v7, %v2566_v28  ;;  %vm15051_vm13 = vmpackc.low %vm2854_vm7, %vm20644_vm10  ;;  %v1973_v28 = vpop.f32.mrb[158].mxu0 }
 0x21e   :  { %v15057_v5 = vpack.c.bf16 %v2600_v13, %v2568_v9  ;;  %vm20647_vm6 = vcmp.gt.f32.partialorder %v2095_v56, 0.0  ;;  %v2629_v49 = vmax.f32 %v1968_v19, 0.0  ;;  %vm2885_vm7 = vcmp.gt.f32.partialorder %v1968_v19, 0.0  ;;  %v2110_v9 = vpop.f32.mrb[158].mxu1  ;;  %v1975_v63 = vpop.f32.mrb[159].mxu0 }
 0x21f   :  { %vm15060_vm14 = vmpackc.low %vm2856_vm5, %vm20647_vm6  ;;  %v1974_v56 = vadd.f32 %v1973_v28, %v13494_v32  ;;  %vm2887_vm5 = vcmp.gt.f32.partialorder %v2105_v1, 0.0  ;;  %v2630_v47 = vmax.f32 %v1970_v26, 0.0  ;;  %v2111_v20 = vadd.f32 %v2110_v9, %v13494_v32  ;;  %v2112_v54 = vpop.f32.mrb[159].mxu1 }
 0x220   :  { %11554 = vmatpush1.bf16.msra.mxu0 %v14842_v15  ;;  %11586 = vmatpush1.bf16.msra.mxu1 %v14851_v23  ;;  %v2631_v15 = vmax.f32 %v2105_v1, 0.0  ;;  %v2107_v23 = vadd.f32 %v2106_v48, %v13457_v45  ;;  %v1976_v33 = vadd.f32 %v1975_v63, %v13494_v32  ;;  %v2113_v38 = vadd.f32 %v2112_v54, %v13494_v32  ;;  %v20663_v54 = vld [vmem:[#allocation22_spill] sm:$0xff]  ;;  %v20665_v1 = vld [vmem:[#allocation23_spill] sm:$0xff] }
 0x221   :  { %11556 = vmatprep.subr.msk.bf16.mxu0 %vm14689_vm0, %v20397_v34  ;;  %11588 = vmatprep.subr.msk.bf16.mxu1 %vm14699_vm3, %v20397_v34  ;;  %v2661_v12 = vmax.f32 %v1974_v56, 0.0  ;;  %vm2917_vm10 = vcmp.gt.f32.partialorder %v1974_v56, 0.0  ;;  %v20653_v13 = vmov 0  ;;  %v2663_v55 = vmax.f32 %v2111_v20, 0.0 }
 0x222   :  { %vm15082_vm3 = vmpackc.low %vm2917_vm10, %vm2885_vm7  ;;  %vm2919_vm6 = vcmp.gt.f32.partialorder %v2111_v20, 0.0  ;;  %v2662_v2 = vmax.f32 %v1976_v33, 0.0  ;;  %vm2918_vm0 = vcmp.gt.f32.partialorder %v1976_v33, 0.0  ;;  %v2632_v28 = vmax.f32 %v2107_v23, 0.0 }
 0x223   :  { %v20654_v13 = vsel %vm15082_vm3, 4294967295, %v20653_v13  ;;  %v15092_v56 = vpack.c.bf16 %v2661_v12, %v2629_v49  ;;  %v20658_v19 = vmov 0  ;;  %v2664_v9 = vmax.f32 %v2113_v38, 0.0 }
 0x224   :  { %11558 = vmatpush1.bf16.msk.msra.mxu0 %vm14667_vm12, %v20397_v34  ;;  %11590 = vmatpush1.bf16.msk.msra.mxu1 %vm14676_vm8, %v20397_v34  ;;  %vm20657_vm12 = vnez %v20656_v37  ;;  %vm15095_vm8 = vmpackc.low %vm2919_vm6, %vm2887_vm5  ;;  %vm2920_vm7 = vcmp.gt.f32.partialorder %v2113_v38, 0.0  ;;  %vm2888_vm10 = vcmp.gt.f32.partialorder %v2107_v23, 0.0  ;;  %v15099_v63 = vpack.c.bf16 %v2663_v55, %v2631_v15  ;;  %v20673_v15 = vld [vmem:[#allocation31_spill] sm:$0xff] }
 0x225   :  { %11560 = vmatprep.subr.msk.bf16.mxu0 %vm14746_vm15, %v20397_v34  ;;  %11592 = vmatprep.subr.msk.bf16.mxu1 %vm20657_vm12, %v20397_v34  ;;  %v20659_v19 = vsel %vm15095_vm8, 4294967295, %v20658_v19  ;;  %v11615_v20 = vpack.c.bf16 %v2662_v2, %v2630_v47  ;;  %vm20660_vm3 = vcmp.gt.f32.partialorder %v1970_v26, 0.0  ;;  %vm20664_vm12 = vnez %v20663_v54  ;;  %vm15112_vm6 = vmpackc.low %vm2920_vm7, %vm2888_vm10  ;;  %v20671_v26 = vld [vmem:[#allocation30_spill] sm:$0xff] }
 0x226   :  { %vm15102_vm15 = vmpackc.low %vm2918_vm0, %vm20660_vm3  ;;  %vm20666_vm5 = vnez %v20665_v1  ;;  %v11647_v49 = vpack.c.bf16 %v2664_v9, %v2632_v28  ;;  %vm20669_vm8 = vnez %v20575_v43  ;;  %vm20670_vm0 = vnez %v20582_v22 }
 0x227   :  { %vm20672_vm3 = vnez %v20671_v26  ;;  %vm20675_vm7 = vnez %v20595_v24  ;;  %vm20677_vm10 = vnez %v20590_v50 }
 0x228   :  { %11562 = vmatpush1.bf16.msk.msra.mxu0 %vm20664_vm12, %v20397_v34  ;;  %11594 = vmatpush1.bf16.msk.msra.mxu1 %vm20666_vm5, %v20397_v34  ;;  %vm20674_vm12 = vnez %v20673_v15 }
 0x229   :  { %11564 = vmatprep.subr.msk.bf16.mxu0 %vm20669_vm8, %v20397_v34  ;;  %11596 = vmatprep.subr.msk.bf16.mxu1 %vm20670_vm0, %v20397_v34  ;;  %vm20676_vm8 = vnez %v20587_v46 }
 0x22c   :  { %11566 = vmatpush1.bf16.msk.msra.mxu0 %vm20672_vm3, %v20397_v34  ;;  %11598 = vmatpush1.bf16.msk.msra.mxu1 %vm20674_vm12, %v20397_v34 }
 0x22d   :  { %11568 = vmatprep.subr.msk.bf16.mxu0 %vm14856_vm9, %v20397_v34  ;;  %11600 = vmatprep.subr.msk.bf16.mxu1 %vm20675_vm7, %v20397_v34 }
 0x230   :  { %11570 = vmatpush1.bf16.msk.msra.mxu0 %vm20676_vm8, %v20397_v34  ;;  %11602 = vmatpush1.bf16.msk.msra.mxu1 %vm20677_vm10, %v20397_v34 }
 0x231   :  { %11604 = vmatprep.subr.bf16.mxu0 %v14943_v14  ;;  %11636 = vmatprep.subr.bf16.mxu1 %v14958_v41  ;;  %v2205_v46 = vpop.f32.mrb[168].mxu0 }
 0x232   :  { %v2206_v43 = vadd.f32 %v2205_v46, %v13321_v42  ;;  %v2342_v22 = vpop.f32.mrb[168].mxu1  ;;  %v2207_v50 = vpop.f32.mrb[169].mxu0 }
 0x233   :  { %4219 = vmatmul.mubr.f32.vlgmr.msra.gmra.mrb[202].mxu0 %v14972_v44  ;;  %4290 = vmatmul.mubr.f32.vlgmr.msra.gmra.mrb[202].mxu1 %v14972_v44  ;;  %v2343_v4 = vadd.f32 %v2342_v22, %v13321_v42  ;;  %v2208_v24 = vadd.f32 %v2207_v50, %v13321_v42 }
 0x234   :  { %11606 = vmatpush1.bf16.msra.mxu0 %v14931_v59  ;;  %11638 = vmatpush1.bf16.msra.mxu1 %v14939_v6  ;;  %v2344_v59 = vpop.f32.mrb[169].mxu1  ;;  %v2441_v14 = vmax.f32 %v2206_v43, 0.0  ;;  %vm2697_vm9 = vcmp.gt.f32.partialorder %v2206_v43, 0.0 }
 0x235   :  { %11608 = vmatprep.subr.bf16.mxu0 %v15001_v62  ;;  %11640 = vmatprep.subr.bf16.mxu1 %v15012_v58  ;;  %v2345_v6 = vadd.f32 %v2344_v59, %v13321_v42  ;;  %v2443_v62 = vmax.f32 %v2343_v4, 0.0  ;;  %vm2699_vm5 = vcmp.gt.f32.partialorder %v2343_v4, 0.0  ;;  %v2442_v58 = vmax.f32 %v2208_v24, 0.0 }
 0x236   :  { %4360 = vmatprep.mubr.f32.mxu0 %v20089_v0  ;;  %4431 = vmatprep.mubr.f32.mxu1 %v20089_v0  ;;  %v2211_v41 = vpop.f32.mrb[170].mxu0 }
 0x237   :  { %v2212_v23 = vadd.f32 %v2211_v41, %v20306_v61  ;;  %v2348_v47 = vpop.f32.mrb[170].mxu1  ;;  %v2213_v38 = vpop.f32.mrb[171].mxu0  ;;  %v2444_v42 = vmax.f32 %v2345_v6, 0.0 }
 0x238   :  { %11610 = vmatpush1.bf16.msra.mxu0 %v14987_v3  ;;  %11642 = vmatpush1.bf16.msra.mxu1 %v14997_v35  ;;  %v2349_v3 = vadd.f32 %v2348_v47, %v20306_v61  ;;  %v2214_v35 = vadd.f32 %v2213_v38, %v20306_v61  ;;  %v2350_v7 = vpop.f32.mrb[171].mxu1 }
 0x239   :  { %11612 = vmatprep.subr.bf16.mxu0 %v15047_v10  ;;  %11644 = vmatprep.subr.bf16.mxu1 %v15057_v5  ;;  %v2473_v18 = vmax.f32 %v2212_v23, 0.0  ;;  %vm2729_vm12 = vcmp.gt.f32.partialorder %v2212_v23, 0.0  ;;  %v2351_v10 = vadd.f32 %v2350_v7, %v20306_v61  ;;  %v20680_v61 = vmov 0 }
 0x23a   :  { %vm15165_vm7 = vmpackc.low %vm2729_vm12, %vm2697_vm9  ;;  %v2475_v55 = vmax.f32 %v2349_v3, 0.0  ;;  %vm2731_vm8 = vcmp.gt.f32.partialorder %v2349_v3, 0.0  ;;  %v2474_v2 = vmax.f32 %v2214_v35, 0.0  ;;  %vm2730_vm10 = vcmp.gt.f32.partialorder %v2214_v35, 0.0  ;;  %v2217_v48 = vpop.f32.mrb[172].mxu0 }
 0x23b   :  { %v15169_v37 = vpack.c.bf16 %v2473_v18, %v2441_v14  ;;  %vm15172_vm3 = vmpackc.low %vm2731_vm8, %vm2699_vm5  ;;  %vm2732_vm0 = vcmp.gt.f32.partialorder %v2351_v10, 0.0  ;;  %v2354_v28 = vpop.f32.mrb[172].mxu1  ;;  %v2219_v9 = vpop.f32.mrb[173].mxu0  ;;  %vm20682_vm9 = vcmp.gt.f32.partialorder %v2208_v24, 0.0  ;;  %vm20685_vm12 = vcmp.gt.f32.partialorder %v2345_v6, 0.0 }
 0x23c   :  { %11614 = vmatpush1.bf16.msra.mxu0 %v15035_v36  ;;  %11646 = vmatpush1.bf16.msra.mxu1 %v15043_v11  ;;  %v20681_v61 = vsel %vm15172_vm3, 4294967295, %v20680_v61  ;;  %v2476_v36 = vmax.f32 %v2351_v10, 0.0  ;;  %v2218_v11 = vadd.f32 %v2217_v48, %v13340_v51  ;;  %v15177_v54 = vpack.c.bf16 %v2475_v55, %v2443_v62  ;;  %vm15185_vm5 = vmpackc.low %vm2730_vm10, %vm20682_vm9 }
 0x23d   :  { %11616 = vmatprep.subr.bf16.mxu0 %v11615_v20  ;;  %11648 = vmatprep.subr.bf16.mxu1 %v11647_v49  ;;  %v2355_v1 = vadd.f32 %v2354_v28, %v13340_v51  ;;  %v2220_v20 = vadd.f32 %v2219_v9, %v13340_v51  ;;  %v2356_v49 = vpop.f32.mrb[173].mxu1  ;;  %v15181_v26 = vpack.c.bf16 %v2474_v2, %v2442_v58  ;;  %vm15195_vm8 = vmpackc.low %vm2732_vm0, %vm20685_vm12  ;;  %v20689_v58 = vmov 0 }
 0x23e   :  { %v2357_v46 = vadd.f32 %v2356_v49, %v13340_v51  ;;  %v15192_v43 = vpack.c.bf16 %v2476_v36, %v2444_v42  ;;  %v2505_v50 = vmax.f32 %v2218_v11, 0.0  ;;  %vm2761_vm3 = vcmp.gt.f32.partialorder %v2218_v11, 0.0  ;;  %v2223_v51 = vpop.f32.mrb[174].mxu0 }
 0x23f   :  { %v2224_v4 = vadd.f32 %v2223_v51, %v13374_v29  ;;  %v2360_v24 = vpop.f32.mrb[174].mxu1  ;;  %v2225_v59 = vpop.f32.mrb[175].mxu0  ;;  %vm20691_vm10 = vnez %v20635_v17  ;;  %v20705_v51 = vmov 0 }
 0x240   :  { %11618 = vmatpush1.bf16.msra.mxu0 %v15092_v56  ;;  %11650 = vmatpush1.bf16.msra.mxu1 %v15099_v63  ;;  %v2507_v56 = vmax.f32 %v2355_v1, 0.0  ;;  %v2506_v63 = vmax.f32 %v2220_v20, 0.0  ;;  %v2508_v6 = vmax.f32 %v2357_v46, 0.0  ;;  %v2361_v14 = vadd.f32 %v2360_v24, %v13374_v29  ;;  %v2362_v30 = vpop.f32.mrb[175].mxu1 }
 0x241   :  { %11620 = vmatprep.subr.msk.bf16.mxu0 %vm14947_vm4, %v20397_v34  ;;  %11652 = vmatprep.subr.msk.bf16.mxu1 %vm14961_vm1, %v20397_v34  ;;  %v2226_v41 = vadd.f32 %v2225_v59, %v13374_v29  ;;  %v2537_v62 = vmax.f32 %v2224_v4, 0.0  ;;  %vm2793_vm9 = vcmp.gt.f32.partialorder %v2224_v4, 0.0  ;;  %v2363_v16 = vadd.f32 %v2362_v30, %v13374_v29 }
 0x242   :  { %vm20688_vm1 = vnez %v20620_v39  ;;  %vm15216_vm12 = vmpackc.low %vm2793_vm9, %vm2761_vm3  ;;  %v2539_v23 = vmax.f32 %v2361_v14, 0.0  ;;  %vm2795_vm0 = vcmp.gt.f32.partialorder %v2361_v14, 0.0  ;;  %v2229_v29 = vpop.f32.mrb[176].mxu0  ;;  %v20694_v39 = vmov 0 }
 0x243   :  { %v20690_v58 = vsel %vm15216_vm12, 4294967295, %v20689_v58  ;;  %v2538_v47 = vmax.f32 %v2226_v41, 0.0  ;;  %vm2794_vm4 = vcmp.gt.f32.partialorder %v2226_v41, 0.0  ;;  %v15226_v53 = vpack.c.bf16 %v2537_v62, %v2505_v50  ;;  %v2366_v3 = vpop.f32.mrb[176].mxu1  ;;  %v2231_v35 = vpop.f32.mrb[177].mxu0 }
 0x244   :  { %11622 = vmatpush1.bf16.msk.msra.mxu0 %vm14921_vm11, %v20397_v34  ;;  %11654 = vmatpush1.bf16.msk.msra.mxu1 %vm20688_vm1, %v20397_v34  ;;  %vm20692_vm11 = vnez %v20638_v60  ;;  %vm20693_vm1 = vcmp.gt.f32.partialorder %v2355_v1, 0.0  ;;  %v2540_v38 = vmax.f32 %v2363_v16, 0.0  ;;  %vm2796_vm9 = vcmp.gt.f32.partialorder %v2363_v16, 0.0  ;;  %v2368_v18 = vpop.f32.mrb[177].mxu1 }
 0x245   :  { %11624 = vmatprep.subr.msk.bf16.mxu0 %vm20691_vm10, %v20397_v34  ;;  %11656 = vmatprep.subr.msk.bf16.mxu1 %vm20692_vm11, %v20397_v34  ;;  %vm15229_vm3 = vmpackc.low %vm2795_vm0, %vm20693_vm1  ;;  %v2230_v42 = vadd.f32 %v2229_v29, %v13402_v52  ;;  %v15234_v17 = vpack.c.bf16 %v2539_v23, %v2507_v56  ;;  %v2367_v7 = vadd.f32 %v2366_v3, %v13402_v52  ;;  %vm20696_vm10 = vcmp.gt.f32.partialorder %v2220_v20, 0.0 }
 0x246   :  { %v20695_v39 = vsel %vm15229_vm3, 4294967295, %v20694_v39  ;;  %v2232_v60 = vadd.f32 %v2231_v35, %v13402_v52  ;;  %v15238_v10 = vpack.c.bf16 %v2538_v47, %v2506_v63  ;;  %vm15242_vm0 = vmpackc.low %vm2794_vm4, %vm20696_vm10  ;;  %v2369_v2 = vadd.f32 %v2368_v18, %v13402_v52  ;;  %v2235_v52 = vpop.f32.mrb[178].mxu0 }
 0x247   :  { %vm20699_vm11 = vnez %v20629_v40  ;;  %vm20700_vm1 = vnez %v20632_v21  ;;  %v15253_v48 = vpack.c.bf16 %v2540_v38, %v2508_v6  ;;  %vm20701_vm3 = vcmp.gt.f32.partialorder %v2357_v46, 0.0  ;;  %v2372_v28 = vpop.f32.mrb[178].mxu1  ;;  %v2237_v9 = vpop.f32.mrb[179].mxu0 }
 0x248   :  { %11626 = vmatpush1.bf16.msk.msra.mxu0 %vm20699_vm11, %v20397_v34  ;;  %11658 = vmatpush1.bf16.msk.msra.mxu1 %vm20700_vm1, %v20397_v34  ;;  %vm15256_vm12 = vmpackc.low %vm2796_vm9, %vm20701_vm3  ;;  %v2569_v11 = vmax.f32 %v2230_v42, 0.0  ;;  %vm2825_vm4 = vcmp.gt.f32.partialorder %v2230_v42, 0.0  ;;  %v2571_v40 = vmax.f32 %v2367_v7, 0.0  ;;  %vm2827_vm10 = vcmp.gt.f32.partialorder %v2367_v7, 0.0  ;;  %v2374_v57 = vpop.f32.mrb[179].mxu1 }
 0x249   :  { %11628 = vmatprep.subr.msk.bf16.mxu0 %vm15051_vm13, %v20397_v34  ;;  %11660 = vmatprep.subr.msk.bf16.mxu1 %vm15060_vm14, %v20397_v34  ;;  %v2236_v21 = vadd.f32 %v2235_v52, %v13427_v8  ;;  %v2570_v1 = vmax.f32 %v2232_v60, 0.0  ;;  %vm2826_vm3 = vcmp.gt.f32.partialorder %v2232_v60, 0.0  ;;  %v2373_v20 = vadd.f32 %v2372_v28, %v13427_v8 }
 0x24a   :  { %v2238_v49 = vadd.f32 %v2237_v9, %v13427_v8  ;;  %v2572_v46 = vmax.f32 %v2369_v2, 0.0  ;;  %v2375_v25 = vadd.f32 %v2374_v57, %v13427_v8  ;;  %vm20704_vm14 = vnez %v20643_v31  ;;  %v2241_v8 = vpop.f32.mrb[180].mxu0 }
 0x24b   :  { %v2601_v50 = vmax.f32 %v2236_v21, 0.0  ;;  %vm2857_vm13 = vcmp.gt.f32.partialorder %v2236_v21, 0.0  ;;  %v2603_v56 = vmax.f32 %v2373_v20, 0.0  ;;  %vm2859_vm11 = vcmp.gt.f32.partialorder %v2373_v20, 0.0  ;;  %v2378_v59 = vpop.f32.mrb[180].mxu1  ;;  %v2243_v6 = vpop.f32.mrb[181].mxu0 }
 0x24c   :  { %11630 = vmatpush1.bf16.msk.msra.mxu0 %vm15029_vm2, %v20397_v34  ;;  %11662 = vmatpush1.bf16.msk.msra.mxu1 %vm20704_vm14, %v20397_v34  ;;  %vm15277_vm9 = vmpackc.low %vm2857_vm13, %vm2825_vm4  ;;  %v2602_v63 = vmax.f32 %v2238_v49, 0.0  ;;  %vm2858_vm1 = vcmp.gt.f32.partialorder %v2238_v49, 0.0  ;;  %v20707_v31 = vmov 0  ;;  %v2604_v4 = vmax.f32 %v2375_v25, 0.0  ;;  %v2380_v12 = vpop.f32.mrb[181].mxu1 }
 0x24d   :  { %v20706_v51 = vsel %vm15277_vm9, 4294967295, %v20705_v51  ;;  %11632 = vmatprep.subr.msk.bf16.mxu0 %vm15102_vm15, %v20397_v34  ;;  %11664 = vmatprep.subr.msk.bf16.mxu1 %vm15112_vm6, %v20397_v34  ;;  %v15287_v27 = vpack.c.bf16 %v2601_v50, %v2569_v11  ;;  %vm15290_vm2 = vmpackc.low %vm2859_vm11, %vm2827_vm10  ;;  %vm2860_vm4 = vcmp.gt.f32.partialorder %v2375_v25, 0.0  ;;  %v2242_v24 = vadd.f32 %v2241_v8, %v13457_v45 }
 0x24e   :  { %v20708_v31 = vsel %vm15290_vm2, 4294967295, %v20707_v31  ;;  %vm2828_vm13 = vcmp.gt.f32.partialorder %v2369_v2, 0.0  ;;  %v11709_v33 = vpack.c.bf16 %v2603_v56, %v2571_v40  ;;  %v2379_v14 = vadd.f32 %v2378_v59, %v13457_v45  ;;  %vm15298_vm15 = vmpackc.low %vm2858_vm1, %vm2826_vm3 }
 0x24f   :  { %v11675_v41 = vpack.c.bf16 %v2602_v63, %v2570_v1  ;;  %v2244_v62 = vadd.f32 %v2243_v6, %v13457_v45  ;;  %v2381_v16 = vadd.f32 %v2380_v12, %v13457_v45  ;;  %vm20711_vm6 = vnez %v20654_v13  ;;  %vm15311_vm14 = vmpackc.low %vm2860_vm4, %vm2828_vm13  ;;  %v2247_v45 = vpop.f32.mrb[182].mxu0  ;;  %v2384_v38 = vpop.f32.mrb[182].mxu1 }
 0x250   :  { %11634 = vmatpush1.bf16.msk.msra.mxu0 %vm20711_vm6, %v20397_v34  ;;  %vm20712_vm10 = vnez %v20659_v19  ;;  %v11707_v23 = vpack.c.bf16 %v2604_v4, %v2572_v46  ;;  %v2633_v29 = vmax.f32 %v2242_v24, 0.0  ;;  %vm2889_vm3 = vcmp.gt.f32.partialorder %v2242_v24, 0.0  ;;  %v2249_v3 = vpop.f32.mrb[183].mxu0  ;;  %v2386_v35 = vpop.f32.mrb[183].mxu1 }
 0x251   :  { %11666 = vmatpush1.bf16.msk.msra.mxu1 %vm20712_vm10, %v20397_v34  ;;  %11668 = vmatprep.subr.bf16.mxu0 %v15181_v26  ;;  %v2635_v13 = vmax.f32 %v2379_v14, 0.0  ;;  %v2248_v42 = vadd.f32 %v2247_v45, %v13494_v32  ;;  %v2385_v19 = vadd.f32 %v2384_v38, %v13494_v32  ;;  %v2634_v7 = vmax.f32 %v2244_v62, 0.0 }
 0x252   :  { %11700 = vmatprep.subr.bf16.mxu1 %v15192_v43  ;;  %v2636_v26 = vmax.f32 %v2381_v16, 0.0  ;;  %v2250_v43 = vadd.f32 %v2249_v3, %v13494_v32  ;;  %v2387_v60 = vadd.f32 %v2386_v35, %v13494_v32  ;;  %v20715_v11 = vmov 0 }
 0x253   :  { %4361 = vmatmul.mubr.f32.vlgmr.msra.gmra.mrb[204].mxu0 %v14972_v44  ;;  %v2665_v18 = vmax.f32 %v2248_v42, 0.0  ;;  %vm2921_vm1 = vcmp.gt.f32.partialorder %v2248_v42, 0.0  ;;  %v2667_v2 = vmax.f32 %v2385_v19, 0.0  ;;  %vm2923_vm4 = vcmp.gt.f32.partialorder %v2385_v19, 0.0 }
 0x254   :  { %4432 = vmatmul.mubr.f32.vlgmr.msra.gmra.mrb[204].mxu1 %v14972_v44  ;;  %11670 = vmatpush1.bf16.msra.mxu0 %v15169_v37  ;;  %vm15328_vm13 = vmpackc.low %vm2921_vm1, %vm2889_vm3  ;;  %v2666_v52 = vmax.f32 %v2250_v43, 0.0  ;;  %vm2922_vm6 = vcmp.gt.f32.partialorder %v2250_v43, 0.0  ;;  %v2668_v32 = vmax.f32 %v2387_v60, 0.0  ;;  %vm2924_vm10 = vcmp.gt.f32.partialorder %v2387_v60, 0.0 }
 0x255   :  { %11702 = vmatpush1.bf16.msra.mxu1 %v15177_v54  ;;  %11672 = vmatprep.subr.bf16.mxu0 %v15238_v10  ;;  %v20716_v11 = vsel %vm15328_vm13, 4294967295, %v20715_v11  ;;  %vm2890_vm11 = vcmp.gt.f32.partialorder %v2244_v62, 0.0  ;;  %v11681_v37 = vpack.c.bf16 %v2665_v18, %v2633_v29  ;;  %v11713_v54 = vpack.c.bf16 %v2667_v2, %v2635_v13 }
 0x256   :  { %11704 = vmatprep.subr.bf16.mxu1 %v15253_v48  ;;  %4502 = vmatprep.mubr.f32.mxu0 %v20089_v0  ;;  %vm20717_vm2 = vcmp.gt.f32.partialorder %v2379_v14, 0.0  ;;  %vm2892_vm3 = vcmp.gt.f32.partialorder %v2381_v16, 0.0  ;;  %v11679_v48 = vpack.c.bf16 %v2666_v52, %v2634_v7  ;;  %v11711_v40 = vpack.c.bf16 %v2668_v32, %v2636_v26  ;;  %vm15341_vm1 = vmpackc.low %vm2922_vm6, %vm2890_vm11 }
 0x257   :  { %4573 = vmatprep.mubr.f32.mxu1 %v20089_v0  ;;  %vm15335_vm9 = vmpackc.low %vm2923_vm4, %vm20717_vm2  ;;  %vm20724_vm2 = vnez %v20681_v61 }
 0x258   :  { %11674 = vmatpush1.bf16.msra.mxu0 %v15226_v53  ;;  %vm15346_vm13 = vmpackc.low %vm2924_vm10, %vm2892_vm3  ;;  %v15363_v53 = vpop.permute.xlu0 %3441 }
 0x259   :  { %11706 = vmatpush1.bf16.msra.mxu1 %v15234_v17  ;;  %11676 = vmatprep.subr.bf16.mxu0 %v11675_v41 }
 0x25a   :  { %11708 = vmatprep.subr.bf16.mxu1 %v11707_v23 }
 0x25c   :  { %11678 = vmatpush1.bf16.msra.mxu0 %v15287_v27 }
 0x25d   :  { %11710 = vmatpush1.bf16.msra.mxu1 %v11709_v33  ;;  %11680 = vmatprep.subr.bf16.mxu0 %v11679_v48 }
 0x25e   :  { %11712 = vmatprep.subr.bf16.mxu1 %v11711_v40 }
 0x260   :  { %11682 = vmatpush1.bf16.msra.mxu0 %v11681_v37 }
 0x261   :  { %11714 = vmatpush1.bf16.msra.mxu1 %v11713_v54  ;;  %11684 = vmatprep.subr.msk.bf16.mxu0 %vm15185_vm5, %v20397_v34  ;;  %vm20726_vm5 = vnez %v20695_v39  ;;  %v15461_v39 = vld [vmem:[%s19829_s1 + $0x80] sm:$0xff] }
 0x262   :  { %11716 = vmatprep.subr.msk.bf16.mxu1 %vm15195_vm8, %v20397_v34  ;;  %v3510_v15 = vpop.f32.mrb[192].mxu0  ;;  %vm20727_vm8 = vnez %v20706_v51 }
 0x263   :  { %v3581_v22 = vpop.f32.mrb[192].mxu1  ;;  %v3511_v17 = vadd.f32 %v3510_v15, %v15363_v53  ;;  %v3512_v9 = vpop.f32.mrb[193].mxu0 }
 0x264   :  { %11686 = vmatpush1.bf16.msk.msra.mxu0 %vm15165_vm7, %v20397_v34  ;;  %v3582_v5 = vadd.f32 %v3581_v22, %v15363_v53  ;;  %v3583_v1 = vpop.f32.mrb[193].mxu1  ;;  %v3513_v61 = vadd.f32 %v3512_v9, %v15363_v53  ;;  %vm20725_vm7 = vnez %v20690_v58  ;;  %v15426_v58 = vld [vmem:[%s19829_s1 + $0x68] sm:$0xff] }
 0x265   :  { %11718 = vmatpush1.bf16.msk.msra.mxu1 %vm20724_vm2, %v20397_v34  ;;  %11688 = vmatprep.subr.msk.bf16.mxu0 %vm15242_vm0, %v20397_v34  ;;  %v3584_v20 = vadd.f32 %v3583_v1, %v15363_v53  ;;  %10047 = vst [vmem:[%s19830_s2] sm:$0x3f] %v3511_v17  ;;  %vm20729_vm0 = vnez %v20716_v11 }
 0x266   :  { %11720 = vmatprep.subr.msk.bf16.mxu1 %vm15256_vm12, %v20397_v34  ;;  %10049 = vst [vmem:[%s19830_s2 + $0x10] sm:$0x3f] %v3582_v5  ;;  %10048 = vst [vmem:[%s19830_s2 + $0x8] sm:$0x3f] %v3513_v61  ;;  %vm20728_vm12 = vnez %v20708_v31 }
 0x267   :  { %10050 = vst [vmem:[%s19830_s2 + $0x18] sm:$0x3f] %v3584_v20 }
 0x268   :  { %11690 = vmatpush1.bf16.msk.msra.mxu0 %vm20725_vm7, %v20397_v34 }
 0x269   :  { %11722 = vmatpush1.bf16.msk.msra.mxu1 %vm20726_vm5, %v20397_v34  ;;  %11692 = vmatprep.subr.msk.bf16.mxu0 %vm15298_vm15, %v20397_v34  ;;  %vm20730_vm15 = vcmask 1042432  }
 0x26a   :  { %11724 = vmatprep.subr.msk.bf16.mxu1 %vm15311_vm14, %v20397_v34  ;;  %vm20731_vm14 = vmmov %vm20730_vm15 }
 0x26b   :  { %vm20732_vm11 = vmmov %vm20731_vm14 }
 0x26c   :  { %11694 = vmatpush1.bf16.msk.msra.mxu0 %vm20727_vm8, %v20397_v34  ;;  %vm20733_vm4 = vmmov %vm20732_vm11 }
 0x26d   :  { %11726 = vmatpush1.bf16.msk.msra.mxu1 %vm20728_vm12, %v20397_v34  ;;  %11696 = vmatprep.subr.msk.bf16.mxu0 %vm15341_vm1, %v20397_v34  ;;  %vm20742_vm5 = vmmov %vm20733_vm4 }
 0x26e   :  { %11728 = vmatprep.subr.msk.bf16.mxu1 %vm15346_vm13, %v20397_v34  ;;  %vm20743_vm8 = vmmov %vm20733_vm4 }
 0x26f   :  { %vm20744_vm12 = vmmov %vm20733_vm4 }
 0x270   :  { %11698 = vmatpush1.bf16.msk.msra.mxu0 %vm20729_vm0, %v20397_v34  ;;  %vm20745_vm0 = vmmov %vm20733_vm4 }
 0x271   :  { %11730 = vmatpush1.bf16.msk.msra.mxu1 %vm15335_vm9, %v20397_v34  ;;  %11107 = vmatprep.subr.msk.mxu0 %vm20730_vm15, %v3513_v61  ;;  %vm20734_vm9 = vcmask 23552   ;;  %v15439_v34 = vld [vmem:[%s19829_s1 + $0x70] sm:$0xff]  ;;  %v15737_v61 = vpop.permute.xlu1 %81 }
 0x272   :  { %11113 = vmatprep.subr.msk.mxu1 %vm20731_vm14, %v3584_v20  ;;  %vm20735_vm13 = vmmov %vm20734_vm9 }
 0x273   :  { %4503 = vmatmul.mubr.f32.vlgmr.msra.gmra.mrb[206].mxu0 %v14972_v44  ;;  %vm20736_vm6 = vmmov %vm20734_vm9 }
 0x274   :  { %4574 = vmatmul.mubr.f32.vlgmr.msra.gmra.mrb[206].mxu1 %v14972_v44  ;;  %11108 = vmatpush1.msk.msra.mxu0 %vm20732_vm11, %v3511_v17  ;;  %vm20737_vm10 = vmmov %vm20736_vm6  ;;  %v15450_v44 = vld [vmem:[%s19829_s1 + $0x78] sm:$0xff] }
 0x275   :  { %11114 = vmatpush1.msk.msra.mxu1 %vm20733_vm4, %v3582_v5  ;;  %4756 = vmatprep.mubr.f32.mxu0 %v20089_v0  ;;  %vm20738_vm3 = vmmov %vm20736_vm6 }
 0x276   :  { %4845 = vmatprep.mubr.f32.mxu1 %v20089_v0  ;;  %vm20739_vm1 = vmmov %vm20738_vm3 }
 0x277   :  { %11109 = vmatmul.mubr.msk.f32.vlgmr.msra.gmra.mrb[16].mxu0 %vm20734_vm9, %v15426_v58  ;;  %vm20740_vm2 = vmmov %vm20739_vm1 }
 0x278   :  { %11115 = vmatmul.mubr.msk.f32.vlgmr.msra.gmra.mrb[16].mxu1 %vm20735_vm13, %v15426_v58  ;;  %4762 = vmatprep.mubr.f32.mxu0 %v20089_v0  ;;  %vm20741_vm7 = vmmov %vm20739_vm1 }
 0x279   :  { %4851 = vmatprep.mubr.f32.mxu1 %v20089_v0  ;;  %vm20746_vm15 = vmmov %vm20739_vm1 }
 0x27a   :  { %vm20747_vm14 = vmmov %vm20739_vm1 }
 0x27b   :  { %11110 = vmatmul.mubr.msk.f32.gmra.mrb[18].mxu0 %vm20736_vm6, %v15439_v34  ;;  %vm20748_vm11 = vmmov %vm20739_vm1 }
 0x27c   :  { %11116 = vmatmul.mubr.msk.f32.gmra.mrb[18].mxu1 %vm20737_vm10, %v15439_v34  ;;  %4768 = vmatprep.mubr.f32.mxu0 %v20089_v0  ;;  %vm20749_vm4 = vmmov %vm20739_vm1 }
 0x27d   :  { %4857 = vmatprep.mubr.f32.mxu1 %v20089_v0  ;;  %vm20750_vm9 = vmmov %vm20739_vm1 }
 0x27e   :  { %vm20751_vm13 = vmmov %vm20739_vm1 }
 0x27f   :  { %11111 = vmatmul.mubr.msk.f32.gmra.mrb[20].mxu0 %vm20738_vm3, %v15450_v44  ;;  %vm20752_vm6 = vmmov %vm20739_vm1 }
 0x280   :  { %11117 = vmatmul.mubr.msk.f32.gmra.mrb[20].mxu1 %vm20739_vm1, %v15450_v44  ;;  %4774 = vmatprep.mubr.f32.mxu0 %v20089_v0  ;;  %vm20753_vm10 = vmmov %vm20739_vm1 }
 0x281   :  { %4863 = vmatprep.mubr.f32.mxu1 %v20089_v0  ;;  %vm20754_vm3 = vmmov %vm20745_vm0 }
 0x282   :  { %v3652_v55 = vpop.f32.mrb[194].mxu0  ;;  %vm20755_vm1 = vmmov %vm20745_vm0 }
 0x283   :  { %11112 = vmatmul.mubr.msk.f32.gmra.mrb[22].mxu0 %vm20740_vm2, %v15461_v39  ;;  %v3723_v36 = vpop.f32.mrb[194].mxu1  ;;  %v3653_v49 = vadd.f32 %v3652_v55, %v15363_v53  ;;  %v3654_v46 = vpop.f32.mrb[195].mxu0  ;;  %vm20756_vm2 = vmmov %vm20745_vm0 }
 0x284   :  { %11118 = vmatmul.mubr.msk.f32.gmra.mrb[22].mxu1 %vm20741_vm7, %v15461_v39  ;;  %4934 = vmatprep.mubr.f32.mxu0 %v20089_v0  ;;  %v3724_v57 = vadd.f32 %v3723_v36, %v15363_v53  ;;  %v3725_v50 = vpop.f32.mrb[195].mxu1  ;;  %v3655_v25 = vadd.f32 %v3654_v46, %v15363_v53  ;;  %vm20757_vm7 = vmmov %vm20745_vm0 }
 0x285   :  { %5023 = vmatprep.mubr.f32.mxu1 %v20089_v0  ;;  %v3726_v51 = vadd.f32 %v3725_v50, %v15363_v53  ;;  %10051 = vst [vmem:[%s19830_s2 + $0x20] sm:$0x3f] %v3653_v49 }
 0x286   :  { %10053 = vst [vmem:[%s19830_s2 + $0x30] sm:$0x3f] %v3724_v57  ;;  %10052 = vst [vmem:[%s19830_s2 + $0x28] sm:$0x3f] %v3655_v25  ;;  %11119 = vmatprep.subr.msk.mxu0 %vm20742_vm5, %v3655_v25 }
 0x287   :  { %10054 = vst [vmem:[%s19830_s2 + $0x38] sm:$0x3f] %v3726_v51  ;;  %11125 = vmatprep.subr.msk.mxu1 %vm20743_vm8, %v3726_v51  ;;  %11120 = vmatpush1.msk.msra.mxu0 %vm20744_vm12, %v3653_v49  ;;  %vm20758_vm5 = vmmov %vm20749_vm4 }
 0x288   :  { %11126 = vmatpush1.msk.msra.mxu1 %vm20745_vm0, %v3724_v57  ;;  %11121 = vmatmul.mubr.msk.f32.vlgmr.msra.gmra.mrb[40].mxu0 %vm20746_vm15, %v15426_v58  ;;  %vm20759_vm8 = vmmov %vm20749_vm4 }
 0x289   :  { %11127 = vmatmul.mubr.msk.f32.vlgmr.msra.gmra.mrb[40].mxu1 %vm20747_vm14, %v15426_v58  ;;  %4940 = vmatprep.mubr.f32.mxu0 %v20089_v0  ;;  %vm20760_vm12 = vmmov %vm20749_vm4 }
 0x28a   :  { %5029 = vmatprep.mubr.f32.mxu1 %v20089_v0  ;;  %vm20761_vm0 = vmmov %vm20749_vm4 }
 0x28b   :  { %vm20762_vm15 = vmmov %vm20761_vm0 }
 0x28c   :  { %11122 = vmatmul.mubr.msk.f32.gmra.mrb[42].mxu0 %vm20748_vm11, %v15439_v34  ;;  %vm20763_vm14 = vmmov %vm20761_vm0 }
 0x28d   :  { %11128 = vmatmul.mubr.msk.f32.gmra.mrb[42].mxu1 %vm20749_vm4, %v15439_v34  ;;  %4946 = vmatprep.mubr.f32.mxu0 %v20089_v0  ;;  %vm20764_vm11 = vmmov %vm20761_vm0 }
 0x28e   :  { %5035 = vmatprep.mubr.f32.mxu1 %v20089_v0  ;;  %vm20765_vm4 = vmmov %vm20761_vm0 }
 0x290   :  { %11123 = vmatmul.mubr.msk.f32.gmra.mrb[44].mxu0 %vm20750_vm9, %v15450_v44  ;;  %vm20766_vm9 = vmmov %vm20755_vm1 }
 0x291   :  { %11129 = vmatmul.mubr.msk.f32.gmra.mrb[44].mxu1 %vm20751_vm13, %v15450_v44  ;;  %4952 = vmatprep.mubr.f32.mxu0 %v20089_v0  ;;  %vm20767_vm13 = vmmov %vm20755_vm1 }
 0x292   :  { %5041 = vmatprep.mubr.f32.mxu1 %v20089_v0 }
 0x294   :  { %11124 = vmatmul.mubr.msk.f32.gmra.mrb[46].mxu0 %vm20752_vm6, %v15461_v39  ;;  %vm20768_vm6 = vmmov %vm20755_vm1 }
 0x295   :  { %11130 = vmatmul.mubr.msk.f32.gmra.mrb[46].mxu1 %vm20753_vm10, %v15461_v39  ;;  %5112 = vmatprep.mubr.f32.mxu0 %v20089_v0  ;;  %vm20769_vm10 = vmmov %vm20755_vm1 }
 0x296   :  { %5201 = vmatprep.mubr.f32.mxu1 %v20089_v0 }
 0x2a3   :  { %v3794_v56 = vpop.f32.mrb[196].mxu0  ;;  %v3865_v63 = vpop.f32.mrb[196].mxu1 }
 0x2a4   :  { %v3795_v8 = vadd.f32 %v3794_v56, %v15363_v53  ;;  %v3866_v27 = vadd.f32 %v3865_v63, %v15363_v53  ;;  %v3796_v31 = vpop.f32.mrb[197].mxu0  ;;  %v3867_v4 = vpop.f32.mrb[197].mxu1 }
 0x2a5   :  { %v3797_v24 = vadd.f32 %v3796_v31, %v15363_v53  ;;  %v3868_v59 = vadd.f32 %v3867_v4, %v15363_v53  ;;  %v15789_v31 = vpop.permute.xlu0 %91 }
 0x2a6   :  { %10055 = vst [vmem:[%s19830_s2 + $0x40] sm:$0x3f] %v3795_v8  ;;  %10057 = vst [vmem:[%s19830_s2 + $0x50] sm:$0x3f] %v3866_v27 }
 0x2a7   :  { %10056 = vst [vmem:[%s19830_s2 + $0x48] sm:$0x3f] %v3797_v24  ;;  %10058 = vst [vmem:[%s19830_s2 + $0x58] sm:$0x3f] %v3868_v59  ;;  %11131 = vmatprep.subr.msk.mxu0 %vm20754_vm3, %v3797_v24  ;;  %11137 = vmatprep.subr.msk.mxu1 %vm20755_vm1, %v3868_v59 }
 0x2a8   :  { %11132 = vmatpush1.msk.msra.mxu0 %vm20756_vm2, %v3795_v8  ;;  %11138 = vmatpush1.msk.msra.mxu1 %vm20757_vm7, %v3866_v27  ;;  %vm20770_vm3 = vmmov %vm20761_vm0 }
 0x2a9   :  { %11133 = vmatmul.mubr.msk.f32.vlgmr.msra.gmra.mrb[64].mxu0 %vm20758_vm5, %v15426_v58  ;;  %11139 = vmatmul.mubr.msk.f32.vlgmr.msra.gmra.mrb[64].mxu1 %vm20759_vm8, %v15426_v58  ;;  %vm20771_vm1 = vmmov %vm20761_vm0 }
 0x2aa   :  { %5118 = vmatprep.mubr.f32.mxu0 %v20089_v0  ;;  %5207 = vmatprep.mubr.f32.mxu1 %v20089_v0  ;;  %vm20772_vm2 = vmmov %vm20761_vm0 }
 0x2ab   :  { %vm20773_vm7 = vmmov %vm20761_vm0 }
 0x2ac   :  { %vm20774_vm5 = vmmov %vm20761_vm0 }
 0x2ad   :  { %11134 = vmatmul.mubr.msk.f32.gmra.mrb[66].mxu0 %vm20760_vm12, %v15439_v34  ;;  %11140 = vmatmul.mubr.msk.f32.gmra.mrb[66].mxu1 %vm20761_vm0, %v15439_v34  ;;  %vm20775_vm8 = vmmov %vm20761_vm0 }
 0x2ae   :  { %5124 = vmatprep.mubr.f32.mxu0 %v20089_v0  ;;  %5213 = vmatprep.mubr.f32.mxu1 %v20089_v0  ;;  %vm20776_vm12 = vmmov %vm20761_vm0 }
 0x2b1   :  { %11135 = vmatmul.mubr.msk.f32.gmra.mrb[68].mxu0 %vm20762_vm15, %v15450_v44  ;;  %11141 = vmatmul.mubr.msk.f32.gmra.mrb[68].mxu1 %vm20763_vm14, %v15450_v44  ;;  %vm20777_vm15 = vmmov %vm20768_vm6 }
 0x2b2   :  { %5130 = vmatprep.mubr.f32.mxu0 %v20089_v0  ;;  %5219 = vmatprep.mubr.f32.mxu1 %v20089_v0  ;;  %vm20778_vm14 = vmmov %vm20768_vm6 }
 0x2b5   :  { %11136 = vmatmul.mubr.msk.f32.gmra.mrb[70].mxu0 %vm20764_vm11, %v15461_v39  ;;  %11142 = vmatmul.mubr.msk.f32.gmra.mrb[70].mxu1 %vm20765_vm4, %v15461_v39  ;;  %vm20779_vm11 = vmmov %vm20768_vm6 }
 0x2b6   :  { %5290 = vmatprep.mubr.f32.mxu0 %v20089_v0  ;;  %5379 = vmatprep.mubr.f32.mxu1 %v20089_v0  ;;  %vm20780_vm4 = vmmov %vm20768_vm6 }
 0x2c6   :  { %v3936_v6 = vpop.f32.mrb[198].mxu0  ;;  %v4007_v33 = vpop.f32.mrb[198].mxu1 }
 0x2c7   :  { %v3937_v14 = vadd.f32 %v3936_v6, %v15363_v53  ;;  %v4008_v12 = vadd.f32 %v4007_v33, %v15363_v53  ;;  %v3938_v41 = vpop.f32.mrb[199].mxu0  ;;  %v4009_v30 = vpop.f32.mrb[199].mxu1 }
 0x2c8   :  { %v3939_v62 = vadd.f32 %v3938_v41, %v15363_v53  ;;  %v4010_v16 = vadd.f32 %v4009_v30, %v15363_v53 }
 0x2c9   :  { %10059 = vst [vmem:[%s19830_s2 + $0x60] sm:$0x3f] %v3937_v14  ;;  %10061 = vst [vmem:[%s19830_s2 + $0x70] sm:$0x3f] %v4008_v12 }
 0x2ca   :  { %10060 = vst [vmem:[%s19830_s2 + $0x68] sm:$0x3f] %v3939_v62  ;;  %10062 = vst [vmem:[%s19830_s2 + $0x78] sm:$0x3f] %v4010_v16  ;;  %11143 = vmatprep.subr.msk.mxu0 %vm20766_vm9, %v3939_v62  ;;  %11149 = vmatprep.subr.msk.mxu1 %vm20767_vm13, %v4010_v16 }
 0x2cb   :  { %11144 = vmatpush1.msk.msra.mxu0 %vm20768_vm6, %v3937_v14  ;;  %11150 = vmatpush1.msk.msra.mxu1 %vm20769_vm10, %v4008_v12  ;;  %vm20781_vm9 = vmmov %vm20761_vm0 }
 0x2cc   :  { %11145 = vmatmul.mubr.msk.f32.vlgmr.msra.gmra.mrb[88].mxu0 %vm20770_vm3, %v15426_v58  ;;  %11151 = vmatmul.mubr.msk.f32.vlgmr.msra.gmra.mrb[88].mxu1 %vm20771_vm1, %v15426_v58  ;;  %vm20782_vm13 = vmmov %vm20761_vm0 }
 0x2cd   :  { %5296 = vmatprep.mubr.f32.mxu0 %v20089_v0  ;;  %5385 = vmatprep.mubr.f32.mxu1 %v20089_v0  ;;  %vm20783_vm6 = vmmov %vm20761_vm0 }
 0x2ce   :  { %vm20784_vm10 = vmmov %vm20761_vm0 }
 0x2cf   :  { %vm20785_vm3 = vmmov %vm20761_vm0 }
 0x2d0   :  { %11146 = vmatmul.mubr.msk.f32.gmra.mrb[90].mxu0 %vm20772_vm2, %v15439_v34  ;;  %11152 = vmatmul.mubr.msk.f32.gmra.mrb[90].mxu1 %vm20773_vm7, %v15439_v34  ;;  %vm20786_vm1 = vmmov %vm20761_vm0 }
 0x2d1   :  { %5302 = vmatprep.mubr.f32.mxu0 %v20089_v0  ;;  %5391 = vmatprep.mubr.f32.mxu1 %v20089_v0  ;;  %vm20787_vm2 = vmmov %vm20761_vm0 }
 0x2d2   :  { %vm20788_vm7 = vmmov %vm20761_vm0 }
 0x2d4   :  { %11147 = vmatmul.mubr.msk.f32.gmra.mrb[92].mxu0 %vm20774_vm5, %v15450_v44  ;;  %11153 = vmatmul.mubr.msk.f32.gmra.mrb[92].mxu1 %vm20775_vm8, %v15450_v44  ;;  %vm20789_vm5 = vmmov %vm20780_vm4 }
 0x2d5   :  { %5308 = vmatprep.mubr.f32.mxu0 %v20089_v0  ;;  %5397 = vmatprep.mubr.f32.mxu1 %v20089_v0  ;;  %vm20790_vm8 = vmmov %vm20780_vm4 }
 0x2d8   :  { %11148 = vmatmul.mubr.msk.f32.gmra.mrb[94].mxu0 %vm20776_vm12, %v15461_v39  ;;  %11154 = vmatmul.mubr.msk.f32.gmra.mrb[94].mxu1 %vm20761_vm0, %v15461_v39  ;;  %vm20791_vm12 = vmmov %vm20780_vm4 }
 0x2d9   :  { %5468 = vmatprep.mubr.f32.mxu0 %v20089_v0  ;;  %5557 = vmatprep.mubr.f32.mxu1 %v20089_v0  ;;  %vm20792_vm0 = vmmov %vm20780_vm4 }
 0x2e6   :  { %v4078_v23 = vpop.f32.mrb[200].mxu0  ;;  %v4149_v47 = vpop.f32.mrb[200].mxu1 }
 0x2e7   :  { %v4079_v29 = vadd.f32 %v4078_v23, %v15363_v53  ;;  %v4150_v45 = vadd.f32 %v4149_v47, %v15363_v53  ;;  %v4080_v38 = vpop.f32.mrb[201].mxu0  ;;  %v4151_v13 = vpop.f32.mrb[201].mxu1 }
 0x2e8   :  { %v4081_v42 = vadd.f32 %v4080_v38, %v15363_v53  ;;  %v4152_v19 = vadd.f32 %v4151_v13, %v15363_v53 }
 0x2e9   :  { %10063 = vst [vmem:[%s19830_s2 + $0x80] sm:$0x3f] %v4079_v29  ;;  %10065 = vst [vmem:[%s19830_s2 + $0x90] sm:$0x3f] %v4150_v45 }
 0x2ea   :  { %10064 = vst [vmem:[%s19830_s2 + $0x88] sm:$0x3f] %v4081_v42  ;;  %10066 = vst [vmem:[%s19830_s2 + $0x98] sm:$0x3f] %v4152_v19  ;;  %11155 = vmatprep.subr.msk.mxu0 %vm20777_vm15, %v4081_v42  ;;  %11161 = vmatprep.subr.msk.mxu1 %vm20778_vm14, %v4152_v19 }
 0x2eb   :  { %11156 = vmatpush1.msk.msra.mxu0 %vm20779_vm11, %v4079_v29  ;;  %11162 = vmatpush1.msk.msra.mxu1 %vm20780_vm4, %v4150_v45  ;;  %vm20793_vm15 = vmmov %vm20786_vm1 }
 0x2ec   :  { %11157 = vmatmul.mubr.msk.f32.vlgmr.msra.gmra.mrb[112].mxu0 %vm20781_vm9, %v15426_v58  ;;  %11163 = vmatmul.mubr.msk.f32.vlgmr.msra.gmra.mrb[112].mxu1 %vm20782_vm13, %v15426_v58  ;;  %vm20794_vm14 = vmmov %vm20786_vm1 }
 0x2ed   :  { %5474 = vmatprep.mubr.f32.mxu0 %v20089_v0  ;;  %5563 = vmatprep.mubr.f32.mxu1 %v20089_v0  ;;  %vm20795_vm11 = vmmov %vm20786_vm1 }
 0x2ee   :  { %vm20796_vm4 = vmmov %vm20786_vm1 }
 0x2ef   :  { %vm20797_vm9 = vmmov %vm20786_vm1 }
 0x2f0   :  { %11158 = vmatmul.mubr.msk.f32.gmra.mrb[114].mxu0 %vm20783_vm6, %v15439_v34  ;;  %11164 = vmatmul.mubr.msk.f32.gmra.mrb[114].mxu1 %vm20784_vm10, %v15439_v34  ;;  %vm20798_vm13 = vmmov %vm20786_vm1 }
 0x2f1   :  { %5480 = vmatprep.mubr.f32.mxu0 %v20089_v0  ;;  %5569 = vmatprep.mubr.f32.mxu1 %v20089_v0  ;;  %vm20799_vm6 = vmmov %vm20786_vm1 }
 0x2f2   :  { %vm20800_vm10 = vmmov %vm20786_vm1 }
 0x2f4   :  { %11159 = vmatmul.mubr.msk.f32.gmra.mrb[116].mxu0 %vm20785_vm3, %v15450_v44  ;;  %11165 = vmatmul.mubr.msk.f32.gmra.mrb[116].mxu1 %vm20786_vm1, %v15450_v44  ;;  %vm20801_vm3 = vmmov %vm20792_vm0 }
 0x2f5   :  { %5486 = vmatprep.mubr.f32.mxu0 %v20089_v0  ;;  %5575 = vmatprep.mubr.f32.mxu1 %v20089_v0  ;;  %vm20802_vm1 = vmmov %vm20792_vm0 }
 0x2f8   :  { %11160 = vmatmul.mubr.msk.f32.gmra.mrb[118].mxu0 %vm20787_vm2, %v15461_v39  ;;  %11166 = vmatmul.mubr.msk.f32.gmra.mrb[118].mxu1 %vm20788_vm7, %v15461_v39  ;;  %vm20803_vm2 = vmmov %vm20792_vm0 }
 0x2f9   :  { %5646 = vmatprep.mubr.f32.mxu0 %v20089_v0  ;;  %5735 = vmatprep.mubr.f32.mxu1 %v20089_v0  ;;  %vm20804_vm7 = vmmov %vm20792_vm0 }
 0x306   :  { %v4220_v3 = vpop.f32.mrb[202].mxu0  ;;  %v4291_v35 = vpop.f32.mrb[202].mxu1 }
 0x307   :  { %v4221_v7 = vadd.f32 %v4220_v3, %v15363_v53  ;;  %v4292_v26 = vadd.f32 %v4291_v35, %v15363_v53  ;;  %v4222_v43 = vpop.f32.mrb[203].mxu0  ;;  %v4293_v60 = vpop.f32.mrb[203].mxu1 }
 0x308   :  { %v4223_v18 = vadd.f32 %v4222_v43, %v15363_v53  ;;  %v4294_v2 = vadd.f32 %v4293_v60, %v15363_v53 }
 0x309   :  { %10067 = vst [vmem:[%s19830_s2 + $0xa0] sm:$0x3f] %v4221_v7  ;;  %10069 = vst [vmem:[%s19830_s2 + $0xb0] sm:$0x3f] %v4292_v26 }
 0x30a   :  { %10068 = vst [vmem:[%s19830_s2 + $0xa8] sm:$0x3f] %v4223_v18  ;;  %10070 = vst [vmem:[%s19830_s2 + $0xb8] sm:$0x3f] %v4294_v2  ;;  %11167 = vmatprep.subr.msk.mxu0 %vm20789_vm5, %v4223_v18  ;;  %11173 = vmatprep.subr.msk.mxu1 %vm20790_vm8, %v4294_v2 }
 0x30b   :  { %11168 = vmatpush1.msk.msra.mxu0 %vm20791_vm12, %v4221_v7  ;;  %11174 = vmatpush1.msk.msra.mxu1 %vm20792_vm0, %v4292_v26  ;;  %vm20805_vm5 = vmmov %vm20796_vm4 }
 0x30c   :  { %11169 = vmatmul.mubr.msk.f32.vlgmr.msra.gmra.mrb[136].mxu0 %vm20793_vm15, %v15426_v58  ;;  %11175 = vmatmul.mubr.msk.f32.vlgmr.msra.gmra.mrb[136].mxu1 %vm20794_vm14, %v15426_v58  ;;  %vm20806_vm8 = vmmov %vm20796_vm4 }
 0x30d   :  { %5652 = vmatprep.mubr.f32.mxu0 %v20089_v0  ;;  %5741 = vmatprep.mubr.f32.mxu1 %v20089_v0  ;;  %vm20807_vm12 = vmmov %vm20796_vm4 }
 0x30e   :  { %vm20808_vm0 = vmmov %vm20796_vm4 }
 0x30f   :  { %vm20809_vm15 = vmmov %vm20808_vm0 }
 0x310   :  { %11170 = vmatmul.mubr.msk.f32.gmra.mrb[138].mxu0 %vm20795_vm11, %v15439_v34  ;;  %11176 = vmatmul.mubr.msk.f32.gmra.mrb[138].mxu1 %vm20796_vm4, %v15439_v34  ;;  %vm20810_vm14 = vmmov %vm20808_vm0 }
 0x311   :  { %5658 = vmatprep.mubr.f32.mxu0 %v20089_v0  ;;  %5747 = vmatprep.mubr.f32.mxu1 %v20089_v0  ;;  %vm20811_vm11 = vmmov %vm20808_vm0 }
 0x312   :  { %vm20812_vm4 = vmmov %vm20808_vm0 }
 0x314   :  { %11171 = vmatmul.mubr.msk.f32.gmra.mrb[140].mxu0 %vm20797_vm9, %v15450_v44  ;;  %11177 = vmatmul.mubr.msk.f32.gmra.mrb[140].mxu1 %vm20798_vm13, %v15450_v44  ;;  %vm20813_vm9 = vmmov %vm20802_vm1 }
 0x315   :  { %5664 = vmatprep.mubr.f32.mxu0 %v20089_v0  ;;  %5753 = vmatprep.mubr.f32.mxu1 %v20089_v0  ;;  %vm20814_vm13 = vmmov %vm20802_vm1 }
 0x318   :  { %11172 = vmatmul.mubr.msk.f32.gmra.mrb[142].mxu0 %vm20799_vm6, %v15461_v39  ;;  %11178 = vmatmul.mubr.msk.f32.gmra.mrb[142].mxu1 %vm20800_vm10, %v15461_v39  ;;  %vm20815_vm6 = vmmov %vm20802_vm1 }
 0x319   :  { %5824 = vmatprep.mubr.f32.mxu0 %v20089_v0  ;;  %5913 = vmatprep.mubr.f32.mxu1 %v20089_v0  ;;  %vm20816_vm10 = vmmov %vm20802_vm1 }
 0x326   :  { %v4362_v11 = vpop.f32.mrb[204].mxu0 }
 0x327   :  { %v4433_v52 = vpop.f32.mrb[204].mxu1  ;;  %v4363_v32 = vadd.f32 %v4362_v11, %v15363_v53  ;;  %v4364_v54 = vpop.f32.mrb[205].mxu0 }
 0x328   :  { %v4434_v37 = vadd.f32 %v4433_v52, %v15363_v53  ;;  %v4435_v10 = vpop.f32.mrb[205].mxu1  ;;  %v4365_v48 = vadd.f32 %v4364_v54, %v15363_v53 }
 0x329   :  { %v4436_v40 = vadd.f32 %v4435_v10, %v15363_v53  ;;  %10071 = vst [vmem:[%s19830_s2 + $0xc0] sm:$0x3f] %v4363_v32 }
 0x32a   :  { %10073 = vst [vmem:[%s19830_s2 + $0xd0] sm:$0x3f] %v4434_v37  ;;  %10072 = vst [vmem:[%s19830_s2 + $0xc8] sm:$0x3f] %v4365_v48  ;;  %11179 = vmatprep.subr.msk.mxu0 %vm20801_vm3, %v4365_v48 }
 0x32b   :  { %10074 = vst [vmem:[%s19830_s2 + $0xd8] sm:$0x3f] %v4436_v40  ;;  %11185 = vmatprep.subr.msk.mxu1 %vm20802_vm1, %v4436_v40  ;;  %11180 = vmatpush1.msk.msra.mxu0 %vm20803_vm2, %v4363_v32  ;;  %vm20817_vm3 = vmmov %vm20808_vm0 }
 0x32c   :  { %11186 = vmatpush1.msk.msra.mxu1 %vm20804_vm7, %v4434_v37  ;;  %11181 = vmatmul.mubr.msk.f32.vlgmr.msra.gmra.mrb[160].mxu0 %vm20805_vm5, %v15426_v58  ;;  %vm20818_vm1 = vmmov %vm20808_vm0 }
 0x32d   :  { %11187 = vmatmul.mubr.msk.f32.vlgmr.msra.gmra.mrb[160].mxu1 %vm20806_vm8, %v15426_v58  ;;  %5830 = vmatprep.mubr.f32.mxu0 %v20089_v0  ;;  %vm20819_vm2 = vmmov %vm20808_vm0 }
 0x32e   :  { %5919 = vmatprep.mubr.f32.mxu1 %v20089_v0  ;;  %vm20820_vm7 = vmmov %vm20808_vm0 }
 0x32f   :  { %vm20821_vm5 = vmmov %vm20808_vm0 }
 0x330   :  { %11182 = vmatmul.mubr.msk.f32.gmra.mrb[162].mxu0 %vm20807_vm12, %v15439_v34  ;;  %vm20822_vm8 = vmmov %vm20808_vm0 }
 0x331   :  { %11188 = vmatmul.mubr.msk.f32.gmra.mrb[162].mxu1 %vm20808_vm0, %v15439_v34  ;;  %5836 = vmatprep.mubr.f32.mxu0 %v20089_v0  ;;  %vm20823_vm12 = vmmov %vm20808_vm0 }
 0x332   :  { %5925 = vmatprep.mubr.f32.mxu1 %v20089_v0 }
 0x334   :  { %11183 = vmatmul.mubr.msk.f32.gmra.mrb[164].mxu0 %vm20809_vm15, %v15450_v44 }
 0x335   :  { %11189 = vmatmul.mubr.msk.f32.gmra.mrb[164].mxu1 %vm20810_vm14, %v15450_v44  ;;  %5842 = vmatprep.mubr.f32.mxu0 %v20089_v0 }
 0x336   :  { %5931 = vmatprep.mubr.f32.mxu1 %v20089_v0 }
 0x338   :  { %11184 = vmatmul.mubr.msk.f32.gmra.mrb[166].mxu0 %vm20811_vm11, %v15461_v39 }
 0x339   :  { %11190 = vmatmul.mubr.msk.f32.gmra.mrb[166].mxu1 %vm20812_vm4, %v15461_v39  ;;  %6002 = vmatprep.mubr.f32.mxu0 %v20089_v0 }
 0x33a   :  { %6091 = vmatprep.mubr.f32.mxu1 %v20089_v0 }
 0x346   :  { %v4504_v21 = vpop.f32.mrb[206].mxu0 }
 0x347   :  { %v4575_v28 = vpop.f32.mrb[206].mxu1  ;;  %v4505_v15 = vadd.f32 %v4504_v21, %v15363_v53  ;;  %v4506_v17 = vpop.f32.mrb[207].mxu0 }
 0x348   :  { %v4576_v22 = vadd.f32 %v4575_v28, %v15363_v53  ;;  %v4577_v5 = vpop.f32.mrb[207].mxu1  ;;  %v4507_v9 = vadd.f32 %v4506_v17, %v15363_v53 }
 0x349   :  { %v4578_v1 = vadd.f32 %v4577_v5, %v15363_v53  ;;  %10075 = vst [vmem:[%s19830_s2 + $0xe0] sm:$0x3f] %v4505_v15 }
 0x34a   :  { %10077 = vst [vmem:[%s19830_s2 + $0xf0] sm:$0x3f] %v4576_v22  ;;  %10076 = vst [vmem:[%s19830_s2 + $0xe8] sm:$0x3f] %v4507_v9  ;;  %v4758_v20 = vpop.f32.mrb[16].mxu0  ;;  %11191 = vmatprep.subr.msk.mxu0 %vm20813_vm9, %v4507_v9 }
 0x34b   :  { %10078 = vst [vmem:[%s19830_s2 + $0xf8] sm:$0x3f] %v4578_v1  ;;  %v4847_v53 = vpop.f32.mrb[16].mxu1  ;;  %11197 = vmatprep.subr.msk.mxu1 %vm20814_vm13, %v4578_v1  ;;  %v15754_v55 = vadd.f32 %v4758_v20, %v15737_v61  ;;  %v15759_v49 = vpop.f32.mrb[17].mxu0  ;;  %11192 = vmatpush1.msk.msra.mxu0 %vm20815_vm6, %v4505_v15 }
 0x34c   :  { %v15757_v36 = vadd.f32 %v4847_v53, %v15737_v61  ;;  %v15761_v57 = vpop.f32.mrb[17].mxu1  ;;  %11198 = vmatpush1.msk.msra.mxu1 %vm20816_vm10, %v4576_v22  ;;  %11193 = vmatmul.mubr.msk.f32.vlgmr.msra.gmra.mrb[184].mxu0 %vm20817_vm3, %v15426_v58  ;;  %v15879_v53 = vadd.f32 %v15759_v49, %v15737_v61 }
 0x34d   :  { %11199 = vmatmul.mubr.msk.f32.vlgmr.msra.gmra.mrb[184].mxu1 %vm20818_vm1, %v15426_v58  ;;  %v15770_v46 = vmul.f32 100.0, %v15754_v55  ;;  %6008 = vmatprep.mubr.f32.mxu0 %v20089_v0  ;;  %v15783_v58 = vpop.permute.xlu1 %86 }
 0x34e   :  { %v15773_v50 = vmul.f32 100.0, %v15757_v36  ;;  %6097 = vmatprep.mubr.f32.mxu1 %v20089_v0  ;;  %v4764_v25 = vpop.f32.mrb[18].mxu0  ;;  %20825 = vst [vmem:[#allocation28_spill] sm:$0xff] %v15879_v53 }
 0x34f   :  { %v4853_v51 = vpop.f32.mrb[18].mxu1  ;;  %v6500_v56 = vmin.f32 %v15770_v46, 20.0  ;;  %v15779_v8 = vpop.f32.mrb[19].mxu0  ;;  %v15792_v59 = vadd.f32 %v4764_v25, %v15783_v58  ;;  %v15883_v25 = vadd.f32 %v15761_v57, %v15737_v61  ;;  %vm6372_vm14 = vcmp.gt.f32.partialorder %v15770_v46, 20.0 }
 0x350   :  { %v6502_v63 = vmin.f32 %v15773_v50, 20.0  ;;  %v15781_v27 = vpop.f32.mrb[19].mxu1  ;;  %11194 = vmatmul.mubr.msk.f32.gmra.mrb[186].mxu0 %vm20819_vm2, %v15439_v34  ;;  %v15795_v6 = vadd.f32 %v4853_v51, %v15783_v58  ;;  %vm6374_vm11 = vcmp.gt.f32.partialorder %v15773_v50, 20.0 }
 0x351   :  { %11200 = vmatmul.mubr.msk.f32.gmra.mrb[186].mxu1 %vm20820_vm7, %v15439_v34  ;;  %v6628_v4 = vmul.f32 1.442695, %v6500_v56  ;;  %6014 = vmatprep.mubr.f32.mxu0 %v20089_v0  ;;  %v15800_v12 = vmul.f32 100.0, %v15792_v59  ;;  %v15841_v26 = vpop.permute.xlu1 %96  ;;  %20826 = vst [vmem:[#allocation39_spill] sm:$0xff] %v15883_v25 }
 0x352   :  { %v6632_v24 = vmul.f32 1.442695, %v6502_v63  ;;  %6103 = vmatprep.mubr.f32.mxu1 %v20089_v0  ;;  %v4770_v33 = vpop.f32.mrb[20].mxu0  ;;  %v15803_v34 = vmul.f32 100.0, %v15795_v6  ;;  %20824 = vst [vmem:[#allocation25_spill] sm:$0xff] %v15841_v26 }
 0x353   :  { %v4859_v14 = vpop.f32.mrb[20].mxu1  ;;  %12142 = vpow2.f32 %v6628_v4  ;;  %v15806_v41 = vadd.f32 %v4770_v33, %v15789_v31  ;;  %v15808_v30 = vpop.f32.mrb[21].mxu0  ;;  %v6532_v23 = vmin.f32 %v15800_v12, 20.0  ;;  %vm6404_vm6 = vcmp.gt.f32.partialorder %v15800_v12, 20.0 }
 0x354   :  { %v15810_v62 = vpop.f32.mrb[21].mxu1  ;;  %12144 = vpow2.f32 %v6632_v24  ;;  %v15813_v16 = vadd.f32 %v4859_v14, %v15789_v31  ;;  %11195 = vmatmul.mubr.msk.f32.gmra.mrb[188].mxu0 %vm20821_vm5, %v15450_v44  ;;  %v6534_v47 = vmin.f32 %v15803_v34, 20.0  ;;  %vm6406_vm10 = vcmp.gt.f32.partialorder %v15803_v34, 20.0 }
 0x355   :  { %11201 = vmatmul.mubr.msk.f32.gmra.mrb[188].mxu1 %vm20822_vm8, %v15450_v44  ;;  %6020 = vmatprep.mubr.f32.mxu0 %v20089_v0  ;;  %v6692_v38 = vmul.f32 1.442695, %v6532_v23  ;;  %v15824_v13 = vmul.f32 100.0, %v15806_v41 }
 0x356   :  { %6109 = vmatprep.mubr.f32.mxu1 %v20089_v0  ;;  %v4776_v29 = vpop.f32.mrb[22].mxu0  ;;  %v6696_v19 = vmul.f32 1.442695, %v6534_v47  ;;  %v15829_v3 = vmul.f32 100.0, %v15813_v16 }
 0x357   :  { %v4865_v45 = vpop.f32.mrb[22].mxu1  ;;  %v15826_v42 = vpop.f32.mrb[23].mxu0  ;;  %12146 = vpow2.f32 %v6692_v38  ;;  %v6564_v35 = vmin.f32 %v15824_v13, 20.0  ;;  %v15844_v18 = vadd.f32 %v4776_v29, %v15841_v26  ;;  %vm6436_vm1 = vcmp.gt.f32.partialorder %v15824_v13, 20.0 }
 0x358   :  { %v15831_v44 = vpop.f32.mrb[23].mxu1  ;;  %11196 = vmatmul.mubr.msk.f32.gmra.mrb[190].mxu0 %vm20823_vm12, %v15461_v39  ;;  %12148 = vpow2.f32 %v6696_v19  ;;  %v6566_v7 = vmin.f32 %v15829_v3, 20.0  ;;  %v15850_v32 = vadd.f32 %v4865_v45, %v15841_v26  ;;  %v15904_v19 = vmul.f32 100.0, %v15879_v53 }
 0x359   :  { %11202 = vmatmul.mubr.msk.f32.gmra.mrb[190].mxu1 %vm20808_vm0, %v15461_v39  ;;  %8366 = vmatprep.mubr.f32.mxu0 %v20089_v0  ;;  %v6756_v43 = vmul.f32 1.442695, %v6564_v35  ;;  %v15853_v37 = vmul.f32 100.0, %v15844_v18  ;;  %v15907_v35 = vmul.f32 100.0, %v15883_v25  ;;  %vm6438_vm7 = vcmp.gt.f32.partialorder %v15829_v3, 20.0 }
 0x35a   :  { %8437 = vmatprep.mubr.f32.mxu1 %v20089_v0  ;;  %v6760_v60 = vmul.f32 1.442695, %v6566_v7  ;;  %v15866_v28 = vmul.f32 100.0, %v15850_v32  ;;  %v15923_v0 = vadd.f32 %v15781_v27, %v15783_v58 }
 0x35b   :  { %12150 = vpow2.f32 %v6756_v43  ;;  %v15855_v54 = vpop.f32.mrb[40].mxu0  ;;  %v6596_v1 = vmin.f32 %v15853_v37, 20.0  ;;  %vm6468_vm12 = vcmp.gt.f32.partialorder %v15853_v37, 20.0 }
 0x35c   :  { %12152 = vpow2.f32 %v6760_v60  ;;  %v15857_v10 = vpop.f32.mrb[40].mxu1  ;;  %v15859_v48 = vpop.f32.mrb[41].mxu0  ;;  %v6598_v33 = vmin.f32 %v15866_v28, 20.0  ;;  %20832 = vst [vmem:[#allocation46_spill] sm:$0xff] %v15923_v0  ;;  %vm6470_vm0 = vcmp.gt.f32.partialorder %v15866_v28, 20.0 }
 0x35d   :  { %v12143_v2 = vpop.eup %12142  ;;  %v15861_v40 = vpop.f32.mrb[41].mxu1  ;;  %v6820_v57 = vmul.f32 1.442695, %v6596_v1 }
 0x35e   :  { %v15846_v39 = vpop.eup %12144  ;;  %v6884_v11 = vadd.f32 1.0, %v12143_v2  ;;  %v6887_v5 = vmul.f32 -0.5, %v12143_v2  ;;  %v6890_v24 = vand.u32 2147483647, %v12143_v2 }
 0x35f   :  { %v6902_v52 = vadd.f32 1.0, %v15846_v39  ;;  %v15868_v15 = vpop.f32.mrb[42].mxu0  ;;  %v6905_v20 = vmul.f32 -0.5, %v15846_v39  ;;  %v6908_v60 = vand.u32 2147483647, %v15846_v39 }
 0x360   :  { %12154 = vlog2.f32 %v6884_v11  ;;  %v15870_v22 = vpop.f32.mrb[42].mxu1  ;;  %v15886_v56 = vpop.f32.mrb[43].mxu0  ;;  %v6888_v23 = vadd.f32 1.0, %v6887_v5  ;;  %v6824_v5 = vmul.f32 1.442695, %v6598_v33 }
 0x361   :  { %12156 = vlog2.f32 %v6902_v52  ;;  %v15863_v21 = vpop.eup %12146  ;;  %v15888_v63 = vpop.f32.mrb[43].mxu1  ;;  %v6906_v38 = vadd.f32 1.0, %v6905_v20  ;;  %vm15913_vm15 = vcmp.lt.f32.partialorder %v6890_v24, 0.0004427343  ;;  %vm15940_vm4 = vcmp.lt.f32.partialorder %v6908_v60, 0.0004427343 }
 0x362   :  { %v15872_v17 = vpop.eup %12148  ;;  %v7172_v9 = vadd.f32 1.0, %v15863_v21  ;;  %20827 = vst [vmem:[#allocation40_spill] sm:$0xff] %v15888_v63  ;;  %v7175_v7 = vmul.f32 -0.5, %v15863_v21  ;;  %v6889_v25 = vmul.f32 %v12143_v2, %v6888_v23  ;;  %v7178_v33 = vand.u32 2147483647, %v15863_v21 }
 0x363   :  { %v7190_v51 = vadd.f32 1.0, %v15872_v17  ;;  %v15893_v14 = vpop.f32.mrb[44].mxu0  ;;  %v7193_v11 = vmul.f32 -0.5, %v15872_v17  ;;  %v6501_v60 = vmin.f32 %v15904_v19, 20.0 }
 0x364   :  { %12158 = vlog2.f32 %v7172_v9  ;;  %v15895_v49 = vpop.f32.mrb[44].mxu1  ;;  %v15897_v47 = vpop.f32.mrb[45].mxu0  ;;  %v7176_v53 = vadd.f32 1.0, %v7175_v7  ;;  %v15953_v7 = vadd.f32 %v15857_v10, %v15737_v61  ;;  %vm15957_vm9 = vcmp.lt.f32.partialorder %v7178_v33, 0.0004427343 }
 0x365   :  { %v15890_v4 = vpop.eup %12150  ;;  %12160 = vlog2.f32 %v7190_v51  ;;  %20828 = vst [vmem:[#allocation33_spill] sm:$0xff] %v15897_v47  ;;  %v15899_v29 = vpop.f32.mrb[45].mxu1  ;;  %v15919_v51 = vadd.f32 %v15779_v8, %v15783_v58  ;;  %v6907_v8 = vmul.f32 %v15846_v39, %v6906_v38  ;;  %v7196_v39 = vand.u32 2147483647, %v15872_v17 }
 0x366   :  { %20829 = vst [vmem:[#allocation36_spill] sm:$0xff] %v15899_v29  ;;  %v15901_v45 = vpop.eup %12152  ;;  %v7460_v52 = vadd.f32 1.0, %v15890_v4  ;;  %12162 = vpow2.f32 %v6820_v57  ;;  %v7194_v57 = vadd.f32 1.0, %v7193_v11  ;;  %v15949_v38 = vadd.f32 %v15855_v54, %v15737_v61 }
 0x367   :  { %v15925_v29 = vpop.f32.mrb[46].mxu0  ;;  %v7478_v27 = vadd.f32 1.0, %v15901_v45  ;;  %12164 = vpow2.f32 %v6824_v5  ;;  %v6503_v5 = vmin.f32 %v15907_v35, 20.0  ;;  %v7177_v20 = vmul.f32 %v15863_v21, %v7176_v53 }
 0x368   :  { %v15930_v24 = vpop.f32.mrb[47].mxu0  ;;  %12166 = vlog2.f32 %v7460_v52  ;;  %v7195_v23 = vmul.f32 %v15872_v17, %v7194_v57  ;;  %vm7197_vm13 = vcmp.lt.f32.partialorder %v7196_v39, 0.0004427343  ;;  %v7481_v34 = vmul.f32 -0.5, %v15901_v45 }
 0x369   :  { %20833 = vst [vmem:[#allocation49_spill] sm:$0xff] %v15930_v24  ;;  %12168 = vlog2.f32 %v7478_v27  ;;  %v15972_v24 = vmul.f32 100.0, %v15923_v0 }
 0x36a   :  { %v12155_v43 = vpop.eup %12154 }
 0x36b   :  { %v12157_v9 = vpop.eup %12156  ;;  %v6886_v1 = vmul.f32 0.6931472, %v12155_v43  ;;  %v15928_v43 = vpop.f32.mrb[46].mxu1 }
 0x36c   :  { %v6904_v47 = vmul.f32 0.6931472, %v12157_v9  ;;  %v15936_v63 = vpop.f32.mrb[47].mxu1 }
 0x36d   :  { %20834 = vst [vmem:[#allocation43_spill] sm:$0xff] %v15936_v63  ;;  %v6892_v2 = vsel %vm15913_vm15, %v6889_v25, %v6886_v1  ;;  %v15967_v63 = vmul.f32 100.0, %v15949_v38 }
 0x36e   :  { %v6910_v9 = vsel %vm15940_vm4, %v6907_v8, %v6904_v47  ;;  %v12159_v25 = vpop.eup %12158  ;;  %v15962_v47 = vmul.f32 100.0, %v15919_v51  ;;  %v8037_v1 = vmul.f32 0.01, %v6892_v2  ;;  %v15975_v2 = vmul.f32 100.0, %v15953_v7 }
 0x36f   :  { %v12161_v52 = vpop.eup %12160  ;;  %v7174_v54 = vmul.f32 0.6931472, %v12159_v25  ;;  %v8039_v10 = vmul.f32 0.01, %v6910_v9  ;;  %v6504_v27 = vmin.f32 %v15967_v63, 20.0  ;;  %v7463_v9 = vmul.f32 -0.5, %v15890_v4 }
 0x370   :  { %v7192_v8 = vmul.f32 0.6931472, %v12161_v52  ;;  %v6533_v57 = vmin.f32 %v15962_v47, 20.0  ;;  %v15982_v39 = vpop.eup %12162  ;;  %v15987_v25 = vsel %vm6372_vm14, %v15754_v55, %v8037_v1  ;;  %v6506_v46 = vmin.f32 %v15975_v2, 20.0 }
 0x371   :  { %v7180_v33 = vsel %vm15957_vm9, %v7177_v20, %v7174_v54  ;;  %v15992_v12 = vsel %vm6374_vm11, %v15757_v36, %v8039_v10  ;;  %v15998_v52 = vpop.eup %12164  ;;  %v7748_v55 = vadd.f32 1.0, %v15982_v39  ;;  %v6636_v1 = vmul.f32 1.442695, %v6504_v27 }
 0x372   :  { %v8069_v21 = vmul.f32 0.01, %v7180_v33  ;;  %v7198_v53 = vsel %vm7197_vm13, %v7195_v23, %v7192_v8  ;;  %20839 = vst [vmem:[#allocation44_spill] sm:$0xff] %v15992_v12  ;;  %v12167_v50 = vpop.eup %12166  ;;  %v7464_v10 = vadd.f32 1.0, %v7463_v9  ;;  %v7466_v8 = vand.u32 2147483647, %v15890_v4 }
 0x373   :  { %v8071_v17 = vmul.f32 0.01, %v7198_v53  ;;  %12170 = vlog2.f32 %v7748_v55  ;;  %v7766_v23 = vadd.f32 1.0, %v15998_v52  ;;  %v6630_v33 = vmul.f32 1.442695, %v6501_v60  ;;  %v12169_v53 = vpop.eup %12168 }
 0x374   :  { %v15995_v11 = vsel %vm6404_vm6, %v15792_v59, %v8069_v21  ;;  %v6535_v59 = vmin.f32 %v15972_v24, 20.0  ;;  %v16014_v21 = vmul.f32 1.442695, %v6533_v57  ;;  %v7482_v54 = vadd.f32 1.0, %v7481_v34 }
 0x375   :  { %v16003_v20 = vsel %vm6406_vm10, %v15795_v6, %v8071_v17  ;;  %v16012_v6 = vmul.f32 1.442695, %v6503_v5  ;;  %v7462_v17 = vmul.f32 0.6931472, %v12167_v50  ;;  %12172 = vlog2.f32 %v7766_v23 }
 0x376   :  { %20840 = vst [vmem:[#allocation54_spill] sm:$0xff] %v16003_v20  ;;  %v6640_v0 = vmul.f32 1.442695, %v6506_v46  ;;  %v16016_v36 = vmul.f32 1.442695, %v6535_v59  ;;  %v16020_v27 = vadd.f32 %v15808_v30, %v15789_v31  ;;  %v7751_v9 = vmul.f32 -0.5, %v15982_v39 }
 0x377   :  { %12174 = vpow2.f32 %v6636_v1  ;;  %v7465_v60 = vmul.f32 %v15890_v4, %v7464_v10  ;;  %vm16024_vm3 = vcmp.lt.f32.partialorder %v7466_v8, 0.0004427343  ;;  %v7484_v57 = vand.u32 2147483647, %v15901_v45 }
 0x378   :  { %20841 = vst [vmem:[#allocation57_spill] sm:$0xff] %v16020_v27  ;;  %12176 = vpow2.f32 %v6640_v0  ;;  %v7480_v34 = vmul.f32 0.6931472, %v12169_v53  ;;  %v7769_v55 = vmul.f32 -0.5, %v15998_v52  ;;  %v16032_v46 = vadd.f32 %v15868_v15, %v15783_v58 }
 0x379   :  { %v16036_v30 = vadd.f32 %v15870_v22, %v15783_v58  ;;  %v7468_v4 = vsel %vm16024_vm3, %v7465_v60, %v7462_v17  ;;  %v7483_v50 = vmul.f32 %v15901_v45, %v7482_v54  ;;  %v16044_v0 = vadd.f32 %v15810_v62, %v15789_v31 }
 0x37a   :  { %v7752_v15 = vadd.f32 1.0, %v7751_v9  ;;  %v16051_v10 = vmul.f32 100.0, %v16032_v46  ;;  %v16058_v8 = vadd.f32 %v15893_v14, %v15789_v31  ;;  %12178 = vpow2.f32 %v6630_v33 }
 0x37b   :  { %20844 = vst [vmem:[#allocation51_spill] sm:$0xff] %v16044_v0  ;;  %v16054_v22 = vmul.f32 100.0, %v16036_v30  ;;  %vm16064_vm2 = vcmp.lt.f32.partialorder %v7484_v57, 0.0004427343  ;;  %v7754_v23 = vand.u32 2147483647, %v15982_v39 }
 0x37c   :  { %v16046_v59 = vpop.f32.mrb[64].mxu0  ;;  %v16048_v1 = vpop.f32.mrb[64].mxu1  ;;  %v7772_v53 = vand.u32 2147483647, %v15998_v52  ;;  %v7486_v17 = vsel %vm16064_vm2, %v7483_v50, %v7480_v34  ;;  %v16074_v14 = vmul.f32 100.0, %v16020_v27  ;;  %v7770_v9 = vadd.f32 1.0, %v7769_v55 }
 0x37d   :  { %v16060_v45 = vpop.f32.mrb[65].mxu0  ;;  %v16062_v54 = vpop.f32.mrb[65].mxu1  ;;  %v6536_v60 = vmin.f32 %v16051_v10, 20.0  ;;  %v8101_v5 = vmul.f32 0.01, %v7468_v4  ;;  %v16078_v57 = vmul.f32 100.0, %v16044_v0  ;;  %v7753_v55 = vmul.f32 %v15982_v39, %v7752_v15 }
 0x37e   :  { %20845 = vst [vmem:[#allocation52_spill] sm:$0xff] %v16060_v45  ;;  %20846 = vst [vmem:[#allocation59_spill] sm:$0xff] %v16062_v54  ;;  %v12171_v33 = vpop.eup %12170  ;;  %v16082_v54 = vadd.f32 %v15826_v42, %v15841_v26  ;;  %v6538_v45 = vmin.f32 %v16054_v22, 20.0  ;;  %v16091_v27 = vmul.f32 100.0, %v16058_v8  ;;  %v8103_v0 = vmul.f32 0.01, %v7486_v17 }
 0x37f   :  { %20849 = vst [vmem:[#allocation47_spill] sm:$0xff] %v16078_v57  ;;  %v7750_v50 = vmul.f32 0.6931472, %v12171_v33  ;;  %v6700_v62 = vmul.f32 1.442695, %v6536_v60  ;;  %v12173_v4 = vpop.eup %12172  ;;  %v16099_v42 = vadd.f32 %v15895_v49, %v15789_v31  ;;  %v7771_v39 = vmul.f32 %v15998_v52, %v7770_v9 }
 0x380   :  { %20850 = vst [vmem:[#allocation48_spill] sm:$0xff] %v16082_v54  ;;  %v16085_v12 = vpop.f32.mrb[66].mxu0  ;;  %v16087_v34 = vpop.f32.mrb[66].mxu1  ;;  %vm7755_vm5 = vcmp.lt.f32.partialorder %v7754_v23, 0.0004427343  ;;  %vm6376_vm14 = vcmp.gt.f32.partialorder %v15967_v63, 20.0 }
 0x381   :  { %20851 = vst [vmem:[#allocation42_spill] sm:$0xff] %v16085_v12  ;;  %20852 = vst [vmem:[#allocation45_spill] sm:$0xff] %v16087_v34  ;;  %vm16093_vm8 = vcmp.lt.f32.partialorder %v7772_v53, 0.0004427343  ;;  %v16101_v12 = vpop.eup %12174  ;;  %v7756_v33 = vsel %vm7755_vm5, %v7753_v55, %v7750_v50  ;;  %v7768_v34 = vmul.f32 0.6931472, %v12173_v4  ;;  %12180 = vpow2.f32 %v6700_v62 }
 0x382   :  { %v16104_v15 = vpop.f32.mrb[67].mxu0  ;;  %v16106_v60 = vpop.f32.mrb[67].mxu1  ;;  %v8133_v53 = vmul.f32 0.01, %v7756_v33  ;;  %v6920_v17 = vadd.f32 1.0, %v16101_v12  ;;  %v16115_v50 = vsel %vm6436_vm1, %v15806_v41, %v8101_v5  ;;  %v6568_v55 = vmin.f32 %v16091_v27, 20.0 }
 0x383   :  { %20855 = vst [vmem:[#allocation55_spill] sm:$0xff] %v16104_v15  ;;  %20856 = vst [vmem:[#allocation56_spill] sm:$0xff] %v16106_v60  ;;  %v16108_v23 = vpop.eup %12176  ;;  %v6704_v49 = vmul.f32 1.442695, %v6538_v45  ;;  %v7774_v52 = vsel %vm16093_vm8, %v7771_v39, %v7768_v34  ;;  %v16129_v13 = vmul.f32 100.0, %v16099_v42  ;;  %v6565_v5 = vmin.f32 %v16074_v14, 20.0 }
 0x384   :  { %20857 = vst [vmem:[#allocation50_spill] sm:$0xff] %v16115_v50  ;;  %v6938_v9 = vadd.f32 1.0, %v16108_v23  ;;  %v16121_v62 = vpop.f32.mrb[68].mxu0  ;;  %v16123_v4 = vpop.f32.mrb[68].mxu1  ;;  %v16126_v37 = vsel %vm6468_vm12, %v15844_v18, %v8133_v53  ;;  %v8135_v45 = vmul.f32 0.01, %v7774_v52  ;;  %12182 = vlog2.f32 %v6920_v17 }
 0x385   :  { %20858 = vst [vmem:[#allocation53_spill] sm:$0xff] %v16121_v62  ;;  %20859 = vst [vmem:[#allocation61_spill] sm:$0xff] %v16123_v4  ;;  %v16131_v41 = vpop.f32.mrb[69].mxu0  ;;  %v16133_v20 = vpop.f32.mrb[69].mxu1  ;;  %v16140_v33 = vmul.f32 100.0, %v16082_v54  ;;  %v16147_v39 = vsel %vm6438_vm7, %v15813_v16, %v8103_v0  ;;  %v16154_v17 = vadd.f32 %v15831_v44, %v15841_v26  ;;  %12184 = vpow2.f32 %v6704_v49 }
 0x386   :  { %20860 = vst [vmem:[#allocation62_spill] sm:$0xff] %v16126_v37  ;;  %20861 = vst [vmem:[#allocation58_spill] sm:$0xff] %v16131_v41  ;;  %v16142_v18 = vpop.eup %12178  ;;  %v16150_v53 = vsel %vm6470_vm0, %v15850_v32, %v8135_v45  ;;  %v6567_v34 = vmin.f32 %v16078_v57, 20.0  ;;  %12186 = vlog2.f32 %v6938_v9  ;;  %v6764_v16 = vmul.f32 1.442695, %v6568_v55 }
 0x387   :  { %20862 = vst [vmem:[#allocation60_spill] sm:$0xff] %v16133_v20  ;;  %20863 = vst [vmem:[#allocation3_spill] sm:$0xff] %v16147_v39  ;;  %12188 = vpow2.f32 %v16012_v6  ;;  %v6570_v44 = vmin.f32 %v16129_v13, 20.0  ;;  %v6758_v0 = vmul.f32 1.442695, %v6565_v5  ;;  %v6597_v49 = vmin.f32 %v16140_v33, 20.0 }
 0x388   :  { %20864 = vst [vmem:[#allocation2_spill] sm:$0xff] %v16150_v53  ;;  %20865 = vst [vmem:[#allocation41_spill] sm:$0xff] %v16154_v17  ;;  %v16156_v52 = vpop.f32.mrb[70].mxu0  ;;  %v16158_v28 = vpop.f32.mrb[70].mxu1  ;;  %12190 = vpow2.f32 %v6764_v16  ;;  %v16172_v45 = vadd.f32 %v15925_v29, %v15841_v26  ;;  %v16176_v9 = vmul.f32 100.0, %v16154_v17  ;;  %v6923_v5 = vmul.f32 -0.5, %v16101_v12 }
 0x389   :  { %20866 = vst [vmem:[#allocation8_spill] sm:$0xff] %v16156_v52  ;;  %20867 = vst [vmem:[#allocation5_spill] sm:$0xff] %v16158_v28  ;;  %v16163_v3 = vpop.f32.mrb[71].mxu0  ;;  %v16165_v32 = vpop.f32.mrb[71].mxu1  ;;  %12192 = vpow2.f32 %v16014_v21  ;;  %v6768_v55 = vmul.f32 1.442695, %v6570_v44  ;;  %v16188_v21 = vadd.f32 %v15928_v43, %v15841_v26  ;;  %v16199_v43 = vadd.f32 %v15859_v48, %v15737_v61 }
 0x38a   :  { %20868 = vst [vmem:[#allocation4_spill] sm:$0xff] %v16163_v3  ;;  %20869 = vst [vmem:[#allocation7_spill] sm:$0xff] %v16165_v32  ;;  %12194 = vpow2.f32 %v16016_v36  ;;  %v6762_v6 = vmul.f32 1.442695, %v6567_v34  ;;  %v16184_v16 = vmul.f32 100.0, %v16172_v45  ;;  %v6599_v3 = vmin.f32 %v16176_v9, 20.0 }
 0x38b   :  { %20870 = vst [vmem:[#allocation16_spill] sm:$0xff] %v16176_v9  ;;  %v16178_v20 = vpop.eup %12180  ;;  %12196 = vpow2.f32 %v6768_v55  ;;  %v6822_v29 = vmul.f32 1.442695, %v6597_v49  ;;  %v6941_v36 = vmul.f32 -0.5, %v16108_v23  ;;  %v6893_v34 = vadd.f32 1.0, %v16142_v18  ;;  %20871 = vst [vmem:[#allocation63_spill] sm:$0xff] %v16199_v43 }
 0x38c   :  { %v7208_v32 = vadd.f32 1.0, %v16178_v20  ;;  %12198 = vpow2.f32 %v6758_v0  ;;  %v6924_v41 = vadd.f32 1.0, %v6923_v5  ;;  %v7211_v55 = vmul.f32 -0.5, %v16178_v20 }
 0x38d   :  { %v6926_v0 = vand.u32 2147483647, %v16101_v12  ;;  %v16203_v49 = vadd.f32 %v15861_v40, %v15737_v61  ;;  %v16208_v28 = vmul.f32 100.0, %v16188_v21  ;;  %v6826_v53 = vmul.f32 1.442695, %v6599_v3 }
 0x38e   :  { %v12183_v44 = vpop.eup %12182  ;;  %12200 = vlog2.f32 %v7208_v32  ;;  %v6600_v32 = vmin.f32 %v16184_v16, 20.0  ;;  %v6942_v52 = vadd.f32 1.0, %v6941_v36  ;;  %v6944_v48 = vand.u32 2147483647, %v16108_v23 }
 0x38f   :  { %12202 = vpow2.f32 %v6762_v6  ;;  %v16194_v60 = vpop.eup %12184  ;;  %20872 = vst [vmem:[#allocation6_spill] sm:$0xff] %v16203_v49  ;;  %v6922_v6 = vmul.f32 0.6931472, %v12183_v44  ;;  %v6925_v40 = vmul.f32 %v16101_v12, %v6924_v41  ;;  %v7212_v50 = vadd.f32 1.0, %v7211_v55 }
 0x390   :  { %v12187_v15 = vpop.eup %12186  ;;  %12204 = vpow2.f32 %v6822_v29  ;;  %v7226_v5 = vadd.f32 1.0, %v16194_v60  ;;  %v6828_v29 = vmul.f32 1.442695, %v6600_v32  ;;  %vm16218_vm15 = vcmp.lt.f32.partialorder %v6926_v0, 0.0004427343 }
 0x391   :  { %v16210_v39 = vpop.eup %12188  ;;  %12206 = vlog2.f32 %v6893_v34  ;;  %v6940_v9 = vmul.f32 0.6931472, %v12187_v15  ;;  %v16223_v3 = vmul.f32 100.0, %v16199_v43  ;;  %v6928_v12 = vsel %vm16218_vm15, %v6925_v40, %v6922_v6 }
 0x392   :  { %v16213_v17 = vpop.eup %12190  ;;  %12208 = vlog2.f32 %v7226_v5  ;;  %v16231_v41 = vmul.f32 100.0, %v16203_v49  ;;  %v7229_v55 = vmul.f32 -0.5, %v16194_v60  ;;  %v6602_v0 = vmin.f32 %v16208_v28, 20.0 }
 0x393   :  { %v16216_v44 = vpop.eup %12192  ;;  %v7496_v36 = vadd.f32 1.0, %v16213_v17  ;;  %v6943_v15 = vmul.f32 %v16108_v23, %v6942_v52  ;;  %v7214_v5 = vand.u32 2147483647, %v16178_v20  ;;  %vm16242_vm11 = vcmp.lt.f32.partialorder %v6944_v48, 0.0004427343 }
 0x394   :  { %v16226_v34 = vpop.eup %12194  ;;  %v7213_v6 = vmul.f32 %v16178_v20, %v7212_v50  ;;  %v8041_v57 = vmul.f32 0.01, %v6928_v12  ;;  %vm6378_vm4 = vcmp.gt.f32.partialorder %v15975_v2, 20.0  ;;  %v7232_v52 = vand.u32 2147483647, %v16194_v60 }
 0x395   :  { %v16235_v32 = vpop.eup %12196  ;;  %12210 = vlog2.f32 %v7496_v36  ;;  %v6946_v23 = vsel %vm16242_vm11, %v6943_v15, %v6940_v9  ;;  %v6832_v36 = vmul.f32 1.442695, %v6602_v0  ;;  %v7230_v54 = vadd.f32 1.0, %v7229_v55 }
 0x396   :  { %v16240_v43 = vpop.eup %12198  ;;  %v7514_v40 = vadd.f32 1.0, %v16235_v32  ;;  %12212 = vpow2.f32 %v6828_v29  ;;  %v7499_v62 = vmul.f32 -0.5, %v16213_v17  ;;  %vm7215_vm9 = vcmp.lt.f32.partialorder %v7214_v5, 0.0004427343 }
 0x397   :  { %v7502_v20 = vand.u32 2147483647, %v16213_v17  ;;  %v8043_v9 = vmul.f32 0.01, %v6946_v23  ;;  %vm6408_vm13 = vcmp.gt.f32.partialorder %v16051_v10, 20.0  ;;  %v16273_v23 = vsel %vm6376_vm14, %v15949_v38, %v8041_v57 }
 0x398   :  { %v12201_v49 = vpop.eup %12200  ;;  %12214 = vlog2.f32 %v7514_v40  ;;  %vm16264_vm6 = vcmp.lt.f32.partialorder %v7232_v52, 0.0004427343  ;;  %20881 = vst [vmem:[#allocation24_spill] sm:$0xff] %v16273_v23  ;;  %v7517_v50 = vmul.f32 -0.5, %v16235_v32  ;;  %vm6410_vm3 = vcmp.gt.f32.partialorder %v16054_v22, 20.0 }
 0x399   :  { %v16252_v4 = vpop.eup %12202  ;;  %v7210_v48 = vmul.f32 0.6931472, %v12201_v49  ;;  %12216 = vpow2.f32 %v6832_v36  ;;  %v6896_v49 = vmul.f32 -0.5, %v16142_v18  ;;  %vm16282_vm10 = vcmp.lt.f32.partialorder %v7502_v20, 0.0004427343 }
 0x39a   :  { %v16259_v12 = vpop.eup %12204  ;;  %12218 = vpow2.f32 %v6826_v53  ;;  %v7181_v53 = vadd.f32 1.0, %v16216_v44  ;;  %v6899_v20 = vand.u32 2147483647, %v16142_v18  ;;  %v7518_v2 = vadd.f32 1.0, %v7517_v50 }
 0x39b   :  { %v7216_v15 = vsel %vm7215_vm9, %v7213_v6, %v7210_v48  ;;  %v12207_v55 = vpop.eup %12206  ;;  %v7231_v6 = vmul.f32 %v16194_v60, %v7230_v54  ;;  %v7500_v48 = vadd.f32 1.0, %v7499_v62  ;;  %v6897_v54 = vadd.f32 1.0, %v6896_v49 }
 0x39c   :  { %v8073_v37 = vmul.f32 0.01, %v7216_v15  ;;  %v12209_v36 = vpop.eup %12208  ;;  %v6895_v38 = vmul.f32 0.6931472, %v12207_v55  ;;  %12220 = vlog2.f32 %v7181_v53  ;;  %v16295_v62 = vadd.f32 %v15886_v56, %v15783_v58 }
 0x39d   :  { %v7228_v52 = vmul.f32 0.6931472, %v12209_v36  ;;  %v16308_v55 = vsel %vm6378_vm4, %v15953_v7, %v8043_v9  ;;  %v7184_v56 = vmul.f32 -0.5, %v16216_v44  ;;  %v6898_v22 = vmul.f32 %v16142_v18, %v6897_v54 }
 0x39e   :  { %v16280_v10 = vsel %vm6408_vm13, %v16032_v46, %v8073_v37  ;;  %20887 = vst [vmem:[#allocation19_spill] sm:$0xff] %v16295_v62  ;;  %v6911_v37 = vadd.f32 1.0, %v16210_v39  ;;  %20890 = vst [vmem:[#allocation37_spill] sm:$0xff] %v16308_v55  ;;  %vm16327_vm1 = vcmp.lt.f32.partialorder %v6899_v20, 0.0004427343  ;;  %vm6373_vm2 = vcmp.gt.f32.partialorder %v15904_v19, 20.0 }
 0x39f   :  { %v16257_v29 = vpop.f32.mrb[88].mxu0  ;;  %v16268_v40 = vpop.f32.mrb[88].mxu1  ;;  %20883 = vst [vmem:[#allocation11_spill] sm:$0xff] %v16280_v10  ;;  %v7234_v46 = vsel %vm16264_vm6, %v7231_v6, %v7228_v52  ;;  %v6901_v54 = vsel %vm16327_vm1, %v6898_v22, %v6895_v38  ;;  %vm6405_vm7 = vcmp.gt.f32.partialorder %v15962_v47, 20.0  ;;  %v16360_v22 = vmul.f32 100.0, %v16295_v62 }
 0x3a0   :  { %20877 = vst [vmem:[#allocation13_spill] sm:$0xff] %v16257_v29  ;;  %20880 = vst [vmem:[#allocation21_spill] sm:$0xff] %v16268_v40  ;;  %v16277_v0 = vpop.f32.mrb[89].mxu0  ;;  %v16289_v57 = vpop.f32.mrb[89].mxu1  ;;  %v8075_v5 = vmul.f32 0.01, %v7234_v46  ;;  %12222 = vlog2.f32 %v6911_v37 }
 0x3a1   :  { %20882 = vst [vmem:[#allocation10_spill] sm:$0xff] %v16277_v0  ;;  %20886 = vst [vmem:[#allocation26_spill] sm:$0xff] %v16289_v57  ;;  %v12211_v60 = vpop.eup %12210  ;;  %v7501_v57 = vmul.f32 %v16213_v17, %v7500_v48  ;;  %v7520_v0 = vand.u32 2147483647, %v16235_v32  ;;  %v7187_v48 = vand.u32 2147483647, %v16216_v44 }
 0x3a2   :  { %v16303_v49 = vpop.eup %12212  ;;  %v7498_v52 = vmul.f32 0.6931472, %v12211_v60  ;;  %v16320_v7 = vsel %vm6410_vm3, %v16036_v30, %v8075_v5  ;;  %v20899_v5 = vmin.f32 %v16223_v3, 20.0  ;;  %v6914_v15 = vmul.f32 -0.5, %v16210_v39 }
 0x3a3   :  { %v16299_v36 = vpop.f32.mrb[90].mxu0  ;;  %v16301_v63 = vpop.f32.mrb[90].mxu1  ;;  %20893 = vst [vmem:[#allocation35_spill] sm:$0xff] %v16320_v7  ;;  %v7790_v18 = vand.u32 2147483647, %v16303_v49  ;;  %v7787_v38 = vmul.f32 -0.5, %v16303_v49 }
 0x3a4   :  { %20888 = vst [vmem:[#allocation29_spill] sm:$0xff] %v16299_v36  ;;  %20889 = vst [vmem:[#allocation27_spill] sm:$0xff] %v16301_v63  ;;  %v16312_v6 = vpop.f32.mrb[91].mxu0  ;;  %v16314_v53 = vpop.f32.mrb[91].mxu1  ;;  %v7784_v63 = vadd.f32 1.0, %v16303_v49  ;;  %vm6440_vm0 = vcmp.gt.f32.partialorder %v16091_v27, 20.0 }
 0x3a5   :  { %20891 = vst [vmem:[#allocation18_spill] sm:$0xff] %v16312_v6  ;;  %20892 = vst [vmem:[#allocation32_spill] sm:$0xff] %v16314_v53  ;;  %v12215_v36 = vpop.eup %12214  ;;  %v16348_v46 = vmul.f32 1.442695, %v20899_v5  ;;  %v20900_v53 = vld [vmem:[#allocation40_spill] sm:$0xff]  ;;  %vm6472_vm15 = vcmp.gt.f32.partialorder %v16184_v16, 20.0 }
 0x3a6   :  { %v16323_v9 = vpop.eup %12216  ;;  %12224 = vlog2.f32 %v7784_v63  ;;  %v7185_v63 = vadd.f32 1.0, %v7184_v56  ;;  %v16352_v6 = vadd.f32 %v20900_v53, %v15783_v58  ;;  %v7516_v17 = vmul.f32 0.6931472, %v12215_v36 }
 0x3a7   :  { %v16332_v60 = vpop.f32.mrb[92].mxu0  ;;  %v16334_v30 = vpop.f32.mrb[92].mxu1  ;;  %v7802_v50 = vadd.f32 1.0, %v16323_v9  ;;  %vm16362_vm5 = vcmp.lt.f32.partialorder %v7520_v0, 0.0004427343  ;;  %v7805_v55 = vmul.f32 -0.5, %v16323_v9 }
 0x3a8   :  { %20896 = vst [vmem:[#allocation38_spill] sm:$0xff] %v16332_v60  ;;  %20897 = vst [vmem:[#allocation34_spill] sm:$0xff] %v16334_v30  ;;  %v16341_v20 = vpop.f32.mrb[93].mxu0  ;;  %v16343_v37 = vpop.eup %12218  ;;  %v7504_v30 = vsel %vm16282_vm10, %v7501_v57, %v7498_v52  ;;  %vm16366_vm8 = vcmp.lt.f32.partialorder %v7187_v48, 0.0004427343  ;;  %v7199_v57 = vadd.f32 1.0, %v16226_v34  ;;  %v7519_v60 = vmul.f32 %v16235_v32, %v7518_v2 }
 0x3a9   :  { %20898 = vst [vmem:[#allocation14_spill] sm:$0xff] %v16341_v20  ;;  %v16357_v56 = vpop.f32.mrb[93].mxu1  ;;  %12226 = vlog2.f32 %v7802_v50  ;;  %v8038_v53 = vmul.f32 0.01, %v6901_v54  ;;  %v12221_v52 = vpop.eup %12220  ;;  %vm16373_vm12 = vcmp.lt.f32.partialorder %v7790_v18, 0.0004427343  ;;  %v7186_v0 = vmul.f32 %v16216_v44, %v7185_v63 }
 0x3aa   :  { %20901 = vst [vmem:[#allocation12_spill] sm:$0xff] %v16357_v56  ;;  %v8105_v56 = vmul.f32 0.01, %v7504_v30  ;;  %v7788_v54 = vadd.f32 1.0, %v7787_v38  ;;  %v7183_v7 = vmul.f32 0.6931472, %v12221_v52  ;;  %12228 = vlog2.f32 %v7199_v57  ;;  %v12223_v20 = vpop.eup %12222 }
 0x3ab   :  { %v16378_v50 = vpop.f32.mrb[94].mxu0  ;;  %v16380_v48 = vpop.f32.mrb[94].mxu1  ;;  %v7522_v2 = vsel %vm16362_vm5, %v7519_v60, %v7516_v17  ;;  %v7808_v44 = vand.u32 2147483647, %v16323_v9  ;;  %v16394_v18 = vadd.f32 %v16046_v59, %v15737_v61  ;;  %v16398_v63 = vadd.f32 %v16048_v1, %v15737_v61 }
 0x3ac   :  { %20908 = vst [vmem:[#allocation15_spill] sm:$0xff] %v16378_v50  ;;  %20909 = vst [vmem:[#allocation9_spill] sm:$0xff] %v16380_v48  ;;  %v16384_v30 = vpop.f32.mrb[95].mxu0  ;;  %v16386_v32 = vpop.f32.mrb[95].mxu1  ;;  %v7189_v38 = vsel %vm16366_vm8, %v7186_v0, %v7183_v7  ;;  %v6915_v57 = vadd.f32 1.0, %v6914_v15  ;;  %v7202_v52 = vmul.f32 -0.5, %v16226_v34  ;;  %v7789_v7 = vmul.f32 %v16303_v49, %v7788_v54 }
 0x3ad   :  { %20910 = vst [vmem:[#allocation17_spill] sm:$0xff] %v16384_v30  ;;  %20911 = vst [vmem:[#allocation20_spill] sm:$0xff] %v16386_v32  ;;  %v7469_v60 = vadd.f32 1.0, %v16240_v43  ;;  %v8070_v17 = vmul.f32 0.01, %v7189_v38  ;;  %v16406_v30 = vmul.f32 100.0, %v16394_v18 }
 0x3ae   :  { %v6917_v32 = vand.u32 2147483647, %v16210_v39  ;;  %v16409_v59 = vmul.f32 100.0, %v16398_v63  ;;  %vm6442_vm14 = vcmp.gt.f32.partialorder %v16129_v13, 20.0  ;;  %v7806_v5 = vadd.f32 1.0, %v7805_v55  ;;  %v20912_v15 = vld [vmem:[#allocation28_spill] sm:$0xff] }
 0x3af   :  { %v8166_v0 = vsel %vm6373_vm2, %v20912_v15, %v8038_v53  ;;  %v7205_v38 = vand.u32 2147483647, %v16226_v34  ;;  %v8198_v50 = vsel %vm6405_vm7, %v15919_v51, %v8070_v17  ;;  %v6913_v40 = vmul.f32 0.6931472, %v12223_v20  ;;  %v20921_v17 = vld [vmem:[#allocation46_spill] sm:$0xff] }
 0x3b0   :  { %v12225_v1 = vpop.eup %12224  ;;  %v6508_v29 = vmin.f32 %v16406_v30, 20.0  ;;  %v11731_v23 = vpack.c.bf16 %v8198_v50, %v8166_v0  ;;  %v7203_v10 = vadd.f32 1.0, %v7202_v52  ;;  %v6510_v62 = vmin.f32 %v16409_v59, 20.0 }
 0x3b1   :  { %v7786_v48 = vmul.f32 0.6931472, %v12225_v1  ;;  %12230 = vlog2.f32 %v7469_v60  ;;  %vm6375_vm11 = vcmp.gt.f32.partialorder %v15907_v35, 20.0  ;;  %v6916_v55 = vmul.f32 %v16210_v39, %v6915_v57 }
 0x3b2   :  { %vm16426_vm4 = vcmp.lt.f32.partialorder %v6917_v32, 0.0004427343  ;;  %v6644_v51 = vmul.f32 1.442695, %v6508_v29  ;;  %v7807_v50 = vmul.f32 %v16323_v9, %v7806_v5  ;;  %11732 = vmatprep.subr.bf16.mxu0 %v11731_v23  ;;  %v6648_v52 = vmul.f32 1.442695, %v6510_v62 }
 0x3b3   :  { %v12227_v49 = vpop.eup %12226  ;;  %v7792_v19 = vsel %vm16373_vm12, %v7789_v7, %v7786_v48  ;;  %v16434_v60 = vsel %vm6440_vm0, %v16058_v8, %v8105_v56  ;;  %v8107_v36 = vmul.f32 0.01, %v7522_v2  ;;  %vm7809_vm9 = vcmp.lt.f32.partialorder %v7808_v44, 0.0004427343  ;;  %v20919_v44 = vld [vmem:[#allocation33_spill] sm:$0xff] }
 0x3b4   :  { %v8137_v47 = vmul.f32 0.01, %v7792_v19  ;;  %v7804_v54 = vmul.f32 0.6931472, %v12227_v49  ;;  %v6919_v39 = vsel %vm16426_vm4, %v6916_v55, %v6913_v40  ;;  %v20915_v48 = vpack.c.bf16 %v15995_v11, %v15987_v25  ;;  %v12229_v29 = vpop.eup %12228 }
 0x3b5   :  { %v7204_v27 = vmul.f32 %v16226_v34, %v7203_v10  ;;  %12232 = vpow2.f32 %v6644_v51  ;;  %v7201_v56 = vmul.f32 0.6931472, %v12229_v29  ;;  %vm6474_vm13 = vcmp.gt.f32.partialorder %v16208_v28, 20.0 }
 0x3b6   :  { %11734 = vmatpush1.bf16.msra.mxu0 %v20915_v48  ;;  %v16444_v23 = vsel %vm6472_vm15, %v16172_v45, %v8137_v47  ;;  %v7810_v62 = vsel %vm7809_vm9, %v7807_v50, %v7804_v54  ;;  %12234 = vpow2.f32 %v6648_v52  ;;  %vm7206_vm6 = vcmp.lt.f32.partialorder %v7205_v38, 0.0004427343  ;;  %v20924_v54 = vld [vmem:[#allocation54_spill] sm:$0xff]  ;;  %v20925_v50 = vld [vmem:[#allocation44_spill] sm:$0xff] }
 0x3b7   :  { %v8139_v9 = vmul.f32 0.01, %v7810_v62  ;;  %v8040_v25 = vmul.f32 0.01, %v6919_v39  ;;  %v7757_v11 = vadd.f32 1.0, %v16259_v12  ;;  %v16454_v45 = vsel %vm6442_vm14, %v16099_v42, %v8107_v36  ;;  %v20927_v36 = vld [vmem:[#allocation42_spill] sm:$0xff] }
 0x3b8   :  { %20916 = vst [vmem:[#allocation22_spill] sm:$0xff] %v16454_v45  ;;  %v7207_v34 = vsel %vm7206_vm6, %v7204_v27, %v7201_v56  ;;  %v7472_v40 = vmul.f32 -0.5, %v16240_v43  ;;  %12236 = vpow2.f32 %v16348_v46  ;;  %v16462_v10 = vmul.f32 100.0, %v16352_v6  ;;  %v20920_v46 = vld [vmem:[#allocation39_spill] sm:$0xff] }
 0x3b9   :  { %v16457_v16 = vsel %vm6474_vm13, %v16188_v21, %v8139_v9  ;;  %v8072_v32 = vmul.f32 0.01, %v7207_v34  ;;  %vm6407_vm10 = vcmp.gt.f32.partialorder %v15972_v24, 20.0  ;;  %v20918_v42 = vmin.f32 %v16231_v41, 20.0  ;;  %v20922_v24 = vld [vmem:[#allocation36_spill] sm:$0xff]  ;;  %v20962_v45 = vld [vmem:[#allocation55_spill] sm:$0xff] }
 0x3ba   :  { %20917 = vst [vmem:[#allocation23_spill] sm:$0xff] %v16457_v16  ;;  %v6537_v21 = vmin.f32 %v16360_v22, 20.0  ;;  %12238 = vlog2.f32 %v7757_v11  ;;  %v16472_v57 = vadd.f32 %v20919_v44, %v15789_v31  ;;  %v8168_v20 = vsel %vm6375_vm11, %v20920_v46, %v8040_v25  ;;  %v20928_v25 = vld [vmem:[#allocation49_spill] sm:$0xff] }
 0x3bb   :  { %v6642_v13 = vmul.f32 1.442695, %v20918_v42  ;;  %v12231_v2 = vpop.eup %12230  ;;  %v8200_v1 = vsel %vm6407_vm10, %v20921_v17, %v8072_v32  ;;  %v7487_v7 = vadd.f32 1.0, %v16252_v4  ;;  %v16481_v5 = vadd.f32 %v20922_v24, %v15789_v31  ;;  %v20933_v17 = vld [vmem:[#allocation45_spill] sm:$0xff] }
 0x3bc   :  { %v11739_v15 = vpack.c.bf16 %v8200_v1, %v8168_v20  ;;  %v7473_v0 = vadd.f32 1.0, %v7472_v40  ;;  %v7760_v38 = vmul.f32 -0.5, %v16259_v12  ;;  %v6539_v49 = vmin.f32 %v16462_v10, 20.0 }
 0x3bd   :  { %20923 = vst [vmem:[#allocation30_spill] sm:$0xff] %v16481_v5  ;;  %v7475_v19 = vand.u32 2147483647, %v16240_v43  ;;  %12240 = vlog2.f32 %v7487_v7  ;;  %v7775_v35 = vadd.f32 1.0, %v16343_v37  ;;  %v7471_v55 = vmul.f32 0.6931472, %v12231_v2 }
 0x3be   :  { %12242 = vpow2.f32 %v6642_v13  ;;  %11740 = vmatprep.subr.bf16.mxu1 %v11739_v15  ;;  %v7490_v53 = vmul.f32 -0.5, %v16252_v4  ;;  %v16490_v47 = vmul.f32 1.442695, %v6537_v21  ;;  %v20926_v52 = vpack.c.bf16 %v20924_v54, %v20925_v50  ;;  %v20931_v2 = vld [vmem:[#allocation43_spill] sm:$0xff] }
 0x3bf   :  { %v16488_v51 = vpop.eup %12232  ;;  %12244 = vlog2.f32 %v7775_v35  ;;  %v16497_v39 = vadd.f32 %v20927_v36, %v15783_v58  ;;  %vm6437_vm3 = vcmp.gt.f32.partialorder %v16074_v14, 20.0  ;;  %v16503_v29 = vmul.f32 100.0, %v16472_v57 }
 0x3c0   :  { %11742 = vmatpush1.bf16.msra.mxu1 %v20926_v52  ;;  %v16499_v48 = vpop.eup %12234  ;;  %v16506_v62 = vmul.f32 100.0, %v16481_v5  ;;  %v7474_v27 = vmul.f32 %v16240_v43, %v7473_v0  ;;  %v7761_v9 = vadd.f32 1.0, %v7760_v38  ;;  %vm6469_vm1 = vcmp.gt.f32.partialorder %v16140_v33, 20.0  ;;  %v20938_v33 = vld [vmem:[#allocation47_spill] sm:$0xff] }
 0x3c1   :  { %v6706_v56 = vmul.f32 1.442695, %v6539_v49  ;;  %v16512_v11 = vadd.f32 %v20928_v25, %v15841_v26  ;;  %vm16514_vm2 = vcmp.lt.f32.partialorder %v7475_v19, 0.0004427343  ;;  %v7778_v40 = vmul.f32 -0.5, %v16343_v37 }
 0x3c2   :  { %v6956_v32 = vadd.f32 1.0, %v16488_v51  ;;  %v7477_v42 = vsel %vm16514_vm2, %v7474_v27, %v7471_v55  ;;  %v7763_v43 = vand.u32 2147483647, %v16259_v12  ;;  %v7491_v13 = vadd.f32 1.0, %v7490_v53  ;;  %v16523_v21 = vpop.eup %12236 }
 0x3c3   :  { %v16527_v44 = vadd.f32 %v20931_v2, %v15841_v26  ;;  %v6974_v46 = vadd.f32 1.0, %v16499_v48  ;;  %v16531_v20 = vmul.f32 100.0, %v16497_v39  ;;  %v16535_v1 = vadd.f32 %v20933_v17, %v15783_v58  ;;  %v20936_v2 = vld [vmem:[#allocation48_spill] sm:$0xff] }
 0x3c4   :  { %v12239_v7 = vpop.eup %12238  ;;  %v6569_v24 = vmin.f32 %v16503_v29, 20.0  ;;  %v6571_v15 = vmin.f32 %v16506_v62, 20.0  ;;  %v7762_v0 = vmul.f32 %v16259_v12, %v7761_v9  ;;  %v7493_v38 = vand.u32 2147483647, %v16252_v4 }
 0x3c5   :  { %20932 = vst [vmem:[#allocation31_spill] sm:$0xff] %v16527_v44  ;;  %v7759_v49 = vmul.f32 0.6931472, %v12239_v7  ;;  %v8102_v19 = vmul.f32 0.01, %v7477_v42  ;;  %v7779_v35 = vadd.f32 1.0, %v7778_v40  ;;  %12246 = vlog2.f32 %v6956_v32 }
 0x3c6   :  { %v6540_v55 = vmin.f32 %v16531_v20, 20.0  ;;  %vm7764_vm7 = vcmp.lt.f32.partialorder %v7763_v43, 0.0004427343  ;;  %v7492_v53 = vmul.f32 %v16252_v4, %v7491_v13  ;;  %v16544_v54 = vmul.f32 100.0, %v16535_v1  ;;  %v20934_v40 = vld [vmem:[#allocation53_spill] sm:$0xff] }
 0x3c7   :  { %v12241_v50 = vpop.eup %12240  ;;  %12248 = vlog2.f32 %v6974_v46  ;;  %v7765_v52 = vsel %vm7764_vm7, %v7762_v0, %v7759_v49  ;;  %v7781_v36 = vand.u32 2147483647, %v16343_v37  ;;  %v16552_v32 = vadd.f32 %v20934_v40, %v15789_v31  ;;  %v20935_v42 = vld [vmem:[#allocation57_spill] sm:$0xff] }
 0x3c8   :  { %v6708_v12 = vmul.f32 1.442695, %v6540_v55  ;;  %v16547_v27 = vpop.eup %12242  ;;  %v8134_v9 = vmul.f32 0.01, %v7765_v52  ;;  %v7489_v25 = vmul.f32 0.6931472, %v12241_v50  ;;  %v8230_v43 = vsel %vm6437_vm3, %v20935_v42, %v8102_v19 }
 0x3c9   :  { %v6542_v34 = vmin.f32 %v16544_v54, 20.0  ;;  %v12245_v4 = vpop.eup %12244  ;;  %vm7494_vm5 = vcmp.lt.f32.partialorder %v7493_v38, 0.0004427343  ;;  %v7780_v13 = vmul.f32 %v16343_v37, %v7779_v35  ;;  %vm7782_vm8 = vcmp.lt.f32.partialorder %v7781_v36, 0.0004427343  ;;  %v20937_v50 = vld [vmem:[#allocation61_spill] sm:$0xff] }
 0x3ca   :  { %12250 = vpow2.f32 %v6708_v12  ;;  %v8262_v46 = vsel %vm6469_vm1, %v20936_v2, %v8134_v9  ;;  %v7495_v17 = vsel %vm7494_vm5, %v7492_v53, %v7489_v25  ;;  %v7777_v7 = vmul.f32 0.6931472, %v12245_v4  ;;  %v20939_v53 = vld [vmem:[#allocation16_spill] sm:$0xff]  ;;  %v20941_v12 = vld [vmem:[#allocation62_spill] sm:$0xff]  ;;  %v20944_v4 = vld [vmem:[#allocation51_spill] sm:$0xff] }
 0x3cb   :  { %v6712_v0 = vmul.f32 1.442695, %v6542_v34  ;;  %v11735_v49 = vpack.c.bf16 %v8262_v46, %v8230_v43  ;;  %v8104_v55 = vmul.f32 0.01, %v7495_v17  ;;  %v16563_v52 = vadd.f32 %v20937_v50, %v15789_v31  ;;  %v20942_v9 = vld [vmem:[#allocation50_spill] sm:$0xff] }
 0x3cc   :  { %v16566_v14 = vmul.f32 100.0, %v16512_v11  ;;  %v7783_v38 = vsel %vm7782_vm8, %v7780_v13, %v7777_v7  ;;  %v16569_v37 = vmul.f32 100.0, %v16552_v32  ;;  %vm6439_vm12 = vcmp.gt.f32.partialorder %v20938_v33, 20.0 }
 0x3cd   :  { %12252 = vpow2.f32 %v6712_v0  ;;  %v6766_v19 = vmul.f32 1.442695, %v6569_v24  ;;  %11736 = vmatprep.subr.bf16.mxu0 %v11735_v49  ;;  %v8136_v35 = vmul.f32 0.01, %v7783_v38  ;;  %vm6471_vm0 = vcmp.gt.f32.partialorder %v20939_v53, 20.0  ;;  %v20946_v0 = vld [vmem:[#allocation52_spill] sm:$0xff] }
 0x3ce   :  { %12254 = vpow2.f32 %v16490_v47  ;;  %v16575_v36 = vmul.f32 100.0, %v16527_v44  ;;  %v20943_v25 = vpack.c.bf16 %v20941_v12, %v20942_v9  ;;  %v6572_v34 = vmin.f32 %v16569_v37, 20.0  ;;  %v20945_v47 = vld [vmem:[#allocation41_spill] sm:$0xff]  ;;  %v20951_v9 = vld [vmem:[#allocation2_spill] sm:$0xff] }
 0x3cf   :  { %12256 = vpow2.f32 %v6706_v56  ;;  %v6959_v40 = vmul.f32 -0.5, %v16488_v51  ;;  %v8232_v42 = vsel %vm6439_vm12, %v20944_v4, %v8104_v55  ;;  %v8264_v24 = vsel %vm6471_vm0, %v20945_v47, %v8136_v35  ;;  %v12247_v13 = vpop.eup %12246 }
 0x3d0   :  { %20940 = vst [vmem:[#allocation40_spill] sm:$0xff] %v16575_v36  ;;  %11738 = vmatpush1.bf16.msra.mxu0 %v20943_v25  ;;  %v16585_v43 = vmul.f32 100.0, %v16563_v52  ;;  %v6770_v56 = vmul.f32 1.442695, %v6571_v15  ;;  %v6601_v2 = vmin.f32 %v16566_v14, 20.0  ;;  %v11743_v46 = vpack.c.bf16 %v8264_v24, %v8232_v42  ;;  %v20948_v15 = vld [vmem:[#allocation8_spill] sm:$0xff] }
 0x3d1   :  { %v6772_v17 = vmul.f32 1.442695, %v6572_v34  ;;  %v12249_v7 = vpop.eup %12248  ;;  %12258 = vpow2.f32 %v6766_v19  ;;  %v16590_v49 = vadd.f32 %v20946_v0, %v15737_v61  ;;  %v6603_v55 = vmin.f32 %v16575_v36, 20.0  ;;  %v20949_v19 = vld [vmem:[#allocation59_spill] sm:$0xff]  ;;  %v20954_v42 = vld [vmem:[#allocation5_spill] sm:$0xff] }
 0x3d2   :  { %v6574_v50 = vmin.f32 %v16585_v43, 20.0  ;;  %v6977_v38 = vmul.f32 -0.5, %v16499_v48  ;;  %11744 = vmatprep.subr.bf16.mxu1 %v11743_v46  ;;  %v16597_v33 = vadd.f32 %v20948_v15, %v15841_v26  ;;  %v6960_v53 = vadd.f32 1.0, %v6959_v40  ;;  %v20952_v25 = vld [vmem:[#allocation3_spill] sm:$0xff] }
 0x3d3   :  { %20947 = vst [vmem:[#allocation28_spill] sm:$0xff] %v16590_v49  ;;  %12260 = vpow2.f32 %v6772_v17  ;;  %v16603_v12 = vadd.f32 %v20949_v19, %v15737_v61  ;;  %v20953_v34 = vpack.c.bf16 %v20951_v9, %v20952_v25  ;;  %v16610_v47 = vadd.f32 %v20954_v42, %v15841_v26  ;;  %v16633_v42 = vpop.f32.mrb[112].mxu0 }
 0x3d4   :  { %v16599_v35 = vpop.eup %12250  ;;  %v6776_v4 = vmul.f32 1.442695, %v6574_v50  ;;  %12262 = vpow2.f32 %v6770_v56  ;;  %v6830_v24 = vmul.f32 1.442695, %v6601_v2  ;;  %v6962_v46 = vand.u32 2147483647, %v16488_v51 }
 0x3d5   :  { %20950 = vst [vmem:[#allocation33_spill] sm:$0xff] %v16603_v12  ;;  %11746 = vmatpush1.bf16.msra.mxu1 %v20953_v34  ;;  %v7244_v17 = vadd.f32 1.0, %v16599_v35  ;;  %v6958_v40 = vmul.f32 0.6931472, %v12247_v13  ;;  %v16615_v0 = vmul.f32 100.0, %v16590_v49  ;;  %v16618_v15 = vmul.f32 100.0, %v16597_v33 }
 0x3d6   :  { %12264 = vpow2.f32 %v6776_v4  ;;  %v6834_v50 = vmul.f32 1.442695, %v6603_v55  ;;  %v6978_v9 = vadd.f32 1.0, %v6977_v38  ;;  %v16623_v56 = vmul.f32 100.0, %v16610_v47  ;;  %20956 = vst [vmem:[#allocation46_spill] sm:$0xff] %v16633_v42 }
 0x3d7   :  { %20955 = vst [vmem:[#allocation39_spill] sm:$0xff] %v16615_v0  ;;  %v16620_v19 = vpop.eup %12252  ;;  %12266 = vlog2.f32 %v7244_v17  ;;  %v6961_v25 = vmul.f32 %v16488_v51, %v6960_v53  ;;  %v6980_v13 = vand.u32 2147483647, %v16499_v48  ;;  %v16630_v34 = vmul.f32 100.0, %v16603_v12 }
 0x3d8   :  { %v16625_v2 = vpop.eup %12254  ;;  %v7262_v4 = vadd.f32 1.0, %v16620_v19  ;;  %12268 = vpow2.f32 %v6830_v24  ;;  %vm16637_vm15 = vcmp.lt.f32.partialorder %v6962_v46, 0.0004427343  ;;  %v6976_v38 = vmul.f32 0.6931472, %v12249_v7 }
 0x3d9   :  { %v16635_v28 = vpop.eup %12256  ;;  %v6604_v17 = vmin.f32 %v16618_v15, 20.0  ;;  %v6964_v51 = vsel %vm16637_vm15, %v6961_v25, %v6958_v40  ;;  %v6509_v53 = vmin.f32 %v16615_v0, 20.0  ;;  %v7247_v8 = vmul.f32 -0.5, %v16599_v35 }
 0x3da   :  { %12270 = vlog2.f32 %v7262_v4  ;;  %v6979_v12 = vmul.f32 %v16499_v48, %v6978_v9  ;;  %v6606_v24 = vmin.f32 %v16623_v56, 20.0  ;;  %vm6380_vm14 = vcmp.gt.f32.partialorder %v16406_v30, 20.0 }
 0x3db   :  { %12272 = vpow2.f32 %v6834_v50  ;;  %v6836_v42 = vmul.f32 1.442695, %v6604_v17  ;;  %v16648_v46 = vpop.eup %12258  ;;  %vm6382_vm11 = vcmp.gt.f32.partialorder %v16409_v59, 20.0  ;;  %vm16652_vm4 = vcmp.lt.f32.partialorder %v6980_v13, 0.0004427343 }
 0x3dc   :  { %v8045_v4 = vmul.f32 0.01, %v6964_v51  ;;  %v6982_v48 = vsel %vm16652_vm4, %v6979_v12, %v6976_v38  ;;  %v7265_v50 = vmul.f32 -0.5, %v16620_v19  ;;  %v6840_v9 = vmul.f32 1.442695, %v6606_v24 }
 0x3dd   :  { %v12261_v25 = vpop.eup %12260  ;;  %v16660_v55 = vmul.f32 1.442695, %v6509_v53  ;;  %v7248_v17 = vadd.f32 1.0, %v7247_v8  ;;  %12274 = vpow2.f32 %v6836_v42  ;;  %v7250_v13 = vand.u32 2147483647, %v16599_v35 }
 0x3de   :  { %v7532_v49 = vadd.f32 1.0, %v12261_v25  ;;  %v16662_v0 = vpop.eup %12262  ;;  %v16667_v40 = vadd.f32 %v20962_v45, %v15783_v58  ;;  %v7535_v51 = vmul.f32 -0.5, %v12261_v25  ;;  %12276 = vpow2.f32 %v6840_v9 }
 0x3df   :  { %20961 = vst [vmem:[#allocation36_spill] sm:$0xff] %v16660_v55  ;;  %v8047_v12 = vmul.f32 0.01, %v6982_v48  ;;  %vm6412_vm9 = vcmp.gt.f32.partialorder %v16531_v20, 20.0  ;;  %v7268_v38 = vand.u32 2147483647, %v16620_v19  ;;  %v16676_v42 = vsel %vm6380_vm14, %v16394_v18, %v8045_v4 }
 0x3e0   :  { %v16669_v7 = vpop.eup %12264  ;;  %12278 = vlog2.f32 %v7532_v49  ;;  %20963 = vst [vmem:[#allocation54_spill] sm:$0xff] %v16676_v42  ;;  %vm6414_vm13 = vcmp.gt.f32.partialorder %v16544_v54, 20.0  ;;  %v7266_v45 = vadd.f32 1.0, %v7265_v50  ;;  %v6929_v24 = vadd.f32 1.0, %v16523_v21  ;;  %v16686_v18 = vpop.f32.mrb[112].mxu1 }
 0x3e1   :  { %v12267_v8 = vpop.eup %12266  ;;  %v7550_v53 = vadd.f32 1.0, %v16669_v7  ;;  %v7249_v48 = vmul.f32 %v16599_v35, %v7248_v17  ;;  %v7538_v16 = vand.u32 2147483647, %v12261_v25  ;;  %v6932_v55 = vmul.f32 -0.5, %v16523_v21  ;;  %20964 = vst [vmem:[#allocation44_spill] sm:$0xff] %v16686_v18 }
 0x3e2   :  { %v7246_v9 = vmul.f32 0.6931472, %v12267_v8  ;;  %v16683_v49 = vpop.eup %12268  ;;  %vm7251_vm6 = vcmp.lt.f32.partialorder %v7250_v13, 0.0004427343  ;;  %v7536_v44 = vadd.f32 1.0, %v7535_v51  ;;  %v7553_v30 = vmul.f32 -0.5, %v16669_v7 }
 0x3e3   :  { %12280 = vlog2.f32 %v7550_v53  ;;  %v16691_v50 = vsel %vm6382_vm11, %v16398_v63, %v8047_v12  ;;  %vm16693_vm10 = vcmp.lt.f32.partialorder %v7268_v38, 0.0004427343  ;;  %v7556_v17 = vand.u32 2147483647, %v16669_v7  ;;  %v16698_v13 = vpop.f32.mrb[113].mxu0  ;;  %v16700_v51 = vpop.f32.mrb[113].mxu1 }
 0x3e4   :  { %v12271_v4 = vpop.eup %12270  ;;  %v7252_v8 = vsel %vm7251_vm6, %v7249_v48, %v7246_v9  ;;  %20967 = vst [vmem:[#allocation42_spill] sm:$0xff] %v16698_v13  ;;  %20968 = vst [vmem:[#allocation49_spill] sm:$0xff] %v16700_v51  ;;  %v7267_v36 = vmul.f32 %v16620_v19, %v7266_v45  ;;  %12282 = vlog2.f32 %v6929_v24  ;;  %vm16705_vm3 = vcmp.lt.f32.partialorder %v7538_v16, 0.0004427343  ;;  %v16718_v45 = vpop.f32.mrb[114].mxu0 }
 0x3e5   :  { %v16702_v53 = vpop.eup %12272  ;;  %v8077_v18 = vmul.f32 0.01, %v7252_v8  ;;  %v7264_v5 = vmul.f32 0.6931472, %v12271_v4  ;;  %v6933_v59 = vadd.f32 1.0, %v6932_v55  ;;  %v7217_v38 = vadd.f32 1.0, %v16625_v2 }
 0x3e6   :  { %v6935_v12 = vand.u32 2147483647, %v16523_v21  ;;  %v7537_v4 = vmul.f32 %v12261_v25, %v7536_v44  ;;  %v7554_v19 = vadd.f32 1.0, %v7553_v30  ;;  %20972 = vst [vmem:[#allocation45_spill] sm:$0xff] %v16718_v45  ;;  %v16720_v16 = vpop.f32.mrb[114].mxu1  ;;  %v7220_v25 = vmul.f32 -0.5, %v16625_v2 }
 0x3e7   :  { %v16714_v9 = vsel %vm6412_vm9, %v16497_v39, %v8077_v18  ;;  %v7270_v48 = vsel %vm16693_vm10, %v7267_v36, %v7264_v5  ;;  %20973 = vst [vmem:[#allocation53_spill] sm:$0xff] %v16720_v16  ;;  %v12275_v24 = vpop.eup %12274  ;;  %vm16724_vm1 = vcmp.lt.f32.partialorder %v7556_v17, 0.0004427343  ;;  %12284 = vlog2.f32 %v7217_v38  ;;  %v16728_v39 = vpop.f32.mrb[115].mxu0  ;;  %v16767_v63 = vld [vmem:[%s19829_s1 + $0x88] sm:$0x1f] }
 0x3e8   :  { %20971 = vst [vmem:[#allocation43_spill] sm:$0xff] %v16714_v9  ;;  %v8079_v8 = vmul.f32 0.01, %v7270_v48  ;;  %20976 = vst [vmem:[#allocation57_spill] sm:$0xff] %v16728_v39  ;;  %v16730_v20 = vpop.f32.mrb[115].mxu1  ;;  %v12277_v5 = vpop.eup %12276  ;;  %v7820_v44 = vadd.f32 1.0, %v12275_v24 }
 0x3e9   :  { %20977 = vst [vmem:[#allocation48_spill] sm:$0xff] %v16730_v20  ;;  %v7823_v36 = vmul.f32 -0.5, %v12275_v24  ;;  %v6947_v30 = vadd.f32 1.0, %v16547_v27  ;;  %vm6444_vm2 = vcmp.gt.f32.partialorder %v16569_v37, 20.0  ;;  %v7838_v17 = vadd.f32 1.0, %v12277_v5  ;;  %v16743_v13 = vpop.f32.mrb[116].mxu0 }
 0x3ea   :  { %v12279_v18 = vpop.eup %12278  ;;  %v16737_v35 = vsel %vm6414_vm13, %v16535_v1, %v8079_v8  ;;  %v7841_v38 = vmul.f32 -0.5, %v12277_v5  ;;  %v7223_v48 = vand.u32 2147483647, %v16625_v2  ;;  %12286 = vlog2.f32 %v7820_v44  ;;  %20978 = vst [vmem:[#allocation61_spill] sm:$0xff] %v16743_v13  ;;  %v16745_v16 = vpop.f32.mrb[116].mxu1  ;;  %20986 = vst [vmem:[#allocation50_spill] sm:$0xff] %v16767_v63 }
 0x3eb   :  { %v7534_v20 = vmul.f32 0.6931472, %v12279_v18  ;;  %v7826_v39 = vand.u32 2147483647, %v12275_v24  ;;  %20979 = vst [vmem:[#allocation47_spill] sm:$0xff] %v16745_v16  ;;  %v7824_v45 = vadd.f32 1.0, %v7823_v36  ;;  %12288 = vlog2.f32 %v7838_v17 }
 0x3ec   :  { %v7844_v1 = vand.u32 2147483647, %v12277_v5  ;;  %v6950_v54 = vmul.f32 -0.5, %v16547_v27  ;;  %v16748_v8 = vpop.f32.mrb[117].mxu0  ;;  %vm16752_vm7 = vcmp.lt.f32.partialorder %v6935_v12, 0.0004427343  ;;  %12290 = vlog2.f32 %v6947_v30 }
 0x3ed   :  { %20980 = vst [vmem:[#allocation16_spill] sm:$0xff] %v16748_v8  ;;  %v12281_v42 = vpop.eup %12280  ;;  %v7540_v9 = vsel %vm16705_vm3, %v7537_v4, %v7534_v20  ;;  %v7221_v44 = vadd.f32 1.0, %v7220_v25  ;;  %v16756_v18 = vpop.f32.mrb[117].mxu1  ;;  %vm6446_vm5 = vcmp.gt.f32.partialorder %v16585_v43, 20.0  ;;  %v7555_v17 = vmul.f32 %v16669_v7, %v7554_v19 }
 0x3ee   :  { %20983 = vst [vmem:[#allocation62_spill] sm:$0xff] %v16756_v18  ;;  %v7552_v36 = vmul.f32 0.6931472, %v12281_v42  ;;  %v7842_v16 = vadd.f32 1.0, %v7841_v38  ;;  %vm16760_vm8 = vcmp.lt.f32.partialorder %v7223_v48, 0.0004427343  ;;  %v12283_v12 = vpop.eup %12282  ;;  %v6934_v7 = vmul.f32 %v16523_v21, %v6933_v59 }
 0x3ef   :  { %vm6377_vm12 = vcmp.gt.f32.partialorder %v16223_v3, 20.0  ;;  %vm6409_vm0 = vcmp.gt.f32.partialorder %v16360_v22, 20.0  ;;  %v8109_v4 = vmul.f32 0.01, %v7540_v9  ;;  %vm16771_vm15 = vcmp.lt.f32.partialorder %v7826_v39, 0.0004427343 }
 0x3f0   :  { %v7235_v19 = vadd.f32 1.0, %v16635_v28  ;;  %v7558_v20 = vsel %vm16724_vm1, %v7555_v17, %v7552_v36  ;;  %v7825_v25 = vmul.f32 %v12275_v24, %v7824_v45  ;;  %vm16779_vm14 = vcmp.lt.f32.partialorder %v7844_v1, 0.0004427343  ;;  %v16783_v18 = vpop.f32.mrb[118].mxu0  ;;  %v16785_v9 = vpop.f32.mrb[118].mxu1 }
 0x3f1   :  { %v6931_v38 = vmul.f32 0.6931472, %v12283_v12  ;;  %v6951_v48 = vadd.f32 1.0, %v6950_v54  ;;  %20991 = vst [vmem:[#allocation51_spill] sm:$0xff] %v16783_v18  ;;  %20992 = vst [vmem:[#allocation41_spill] sm:$0xff] %v16785_v9  ;;  %v7222_v39 = vmul.f32 %v16625_v2, %v7221_v44  ;;  %v7238_v59 = vmul.f32 -0.5, %v16635_v28  ;;  %v12285_v45 = vpop.eup %12284 }
 0x3f2   :  { %v6953_v21 = vand.u32 2147483647, %v16547_v27  ;;  %12292 = vlog2.f32 %v7235_v19  ;;  %v16790_v51 = vpop.f32.mrb[119].mxu0  ;;  %vm6476_vm11 = vcmp.gt.f32.partialorder %v16618_v15, 20.0  ;;  %v7843_v24 = vmul.f32 %v12277_v5, %v7842_v16  ;;  %v16796_v36 = vpop.f32.mrb[119].mxu1 }
 0x3f3   :  { %20993 = vst [vmem:[#allocation52_spill] sm:$0xff] %v16790_v51  ;;  %v6937_v1 = vsel %vm16752_vm7, %v6934_v7, %v6931_v38  ;;  %vm8299_vm4 = vcmask 261120   ;;  %v7505_v54 = vadd.f32 1.0, %v16648_v46  ;;  %20994 = vst [vmem:[#allocation8_spill] sm:$0xff] %v16796_v36  ;;  %v16801_v2 = vsel %vm6444_vm2, %v16552_v32, %v8109_v4 }
 0x3f4   :  { %20995 = vst [vmem:[#allocation59_spill] sm:$0xff] %v16801_v2  ;;  %v8111_v44 = vmul.f32 0.01, %v7558_v20  ;;  %vm6478_vm9 = vcmp.gt.f32.partialorder %v16623_v56, 20.0  ;;  %v7219_v17 = vmul.f32 0.6931472, %v12285_v45  ;;  %11203 = vmatmul.mubr.msk.f32.vlgmr.msra.gmra.mrb[208].mxu0 %vm8299_vm4, %v16767_v63  ;;  %11204 = vmatmul.mubr.msk.f32.vlgmr.msra.gmra.mrb[208].mxu1 %vm8299_vm4, %v16767_v63  ;;  %v6952_v55 = vmul.f32 %v16547_v27, %v6951_v48  ;;  %v12287_v5 = vpop.eup %12286 }
 0x3f5   :  { %v7241_v12 = vand.u32 2147483647, %v16635_v28  ;;  %v8042_v16 = vmul.f32 0.01, %v6937_v1  ;;  %12294 = vlog2.f32 %v7505_v54  ;;  %v7793_v37 = vadd.f32 1.0, %v16683_v49  ;;  %v12289_v38 = vpop.eup %12288 }
 0x3f6   :  { %v20996_v32 = vmov 0.0   ;;  %v7225_v4 = vsel %vm16760_vm8, %v7222_v39, %v7219_v17  ;;  %vm16815_vm13 = vcmp.lt.f32.partialorder %v6953_v21, 0.0004427343  ;;  %v7239_v19 = vadd.f32 1.0, %v7238_v59  ;;  %v12291_v1 = vpop.eup %12290  ;;  %v21000_v17 = vld [vmem:[#allocation63_spill] sm:$0xff] }
 0x3f7   :  { %8508 = vmatprep.mubr.f32.mxu0 %v20996_v32  ;;  %8579 = vmatprep.mubr.f32.mxu1 %v20996_v32  ;;  %v7508_v20 = vmul.f32 -0.5, %v16648_v46  ;;  %v7822_v27 = vmul.f32 0.6931472, %v12287_v5  ;;  %v8074_v48 = vmul.f32 0.01, %v7225_v4  ;;  %12296 = vlog2.f32 %v7793_v37  ;;  %v21001_v5 = vld [vmem:[#allocation19_spill] sm:$0xff] }
 0x3f8   :  { %v7796_v45 = vmul.f32 -0.5, %v16683_v49  ;;  %vm6379_vm6 = vcmp.gt.f32.partialorder %v16231_v41, 20.0  ;;  %v16825_v8 = vsel %vm6446_vm5, %v16563_v52, %v8111_v44  ;;  %v7840_v39 = vmul.f32 0.6931472, %v12289_v38 }
 0x3f9   :  { %20999 = vst [vmem:[#allocation2_spill] sm:$0xff] %v16825_v8  ;;  %v7511_v21 = vand.u32 2147483647, %v16648_v46  ;;  %v7523_v59 = vadd.f32 1.0, %v16662_v0  ;;  %vm6411_vm10 = vcmp.gt.f32.partialorder %v16462_v10, 20.0  ;;  %v7828_v54 = vsel %vm16771_vm15, %v7825_v25, %v7822_v27 }
 0x3fa   :  { %v8170_v37 = vsel %vm6377_vm12, %v21000_v17, %v8042_v16  ;;  %v8202_v43 = vsel %vm6409_vm0, %v21001_v5, %v8074_v48  ;;  %v6949_v52 = vmul.f32 0.6931472, %v12291_v1  ;;  %v8141_v44 = vmul.f32 0.01, %v7828_v54  ;;  %v21005_v48 = vld [vmem:[#allocation24_spill] sm:$0xff]  ;;  %v21009_v17 = vld [vmem:[#allocation13_spill] sm:$0xff] }
 0x3fb   :  { %v7846_v4 = vsel %vm16779_vm14, %v7843_v24, %v7840_v39  ;;  %v11747_v38 = vpack.c.bf16 %v8202_v43, %v8170_v37  ;;  %v7509_v36 = vadd.f32 1.0, %v7508_v20  ;;  %v7797_v25 = vadd.f32 1.0, %v7796_v45  ;;  %v21004_v20 = vld [vmem:[#allocation11_spill] sm:$0xff]  ;;  %v21010_v37 = vld [vmem:[#allocation6_spill] sm:$0xff] }
 0x3fc   :  { %v8143_v51 = vmul.f32 0.01, %v7846_v4  ;;  %v6955_v42 = vsel %vm16815_vm13, %v6952_v55, %v6949_v52  ;;  %12298 = vlog2.f32 %v7523_v59  ;;  %v12293_v27 = vpop.eup %12292  ;;  %v16845_v3 = vsel %vm6476_vm11, %v16597_v33, %v8141_v44 }
 0x3fd   :  { %21002 = vst [vmem:[#allocation3_spill] sm:$0xff] %v16845_v3  ;;  %11748 = vmatprep.subr.bf16.mxu0 %v11747_v38  ;;  %v7240_v22 = vmul.f32 %v16635_v28, %v7239_v19  ;;  %v8044_v16 = vmul.f32 0.01, %v6955_v42  ;;  %v7526_v30 = vmul.f32 -0.5, %v16662_v0  ;;  %v7237_v7 = vmul.f32 0.6931472, %v12293_v27 }
 0x3fe   :  { %v16854_v55 = vsel %vm6478_vm9, %v16610_v47, %v8143_v51  ;;  %v21006_v15 = vpack.c.bf16 %v21004_v20, %v21005_v48  ;;  %v7811_v33 = vadd.f32 1.0, %v16702_v53  ;;  %vm6441_vm3 = vcmp.gt.f32.partialorder %v16503_v29, 20.0  ;;  %v21012_v27 = vld [vmem:[#allocation56_spill] sm:$0xff]  ;;  %v21016_v19 = vld [vmem:[#allocation37_spill] sm:$0xff] }
 0x3ff   :  { %21003 = vst [vmem:[#allocation5_spill] sm:$0xff] %v16854_v55  ;;  %vm6473_vm1 = vcmp.gt.f32.partialorder %v16566_v14, 20.0  ;;  %vm7242_vm2 = vcmp.lt.f32.partialorder %v7241_v12, 0.0004427343  ;;  %vm16864_vm7 = vcmp.lt.f32.partialorder %v7511_v21, 0.0004427343  ;;  %v12295_v56 = vpop.eup %12294  ;;  %v7510_v45 = vmul.f32 %v16648_v46, %v7509_v36 }
 0x400   :  { %11750 = vmatpush1.bf16.msra.mxu0 %v21006_v15  ;;  %v7799_v47 = vand.u32 2147483647, %v16683_v49  ;;  %v7243_v51 = vsel %vm7242_vm2, %v7240_v22, %v7237_v7  ;;  %v7798_v1 = vmul.f32 %v16683_v49, %v7797_v25  ;;  %12300 = vlog2.f32 %v7811_v33  ;;  %v21011_v46 = vld [vmem:[#allocation21_spill] sm:$0xff]  ;;  %v21015_v33 = vld [vmem:[#allocation35_spill] sm:$0xff] }
 0x401   :  { %v8076_v39 = vmul.f32 0.01, %v7243_v51  ;;  %v7507_v59 = vmul.f32 0.6931472, %v12295_v56  ;;  %v7529_v54 = vand.u32 2147483647, %v16662_v0  ;;  %v16874_v12 = vadd.f32 %v21009_v17, %v15737_v61  ;;  %v12297_v21 = vpop.eup %12296 }
 0x402   :  { %v8172_v5 = vsel %vm6379_vm6, %v21010_v37, %v8044_v16  ;;  %v7527_v43 = vadd.f32 1.0, %v7526_v30  ;;  %v7814_v52 = vmul.f32 -0.5, %v16702_v53  ;;  %v16882_v49 = vadd.f32 %v21011_v46, %v15737_v61  ;;  %v21018_v17 = vld [vmem:[#allocation29_spill] sm:$0xff]  ;;  %v21019_v37 = vld [vmem:[#allocation58_spill] sm:$0xff] }
 0x403   :  { %v8204_v36 = vsel %vm6411_vm10, %v16352_v6, %v8076_v39  ;;  %v7513_v44 = vsel %vm16864_vm7, %v7510_v45, %v7507_v59  ;;  %v7795_v4 = vmul.f32 0.6931472, %v12297_v21  ;;  %v16890_v38 = vmul.f32 100.0, %v16874_v12  ;;  %v21048_v28 = vld [vmem:[#allocation9_spill] sm:$0xff] }
 0x404   :  { %v11755_v41 = vpack.c.bf16 %v8204_v36, %v8172_v5  ;;  %vm7800_vm5 = vcmp.lt.f32.partialorder %v7799_v47, 0.0004427343  ;;  %v8106_v42 = vmul.f32 0.01, %v7513_v44  ;;  %v16893_v25 = vmul.f32 100.0, %v16882_v49 }
 0x405   :  { %v16897_v22 = vadd.f32 %v21012_v27, %v15783_v58  ;;  %v7801_v16 = vsel %vm7800_vm5, %v7798_v1, %v7795_v4  ;;  %vm16899_vm8 = vcmp.lt.f32.partialorder %v7529_v54, 0.0004427343  ;;  %v6512_v10 = vmin.f32 %v16890_v38, 20.0 }
 0x406   :  { %v12299_v30 = vpop.eup %12298  ;;  %v16905_v7 = vmul.f32 100.0, %v16667_v40  ;;  %11756 = vmatprep.subr.bf16.mxu1 %v11755_v41  ;;  %v8138_v20 = vmul.f32 0.01, %v7801_v16  ;;  %v7817_v48 = vand.u32 2147483647, %v16702_v53  ;;  %v6514_v15 = vmin.f32 %v16893_v25, 20.0 }
 0x407   :  { %v21017_v47 = vpack.c.bf16 %v21015_v33, %v21016_v19  ;;  %v7525_v56 = vmul.f32 0.6931472, %v12299_v30  ;;  %v7528_v51 = vmul.f32 %v16662_v0, %v7527_v43  ;;  %v7815_v45 = vadd.f32 1.0, %v7814_v52  ;;  %v21024_v41 = vld [vmem:[#allocation27_spill] sm:$0xff]  ;;  %v21026_v33 = vld [vmem:[#allocation4_spill] sm:$0xff] }
 0x408   :  { %v6652_v1 = vmul.f32 1.442695, %v6512_v10  ;;  %v8234_v39 = vsel %vm6441_vm3, %v16472_v57, %v8106_v42  ;;  %v8266_v59 = vsel %vm6473_vm1, %v16512_v11, %v8138_v20  ;;  %v6656_v54 = vmul.f32 1.442695, %v6514_v15  ;;  %v21022_v11 = vld [vmem:[#allocation60_spill] sm:$0xff] }
 0x409   :  { %11758 = vmatpush1.bf16.msra.mxu1 %v21017_v47  ;;  %v16921_v21 = vadd.f32 %v21018_v17, %v15783_v58  ;;  %v16925_v5 = vadd.f32 %v21019_v37, %v15789_v31  ;;  %v11751_v0 = vpack.c.bf16 %v8266_v59, %v8234_v39  ;;  %v7531_v43 = vsel %vm16899_vm8, %v7528_v51, %v7525_v56  ;;  %v21029_v47 = vld [vmem:[#allocation40_spill] sm:$0xff]  ;;  %v21030_v39 = vld [vmem:[#allocation7_spill] sm:$0xff] }
 0x40a   :  { %12302 = vpow2.f32 %v6652_v1  ;;  %v12301_v29 = vpop.eup %12300  ;;  %v21021_v57 = vmin.f32 %v16630_v34, 20.0  ;;  %v16933_v14 = vadd.f32 %v21022_v11, %v15789_v31  ;;  %v6541_v36 = vmin.f32 %v16905_v7, 20.0  ;;  %v21033_v37 = vld [vmem:[#allocation31_spill] sm:$0xff]  ;;  %v21034_v11 = vld [vmem:[#allocation36_spill] sm:$0xff] }
 0x40b   :  { %21020 = vst [vmem:[#allocation55_spill] sm:$0xff] %v16925_v5  ;;  %12304 = vpow2.f32 %v6656_v54  ;;  %v16936_v46 = vmul.f32 100.0, %v16921_v21  ;;  %11752 = vmatprep.subr.bf16.mxu0 %v11751_v0  ;;  %v7813_v44 = vmul.f32 0.6931472, %v12301_v29  ;;  %v7816_v4 = vmul.f32 %v16702_v53, %v7815_v45  ;;  %v21032_v54 = vld [vmem:[#allocation30_spill] sm:$0xff] }
 0x40c   :  { %v6650_v52 = vmul.f32 1.442695, %v21021_v57  ;;  %21023 = vst [vmem:[#allocation63_spill] sm:$0xff] %v16933_v14  ;;  %v16942_v42 = vadd.f32 %v21024_v41, %v15783_v58  ;;  %vm6443_vm12 = vcmp.gt.f32.partialorder %v16506_v62, 20.0  ;;  %v16946_v27 = vmul.f32 100.0, %v16897_v22  ;;  %v21035_v41 = vld [vmem:[#allocation10_spill] sm:$0xff] }
 0x40d   :  { %vm7818_vm0 = vcmp.lt.f32.partialorder %v7817_v48, 0.0004427343  ;;  %v8108_v16 = vmul.f32 0.01, %v7531_v43  ;;  %v21025_v6 = vpack.c.bf16 %v16444_v23, %v16434_v60  ;;  %v16952_v10 = vmul.f32 100.0, %v16925_v5  ;;  %v21028_v60 = vld [vmem:[#allocation38_spill] sm:$0xff] }
 0x40e   :  { %v7819_v30 = vsel %vm7818_vm0, %v7816_v4, %v7813_v44  ;;  %v6544_v53 = vmin.f32 %v16936_v46, 20.0  ;;  %v16956_v20 = vmul.f32 100.0, %v16942_v42  ;;  %v16959_v15 = vmul.f32 100.0, %v16933_v14 }
 0x40f   :  { %11754 = vmatpush1.bf16.msra.mxu0 %v21025_v6  ;;  %v16963_v48 = vadd.f32 %v21026_v33, %v15841_v26  ;;  %v8140_v19 = vmul.f32 0.01, %v7819_v30  ;;  %v16967_v23 = vadd.f32 %v21028_v60, %v15789_v31  ;;  %vm6475_vm15 = vcmp.gt.f32.partialorder %v21029_v47, 20.0  ;;  %v21037_v30 = vld [vmem:[#allocation34_spill] sm:$0xff]  ;;  %v21038_v47 = vld [vmem:[#allocation23_spill] sm:$0xff] }
 0x410   :  { %v6710_v56 = vmul.f32 1.442695, %v6541_v36  ;;  %v6716_v51 = vmul.f32 1.442695, %v6544_v53  ;;  %v6546_v45 = vmin.f32 %v16956_v20, 20.0  ;;  %v6543_v1 = vmin.f32 %v16946_v27, 20.0 }
 0x411   :  { %21027 = vst [vmem:[#allocation19_spill] sm:$0xff] %v16963_v48  ;;  %v16976_v59 = vadd.f32 %v21030_v39, %v15841_v26  ;;  %v8236_v17 = vsel %vm6443_vm12, %v21032_v54, %v8108_v16  ;;  %v8268_v0 = vsel %vm6475_vm15, %v21033_v37, %v8140_v19  ;;  %v16984_v57 = vmul.f32 100.0, %v16967_v23 }
 0x412   :  { %11205 = vmatmul.mubr.msk.f32.vlgmr.msra.gmra.mrb[210].mxu0 %vm8299_vm4, %v16767_v63  ;;  %v11759_v43 = vpack.c.bf16 %v8268_v0, %v8236_v17  ;;  %12306 = vpow2.f32 %v6716_v51  ;;  %v6720_v29 = vmul.f32 1.442695, %v6546_v45  ;;  %v6573_v36 = vmin.f32 %v16952_v10, 20.0  ;;  %v21039_v51 = vld [vmem:[#allocation22_spill] sm:$0xff] }
 0x413   :  { %21031 = vst [vmem:[#allocation11_spill] sm:$0xff] %v16976_v59  ;;  %8650 = vmatprep.mubr.f32.mxu0 %v20996_v32  ;;  %12308 = vpow2.f32 %v21034_v11  ;;  %v6575_v44 = vmin.f32 %v16959_v15, 20.0  ;;  %v16990_v4 = vmul.f32 100.0, %v16963_v48  ;;  %v16996_v16 = vadd.f32 %v21035_v41, %v15737_v61 }
 0x414   :  { %v16992_v62 = vpop.eup %12302  ;;  %11760 = vmatprep.subr.bf16.mxu1 %v11759_v43  ;;  %12310 = vpow2.f32 %v6720_v29  ;;  %v6576_v6 = vmin.f32 %v16984_v57, 20.0  ;;  %v17001_v53 = vadd.f32 %v21037_v30, %v15789_v31  ;;  %v6714_v19 = vmul.f32 1.442695, %v6543_v1  ;;  %v21042_v29 = vld [vmem:[#allocation26_spill] sm:$0xff] }
 0x415   :  { %21036 = vst [vmem:[#allocation24_spill] sm:$0xff] %v16996_v16  ;;  %v17003_v33 = vpop.eup %12304  ;;  %12312 = vpow2.f32 %v6650_v52  ;;  %v17006_v60 = vmul.f32 100.0, %v16976_v59  ;;  %v21040_v45 = vpack.c.bf16 %v21038_v47, %v21039_v51  ;;  %v6992_v39 = vadd.f32 1.0, %v16992_v62 }
 0x416   :  { %12314 = vpow2.f32 %v6710_v56  ;;  %v7010_v54 = vadd.f32 1.0, %v17003_v33  ;;  %v6774_v17 = vmul.f32 1.442695, %v6573_v36  ;;  %v6778_v37 = vmul.f32 1.442695, %v6575_v44  ;;  %v21044_v44 = vld [vmem:[#allocation15_spill] sm:$0xff] }
 0x417   :  { %11762 = vmatpush1.bf16.msra.mxu1 %v21040_v45  ;;  %12316 = vlog2.f32 %v6992_v39  ;;  %v6780_v0 = vmul.f32 1.442695, %v6576_v6  ;;  %v6605_v43 = vmin.f32 %v16990_v4, 20.0  ;;  %v17015_v52 = vmul.f32 100.0, %v16996_v16 }
 0x418   :  { %12318 = vlog2.f32 %v7010_v54  ;;  %v17018_v1 = vmul.f32 100.0, %v17001_v53  ;;  %v6607_v56 = vmin.f32 %v17006_v60, 20.0  ;;  %v17025_v11 = vadd.f32 %v21042_v29, %v15737_v61 }
 0x419   :  { %21041 = vst [vmem:[#allocation13_spill] sm:$0xff] %v17015_v52  ;;  %12320 = vpow2.f32 %v6714_v19  ;;  %v17031_v41 = vadd.f32 %v21044_v44, %v15841_v26  ;;  %v6838_v30 = vmul.f32 1.442695, %v6605_v43  ;;  %v6513_v19 = vmin.f32 %v17015_v52, 20.0 }
 0x41a   :  { %11206 = vmatmul.mubr.msk.f32.vlgmr.msra.gmra.mrb[210].mxu1 %vm8299_vm4, %v16767_v63  ;;  %21043 = vst [vmem:[#allocation6_spill] sm:$0xff] %v17025_v11  ;;  %12322 = vpow2.f32 %v6780_v0  ;;  %v6578_v36 = vmin.f32 %v17018_v1, 20.0  ;;  %v6842_v45 = vmul.f32 1.442695, %v6607_v56  ;;  %v6995_v39 = vmul.f32 -0.5, %v16992_v62 }
 0x41b   :  { %8721 = vmatprep.mubr.f32.mxu1 %v20996_v32  ;;  %12324 = vpow2.f32 %v6774_v17  ;;  %v17040_v54 = vmul.f32 100.0, %v17025_v11  ;;  %v7013_v29 = vmul.f32 -0.5, %v17003_v33  ;;  %v17058_v24 = vadd.f32 %v21048_v28, %v15841_v26 }
 0x41c   :  { %v17033_v6 = vpop.eup %12306  ;;  %12326 = vpow2.f32 %v6778_v37  ;;  %v6784_v47 = vmul.f32 1.442695, %v6578_v36  ;;  %v21046_v37 = vld [vmem:[#allocation18_spill] sm:$0xff]  ;;  %v17051_v36 = vmul.f32 100.0, %v17031_v41  ;;  %v6998_v16 = vand.u32 2147483647, %v16992_v62 }
 0x41d   :  { %v17036_v51 = vpop.eup %12308  ;;  %21045 = vst [vmem:[#allocation21_spill] sm:$0xff] %v17040_v54  ;;  %v7280_v17 = vadd.f32 1.0, %v17033_v6  ;;  %v17048_v43 = vadd.f32 %v21046_v37, %v15783_v58  ;;  %v6654_v37 = vmul.f32 1.442695, %v6513_v19  ;;  %v7283_v9 = vmul.f32 -0.5, %v17033_v6 }
 0x41e   :  { %v17043_v0 = vpop.eup %12310  ;;  %12328 = vpow2.f32 %v6784_v47  ;;  %v6996_v47 = vadd.f32 1.0, %v6995_v39  ;;  %v6608_v18 = vmin.f32 %v17051_v36, 20.0  ;;  %v7014_v55 = vadd.f32 1.0, %v7013_v29 }
 0x41f   :  { %21047 = vst [vmem:[#allocation56_spill] sm:$0xff] %v17048_v43  ;;  %v17053_v56 = vpop.eup %12312  ;;  %12330 = vlog2.f32 %v7280_v17  ;;  %v7298_v44 = vadd.f32 1.0, %v17043_v0  ;;  %v17065_v17 = vpop.f32.mrb[136].mxu0  ;;  %v17069_v32 = vmul.f32 100.0, %v17048_v43  ;;  %v7016_v19 = vand.u32 2147483647, %v17003_v33 }
 0x420   :  { %v17060_v11 = vpop.eup %12314  ;;  %12332 = vpow2.f32 %v6838_v30  ;;  %21049 = vst [vmem:[#allocation35_spill] sm:$0xff] %v17065_v17  ;;  %v7301_v39 = vmul.f32 -0.5, %v17043_v0  ;;  %v6844_v63 = vmul.f32 1.442695, %v6608_v18  ;;  %vm17080_vm14 = vcmp.lt.f32.partialorder %v6998_v16, 0.0004427343 }
 0x421   :  { %v12317_v52 = vpop.eup %12316  ;;  %12334 = vlog2.f32 %v7298_v44  ;;  %v17076_v44 = vmul.f32 100.0, %v17058_v24  ;;  %v6997_v43 = vmul.f32 %v16992_v62, %v6996_v47  ;;  %v7284_v14 = vadd.f32 1.0, %v7283_v9  ;;  %v17134_v5 = vpop.f32.mrb[137].mxu0 }
 0x422   :  { %v12319_v8 = vpop.eup %12318  ;;  %12336 = vpow2.f32 %v6842_v45  ;;  %v6994_v17 = vmul.f32 0.6931472, %v12317_v52  ;;  %v7286_v13 = vand.u32 2147483647, %v17033_v6  ;;  %vm6384_vm11 = vcmp.gt.f32.partialorder %v16890_v38, 20.0  ;;  %21060 = vst [vmem:[#allocation29_spill] sm:$0xff] %v17134_v5 }
 0x423   :  { %v17071_v30 = vpop.eup %12320  ;;  %v7012_v29 = vmul.f32 0.6931472, %v12319_v8  ;;  %12338 = vpow2.f32 %v6654_v37  ;;  %v7015_v16 = vmul.f32 %v17003_v33, %v7014_v55  ;;  %vm6416_vm9 = vcmp.gt.f32.partialorder %v16936_v46, 20.0  ;;  %v21054_v33 = vld [vmem:[#allocation32_spill] sm:$0xff] }
 0x424   :  { %v17078_v59 = vpop.eup %12322  ;;  %v7304_v8 = vand.u32 2147483647, %v17043_v0  ;;  %12340 = vpow2.f32 %v6844_v63  ;;  %v6965_v52 = vadd.f32 1.0, %v17036_v51  ;;  %vm6386_vm13 = vcmp.gt.f32.partialorder %v16893_v25, 20.0 }
 0x425   :  { %v17084_v28 = vpop.eup %12324  ;;  %v7568_v18 = vadd.f32 1.0, %v17078_v59  ;;  %vm17097_vm6 = vcmp.lt.f32.partialorder %v7016_v19, 0.0004427343  ;;  %v7302_v62 = vadd.f32 1.0, %v7301_v39  ;;  %v6610_v37 = vmin.f32 %v17076_v44, 20.0 }
 0x426   :  { %v17089_v2 = vpop.eup %12326  ;;  %v7000_v55 = vsel %vm17080_vm14, %v6997_v43, %v6994_v17  ;;  %v7018_v63 = vsel %vm17097_vm6, %v7015_v16, %v7012_v29  ;;  %vm6418_vm10 = vcmp.gt.f32.partialorder %v16956_v20, 20.0  ;;  %v17111_v19 = vadd.f32 %v21054_v33, %v15783_v58 }
 0x427   :  { %12342 = vlog2.f32 %v7568_v18  ;;  %v7285_v39 = vmul.f32 %v17033_v6, %v7284_v14  ;;  %vm17114_vm3 = vcmp.lt.f32.partialorder %v7286_v13, 0.0004427343  ;;  %v7571_v26 = vmul.f32 -0.5, %v17078_v59  ;;  %v17127_v6 = vpop.f32.mrb[136].mxu1 }
 0x428   :  { %v17102_v47 = vpop.eup %12328  ;;  %21055 = vst [vmem:[#allocation37_spill] sm:$0xff] %v17111_v19  ;;  %vm17122_vm1 = vcmp.lt.f32.partialorder %v7304_v8, 0.0004427343  ;;  %v6848_v16 = vmul.f32 1.442695, %v6610_v37  ;;  %12344 = vlog2.f32 %v6965_v52  ;;  %v7303_v13 = vmul.f32 %v17043_v0, %v7302_v62  ;;  %v17136_v52 = vpop.f32.mrb[137].mxu1 }
 0x429   :  { %v12331_v3 = vpop.eup %12330  ;;  %v7586_v43 = vadd.f32 1.0, %v17102_v47  ;;  %v8049_v33 = vmul.f32 0.01, %v7000_v55  ;;  %v8051_v14 = vmul.f32 0.01, %v7018_v63  ;;  %v7589_v8 = vmul.f32 -0.5, %v17102_v47 }
 0x42a   :  { %v17120_v17 = vpop.eup %12332  ;;  %v7282_v45 = vmul.f32 0.6931472, %v12331_v3  ;;  %21061 = vst [vmem:[#allocation58_spill] sm:$0xff] %v17136_v52  ;;  %v7572_v0 = vadd.f32 1.0, %v7571_v26  ;;  %v7574_v62 = vand.u32 2147483647, %v17078_v59 }
 0x42b   :  { %v12335_v9 = vpop.eup %12334  ;;  %12346 = vlog2.f32 %v7586_v43  ;;  %v7592_v43 = vand.u32 2147483647, %v17102_v47  ;;  %v6968_v29 = vmul.f32 -0.5, %v17036_v51  ;;  %v17167_v55 = vsel %vm6386_vm13, %v16882_v49, %v8051_v14 }
 0x42c   :  { %v17129_v54 = vpop.eup %12336  ;;  %v7288_v48 = vsel %vm17114_vm3, %v7285_v39, %v7282_v45  ;;  %v7300_v3 = vmul.f32 0.6931472, %v12335_v9  ;;  %12348 = vpow2.f32 %v6848_v16  ;;  %v17145_v39 = vmul.f32 100.0, %v17111_v19  ;;  %v17160_v9 = vpop.f32.mrb[138].mxu0  ;;  %21064 = vst [vmem:[#allocation4_spill] sm:$0xff] %v17167_v55 }
 0x42d   :  { %v8081_v37 = vmul.f32 0.01, %v7288_v48  ;;  %v17140_v63 = vpop.eup %12338  ;;  %v7253_v45 = vadd.f32 1.0, %v17060_v11  ;;  %v17152_v48 = vsel %vm6384_vm11, %v16874_v12, %v8049_v33  ;;  %21062 = vst [vmem:[#allocation60_spill] sm:$0xff] %v17160_v9  ;;  %v7590_v38 = vadd.f32 1.0, %v7589_v8  ;;  %v17172_v46 = vpop.f32.mrb[139].mxu0 }
 0x42e   :  { %v7306_v18 = vsel %vm17122_vm1, %v7303_v13, %v7300_v3  ;;  %v17162_v13 = vpop.f32.mrb[138].mxu1  ;;  %v12341_v3 = vpop.eup %12340  ;;  %21065 = vst [vmem:[#allocation38_spill] sm:$0xff] %v17172_v46  ;;  %v7573_v25 = vmul.f32 %v17078_v59, %v7572_v0  ;;  %vm17182_vm2 = vcmp.lt.f32.partialorder %v7574_v62, 0.0004427343  ;;  %vm17188_vm7 = vcmp.lt.f32.partialorder %v7592_v43, 0.0004427343 }
 0x42f   :  { %v17157_v26 = vsel %vm6416_vm9, %v16921_v21, %v8081_v37  ;;  %v8083_v16 = vmul.f32 0.01, %v7306_v18  ;;  %21063 = vst [vmem:[#allocation27_spill] sm:$0xff] %v17162_v13  ;;  %v6971_v21 = vand.u32 2147483647, %v17036_v51  ;;  %v17174_v33 = vpop.f32.mrb[139].mxu1  ;;  %12350 = vlog2.f32 %v7253_v45 }
 0x430   :  { %21066 = vst [vmem:[#allocation40_spill] sm:$0xff] %v17174_v33  ;;  %v7856_v14 = vadd.f32 1.0, %v12341_v3  ;;  %v7859_v46 = vmul.f32 -0.5, %v12341_v3  ;;  %v7256_v20 = vmul.f32 -0.5, %v17060_v11  ;;  %v17193_v59 = vpop.f32.mrb[140].mxu0  ;;  %v17195_v0 = vpop.f32.mrb[140].mxu1 }
 0x431   :  { %v12343_v37 = vpop.eup %12342  ;;  %v17179_v18 = vsel %vm6418_vm10, %v16942_v42, %v8083_v16  ;;  %v6969_v42 = vadd.f32 1.0, %v6968_v29  ;;  %21072 = vst [vmem:[#allocation30_spill] sm:$0xff] %v17193_v59  ;;  %21073 = vst [vmem:[#allocation31_spill] sm:$0xff] %v17195_v0  ;;  %vm6448_vm5 = vcmp.gt.f32.partialorder %v16984_v57, 20.0  ;;  %v7591_v16 = vmul.f32 %v17102_v47, %v7590_v38  ;;  %v17204_v45 = vpop.f32.mrb[141].mxu0  ;;  %v21078_v13 = vld [vmem:[#allocation39_spill] sm:$0xff] }
 0x432   :  { %21067 = vst [vmem:[#allocation7_spill] sm:$0xff] %v17179_v18  ;;  %v7570_v12 = vmul.f32 0.6931472, %v12343_v37  ;;  %12352 = vlog2.f32 %v7856_v14  ;;  %v12345_v62 = vpop.eup %12344  ;;  %vm17199_vm8 = vcmp.lt.f32.partialorder %v6971_v21, 0.0004427343  ;;  %v6983_v43 = vadd.f32 1.0, %v17053_v56 }
 0x433   :  { %21076 = vst [vmem:[#allocation36_spill] sm:$0xff] %v17204_v45  ;;  %v17206_v29 = vpop.f32.mrb[141].mxu1  ;;  %v7862_v0 = vand.u32 2147483647, %v12341_v3  ;;  %v6967_v52 = vmul.f32 0.6931472, %v12345_v62  ;;  %v6970_v55 = vmul.f32 %v17036_v51, %v6969_v42 }
 0x434   :  { %21077 = vst [vmem:[#allocation10_spill] sm:$0xff] %v17206_v29  ;;  %v7576_v8 = vsel %vm17182_vm2, %v7573_v25, %v7570_v12  ;;  %v7259_v59 = vand.u32 2147483647, %v17060_v11  ;;  %vm6450_vm12 = vcmp.gt.f32.partialorder %v17018_v1, 20.0  ;;  %v7860_v38 = vadd.f32 1.0, %v7859_v46  ;;  %v17215_v12 = vpop.f32.mrb[142].mxu0 }
 0x435   :  { %v12347_v14 = vpop.eup %12346  ;;  %12354 = vlog2.f32 %v6983_v43  ;;  %v6986_v21 = vmul.f32 -0.5, %v17053_v56  ;;  %vm6381_vm0 = vcmp.gt.f32.partialorder %v21078_v13, 20.0  ;;  %v7257_v49 = vadd.f32 1.0, %v7256_v20  ;;  %21079 = vst [vmem:[#allocation34_spill] sm:$0xff] %v17215_v12  ;;  %v17217_v25 = vpop.f32.mrb[142].mxu1  ;;  %v21081_v46 = vld [vmem:[#allocation14_spill] sm:$0xff] }
 0x436   :  { %v12349_v5 = vpop.eup %12348  ;;  %v7588_v47 = vmul.f32 0.6931472, %v12347_v14  ;;  %21080 = vst [vmem:[#allocation23_spill] sm:$0xff] %v17217_v25  ;;  %v8113_v62 = vmul.f32 0.01, %v7576_v8  ;;  %v17223_v43 = vadd.f32 %v21081_v46, %v15789_v31  ;;  %v17226_v19 = vpop.f32.mrb[143].mxu0  ;;  %v6973_v33 = vsel %vm17199_vm8, %v6970_v55, %v6967_v52 }
 0x437   :  { %v7874_v45 = vadd.f32 1.0, %v12349_v5  ;;  %v7877_v29 = vmul.f32 -0.5, %v12349_v5  ;;  %v6989_v14 = vand.u32 2147483647, %v17053_v56  ;;  %21083 = vst [vmem:[#allocation26_spill] sm:$0xff] %v17226_v19  ;;  %v17228_v9 = vpop.f32.mrb[143].mxu1  ;;  %v7861_v42 = vmul.f32 %v12341_v3, %v7860_v38 }
 0x438   :  { %v7594_v18 = vsel %vm17188_vm7, %v7591_v16, %v7588_v47  ;;  %21082 = vst [vmem:[#allocation22_spill] sm:$0xff] %v17223_v43  ;;  %21084 = vst [vmem:[#allocation15_spill] sm:$0xff] %v17228_v9  ;;  %vm6413_vm15 = vcmp.gt.f32.partialorder %v16905_v7, 20.0  ;;  %vm17231_vm14 = vcmp.lt.f32.partialorder %v7862_v0, 0.0004427343  ;;  %vm6480_vm11 = vcmp.gt.f32.partialorder %v17051_v36, 20.0 }
 0x439   :  { %12356 = vlog2.f32 %v7874_v45  ;;  %v7880_v8 = vand.u32 2147483647, %v12349_v5  ;;  %vm17238_vm9 = vcmp.lt.f32.partialorder %v7259_v59, 0.0004427343  ;;  %v6987_v16 = vadd.f32 1.0, %v6986_v21  ;;  %v12351_v19 = vpop.eup %12350  ;;  %v21096_v20 = vld [vmem:[#allocation46_spill] sm:$0xff] }
 0x43a   :  { %v7271_v47 = vadd.f32 1.0, %v17071_v30  ;;  %v8115_v46 = vmul.f32 0.01, %v7594_v18  ;;  %v7878_v0 = vadd.f32 1.0, %v7877_v29  ;;  %v7258_v9 = vmul.f32 %v17060_v11, %v7257_v49 }
 0x43b   :  { %v7541_v45 = vadd.f32 1.0, %v17084_v28  ;;  %v17248_v52 = vsel %vm6448_vm5, %v16967_v23, %v8113_v62  ;;  %v8046_v55 = vmul.f32 0.01, %v6973_v33  ;;  %vm17250_vm13 = vcmp.lt.f32.partialorder %v6989_v14, 0.0004427343 }
 0x43c   :  { %21089 = vst [vmem:[#allocation18_spill] sm:$0xff] %v17248_v52  ;;  %12358 = vlog2.f32 %v7271_v47  ;;  %v12353_v59 = vpop.eup %12352  ;;  %vm17254_vm6 = vcmp.lt.f32.partialorder %v7880_v8, 0.0004427343  ;;  %v7255_v11 = vmul.f32 0.6931472, %v12351_v19  ;;  %v7274_v37 = vmul.f32 -0.5, %v17071_v30 }
 0x43d   :  { %12360 = vlog2.f32 %v7541_v45  ;;  %v7544_v29 = vmul.f32 -0.5, %v17084_v28  ;;  %v7858_v57 = vmul.f32 0.6931472, %v12353_v59  ;;  %v6988_v23 = vmul.f32 %v17053_v56, %v6987_v16  ;;  %v21095_v16 = vld [vmem:[#allocation28_spill] sm:$0xff] }
 0x43e   :  { %v7277_v38 = vand.u32 2147483647, %v17071_v30  ;;  %v7829_v21 = vadd.f32 1.0, %v17120_v17  ;;  %v17266_v49 = vsel %vm6450_vm12, %v17001_v53, %v8115_v46  ;;  %v7879_v62 = vmul.f32 %v12349_v5, %v7878_v0 }
 0x43f   :  { %21094 = vst [vmem:[#allocation9_spill] sm:$0xff] %v17266_v49  ;;  %v7261_v19 = vsel %vm17238_vm9, %v7258_v9, %v7255_v11  ;;  %v7832_v14 = vmul.f32 -0.5, %v17120_v17  ;;  %v12355_v8 = vpop.eup %12354  ;;  %v7864_v33 = vsel %vm17231_vm14, %v7861_v42, %v7858_v57  ;;  %vm6482_vm10 = vcmp.gt.f32.partialorder %v17076_v44, 20.0  ;;  %v21109_v44 = vld [vmem:[#allocation33_spill] sm:$0xff] }
 0x440   :  { %v8078_v56 = vmul.f32 0.01, %v7261_v19  ;;  %v8174_v47 = vsel %vm6381_vm0, %v21095_v16, %v8046_v55  ;;  %12362 = vlog2.f32 %v7829_v21  ;;  %v8145_v53 = vmul.f32 0.01, %v7864_v33 }
 0x441   :  { %v6985_v1 = vmul.f32 0.6931472, %v12355_v8  ;;  %v7275_v5 = vadd.f32 1.0, %v7274_v37  ;;  %v7545_v46 = vadd.f32 1.0, %v7544_v29  ;;  %vm6383_vm3 = vcmp.gt.f32.partialorder %v16630_v34, 20.0  ;;  %v21101_v8 = vld [vmem:[#allocation54_spill] sm:$0xff] }
 0x442   :  { %v8206_v9 = vsel %vm6413_vm15, %v16667_v40, %v8078_v56  ;;  %v7547_v51 = vand.u32 2147483647, %v17084_v28  ;;  %v7559_v42 = vadd.f32 1.0, %v17089_v2  ;;  %v17285_v0 = vadd.f32 %v21096_v20, %v15737_v61 }
 0x443   :  { %v12357_v13 = vpop.eup %12356  ;;  %vm6415_vm1 = vcmp.gt.f32.partialorder %v16946_v27, 20.0  ;;  %v17291_v45 = vsel %vm6480_vm11, %v17031_v41, %v8145_v53  ;;  %v11763_v55 = vpack.c.bf16 %v8206_v9, %v8174_v47  ;;  %v7833_v59 = vadd.f32 1.0, %v7832_v14  ;;  %v21100_v14 = vld [vmem:[#allocation43_spill] sm:$0xff]  ;;  %v21108_v9 = vld [vmem:[#allocation44_spill] sm:$0xff] }
 0x444   :  { %21097 = vst [vmem:[#allocation32_spill] sm:$0xff] %v17291_v45  ;;  %v7835_v40 = vand.u32 2147483647, %v17120_v17  ;;  %v7876_v11 = vmul.f32 0.6931472, %v12357_v13  ;;  %v6991_v37 = vsel %vm17250_vm13, %v6988_v23, %v6985_v1  ;;  %12364 = vlog2.f32 %v7559_v42 }
 0x445   :  { %11764 = vmatprep.subr.bf16.mxu0 %v11763_v55  ;;  %v7276_v29 = vmul.f32 %v17071_v30, %v7275_v5  ;;  %vm17299_vm2 = vcmp.lt.f32.partialorder %v7277_v38, 0.0004427343  ;;  %v7546_v41 = vmul.f32 %v17084_v28, %v7545_v46  ;;  %v7847_v36 = vadd.f32 1.0, %v17129_v54 }
 0x446   :  { %v12359_v21 = vpop.eup %12358  ;;  %v7882_v19 = vsel %vm17254_vm6, %v7879_v62, %v7876_v11  ;;  %v21102_v3 = vpack.c.bf16 %v21100_v14, %v21101_v8  ;;  %vm17310_vm7 = vcmp.lt.f32.partialorder %v7547_v51, 0.0004427343  ;;  %v7562_v30 = vmul.f32 -0.5, %v17089_v2 }
 0x447   :  { %v17316_v38 = vmul.f32 100.0, %v17285_v0  ;;  %v12361_v28 = vpop.eup %12360  ;;  %vm6445_vm5 = vcmp.gt.f32.partialorder %v16952_v10, 20.0  ;;  %vm6477_vm8 = vcmp.gt.f32.partialorder %v16990_v4, 20.0  ;;  %v8147_v18 = vmul.f32 0.01, %v7882_v19 }
 0x448   :  { %11766 = vmatpush1.bf16.msra.mxu0 %v21102_v3  ;;  %v7273_v62 = vmul.f32 0.6931472, %v12359_v21  ;;  %v8048_v33 = vmul.f32 0.01, %v6991_v37  ;;  %12366 = vlog2.f32 %v7847_v36  ;;  %v7543_v56 = vmul.f32 0.6931472, %v12361_v28 }
 0x449   :  { %v7834_v16 = vmul.f32 %v17120_v17, %v7833_v59  ;;  %vm17321_vm12 = vcmp.lt.f32.partialorder %v7835_v40, 0.0004427343  ;;  %v7565_v53 = vand.u32 2147483647, %v17089_v2  ;;  %v17329_v1 = vsel %vm6482_vm10, %v17058_v24, %v8147_v18  ;;  %v21110_v36 = vld [vmem:[#allocation45_spill] sm:$0xff]  ;;  %v21111_v21 = vld [vmem:[#allocation12_spill] sm:$0xff] }
 0x44a   :  { %21107 = vst [vmem:[#allocation39_spill] sm:$0xff] %v17329_v1  ;;  %v7279_v5 = vsel %vm17299_vm2, %v7276_v29, %v7273_v62  ;;  %v6516_v46 = vmin.f32 %v17316_v38, 20.0  ;;  %v17336_v51 = vadd.f32 %v21108_v9, %v15737_v61  ;;  %v12363_v17 = vpop.eup %12362  ;;  %v7549_v13 = vsel %vm17310_vm7, %v7546_v41, %v7543_v56  ;;  %v21113_v62 = vld [vmem:[#allocation53_spill] sm:$0xff] }
 0x44b   :  { %v8080_v20 = vmul.f32 0.01, %v7279_v5  ;;  %v7850_v24 = vmul.f32 -0.5, %v17129_v54  ;;  %v8176_v55 = vsel %vm6383_vm3, %v21109_v44, %v8048_v33  ;;  %v7831_v59 = vmul.f32 0.6931472, %v12363_v17  ;;  %v21116_v5 = vld [vmem:[#allocation19_spill] sm:$0xff] }
 0x44c   :  { %v7563_v40 = vadd.f32 1.0, %v7562_v30  ;;  %v6660_v11 = vmul.f32 1.442695, %v6516_v46  ;;  %v8110_v29 = vmul.f32 0.01, %v7549_v13  ;;  %v17350_v57 = vmul.f32 100.0, %v17336_v51 }
 0x44d   :  { %v8208_v37 = vsel %vm6415_vm1, %v16897_v22, %v8080_v20  ;;  %v17354_v41 = vadd.f32 %v21110_v36, %v15783_v58  ;;  %v17358_v19 = vadd.f32 %v21111_v21, %v15789_v31  ;;  %v7837_v14 = vsel %vm17321_vm12, %v7834_v16, %v7831_v59  ;;  %v21115_v16 = vld [vmem:[#allocation55_spill] sm:$0xff]  ;;  %v21117_v17 = vld [vmem:[#allocation21_spill] sm:$0xff] }
 0x44e   :  { %v11771_v34 = vpack.c.bf16 %v8208_v37, %v8176_v55  ;;  %12368 = vpow2.f32 %v6660_v11  ;;  %v12365_v8 = vpop.eup %12364  ;;  %vm6447_vm0 = vcmp.gt.f32.partialorder %v16959_v15, 20.0  ;;  %vm6479_vm15 = vcmp.gt.f32.partialorder %v17006_v60, 20.0  ;;  %v21120_v55 = vld [vmem:[#allocation17_spill] sm:$0xff]  ;;  %v21136_v15 = vld [vmem:[#allocation47_spill] sm:$0xff] }
 0x44f   :  { %21112 = vst [vmem:[#allocation14_spill] sm:$0xff] %v17358_v19  ;;  %v8142_v22 = vmul.f32 0.01, %v7837_v14  ;;  %v7851_v27 = vadd.f32 1.0, %v7850_v24  ;;  %v7853_v3 = vand.u32 2147483647, %v17129_v54  ;;  %v7564_v28 = vmul.f32 %v17089_v2, %v7563_v40 }
 0x450   :  { %v6518_v23 = vmin.f32 %v17350_v57, 20.0  ;;  %11772 = vmatprep.subr.bf16.mxu1 %v11771_v34  ;;  %v7561_v30 = vmul.f32 0.6931472, %v12365_v8  ;;  %v17368_v18 = vmul.f32 100.0, %v17354_v41  ;;  %v17372_v33 = vadd.f32 %v21113_v62, %v15783_v58  ;;  %v21123_v14 = vld [vmem:[#allocation3_spill] sm:$0xff]  ;;  %v21128_v62 = vld [vmem:[#allocation42_spill] sm:$0xff] }
 0x451   :  { %v21114_v56 = vpack.c.bf16 %v16737_v35, %v16691_v50  ;;  %v8238_v47 = vsel %vm6445_vm5, %v21115_v16, %v8110_v29  ;;  %v8270_v46 = vsel %vm6477_vm8, %v21116_v5, %v8142_v22  ;;  %vm7566_vm14 = vcmp.lt.f32.partialorder %v7565_v53, 0.0004427343  ;;  %v21119_v35 = vld [vmem:[#allocation25_spill] sm:$0xff] }
 0x452   :  { %v6664_v2 = vmul.f32 1.442695, %v6518_v23  ;;  %v12367_v9 = vpop.eup %12366  ;;  %v21118_v20 = vmin.f32 %v21117_v17, 20.0  ;;  %v17386_v24 = vmul.f32 100.0, %v17223_v43  ;;  %v11767_v44 = vpack.c.bf16 %v8270_v46, %v8238_v47  ;;  %v21130_v47 = vld [vmem:[#allocation61_spill] sm:$0xff] }
 0x453   :  { %11774 = vmatpush1.bf16.msra.mxu1 %v21114_v56  ;;  %v7567_v50 = vsel %vm7566_vm14, %v7564_v28, %v7561_v30  ;;  %v17390_v59 = vadd.f32 %v21120_v55, %v21119_v35  ;;  %v7849_v10 = vmul.f32 0.6931472, %v12367_v9  ;;  %v7852_v40 = vmul.f32 %v17129_v54, %v7851_v27  ;;  %v21124_v54 = vld [vmem:[#allocation59_spill] sm:$0xff]  ;;  %v21126_v27 = vld [vmem:[#allocation20_spill] sm:$0xff] }
 0x454   :  { %v6658_v13 = vmul.f32 1.442695, %v21118_v20  ;;  %12370 = vpow2.f32 %v6664_v2  ;;  %11768 = vmatprep.subr.bf16.mxu0 %v11767_v44  ;;  %vm7854_vm11 = vcmp.lt.f32.partialorder %v7853_v3, 0.0004427343  ;;  %v8112_v4 = vmul.f32 0.01, %v7567_v50 }
 0x455   :  { %21121 = vst [vmem:[#allocation28_spill] sm:$0xff] %v17390_v59  ;;  %v6548_v53 = vmin.f32 %v17368_v18, 20.0  ;;  %v17395_v11 = vmul.f32 100.0, %v17372_v33  ;;  %v21122_v37 = vmin.f32 %v17069_v32, 20.0  ;;  %v6547_v36 = vmin.f32 %v17145_v39, 20.0  ;;  %v21131_v2 = vld [vmem:[#allocation63_spill] sm:$0xff] }
 0x456   :  { %v17401_v21 = vmul.f32 100.0, %v17358_v19  ;;  %v7855_v34 = vsel %vm7854_vm11, %v7852_v40, %v7849_v10  ;;  %v21125_v8 = vpack.c.bf16 %v21123_v14, %v21124_v54  ;;  %v6577_v22 = vmin.f32 %v17386_v24, 20.0  ;;  %v21132_v20 = vld [vmem:[#allocation11_spill] sm:$0xff]  ;;  %v21133_v50 = vld [vmem:[#allocation49_spill] sm:$0xff]  ;;  %v21135_v10 = vld [vmem:[#allocation50_spill] sm:$0xff] }
 0x457   :  { %v6718_v29 = vmul.f32 1.442695, %v21122_v37  ;;  %v17409_v3 = vadd.f32 %v21126_v27, %v21119_v35  ;;  %v8144_v23 = vmul.f32 0.01, %v7855_v34  ;;  %v6724_v30 = vmul.f32 1.442695, %v6548_v53 }
 0x458   :  { %11770 = vmatpush1.bf16.msra.mxu0 %v21125_v8  ;;  %v17412_v28 = vmul.f32 100.0, %v17390_v59  ;;  %v17416_v56 = vadd.f32 %v21128_v62, %v15737_v61  ;;  %v6550_v16 = vmin.f32 %v17395_v11, 20.0  ;;  %v17421_v5 = vadd.f32 %v21130_v47, %v15789_v31  ;;  %v17423_v46 = vpop.eup %12368  ;;  %v21139_v62 = vld [vmem:[#allocation5_spill] sm:$0xff]  ;;  %v21140_v47 = vld [vmem:[#allocation2_spill] sm:$0xff] }
 0x459   :  { %21127 = vst [vmem:[#allocation46_spill] sm:$0xff] %v17409_v3  ;;  %v8240_v9 = vsel %vm6447_vm0, %v21131_v2, %v8112_v4  ;;  %v8272_v44 = vsel %vm6479_vm15, %v21132_v20, %v8144_v23  ;;  %v17433_v55 = vadd.f32 %v21133_v50, %v15737_v61  ;;  %12372 = vpow2.f32 %v6724_v30 }
 0x45a   :  { %21129 = vst [vmem:[#allocation43_spill] sm:$0xff] %v17416_v56  ;;  %v6579_v40 = vmin.f32 %v17401_v21, 20.0  ;;  %v11775_v53 = vpack.c.bf16 %v8272_v44, %v8240_v9  ;;  %v7028_v37 = vadd.f32 1.0, %v17423_v46  ;;  %v17441_v4 = vadd.f32 %v21136_v15, %v15789_v31 }
 0x45b   :  { %21134 = vst [vmem:[#allocation54_spill] sm:$0xff] %v17433_v55  ;;  %11207 = vmatmul.mubr.msk.f32.vlgmr.msra.gmra.mrb[212].mxu0 %vm8299_vm4, %v21135_v10  ;;  %v21137_v34 = vmov 0.0   ;;  %12374 = vpow2.f32 %v6658_v13  ;;  %v6722_v60 = vmul.f32 1.442695, %v6547_v36  ;;  %v17445_v14 = vmul.f32 100.0, %v17409_v3 }
 0x45c   :  { %8792 = vmatprep.mubr.f32.mxu0 %v21137_v34  ;;  %v6728_v54 = vmul.f32 1.442695, %v6550_v16  ;;  %12376 = vpow2.f32 %v6718_v29  ;;  %v6782_v8 = vmul.f32 1.442695, %v6577_v22  ;;  %11776 = vmatprep.subr.bf16.mxu1 %v11775_v53  ;;  %v17448_v27 = vmul.f32 100.0, %v17416_v56 }
 0x45d   :  { %v17451_v23 = vmul.f32 100.0, %v17421_v5  ;;  %v6609_v30 = vmin.f32 %v17412_v28, 20.0  ;;  %v21141_v2 = vpack.c.bf16 %v21139_v62, %v21140_v47  ;;  %v17458_v13 = vmul.f32 100.0, %v17433_v55 }
 0x45e   :  { %21138 = vst [vmem:[#allocation44_spill] sm:$0xff] %v17448_v27  ;;  %12378 = vpow2.f32 %v6728_v54  ;;  %v17460_v36 = vpop.eup %12370  ;;  %v6786_v29 = vmul.f32 1.442695, %v6579_v40  ;;  %v17464_v16 = vmul.f32 100.0, %v17441_v4  ;;  %v6611_v9 = vmin.f32 %v17445_v14, 20.0 }
 0x45f   :  { %11778 = vmatpush1.bf16.msra.mxu1 %v21141_v2  ;;  %21142 = vst [vmem:[#allocation33_spill] sm:$0xff] %v17458_v13  ;;  %12380 = vlog2.f32 %v7028_v37  ;;  %v6580_v22 = vmin.f32 %v17451_v23, 20.0  ;;  %v7046_v20 = vadd.f32 1.0, %v17460_v36  ;;  %v6517_v44 = vmin.f32 %v17448_v27, 20.0  ;;  %v17473_v40 = vld [vmem:[%s19829_s1 + $0x88] sm:$0x1f] }
 0x460   :  { %12382 = vpow2.f32 %v6722_v60  ;;  %v6582_v10 = vmin.f32 %v17464_v16, 20.0  ;;  %21143 = vst [vmem:[#allocation45_spill] sm:$0xff] %v17473_v40  ;;  %v6846_v53 = vmul.f32 1.442695, %v6609_v30  ;;  %v6519_v37 = vmin.f32 %v17458_v13, 20.0  ;;  %v21144_v60 = vld [vmem:[#allocation51_spill] sm:$0xff] }
 0x461   :  { %12384 = vpow2.f32 %v6782_v8  ;;  %v6788_v50 = vmul.f32 1.442695, %v6580_v22  ;;  %v17481_v54 = vadd.f32 %v21144_v60, %v21119_v35  ;;  %v6850_v62 = vmul.f32 1.442695, %v6611_v9  ;;  %v21145_v60 = vld [vmem:[#allocation57_spill] sm:$0xff]  ;;  %v17510_v13 = vpop.f32.mrb[160].mxu0 }
 0x462   :  { %11208 = vmatmul.mubr.msk.f32.vlgmr.msra.gmra.mrb[212].mxu1 %vm8299_vm4, %v17473_v40  ;;  %12386 = vlog2.f32 %v7046_v20  ;;  %v6792_v15 = vmul.f32 1.442695, %v6582_v10  ;;  %v7031_v47 = vmul.f32 -0.5, %v17423_v46  ;;  %v6662_v2 = vmul.f32 1.442695, %v6517_v44  ;;  %v21147_v44 = vld [vmem:[#allocation41_spill] sm:$0xff] }
 0x463   :  { %8863 = vmatprep.mubr.f32.mxu1 %v21137_v34  ;;  %12388 = vpow2.f32 %v6786_v29  ;;  %v17483_v8 = vpop.eup %12372  ;;  %v6666_v20 = vmul.f32 1.442695, %v6519_v37  ;;  %v17490_v29 = vmul.f32 100.0, %v17481_v54  ;;  %v17496_v9 = vadd.f32 %v21145_v60, %v15783_v58  ;;  %21148 = vst [vmem:[#allocation53_spill] sm:$0xff] %v17510_v13 }
 0x464   :  { %12390 = vpow2.f32 %v6788_v50  ;;  %v7316_v30 = vadd.f32 1.0, %v17483_v8  ;;  %v7049_v37 = vmul.f32 -0.5, %v17460_v36  ;;  %vm6388_vm9 = vcmp.gt.f32.partialorder %v17316_v38, 20.0  ;;  %v17596_v38 = vpop.f32.mrb[161].mxu0 }
 0x465   :  { %12392 = vpow2.f32 %v6792_v15  ;;  %v17487_v22 = vpop.eup %12374  ;;  %21146 = vst [vmem:[#allocation12_spill] sm:$0xff] %v17496_v9  ;;  %v17502_v15 = vadd.f32 %v21147_v44, %v21119_v35  ;;  %v6612_v60 = vmin.f32 %v17490_v29, 20.0  ;;  %v7034_v44 = vand.u32 2147483647, %v17423_v46  ;;  %21157 = vst [vmem:[#allocation21_spill] sm:$0xff] %v17596_v38 }
 0x466   :  { %12394 = vpow2.f32 %v6846_v53  ;;  %v17492_v10 = vpop.eup %12376  ;;  %v7032_v53 = vadd.f32 1.0, %v7031_v47  ;;  %v7052_v47 = vand.u32 2147483647, %v17460_v36  ;;  %v7050_v34 = vadd.f32 1.0, %v7049_v37 }
 0x467   :  { %12396 = vlog2.f32 %v7316_v30  ;;  %v7319_v30 = vmul.f32 -0.5, %v17483_v8  ;;  %v6852_v12 = vmul.f32 1.442695, %v6612_v60  ;;  %v17524_v49 = vmul.f32 100.0, %v17502_v15 }
 0x468   :  { %v17498_v50 = vpop.eup %12378  ;;  %12398 = vpow2.f32 %v6850_v62  ;;  %v7033_v1 = vmul.f32 %v17423_v46, %v7032_v53  ;;  %vm6420_vm13 = vcmp.gt.f32.partialorder %v17368_v18, 20.0  ;;  %vm17542_vm6 = vcmp.lt.f32.partialorder %v7034_v44, 0.0004427343 }
 0x469   :  { %v12381_v42 = vpop.eup %12380  ;;  %12400 = vpow2.f32 %v6662_v2  ;;  %v7334_v7 = vadd.f32 1.0, %v17498_v50  ;;  %v17517_v2 = vmul.f32 100.0, %v17496_v9  ;;  %v21152_v9 = vld [vmem:[#allocation16_spill] sm:$0xff]  ;;  %v7320_v60 = vadd.f32 1.0, %v7319_v30 }
 0x46a   :  { %v17506_v55 = vpop.eup %12382  ;;  %12402 = vpow2.f32 %v6666_v20  ;;  %v7030_v27 = vmul.f32 0.6931472, %v12381_v42  ;;  %v21150_v20 = vld [vmem:[#allocation48_spill] sm:$0xff]  ;;  %v17532_v40 = vadd.f32 %v21152_v9, %v15789_v31  ;;  %v6614_v3 = vmin.f32 %v17524_v49, 20.0 }
 0x46b   :  { %v17512_v62 = vpop.eup %12384  ;;  %12404 = vlog2.f32 %v7334_v7  ;;  %21149 = vst [vmem:[#allocation55_spill] sm:$0xff] %v17517_v2  ;;  %v17521_v25 = vadd.f32 %v21150_v20, %v15783_v58  ;;  %v7337_v7 = vmul.f32 -0.5, %v17498_v50  ;;  %v7322_v20 = vand.u32 2147483647, %v17483_v8 }
 0x46c   :  { %v12387_v56 = vpop.eup %12386  ;;  %12406 = vpow2.f32 %v6852_v12  ;;  %v6549_v37 = vmin.f32 %v17517_v2, 20.0  ;;  %v7036_v30 = vsel %vm17542_vm6, %v7033_v1, %v7030_v27  ;;  %vm17552_vm10 = vcmp.lt.f32.partialorder %v7052_v47, 0.0004427343 }
 0x46d   :  { %21151 = vst [vmem:[#allocation19_spill] sm:$0xff] %v17521_v25  ;;  %v17526_v13 = vpop.eup %12388  ;;  %v7048_v9 = vmul.f32 0.6931472, %v12387_v56  ;;  %v17557_v45 = vmul.f32 100.0, %v17521_v25  ;;  %vm6390_vm3 = vcmp.gt.f32.partialorder %v17350_v57, 20.0  ;;  %v7051_v56 = vmul.f32 %v17460_v36, %v7050_v34 }
 0x46e   :  { %v17534_v42 = vpop.eup %12390  ;;  %v7338_v2 = vadd.f32 1.0, %v7337_v7  ;;  %v6856_v43 = vmul.f32 1.442695, %v6614_v3  ;;  %v7321_v27 = vmul.f32 %v17483_v8, %v7320_v60  ;;  %vm7323_vm1 = vcmp.lt.f32.partialorder %v7322_v20, 0.0004427343 }
 0x46f   :  { %v17540_v46 = vpop.eup %12392  ;;  %v7604_v19 = vadd.f32 1.0, %v17534_v42  ;;  %vm6422_vm2 = vcmp.gt.f32.partialorder %v17395_v11, 20.0  ;;  %v8053_v53 = vmul.f32 0.01, %v7036_v30  ;;  %v7054_v25 = vsel %vm17552_vm10, %v7051_v56, %v7048_v9 }
 0x470   :  { %v17548_v52 = vpop.eup %12394  ;;  %v7622_v44 = vadd.f32 1.0, %v17540_v46  ;;  %v7340_v34 = vand.u32 2147483647, %v17498_v50  ;;  %v17573_v36 = vmul.f32 1.442695, %v6549_v37  ;;  %v7001_v8 = vadd.f32 1.0, %v17140_v63 }
 0x471   :  { %v12397_v59 = vpop.eup %12396  ;;  %12408 = vlog2.f32 %v7604_v19  ;;  %v7339_v20 = vmul.f32 %v17498_v50, %v7338_v2  ;;  %v7610_v30 = vand.u32 2147483647, %v17534_v42  ;;  %v7289_v9 = vadd.f32 1.0, %v17492_v10  ;;  %v17592_v2 = vpop.f32.mrb[160].mxu1 }
 0x472   :  { %v17562_v35 = vpop.eup %12398  ;;  %v7318_v1 = vmul.f32 0.6931472, %v12397_v59  ;;  %12410 = vlog2.f32 %v7622_v44  ;;  %v7607_v59 = vmul.f32 -0.5, %v17534_v42  ;;  %v8055_v12 = vmul.f32 0.01, %v7054_v25 }
 0x473   :  { %v17566_v47 = vpop.eup %12400  ;;  %12412 = vpow2.f32 %v6856_v43  ;;  %v7625_v43 = vmul.f32 -0.5, %v17540_v46  ;;  %v17584_v37 = vsel %vm6388_vm9, %v17285_v0, %v8053_v53  ;;  %vm7341_vm7 = vcmp.lt.f32.partialorder %v7340_v34, 0.0004427343  ;;  %v17598_v0 = vpop.f32.mrb[161].mxu1 }
 0x474   :  { %v17571_v19 = vpop.eup %12402  ;;  %v7324_v3 = vsel %vm7323_vm1, %v7321_v27, %v7318_v1  ;;  %12414 = vlog2.f32 %v7001_v8  ;;  %v7628_v50 = vand.u32 2147483647, %v17540_v46  ;;  %21158 = vst [vmem:[#allocation17_spill] sm:$0xff] %v17598_v0  ;;  %vm17600_vm5 = vcmp.lt.f32.partialorder %v7610_v30, 0.0004427343  ;;  %v17619_v1 = vpop.f32.mrb[162].mxu1 }
 0x475   :  { %v12405_v7 = vpop.eup %12404  ;;  %v8085_v60 = vmul.f32 0.01, %v7324_v3  ;;  %v7608_v3 = vadd.f32 1.0, %v7607_v59  ;;  %12416 = vlog2.f32 %v7289_v9  ;;  %v7004_v34 = vmul.f32 -0.5, %v17140_v63  ;;  %21163 = vst [vmem:[#allocation20_spill] sm:$0xff] %v17619_v1  ;;  %v17635_v57 = vpop.f32.mrb[163].mxu1 }
 0x476   :  { %v7336_v44 = vmul.f32 0.6931472, %v12405_v7  ;;  %v12407_v25 = vpop.eup %12406  ;;  %v17608_v8 = vsel %vm6390_vm3, %v17336_v51, %v8055_v12  ;;  %v7626_v7 = vadd.f32 1.0, %v7625_v43  ;;  %vm17624_vm8 = vcmp.lt.f32.partialorder %v7628_v50, 0.0004427343  ;;  %21167 = vst [vmem:[#allocation61_spill] sm:$0xff] %v17635_v57 }
 0x477   :  { %v17589_v56 = vsel %vm6420_vm13, %v17354_v41, %v8085_v60  ;;  %v7892_v18 = vadd.f32 1.0, %v12407_v25  ;;  %21161 = vst [vmem:[#allocation3_spill] sm:$0xff] %v17608_v8  ;;  %v7895_v59 = vmul.f32 -0.5, %v12407_v25  ;;  %v7007_v60 = vand.u32 2147483647, %v17140_v63 }
 0x478   :  { %v7342_v27 = vsel %vm7341_vm7, %v7339_v20, %v7336_v44  ;;  %v7898_v9 = vand.u32 2147483647, %v12407_v25  ;;  %v7292_v44 = vmul.f32 -0.5, %v17492_v10  ;;  %vm6452_vm12 = vcmp.gt.f32.partialorder %v17451_v23, 20.0 }
 0x479   :  { %v8087_v53 = vmul.f32 0.01, %v7342_v27  ;;  %12418 = vlog2.f32 %v7892_v18  ;;  %v17617_v27 = vpop.f32.mrb[162].mxu0  ;;  %v7005_v1 = vadd.f32 1.0, %v7004_v34  ;;  %v7019_v38 = vadd.f32 1.0, %v17487_v22 }
 0x47a   :  { %v7896_v50 = vadd.f32 1.0, %v7895_v59  ;;  %vm17639_vm0 = vcmp.lt.f32.partialorder %v7007_v60, 0.0004427343  ;;  %vm6417_vm14 = vcmp.gt.f32.partialorder %v17069_v32, 20.0  ;;  %vm6454_vm11 = vcmp.gt.f32.partialorder %v17464_v16, 20.0 }
 0x47b   :  { %v12409_v20 = vpop.eup %12408  ;;  %v17614_v30 = vsel %vm6422_vm2, %v17372_v33, %v8087_v53  ;;  %v17628_v33 = vpop.f32.mrb[163].mxu0  ;;  %v7609_v53 = vmul.f32 %v17534_v42, %v7608_v3  ;;  %vm17648_vm9 = vcmp.lt.f32.partialorder %v7898_v9, 0.0004427343  ;;  %v7295_v41 = vand.u32 2147483647, %v17492_v10 }
 0x47c   :  { %21162 = vst [vmem:[#allocation59_spill] sm:$0xff] %v17614_v30  ;;  %v12411_v51 = vpop.eup %12410  ;;  %v7606_v43 = vmul.f32 0.6931472, %v12409_v20  ;;  %21166 = vst [vmem:[#allocation42_spill] sm:$0xff] %v17628_v33  ;;  %v7627_v20 = vmul.f32 %v17540_v46, %v7626_v7  ;;  %v21170_v33 = vld [vmem:[#allocation13_spill] sm:$0xff]  ;;  %v7293_v46 = vadd.f32 1.0, %v7292_v44  ;;  %v7006_v44 = vmul.f32 %v17140_v63, %v7005_v1 }
 0x47d   :  { %v17630_v11 = vpop.eup %12412  ;;  %v7624_v18 = vmul.f32 0.6931472, %v12411_v51  ;;  %vm6385_vm15 = vcmp.gt.f32.partialorder %v21170_v33, 20.0  ;;  %v17652_v34 = vpop.f32.mrb[164].mxu0  ;;  %vm6484_vm13 = vcmp.gt.f32.partialorder %v17490_v29, 20.0  ;;  %v7897_v0 = vmul.f32 %v12407_v25, %v7896_v50 }
 0x47e   :  { %v7910_v12 = vadd.f32 1.0, %v17630_v11  ;;  %v7612_v42 = vsel %vm17600_vm5, %v7609_v53, %v7606_v43  ;;  %21173 = vst [vmem:[#allocation63_spill] sm:$0xff] %v17652_v34  ;;  %v17654_v7 = vpop.f32.mrb[164].mxu1  ;;  %v12415_v59 = vpop.eup %12414  ;;  %v7913_v51 = vmul.f32 -0.5, %v17630_v11  ;;  %v7916_v9 = vand.u32 2147483647, %v17630_v11 }
 0x47f   :  { %21174 = vst [vmem:[#allocation11_spill] sm:$0xff] %v17654_v7  ;;  %v7630_v60 = vsel %vm17624_vm8, %v7627_v20, %v7624_v18  ;;  %v17660_v43 = vpop.f32.mrb[165].mxu0  ;;  %v7003_v53 = vmul.f32 0.6931472, %v12415_v59  ;;  %v17664_v57 = vpop.f32.mrb[165].mxu1  ;;  %v7307_v18 = vadd.f32 1.0, %v17506_v55  ;;  %v7294_v59 = vmul.f32 %v17492_v10, %v7293_v46 }
 0x480   :  { %12420 = vlog2.f32 %v7910_v12  ;;  %21175 = vst [vmem:[#allocation49_spill] sm:$0xff] %v17660_v43  ;;  %21176 = vst [vmem:[#allocation50_spill] sm:$0xff] %v17664_v57  ;;  %v12417_v7 = vpop.eup %12416  ;;  %v8117_v34 = vmul.f32 0.01, %v7612_v42  ;;  %v7022_v12 = vmul.f32 -0.5, %v17487_v22  ;;  %v17672_v63 = vpop.f32.mrb[166].mxu0  ;;  %v21190_v29 = vpack.c.bf16 %v17157_v26, %v17152_v48 }
 0x481   :  { %12422 = vlog2.f32 %v7019_v38  ;;  %v8119_v20 = vmul.f32 0.01, %v7630_v60  ;;  %v7009_v43 = vsel %vm17639_vm0, %v7006_v44, %v7003_v53  ;;  %v7291_v30 = vmul.f32 0.6931472, %v12417_v7  ;;  %21177 = vst [vmem:[#allocation47_spill] sm:$0xff] %v17672_v63  ;;  %v17674_v1 = vpop.f32.mrb[166].mxu1 }
 0x482   :  { %21178 = vst [vmem:[#allocation5_spill] sm:$0xff] %v17674_v1  ;;  %v7914_v38 = vadd.f32 1.0, %v7913_v51  ;;  %vm7296_vm6 = vcmp.lt.f32.partialorder %v7295_v41, 0.0004427343  ;;  %v8050_v42 = vmul.f32 0.01, %v7009_v43  ;;  %12424 = vlog2.f32 %v7307_v18 }
 0x483   :  { %v12419_v25 = vpop.eup %12418  ;;  %vm17676_vm10 = vcmp.lt.f32.partialorder %v7916_v9, 0.0004427343  ;;  %v7297_v60 = vsel %vm7296_vm6, %v7294_v59, %v7291_v30  ;;  %v7310_v8 = vmul.f32 -0.5, %v17506_v55  ;;  %v7577_v7 = vadd.f32 1.0, %v17512_v62  ;;  %v17682_v53 = vpop.f32.mrb[167].mxu0 }
 0x484   :  { %21181 = vst [vmem:[#allocation2_spill] sm:$0xff] %v17682_v53  ;;  %v17684_v10 = vpop.f32.mrb[167].mxu1  ;;  %v17689_v46 = vsel %vm6452_vm12, %v17421_v5, %v8117_v34  ;;  %v7894_v51 = vmul.f32 0.6931472, %v12419_v25  ;;  %v8082_v41 = vmul.f32 0.01, %v7297_v60  ;;  %v17694_v30 = vsel %vm6454_vm11, %v17441_v4, %v8119_v20 }
 0x485   :  { %21182 = vst [vmem:[#allocation51_spill] sm:$0xff] %v17684_v10  ;;  %21183 = vst [vmem:[#allocation57_spill] sm:$0xff] %v17689_v46  ;;  %v7023_v43 = vadd.f32 1.0, %v7022_v12  ;;  %vm6486_vm3 = vcmp.gt.f32.partialorder %v17524_v49, 20.0  ;;  %v7025_v9 = vand.u32 2147483647, %v17487_v22  ;;  %12426 = vlog2.f32 %v7577_v7 }
 0x486   :  { %21184 = vst [vmem:[#allocation41_spill] sm:$0xff] %v17694_v30  ;;  %v7580_v44 = vmul.f32 -0.5, %v17512_v62  ;;  %v7900_v23 = vsel %vm17648_vm9, %v7897_v0, %v7894_v51  ;;  %v21185_v5 = vld [vmem:[#allocation24_spill] sm:$0xff]  ;;  %v7865_v4 = vadd.f32 1.0, %v17548_v52  ;;  %v7311_v59 = vadd.f32 1.0, %v7310_v8  ;;  %v17946_v10 = vpop.f32.mrb[184].mxu0 }
 0x487   :  { %v8178_v34 = vsel %vm6385_vm15, %v21185_v5, %v8050_v42  ;;  %v21186_v12 = vld [vmem:[#allocation56_spill] sm:$0xff]  ;;  %v8149_v18 = vmul.f32 0.01, %v7900_v23  ;;  %v7313_v25 = vand.u32 2147483647, %v17506_v55  ;;  %v7915_v7 = vmul.f32 %v17630_v11, %v7914_v38  ;;  %v21198_v23 = vld [vmem:[#allocation6_spill] sm:$0xff] }
 0x488   :  { %v8210_v16 = vsel %vm6417_vm14, %v21186_v12, %v8082_v41  ;;  %12428 = vlog2.f32 %v7865_v4  ;;  %v7868_v3 = vmul.f32 -0.5, %v17548_v52  ;;  %v7595_v33 = vadd.f32 1.0, %v17526_v13 }
 0x489   :  { %v11779_v20 = vpack.c.bf16 %v8210_v16, %v8178_v34  ;;  %vm6387_vm1 = vcmp.gt.f32.partialorder %v21117_v17, 20.0  ;;  %vm6419_vm2 = vcmp.gt.f32.partialorder %v17145_v39, 20.0  ;;  %v17717_v32 = vsel %vm6484_vm13, %v17481_v54, %v8149_v18  ;;  %v21196_v18 = vld [vmem:[#allocation35_spill] sm:$0xff] }
 0x48a   :  { %v12421_v60 = vpop.eup %12420  ;;  %21187 = vst [vmem:[#allocation48_spill] sm:$0xff] %v17717_v32  ;;  %v7581_v8 = vadd.f32 1.0, %v7580_v44  ;;  %v7583_v11 = vand.u32 2147483647, %v17512_v62  ;;  %v7024_v41 = vmul.f32 %v17487_v22, %v7023_v43  ;;  %vm17723_vm7 = vcmp.lt.f32.partialorder %v7025_v9, 0.0004427343 }
 0x48b   :  { %v12423_v0 = vpop.eup %12422  ;;  %v7912_v42 = vmul.f32 0.6931472, %v12421_v60  ;;  %11780 = vmatprep.subr.bf16.mxu0 %v11779_v20  ;;  %v7312_v44 = vmul.f32 %v17506_v55, %v7311_v59  ;;  %vm17733_vm5 = vcmp.lt.f32.partialorder %v7313_v25, 0.0004427343  ;;  %12430 = vlog2.f32 %v7595_v33 }
 0x48c   :  { %v7021_v51 = vmul.f32 0.6931472, %v12423_v0  ;;  %11782 = vmatpush1.bf16.msra.mxu0 %v21190_v29  ;;  %v12425_v34 = vpop.eup %12424  ;;  %v7869_v9 = vadd.f32 1.0, %v7868_v3  ;;  %v7883_v12 = vadd.f32 1.0, %v17562_v35  ;;  %v7582_v26 = vmul.f32 %v17512_v62, %v7581_v8 }
 0x48d   :  { %v7918_v54 = vsel %vm17676_vm10, %v7915_v7, %v7912_v42  ;;  %v7309_v48 = vmul.f32 0.6931472, %v12425_v34  ;;  %vm17741_vm8 = vcmp.lt.f32.partialorder %v7583_v11, 0.0004427343  ;;  %v7598_v55 = vmul.f32 -0.5, %v17526_v13  ;;  %v21197_v11 = vld [vmem:[#allocation60_spill] sm:$0xff] }
 0x48e   :  { %v8151_v22 = vmul.f32 0.01, %v7918_v54  ;;  %v7027_v43 = vsel %vm17723_vm7, %v7024_v41, %v7021_v51  ;;  %12432 = vlog2.f32 %v7883_v12  ;;  %v17753_v20 = vadd.f32 %v21196_v18, %v15737_v61  ;;  %v21201_v18 = vld [vmem:[#allocation4_spill] sm:$0xff] }
 0x48f   :  { %v8052_v4 = vmul.f32 0.01, %v7027_v43  ;;  %v12427_v59 = vpop.eup %12426  ;;  %vm6449_vm12 = vcmp.gt.f32.partialorder %v17386_v24, 20.0  ;;  %vm6481_vm0 = vcmp.gt.f32.partialorder %v17412_v28, 20.0  ;;  %v7315_v25 = vsel %vm17733_vm5, %v7312_v44, %v7309_v48 }
 0x490   :  { %v17749_v16 = vsel %vm6486_vm3, %v17502_v15, %v8151_v22  ;;  %v7871_v49 = vand.u32 2147483647, %v17548_v52  ;;  %v7601_v15 = vand.u32 2147483647, %v17526_v13  ;;  %v8084_v60 = vmul.f32 0.01, %v7315_v25 }
 0x491   :  { %21195 = vst [vmem:[#allocation16_spill] sm:$0xff] %v17749_v16  ;;  %v7579_v7 = vmul.f32 0.6931472, %v12427_v59  ;;  %v7870_v3 = vmul.f32 %v17548_v52, %v7869_v9  ;;  %v17765_v33 = vmul.f32 100.0, %v17753_v20  ;;  %v7599_v0 = vadd.f32 1.0, %v7598_v55  ;;  %v21199_v52 = vld [vmem:[#allocation37_spill] sm:$0xff] }
 0x492   :  { %v7886_v42 = vmul.f32 -0.5, %v17562_v35  ;;  %v17770_v8 = vadd.f32 %v17127_v6, %v15737_v61  ;;  %v17774_v51 = vadd.f32 %v21197_v11, %v15783_v58  ;;  %v12429_v41 = vpop.eup %12428  ;;  %v8180_v29 = vsel %vm6387_vm1, %v21198_v23, %v8052_v4  ;;  %v21200_v4 = vld [vmem:[#allocation7_spill] sm:$0xff] }
 0x493   :  { %v8212_v54 = vsel %vm6419_vm2, %v21199_v52, %v8084_v60  ;;  %v7585_v44 = vsel %vm17741_vm8, %v7582_v26, %v7579_v7  ;;  %v6520_v5 = vmin.f32 %v17765_v33, 20.0  ;;  %v7867_v34 = vmul.f32 0.6931472, %v12429_v41  ;;  %v21203_v7 = vld [vmem:[#allocation62_spill] sm:$0xff]  ;;  %v21205_v41 = vld [vmem:[#allocation25_spill] sm:$0xff]  ;;  %v21208_v52 = vld [vmem:[#allocation28_spill] sm:$0xff] }
 0x494   :  { %v11787_v6 = vpack.c.bf16 %v8212_v54, %v8180_v29  ;;  %vm7872_vm15 = vcmp.lt.f32.partialorder %v7871_v49, 0.0004427343  ;;  %v17786_v22 = vmul.f32 100.0, %v17770_v8  ;;  %v17789_v43 = vmul.f32 100.0, %v17532_v40  ;;  %21239 = vst [vmem:[#allocation25_spill] sm:$0xff] %v17946_v10 }
 0x495   :  { %v8114_v17 = vmul.f32 0.01, %v7585_v44  ;;  %v6668_v9 = vmul.f32 1.442695, %v6520_v5  ;;  %v17792_v12 = vmul.f32 100.0, %v17774_v51  ;;  %v12431_v39 = vpop.eup %12430  ;;  %vm6451_vm14 = vcmp.gt.f32.partialorder %v17401_v21, 20.0 }
 0x496   :  { %vm6483_vm11 = vcmp.gt.f32.partialorder %v17445_v14, 20.0  ;;  %11788 = vmatprep.subr.bf16.mxu1 %v11787_v6  ;;  %v7873_v48 = vsel %vm7872_vm15, %v7870_v3, %v7867_v34  ;;  %v7600_v26 = vmul.f32 %v17526_v13, %v7599_v0  ;;  %v7887_v50 = vadd.f32 1.0, %v7886_v42  ;;  %v21206_v3 = vld [vmem:[#allocation52_spill] sm:$0xff]  ;;  %v21207_v42 = vld [vmem:[#allocation22_spill] sm:$0xff] }
 0x497   :  { %v6522_v55 = vmin.f32 %v17786_v22, 20.0  ;;  %v21202_v59 = vpack.c.bf16 %v21200_v4, %v21201_v18  ;;  %v8146_v25 = vmul.f32 0.01, %v7873_v48  ;;  %v7597_v49 = vmul.f32 0.6931472, %v12431_v39  ;;  %v21209_v48 = vld [vmem:[#allocation27_spill] sm:$0xff] }
 0x498   :  { %v7889_v60 = vand.u32 2147483647, %v17562_v35  ;;  %12434 = vpow2.f32 %v6668_v9  ;;  %v17804_v11 = vadd.f32 %v21203_v7, %v15789_v31  ;;  %v17808_v23 = vadd.f32 %v21206_v3, %v21205_v41  ;;  %v12433_v0 = vpop.eup %12432  ;;  %v21213_v18 = vld [vmem:[#allocation32_spill] sm:$0xff]  ;;  %v21218_v3 = vld [vmem:[#allocation30_spill] sm:$0xff] }
 0x499   :  { %11790 = vmatpush1.bf16.msra.mxu1 %v21202_v59  ;;  %vm7602_vm9 = vcmp.lt.f32.partialorder %v7601_v15, 0.0004427343  ;;  %v6672_v13 = vmul.f32 1.442695, %v6522_v55  ;;  %v8242_v29 = vsel %vm6449_vm12, %v21207_v42, %v8114_v17  ;;  %v8274_v54 = vsel %vm6481_vm0, %v21208_v52, %v8146_v25  ;;  %v21214_v59 = vld [vmem:[#allocation18_spill] sm:$0xff] }
 0x49a   :  { %21204 = vst [vmem:[#allocation13_spill] sm:$0xff] %v17804_v11  ;;  %v7603_v44 = vsel %vm7602_vm9, %v7600_v26, %v7597_v49  ;;  %v6552_v5 = vmin.f32 %v17792_v12, 20.0  ;;  %v11783_v6 = vpack.c.bf16 %v8274_v54, %v8242_v29  ;;  %v7885_v34 = vmul.f32 0.6931472, %v12433_v0  ;;  %v21211_v26 = vld [vmem:[#allocation8_spill] sm:$0xff]  ;;  %v21216_v49 = vld [vmem:[#allocation29_spill] sm:$0xff] }
 0x49b   :  { %v7888_v9 = vmul.f32 %v17562_v35, %v7887_v50  ;;  %12436 = vpow2.f32 %v6672_v13  ;;  %vm7890_vm13 = vcmp.lt.f32.partialorder %v7889_v60, 0.0004427343  ;;  %v8116_v15 = vmul.f32 0.01, %v7603_v44  ;;  %v21219_v29 = vld [vmem:[#allocation58_spill] sm:$0xff]  ;;  %v21221_v54 = vld [vmem:[#allocation31_spill] sm:$0xff] }
 0x49c   :  { %v6732_v39 = vmul.f32 1.442695, %v6552_v5  ;;  %v17820_v55 = vadd.f32 %v21209_v48, %v15783_v58  ;;  %v21210_v24 = vmin.f32 %v17557_v45, 20.0  ;;  %v17825_v28 = vmul.f32 100.0, %v17804_v11  ;;  %11784 = vmatprep.subr.bf16.mxu0 %v11783_v6  ;;  %v21222_v5 = vld [vmem:[#allocation14_spill] sm:$0xff] }
 0x49d   :  { %v17829_v4 = vadd.f32 %v21211_v26, %v21205_v41  ;;  %v7891_v35 = vsel %vm7890_vm13, %v7888_v9, %v7885_v34  ;;  %v21215_v25 = vpack.c.bf16 %v21213_v18, %v21214_v59  ;;  %v17836_v60 = vadd.f32 %v21216_v49, %v15737_v61  ;;  %v21223_v34 = vld [vmem:[#allocation46_spill] sm:$0xff] }
 0x49e   :  { %v6730_v17 = vmul.f32 1.442695, %v21210_v24  ;;  %v8148_v50 = vmul.f32 0.01, %v7891_v35  ;;  %v17839_v7 = vmul.f32 100.0, %v17820_v55  ;;  %v17843_v13 = vadd.f32 %v21218_v3, %v15789_v31  ;;  %v21224_v35 = vld [vmem:[#allocation45_spill] sm:$0xff] }
 0x49f   :  { %21212 = vst [vmem:[#allocation24_spill] sm:$0xff] %v17829_v4  ;;  %11786 = vmatpush1.bf16.msra.mxu0 %v21215_v25  ;;  %21217 = vst [vmem:[#allocation56_spill] sm:$0xff] %v17836_v60  ;;  %v6581_v0 = vmin.f32 %v17789_v43, 20.0  ;;  %v17847_v42 = vmul.f32 100.0, %v17808_v23  ;;  %v17851_v52 = vadd.f32 %v21219_v29, %v15737_v61  ;;  %v17855_v44 = vadd.f32 %v21221_v54, %v15789_v31  ;;  %v21227_v3 = vld [vmem:[#allocation39_spill] sm:$0xff]  ;;  %v21228_v29 = vld [vmem:[#allocation9_spill] sm:$0xff] }
 0x4a0   :  { %v8244_v6 = vsel %vm6451_vm14, %v21222_v5, %v8116_v15  ;;  %v8276_v9 = vsel %vm6483_vm11, %v21223_v34, %v8148_v50  ;;  %12438 = vpow2.f32 %v6732_v39  ;;  %v6554_v48 = vmin.f32 %v17839_v7, 20.0 }
 0x4a1   :  { %21220 = vst [vmem:[#allocation35_spill] sm:$0xff] %v17851_v52  ;;  %12440 = vpow2.f32 %v17573_v36  ;;  %v6583_v24 = vmin.f32 %v17825_v28, 20.0  ;;  %v11791_v26 = vpack.c.bf16 %v8276_v9, %v8244_v6  ;;  %v17871_v21 = vmul.f32 100.0, %v17829_v4  ;;  %v21240_v4 = vld [vmem:[#allocation36_spill] sm:$0xff] }
 0x4a2   :  { %11209 = vmatmul.mubr.msk.f32.vlgmr.msra.gmra.mrb[214].mxu0 %vm8299_vm4, %v21224_v35  ;;  %v17868_v18 = vpop.eup %12434  ;;  %v17874_v15 = vmul.f32 100.0, %v17836_v60  ;;  %v6736_v14 = vmul.f32 1.442695, %v6554_v48  ;;  %v17877_v39 = vmul.f32 100.0, %v17843_v13  ;;  %v21226_v50 = vmov 0.0  }
 0x4a3   :  { %8934 = vmatprep.mubr.f32.mxu0 %v21226_v50  ;;  %12442 = vpow2.f32 %v6730_v17  ;;  %v6790_v36 = vmul.f32 1.442695, %v6581_v0  ;;  %11792 = vmatprep.subr.bf16.mxu1 %v11791_v26  ;;  %v7064_v59 = vadd.f32 1.0, %v17868_v18  ;;  %v17882_v25 = vmul.f32 100.0, %v17855_v44  ;;  %v21231_v0 = vld [vmem:[#allocation38_spill] sm:$0xff] }
 0x4a4   :  { %21225 = vst [vmem:[#allocation60_spill] sm:$0xff] %v17874_v15  ;;  %v6613_v49 = vmin.f32 %v17847_v42, 20.0  ;;  %v21229_v54 = vpack.c.bf16 %v21227_v3, %v21228_v29  ;;  %v17889_v5 = vmul.f32 100.0, %v17851_v52  ;;  %12444 = vpow2.f32 %v6736_v14  ;;  %v21233_v29 = vld [vmem:[#allocation40_spill] sm:$0xff] }
 0x4a5   :  { %v6584_v6 = vmin.f32 %v17877_v39, 20.0  ;;  %v17892_v17 = vpop.eup %12436  ;;  %12446 = vlog2.f32 %v7064_v59  ;;  %v17896_v34 = vadd.f32 %v21231_v0, %v15783_v58  ;;  %v6794_v9 = vmul.f32 1.442695, %v6583_v24 }
 0x4a6   :  { %11794 = vmatpush1.bf16.msra.mxu1 %v21229_v54  ;;  %21230 = vst [vmem:[#allocation6_spill] sm:$0xff] %v17889_v5  ;;  %v6615_v48 = vmin.f32 %v17871_v21, 20.0  ;;  %v7082_v26 = vadd.f32 1.0, %v17892_v17  ;;  %v6521_v3 = vmin.f32 %v17874_v15, 20.0  ;;  %12448 = vpow2.f32 %v6790_v36 }
 0x4a7   :  { %21232 = vst [vmem:[#allocation37_spill] sm:$0xff] %v17896_v34  ;;  %v17903_v14 = vadd.f32 %v21233_v29, %v15783_v58  ;;  %v6796_v54 = vmul.f32 1.442695, %v6584_v6  ;;  %v6586_v62 = vmin.f32 %v17882_v25, 20.0  ;;  %v6854_v59 = vmul.f32 1.442695, %v6613_v49 }
 0x4a8   :  { %12450 = vlog2.f32 %v7082_v26  ;;  %v6523_v24 = vmin.f32 %v17889_v5, 20.0  ;;  %v17911_v0 = vmul.f32 100.0, %v17896_v34  ;;  %v21236_v29 = vld [vmem:[#allocation34_spill] sm:$0xff]  ;;  %v6858_v52 = vmul.f32 1.442695, %v6615_v48  ;;  %v21237_v49 = vld [vmem:[#allocation23_spill] sm:$0xff] }
 0x4a9   :  { %21234 = vst [vmem:[#allocation7_spill] sm:$0xff] %v17903_v14  ;;  %11210 = vmatmul.mubr.msk.f32.vlgmr.msra.gmra.mrb[214].mxu1 %vm8299_vm4, %v21224_v35  ;;  %12452 = vpow2.f32 %v6796_v54  ;;  %v6800_v36 = vmul.f32 1.442695, %v6586_v62  ;;  %v17915_v38 = vadd.f32 %v21236_v29, %v21205_v41  ;;  %v6670_v35 = vmul.f32 1.442695, %v6521_v3 }
 0x4aa   :  { %9005 = vmatprep.mubr.f32.mxu1 %v21226_v50  ;;  %21235 = vst [vmem:[#allocation4_spill] sm:$0xff] %v17911_v0  ;;  %v17917_v6 = vpop.eup %12438  ;;  %12454 = vpow2.f32 %v6794_v9  ;;  %v17921_v26 = vadd.f32 %v21237_v49, %v21205_v41  ;;  %v7067_v34 = vmul.f32 -0.5, %v17868_v18  ;;  %v17928_v62 = vmul.f32 100.0, %v17903_v14 }
 0x4ab   :  { %v17923_v5 = vpop.eup %12440  ;;  %v7352_v54 = vadd.f32 1.0, %v17917_v6  ;;  %12456 = vpow2.f32 %v6800_v36  ;;  %v6674_v29 = vmul.f32 1.442695, %v6523_v24  ;;  %v17931_v9 = vmul.f32 100.0, %v17915_v38 }
 0x4ac   :  { %21238 = vst [vmem:[#allocation62_spill] sm:$0xff] %v17928_v62  ;;  %12458 = vpow2.f32 %v6854_v59  ;;  %v6553_v3 = vmin.f32 %v17911_v0, 20.0  ;;  %v7085_v60 = vmul.f32 -0.5, %v17892_v17  ;;  %v17940_v15 = vmul.f32 100.0, %v17921_v26 }
 0x4ad   :  { %v17933_v48 = vpop.eup %12442  ;;  %12460 = vlog2.f32 %v7352_v54  ;;  %v7068_v36 = vadd.f32 1.0, %v7067_v34  ;;  %v6555_v24 = vmin.f32 %v17928_v62, 20.0  ;;  %v7355_v54 = vmul.f32 -0.5, %v17917_v6 }
 0x4ae   :  { %v17936_v49 = vpop.eup %12444  ;;  %12462 = vpow2.f32 %v6858_v52  ;;  %v6616_v0 = vmin.f32 %v17931_v9, 20.0  ;;  %v7070_v53 = vand.u32 2147483647, %v17868_v18  ;;  %v7088_v57 = vand.u32 2147483647, %v17892_v17 }
 0x4af   :  { %v12447_v14 = vpop.eup %12446  ;;  %12464 = vpow2.f32 %v6670_v35  ;;  %v7370_v59 = vadd.f32 1.0, %v17936_v49  ;;  %v6734_v34 = vmul.f32 1.442695, %v6553_v3  ;;  %v7086_v63 = vadd.f32 1.0, %v7085_v60 }
 0x4b0   :  { %12466 = vpow2.f32 %v6674_v29  ;;  %v17948_v52 = vpop.eup %12448  ;;  %v7066_v1 = vmul.f32 0.6931472, %v12447_v14  ;;  %v6860_v30 = vmul.f32 1.442695, %v6616_v0  ;;  %v6618_v29 = vmin.f32 %v17940_v15, 20.0 }
 0x4b1   :  { %12468 = vlog2.f32 %v7370_v59  ;;  %v7069_v16 = vmul.f32 %v17868_v18, %v7068_v36  ;;  %v7373_v10 = vmul.f32 -0.5, %v17936_v49  ;;  %v17957_v50 = vmul.f32 1.442695, %v6555_v24 }
 0x4b2   :  { %v12451_v35 = vpop.eup %12450  ;;  %v17961_v11 = vadd.f32 %v21240_v4, %v15789_v31  ;;  %vm6392_vm6 = vcmp.gt.f32.partialorder %v17765_v33, 20.0  ;;  %vm6424_vm10 = vcmp.gt.f32.partialorder %v17792_v12, 20.0  ;;  %v7356_v60 = vadd.f32 1.0, %v7355_v54  ;;  %v18032_v33 = vpop.f32.mrb[185].mxu0 }
 0x4b3   :  { %v17953_v62 = vpop.eup %12452  ;;  %v7358_v14 = vand.u32 2147483647, %v17917_v6  ;;  %12470 = vpow2.f32 %v6860_v30  ;;  %vm17971_vm3 = vcmp.lt.f32.partialorder %v7070_v53, 0.0004427343  ;;  %v7084_v4 = vmul.f32 0.6931472, %v12451_v35 }
 0x4b4   :  { %21241 = vst [vmem:[#allocation52_spill] sm:$0xff] %v17961_v11  ;;  %v17963_v59 = vpop.eup %12454  ;;  %v7640_v0 = vadd.f32 1.0, %v17953_v62  ;;  %12472 = vpow2.f32 %v6734_v34  ;;  %v6864_v36 = vmul.f32 1.442695, %v6618_v29  ;;  %v7072_v46 = vsel %vm17971_vm3, %v7069_v16, %v7066_v1  ;;  %21251 = vst [vmem:[#allocation8_spill] sm:$0xff] %v18032_v33 }
 0x4b5   :  { %v17969_v18 = vpop.eup %12456  ;;  %v7087_v54 = vmul.f32 %v17892_v17, %v7086_v63  ;;  %vm17980_vm1 = vcmp.lt.f32.partialorder %v7088_v57, 0.0004427343  ;;  %vm6394_vm2 = vcmp.gt.f32.partialorder %v17786_v22, 20.0  ;;  %v7374_v53 = vadd.f32 1.0, %v7373_v10 }
 0x4b6   :  { %v17975_v24 = vpop.eup %12458  ;;  %12474 = vlog2.f32 %v7640_v0  ;;  %v7658_v35 = vadd.f32 1.0, %v17969_v18  ;;  %v17987_v34 = vmul.f32 100.0, %v17961_v11  ;;  %v7357_v63 = vmul.f32 %v17917_v6, %v7356_v60  ;;  %v21249_v60 = vld [vmem:[#allocation26_spill] sm:$0xff] }
 0x4b7   :  { %v12461_v30 = vpop.eup %12460  ;;  %12476 = vpow2.f32 %v6864_v36  ;;  %vm7359_vm7 = vcmp.lt.f32.partialorder %v7358_v14, 0.0004427343  ;;  %vm6426_vm5 = vcmp.gt.f32.partialorder %v17839_v7, 20.0  ;;  %v7643_v57 = vmul.f32 -0.5, %v17953_v62 }
 0x4b8   :  { %v17989_v29 = vpop.eup %12462  ;;  %v7354_v1 = vmul.f32 0.6931472, %v12461_v30  ;;  %v8057_v17 = vmul.f32 0.01, %v7072_v46  ;;  %v7090_v10 = vsel %vm17980_vm1, %v7087_v54, %v7084_v4  ;;  %v7376_v0 = vand.u32 2147483647, %v17936_v49 }
 0x4b9   :  { %v17994_v16 = vpop.eup %12464  ;;  %12478 = vlog2.f32 %v7658_v35  ;;  %v21247_v30 = vld [vmem:[#allocation10_spill] sm:$0xff]  ;;  %v18007_v14 = vadd.f32 %v21249_v60, %v21205_v41  ;;  %v7037_v11 = vadd.f32 1.0, %v17566_v47  ;;  %v7375_v32 = vmul.f32 %v17936_v49, %v7374_v53  ;;  %v18024_v49 = vpop.f32.mrb[184].mxu1 }
 0x4ba   :  { %21246 = vst [vmem:[#allocation22_spill] sm:$0xff] %v17994_v16  ;;  %v17999_v3 = vpop.eup %12466  ;;  %v7360_v36 = vsel %vm7359_vm7, %v7357_v63, %v7354_v1  ;;  %v18003_v6 = vadd.f32 %v21247_v30, %v15789_v31  ;;  %v7661_v4 = vmul.f32 -0.5, %v17969_v18  ;;  %v8059_v35 = vmul.f32 0.01, %v7090_v10  ;;  %21250 = vst [vmem:[#allocation27_spill] sm:$0xff] %v18024_v49 }
 0x4bb   :  { %v12469_v46 = vpop.eup %12468  ;;  %v8089_v16 = vmul.f32 0.01, %v7360_v36  ;;  %v7644_v63 = vadd.f32 1.0, %v7643_v57  ;;  %v7325_v30 = vadd.f32 1.0, %v17923_v5  ;;  %v18017_v60 = vsel %vm6392_vm6, %v17753_v20, %v8057_v17  ;;  %v18034_v17 = vpop.f32.mrb[185].mxu1 }
 0x4bc   :  { %21248 = vst [vmem:[#allocation28_spill] sm:$0xff] %v18003_v6  ;;  %v7372_v1 = vmul.f32 0.6931472, %v12469_v46  ;;  %vm7377_vm8 = vcmp.lt.f32.partialorder %v7376_v0, 0.0004427343  ;;  %12480 = vlog2.f32 %v7037_v11  ;;  %v7040_v20 = vmul.f32 -0.5, %v17566_v47 }
 0x4bd   :  { %v18022_v36 = vsel %vm6424_vm10, %v17774_v51, %v8089_v16  ;;  %v18026_v53 = vpop.eup %12470  ;;  %v7646_v46 = vand.u32 2147483647, %v17953_v62  ;;  %21252 = vst [vmem:[#allocation32_spill] sm:$0xff] %v18034_v17  ;;  %v7662_v11 = vadd.f32 1.0, %v7661_v4  ;;  %v7664_v16 = vand.u32 2147483647, %v17969_v18 }
 0x4be   :  { %v7378_v10 = vsel %vm7377_vm8, %v7375_v32, %v7372_v1  ;;  %v18036_v51 = vpop.eup %12472  ;;  %v7928_v0 = vadd.f32 1.0, %v18026_v53  ;;  %v18043_v32 = vsel %vm6394_vm2, %v17770_v8, %v8059_v35  ;;  %v7645_v1 = vmul.f32 %v17953_v62, %v7644_v63  ;;  %v18056_v8 = vpop.f32.mrb[186].mxu0 }
 0x4bf   :  { %v8091_v12 = vmul.f32 0.01, %v7378_v10  ;;  %21253 = vst [vmem:[#allocation18_spill] sm:$0xff] %v18043_v32  ;;  %v7043_v57 = vand.u32 2147483647, %v17566_v47  ;;  %12482 = vlog2.f32 %v7325_v30  ;;  %vm6456_vm12 = vcmp.gt.f32.partialorder %v17877_v39, 20.0 }
 0x4c0   :  { %v12475_v54 = vpop.eup %12474  ;;  %12484 = vlog2.f32 %v7928_v0  ;;  %v7931_v22 = vmul.f32 -0.5, %v18026_v53  ;;  %21255 = vst [vmem:[#allocation30_spill] sm:$0xff] %v18056_v8  ;;  %v18058_v35 = vpop.f32.mrb[186].mxu1  ;;  %vm18062_vm0 = vcmp.lt.f32.partialorder %v7646_v46, 0.0004427343  ;;  %v7041_v7 = vadd.f32 1.0, %v7040_v20 }
 0x4c1   :  { %v18047_v17 = vpop.eup %12476  ;;  %v18052_v4 = vsel %vm6426_vm5, %v17820_v55, %v8091_v12  ;;  %v7642_v10 = vmul.f32 0.6931472, %v12475_v54  ;;  %21256 = vst [vmem:[#allocation58_spill] sm:$0xff] %v18058_v35  ;;  %v18067_v30 = vpop.f32.mrb[187].mxu0  ;;  %v7663_v35 = vmul.f32 %v17969_v18, %v7662_v11  ;;  %v7934_v8 = vand.u32 2147483647, %v18026_v53 }
 0x4c2   :  { %21254 = vst [vmem:[#allocation29_spill] sm:$0xff] %v18052_v4  ;;  %v7946_v55 = vadd.f32 1.0, %v18047_v17  ;;  %21259 = vst [vmem:[#allocation31_spill] sm:$0xff] %v18067_v30  ;;  %v18069_v54 = vpop.f32.mrb[187].mxu1  ;;  %v7328_v46 = vmul.f32 -0.5, %v17923_v5  ;;  %vm6458_vm15 = vcmp.gt.f32.partialorder %v17882_v25, 20.0 }
 0x4c3   :  { %21260 = vst [vmem:[#allocation14_spill] sm:$0xff] %v18069_v54  ;;  %v12479_v12 = vpop.eup %12478  ;;  %v7648_v0 = vsel %vm18062_vm0, %v7645_v1, %v7642_v10  ;;  %v7949_v20 = vmul.f32 -0.5, %v18047_v17  ;;  %v7952_v30 = vand.u32 2147483647, %v18047_v17  ;;  %vm18079_vm14 = vcmp.lt.f32.partialorder %v7664_v16, 0.0004427343 }
 0x4c4   :  { %v7660_v62 = vmul.f32 0.6931472, %v12479_v12  ;;  %12486 = vlog2.f32 %v7946_v55  ;;  %v7932_v63 = vadd.f32 1.0, %v7931_v22  ;;  %vm18083_vm11 = vcmp.lt.f32.partialorder %v7043_v57, 0.0004427343  ;;  %v18092_v33 = vpop.f32.mrb[188].mxu0 }
 0x4c5   :  { %v7055_v18 = vadd.f32 1.0, %v17571_v19  ;;  %v8121_v11 = vmul.f32 0.01, %v7648_v0  ;;  %v7042_v55 = vmul.f32 %v17566_v47, %v7041_v7  ;;  %v7331_v12 = vand.u32 2147483647, %v17923_v5  ;;  %21265 = vst [vmem:[#allocation46_spill] sm:$0xff] %v18092_v33 }
 0x4c6   :  { %v7666_v10 = vsel %vm18079_vm14, %v7663_v35, %v7660_v62  ;;  %v18094_v16 = vpop.f32.mrb[188].mxu1  ;;  %v12481_v32 = vpop.eup %12480  ;;  %v21267_v22 = vld [vmem:[#allocation44_spill] sm:$0xff]  ;;  %v21268_v57 = vld [vmem:[#allocation55_spill] sm:$0xff]  ;;  %vm18098_vm6 = vcmp.lt.f32.partialorder %v7934_v8, 0.0004427343  ;;  %v7329_v0 = vadd.f32 1.0, %v7328_v46  ;;  %v7933_v46 = vmul.f32 %v18026_v53, %v7932_v63 }
 0x4c7   :  { %21266 = vst [vmem:[#allocation45_spill] sm:$0xff] %v18094_v16  ;;  %vm6389_vm9 = vcmp.gt.f32.partialorder %v21267_v22, 20.0  ;;  %vm6421_vm13 = vcmp.gt.f32.partialorder %v21268_v57, 20.0  ;;  %12488 = vlog2.f32 %v7055_v18  ;;  %v7058_v35 = vmul.f32 -0.5, %v17571_v19  ;;  %v18103_v47 = vpop.f32.mrb[189].mxu0  ;;  %v18105_v62 = vpop.f32.mrb[189].mxu1 }
 0x4c8   :  { %21271 = vst [vmem:[#allocation39_spill] sm:$0xff] %v18103_v47  ;;  %21272 = vst [vmem:[#allocation9_spill] sm:$0xff] %v18105_v62  ;;  %vm6488_vm10 = vcmp.gt.f32.partialorder %v17931_v9, 20.0  ;;  %v7950_v7 = vadd.f32 1.0, %v7949_v20  ;;  %vm18108_vm3 = vcmp.lt.f32.partialorder %v7952_v30, 0.0004427343  ;;  %v18121_v30 = vsel %vm6456_vm12, %v17843_v13, %v8121_v11 }
 0x4c9   :  { %v7039_v16 = vmul.f32 0.6931472, %v12481_v32  ;;  %v7343_v8 = vadd.f32 1.0, %v17933_v48  ;;  %v8123_v33 = vmul.f32 0.01, %v7666_v10  ;;  %v7613_v49 = vadd.f32 1.0, %v17948_v52  ;;  %v12483_v62 = vpop.eup %12482 }
 0x4ca   :  { %v7061_v18 = vand.u32 2147483647, %v17571_v19  ;;  %v18116_v47 = vpop.f32.mrb[190].mxu0  ;;  %vm18125_vm1 = vcmp.lt.f32.partialorder %v7331_v12, 0.0004427343  ;;  %v18129_v53 = vpop.f32.mrb[190].mxu1  ;;  %v7330_v39 = vmul.f32 %v17923_v5, %v7329_v0  ;;  %v7951_v1 = vmul.f32 %v18047_v17, %v7950_v7 }
 0x4cb   :  { %21275 = vst [vmem:[#allocation38_spill] sm:$0xff] %v18116_v47  ;;  %v7045_v32 = vsel %vm18083_vm11, %v7042_v55, %v7039_v16  ;;  %12490 = vlog2.f32 %v7343_v8  ;;  %21278 = vst [vmem:[#allocation40_spill] sm:$0xff] %v18129_v53  ;;  %v18131_v63 = vpop.f32.mrb[191].mxu0  ;;  %v12485_v10 = vpop.eup %12484  ;;  %vm6490_vm2 = vcmp.gt.f32.partialorder %v17940_v15, 20.0  ;;  %v7327_v47 = vmul.f32 0.6931472, %v12483_v62 }
 0x4cc   :  { %21279 = vst [vmem:[#allocation34_spill] sm:$0xff] %v18131_v63  ;;  %v7059_v13 = vadd.f32 1.0, %v7058_v35  ;;  %12492 = vlog2.f32 %v7613_v49  ;;  %v7930_v11 = vmul.f32 0.6931472, %v12485_v10  ;;  %v8054_v55 = vmul.f32 0.01, %v7045_v32 }
 0x4cd   :  { %v7346_v12 = vmul.f32 -0.5, %v17933_v48  ;;  %v18137_v16 = vpop.f32.mrb[191].mxu1  ;;  %v18142_v8 = vsel %vm6458_vm15, %v17855_v44, %v8123_v33  ;;  %v7333_v62 = vsel %vm18125_vm1, %v7330_v39, %v7327_v47  ;;  %vm18146_vm7 = vcmp.lt.f32.partialorder %v7061_v18, 0.0004427343  ;;  %v21284_v18 = vld [vmem:[#allocation43_spill] sm:$0xff]  ;;  %v21285_v20 = vld [vmem:[#allocation12_spill] sm:$0xff] }
 0x4ce   :  { %21280 = vst [vmem:[#allocation23_spill] sm:$0xff] %v18137_v16  ;;  %21281 = vst [vmem:[#allocation36_spill] sm:$0xff] %v18142_v8  ;;  %v7901_v49 = vadd.f32 1.0, %v17975_v24  ;;  %v12487_v17 = vpop.eup %12486  ;;  %v7936_v0 = vsel %vm18098_vm6, %v7933_v46, %v7930_v11  ;;  %v8086_v35 = vmul.f32 0.01, %v7333_v62  ;;  %v7616_v25 = vmul.f32 -0.5, %v17948_v52 }
 0x4cf   :  { %v7349_v7 = vand.u32 2147483647, %v17933_v48  ;;  %v8153_v44 = vmul.f32 0.01, %v7936_v0  ;;  %v7948_v33 = vmul.f32 0.6931472, %v12487_v17  ;;  %v8182_v32 = vsel %vm6389_vm9, %v21284_v18, %v8054_v55 }
 0x4d0   :  { %12494 = vlog2.f32 %v7901_v49  ;;  %v7904_v47 = vmul.f32 -0.5, %v17975_v24  ;;  %v8214_v10 = vsel %vm6421_vm13, %v21285_v20, %v8086_v35  ;;  %v7347_v4 = vadd.f32 1.0, %v7346_v12  ;;  %v21286_v11 = vld [vmem:[#allocation33_spill] sm:$0xff] }
 0x4d1   :  { %v7631_v46 = vadd.f32 1.0, %v17963_v59  ;;  %v12489_v39 = vpop.eup %12488  ;;  %vm6391_vm5 = vcmp.gt.f32.partialorder %v21286_v11, 20.0  ;;  %vm6423_vm8 = vcmp.gt.f32.partialorder %v17557_v45, 20.0  ;;  %v18168_v62 = vsel %vm6488_vm10, %v17915_v38, %v8153_v44 }
 0x4d2   :  { %v7954_v22 = vsel %vm18108_vm3, %v7951_v1, %v7948_v33  ;;  %v11795_v55 = vpack.c.bf16 %v8214_v10, %v8182_v32  ;;  %v7060_v57 = vmul.f32 %v17571_v19, %v7059_v13  ;;  %v7057_v17 = vmul.f32 0.6931472, %v12489_v39 }
 0x4d3   :  { %v8155_v49 = vmul.f32 0.01, %v7954_v22  ;;  %v7617_v0 = vadd.f32 1.0, %v7616_v25  ;;  %v7619_v35 = vand.u32 2147483647, %v17948_v52  ;;  %v7905_v18 = vadd.f32 1.0, %v7904_v47 }
 0x4d4   :  { %11796 = vmatprep.subr.bf16.mxu0 %v11795_v55  ;;  %12496 = vlog2.f32 %v7631_v46  ;;  %v7919_v38 = vadd.f32 1.0, %v17989_v29  ;;  %v7063_v19 = vsel %vm18146_vm7, %v7060_v57, %v7057_v17  ;;  %v7348_v13 = vmul.f32 %v17933_v48, %v7347_v4  ;;  %v21296_v17 = vld [vmem:[#allocation54_spill] sm:$0xff] }
 0x4d5   :  { %v12491_v9 = vpop.eup %12490  ;;  %v18180_v54 = vsel %vm6490_vm2, %v17921_v26, %v8155_v49  ;;  %vm18185_vm12 = vcmp.lt.f32.partialorder %v7349_v7, 0.0004427343  ;;  %v21290_v25 = vpack.c.bf16 %v17589_v56, %v17584_v37  ;;  %v7907_v26 = vand.u32 2147483647, %v17975_v24 }
 0x4d6   :  { %21287 = vst [vmem:[#allocation10_spill] sm:$0xff] %v18180_v54  ;;  %v12493_v44 = vpop.eup %12492  ;;  %v7345_v15 = vmul.f32 0.6931472, %v12491_v9  ;;  %v7634_v5 = vmul.f32 -0.5, %v17963_v59  ;;  %vm6453_vm0 = vcmp.gt.f32.partialorder %v17789_v43, 20.0  ;;  %vm6485_vm15 = vcmp.gt.f32.partialorder %v17847_v42, 20.0 }
 0x4d7   :  { %11798 = vmatpush1.bf16.msra.mxu0 %v21290_v25  ;;  %v8056_v48 = vmul.f32 0.01, %v7063_v19  ;;  %v7615_v7 = vmul.f32 0.6931472, %v12493_v44  ;;  %v7618_v47 = vmul.f32 %v17948_v52, %v7617_v0  ;;  %12498 = vlog2.f32 %v7919_v38  ;;  %v21293_v52 = vld [vmem:[#allocation53_spill] sm:$0xff]  ;;  %v21305_v42 = vld [vmem:[#allocation20_spill] sm:$0xff] }
 0x4d8   :  { %v18200_v37 = vmul.f32 100.0, %v18003_v6  ;;  %v7351_v56 = vsel %vm18185_vm12, %v7348_v13, %v7345_v15  ;;  %vm18204_vm14 = vcmp.lt.f32.partialorder %v7619_v35, 0.0004427343  ;;  %v7906_v20 = vmul.f32 %v17975_v24, %v7905_v18  ;;  %v21297_v35 = vld [vmem:[#allocation19_spill] sm:$0xff]  ;;  %v21303_v43 = vld [vmem:[#allocation21_spill] sm:$0xff] }
 0x4d9   :  { %v8088_v10 = vmul.f32 0.01, %v7351_v56  ;;  %v7621_v4 = vsel %vm18204_vm14, %v7618_v47, %v7615_v7  ;;  %v7922_v46 = vmul.f32 -0.5, %v17989_v29  ;;  %v18214_v39 = vadd.f32 %v21293_v52, %v15737_v61  ;;  %v21300_v47 = vld [vmem:[#allocation59_spill] sm:$0xff] }
 0x4da   :  { %v12495_v22 = vpop.eup %12494  ;;  %vm18216_vm11 = vcmp.lt.f32.partialorder %v7907_v26, 0.0004427343  ;;  %v7635_v57 = vadd.f32 1.0, %v7634_v5  ;;  %v7637_v49 = vand.u32 2147483647, %v17963_v59  ;;  %v18223_v24 = vadd.f32 %v17592_v2, %v15737_v61  ;;  %v21298_v26 = vld [vmem:[#allocation15_spill] sm:$0xff] }
 0x4db   :  { %v8184_v0 = vsel %vm6391_vm5, %v21296_v17, %v8056_v48  ;;  %v8216_v18 = vsel %vm6423_vm8, %v21297_v35, %v8088_v10  ;;  %v7903_v38 = vmul.f32 0.6931472, %v12495_v22  ;;  %v18232_v9 = vmul.f32 100.0, %v18214_v39  ;;  %v21301_v56 = vld [vmem:[#allocation3_spill] sm:$0xff] }
 0x4dc   :  { %v11803_v19 = vpack.c.bf16 %v8216_v18, %v8184_v0  ;;  %v8118_v13 = vmul.f32 0.01, %v7621_v4  ;;  %v18235_v1 = vmul.f32 100.0, %v18223_v24  ;;  %v18239_v2 = vadd.f32 %v17617_v27, %v15783_v58 }
 0x4dd   :  { %vm6455_vm9 = vcmp.gt.f32.partialorder %v17825_v28, 20.0  ;;  %v18243_v11 = vmul.f32 100.0, %v18007_v14  ;;  %v7909_v45 = vsel %vm18216_vm11, %v7906_v20, %v7903_v38  ;;  %v7923_v25 = vadd.f32 1.0, %v7922_v46  ;;  %v18317_v28 = vld [vmem:[%s19829_s1 + $0x88] sm:$0x1f] }
 0x4de   :  { %v6524_v44 = vmin.f32 %v18232_v9, 20.0  ;;  %v12497_v15 = vpop.eup %12496  ;;  %vm6487_vm13 = vcmp.gt.f32.partialorder %v17871_v21, 20.0  ;;  %v18251_v5 = vadd.f32 %v21298_v26, %v21205_v41  ;;  %11804 = vmatprep.subr.bf16.mxu1 %v11803_v19  ;;  %v8150_v27 = vmul.f32 0.01, %v7909_v45  ;;  %v21306_v45 = vld [vmem:[#allocation48_spill] sm:$0xff] }
 0x4df   :  { %v7925_v48 = vand.u32 2147483647, %v17989_v29  ;;  %v6526_v7 = vmin.f32 %v18235_v1, 20.0  ;;  %v21302_v32 = vpack.c.bf16 %v21300_v47, %v21301_v56  ;;  %v7633_v20 = vmul.f32 0.6931472, %v12497_v15  ;;  %v21309_v15 = vld [vmem:[#allocation17_spill] sm:$0xff] }
 0x4e0   :  { %21299 = vst [vmem:[#allocation26_spill] sm:$0xff] %v18251_v5  ;;  %v7636_v10 = vmul.f32 %v17963_v59, %v7635_v57  ;;  %vm7638_vm6 = vcmp.lt.f32.partialorder %v7637_v49, 0.0004427343  ;;  %v6676_v4 = vmul.f32 1.442695, %v6524_v44  ;;  %v8246_v46 = vsel %vm6453_vm0, %v17532_v40, %v8118_v13  ;;  %v21312_v56 = vld [vmem:[#allocation13_spill] sm:$0xff] }
 0x4e1   :  { %11806 = vmatpush1.bf16.msra.mxu1 %v21302_v32  ;;  %v8278_v52 = vsel %vm6485_vm15, %v17808_v23, %v8150_v27  ;;  %v6680_v22 = vmul.f32 1.442695, %v6526_v7  ;;  %v18266_v55 = vmul.f32 100.0, %v18239_v2  ;;  %v12499_v17 = vpop.eup %12498  ;;  %v7924_v18 = vmul.f32 %v17989_v29, %v7923_v25  ;;  %v21307_v25 = vld [vmem:[#allocation57_spill] sm:$0xff] }
 0x4e2   :  { %v11799_v0 = vpack.c.bf16 %v8278_v52, %v8246_v46  ;;  %v7639_v35 = vsel %vm7638_vm6, %v7636_v10, %v7633_v20  ;;  %12500 = vpow2.f32 %v6676_v4  ;;  %v7921_v59 = vmul.f32 0.6931472, %v12499_v17  ;;  %v21314_v10 = vld [vmem:[#allocation63_spill] sm:$0xff]  ;;  %v21315_v46 = vld [vmem:[#allocation24_spill] sm:$0xff] }
 0x4e3   :  { %v8120_v57 = vmul.f32 0.01, %v7639_v35  ;;  %12502 = vpow2.f32 %v6680_v22  ;;  %v18271_v40 = vadd.f32 %v21303_v43, %v15737_v61  ;;  %vm7926_vm10 = vcmp.lt.f32.partialorder %v7925_v48, 0.0004427343  ;;  %v21316_v17 = vld [vmem:[#allocation11_spill] sm:$0xff] }
 0x4e4   :  { %12504 = vpow2.f32 %v17957_v50  ;;  %11800 = vmatprep.subr.bf16.mxu0 %v11799_v0  ;;  %v6556_v23 = vmin.f32 %v18266_v55, 20.0  ;;  %v18277_v49 = vadd.f32 %v21305_v42, %v15783_v58  ;;  %v6587_v29 = vmin.f32 %v18200_v37, 20.0  ;;  %v21319_v42 = vld [vmem:[#allocation42_spill] sm:$0xff] }
 0x4e5   :  { %21304 = vst [vmem:[#allocation44_spill] sm:$0xff] %v18271_v40  ;;  %v6617_v38 = vmin.f32 %v18243_v11, 20.0  ;;  %v18282_v19 = vmul.f32 100.0, %v18251_v5  ;;  %v7927_v13 = vsel %vm7926_vm10, %v7924_v18, %v7921_v59  ;;  %v21308_v44 = vpack.c.bf16 %v21306_v45, %v21307_v25  ;;  %v21321_v25 = vld [vmem:[#allocation16_spill] sm:$0xff] }
 0x4e6   :  { %v8152_v50 = vmul.f32 0.01, %v7927_v13  ;;  %v18289_v26 = vadd.f32 %v21309_v15, %v15737_v61  ;;  %v6740_v27 = vmul.f32 1.442695, %v6556_v23  ;;  %v18292_v48 = vmul.f32 100.0, %v18277_v49  ;;  %v21324_v15 = vld [vmem:[#allocation61_spill] sm:$0xff] }
 0x4e7   :  { %11802 = vmatpush1.bf16.msra.mxu0 %v21308_v44  ;;  %v21311_v7 = vmin.f32 %v17987_v34, 20.0  ;;  %v8248_v32 = vsel %vm6455_vm9, %v21312_v56, %v8120_v57  ;;  %v18300_v20 = vmul.f32 100.0, %v18271_v40  ;;  %v18304_v4 = vadd.f32 %v21314_v10, %v15789_v31  ;;  %v21322_v44 = vld [vmem:[#allocation41_spill] sm:$0xff] }
 0x4e8   :  { %21310 = vst [vmem:[#allocation55_spill] sm:$0xff] %v18289_v26  ;;  %v8280_v52 = vsel %vm6487_vm13, %v21315_v46, %v8152_v50  ;;  %12506 = vpow2.f32 %v6740_v27  ;;  %v6558_v22 = vmin.f32 %v18292_v48, 20.0  ;;  %v18312_v0 = vadd.f32 %v21316_v17, %v15789_v31 }
 0x4e9   :  { %v6798_v47 = vmul.f32 1.442695, %v21311_v7  ;;  %21313 = vst [vmem:[#allocation43_spill] sm:$0xff] %v18300_v20  ;;  %v6802_v35 = vmul.f32 1.442695, %v6587_v29  ;;  %v6619_v21 = vmin.f32 %v18282_v19, 20.0  ;;  %v11807_v59 = vpack.c.bf16 %v8280_v52, %v8248_v32 }
 0x4ea   :  { %11211 = vmatmul.mubr.msk.f32.vlgmr.msra.gmra.mrb[216].mxu0 %vm8299_vm4, %v18317_v28  ;;  %v6862_v18 = vmul.f32 1.442695, %v6617_v38  ;;  %v21317_v57 = vmov 0.0   ;;  %v18324_v43 = vmul.f32 100.0, %v18289_v26  ;;  %v6744_v23 = vmul.f32 1.442695, %v6558_v22 }
 0x4eb   :  { %9076 = vmatprep.mubr.f32.mxu0 %v21317_v57  ;;  %v18328_v13 = vadd.f32 %v21319_v42, %v15783_v58  ;;  %v18331_v45 = vmul.f32 100.0, %v18304_v4  ;;  %12508 = vpow2.f32 %v6798_v47  ;;  %11808 = vmatprep.subr.bf16.mxu1 %v11807_v59  ;;  %v6525_v29 = vmin.f32 %v18300_v20, 20.0 }
 0x4ec   :  { %21318 = vst [vmem:[#allocation12_spill] sm:$0xff] %v18324_v43  ;;  %v18334_v38 = vpop.eup %12500  ;;  %v21323_v50 = vpack.c.bf16 %v21321_v25, %v21322_v44  ;;  %12510 = vpow2.f32 %v6744_v23  ;;  %v18341_v27 = vadd.f32 %v21324_v15, %v15783_v58  ;;  %v18345_v56 = vmul.f32 100.0, %v18312_v0  ;;  %v21328_v15 = vld [vmem:[#allocation49_spill] sm:$0xff] }
 0x4ed   :  { %21320 = vst [vmem:[#allocation33_spill] sm:$0xff] %v18328_v13  ;;  %v6588_v7 = vmin.f32 %v18331_v45, 20.0  ;;  %v18347_v47 = vpop.eup %12502  ;;  %12512 = vpow2.f32 %v6802_v35  ;;  %v6866_v32 = vmul.f32 1.442695, %v6619_v21  ;;  %v7100_v10 = vadd.f32 1.0, %v18334_v38 }
 0x4ee   :  { %11810 = vmatpush1.bf16.msra.mxu1 %v21323_v50  ;;  %21325 = vst [vmem:[#allocation53_spill] sm:$0xff] %v18341_v27  ;;  %v18350_v46 = vpop.eup %12504  ;;  %12514 = vpow2.f32 %v6862_v18  ;;  %v7118_v52 = vadd.f32 1.0, %v18347_v47  ;;  %v6527_v22 = vmin.f32 %v18324_v43, 20.0  ;;  %v18355_v17 = vmul.f32 100.0, %v18328_v13 }
 0x4ef   :  { %12516 = vlog2.f32 %v7100_v10  ;;  %v6678_v59 = vmul.f32 1.442695, %v6525_v29  ;;  %v6804_v23 = vmul.f32 1.442695, %v6588_v7  ;;  %v18360_v35 = vmul.f32 100.0, %v18341_v27 }
 0x4f0   :  { %21326 = vst [vmem:[#allocation54_spill] sm:$0xff] %v18355_v17  ;;  %12518 = vlog2.f32 %v7118_v52  ;;  %v6590_v21 = vmin.f32 %v18345_v56, 20.0  ;;  %v6682_v42 = vmul.f32 1.442695, %v6527_v22  ;;  %v6557_v25 = vmin.f32 %v18355_v17, 20.0 }
 0x4f1   :  { %11212 = vmatmul.mubr.msk.f32.vlgmr.msra.gmra.mrb[216].mxu1 %vm8299_vm4, %v18317_v28  ;;  %21327 = vst [vmem:[#allocation19_spill] sm:$0xff] %v18360_v35  ;;  %12520 = vpow2.f32 %v6866_v32  ;;  %v7103_v44 = vmul.f32 -0.5, %v18334_v38  ;;  %v18371_v7 = vadd.f32 %v21328_v15, %v15789_v31  ;;  %v6559_v10 = vmin.f32 %v18360_v35, 20.0  ;;  %v21330_v32 = vld [vmem:[#allocation47_spill] sm:$0xff] }
 0x4f2   :  { %9147 = vmatprep.mubr.f32.mxu1 %v21317_v57  ;;  %v18364_v18 = vpop.eup %12506  ;;  %12522 = vpow2.f32 %v6804_v23  ;;  %v6808_v29 = vmul.f32 1.442695, %v6590_v21  ;;  %v18376_v52 = vadd.f32 %v21330_v32, %v21205_v41  ;;  %v7106_v23 = vand.u32 2147483647, %v18334_v38 }
 0x4f3   :  { %12524 = vpow2.f32 %v6678_v59  ;;  %v7388_v50 = vadd.f32 1.0, %v18364_v18  ;;  %21329 = vst [vmem:[#allocation15_spill] sm:$0xff] %v18371_v7  ;;  %v7121_v21 = vmul.f32 -0.5, %v18347_v47  ;;  %v21331_v59 = vld [vmem:[#allocation5_spill] sm:$0xff]  ;;  %v6742_v12 = vmul.f32 1.442695, %v6557_v25 }
 0x4f4   :  { %12526 = vpow2.f32 %v6808_v29  ;;  %v18384_v33 = vadd.f32 %v21331_v59, %v21205_v41  ;;  %v18389_v29 = vmul.f32 100.0, %v18376_v52  ;;  %v7104_v27 = vadd.f32 1.0, %v7103_v44 }
 0x4f5   :  { %v18378_v22 = vpop.eup %12508  ;;  %12528 = vlog2.f32 %v7388_v50  ;;  %v7124_v26 = vand.u32 2147483647, %v18347_v47  ;;  %v18396_v50 = vmul.f32 100.0, %v18371_v7  ;;  %v7391_v59 = vmul.f32 -0.5, %v18364_v18 }
 0x4f6   :  { %v18386_v15 = vpop.eup %12510  ;;  %12530 = vpow2.f32 %v6682_v42  ;;  %v21333_v42 = vld [vmem:[#allocation50_spill] sm:$0xff]  ;;  %v6620_v13 = vmin.f32 %v18389_v29, 20.0  ;;  %v18407_v40 = vmul.f32 100.0, %v18384_v33  ;;  %vm18409_vm3 = vcmp.lt.f32.partialorder %v7106_v23, 0.0004427343 }
 0x4f7   :  { %v18391_v32 = vpop.eup %12512  ;;  %v7406_v35 = vadd.f32 1.0, %v18386_v15  ;;  %21332 = vst [vmem:[#allocation59_spill] sm:$0xff] %v18396_v50  ;;  %v18403_v25 = vadd.f32 %v21333_v42, %v15789_v31  ;;  %v7122_v7 = vadd.f32 1.0, %v7121_v21  ;;  %v6746_v20 = vmul.f32 1.442695, %v6559_v10 }
 0x4f8   :  { %v18398_v43 = vpop.eup %12514  ;;  %v6868_v53 = vmul.f32 1.442695, %v6620_v13  ;;  %v6622_v42 = vmin.f32 %v18407_v40, 20.0  ;;  %v7105_v54 = vmul.f32 %v18334_v38, %v7104_v27  ;;  %vm18417_vm1 = vcmp.lt.f32.partialorder %v7124_v26, 0.0004427343 }
 0x4f9   :  { %21334 = vst [vmem:[#allocation3_spill] sm:$0xff] %v18403_v25  ;;  %v12517_v44 = vpop.eup %12516  ;;  %12532 = vlog2.f32 %v7406_v35  ;;  %v7409_v23 = vmul.f32 -0.5, %v18386_v15  ;;  %vm6396_vm2 = vcmp.gt.f32.partialorder %v18232_v9, 20.0  ;;  %vm6428_vm7 = vcmp.gt.f32.partialorder %v18266_v55, 20.0 }
 0x4fa   :  { %v12519_v16 = vpop.eup %12518  ;;  %v7102_v63 = vmul.f32 0.6931472, %v12517_v44  ;;  %12534 = vpow2.f32 %v6742_v12  ;;  %v7392_v12 = vadd.f32 1.0, %v7391_v59  ;;  %v6589_v13 = vmin.f32 %v18396_v50, 20.0 }
 0x4fb   :  { %v18414_v8 = vpop.eup %12520  ;;  %v7120_v57 = vmul.f32 0.6931472, %v12519_v16  ;;  %12536 = vpow2.f32 %v6868_v53  ;;  %v6872_v35 = vmul.f32 1.442695, %v6622_v42  ;;  %vm6398_vm5 = vcmp.gt.f32.partialorder %v18235_v1, 20.0  ;;  %v21340_v53 = vld [vmem:[#allocation2_spill] sm:$0xff] }
 0x4fc   :  { %v18422_v21 = vpop.eup %12522  ;;  %v7123_v16 = vmul.f32 %v18347_v47, %v7122_v7  ;;  %v7394_v26 = vand.u32 2147483647, %v18364_v18  ;;  %12538 = vpow2.f32 %v6746_v20  ;;  %v7108_v59 = vsel %vm18409_vm3, %v7105_v54, %v7102_v63  ;;  %v21358_v1 = vld [vmem:[#allocation60_spill] sm:$0xff] }
 0x4fd   :  { %v18427_v10 = vpop.eup %12524  ;;  %v7676_v38 = vadd.f32 1.0, %v18422_v21  ;;  %v7412_v44 = vand.u32 2147483647, %v18386_v15  ;;  %12540 = vpow2.f32 %v6872_v35  ;;  %v18440_v42 = vadd.f32 %v21340_v53, %v21205_v41 }
 0x4fe   :  { %21339 = vst [vmem:[#allocation21_spill] sm:$0xff] %v18427_v10  ;;  %v18433_v27 = vpop.eup %12526  ;;  %v7126_v47 = vsel %vm18417_vm1, %v7123_v16, %v7120_v57  ;;  %v7410_v7 = vadd.f32 1.0, %v7409_v23  ;;  %v7393_v63 = vmul.f32 %v18364_v18, %v7392_v12  ;;  %vm6430_vm8 = vcmp.gt.f32.partialorder %v18292_v48, 20.0 }
 0x4ff   :  { %21341 = vst [vmem:[#allocation20_spill] sm:$0xff] %v18440_v42  ;;  %v12529_v50 = vpop.eup %12528  ;;  %12542 = vlog2.f32 %v7676_v38  ;;  %v7694_v20 = vadd.f32 1.0, %v18433_v27  ;;  %v18449_v54 = vmul.f32 1.442695, %v6589_v13  ;;  %v18452_v17 = vmul.f32 100.0, %v18403_v25 }
 0x500   :  { %v18445_v10 = vpop.eup %12530  ;;  %v7390_v6 = vmul.f32 0.6931472, %v12529_v50  ;;  %v8061_v35 = vmul.f32 0.01, %v7108_v59  ;;  %vm7395_vm12 = vcmp.lt.f32.partialorder %v7394_v26, 0.0004427343  ;;  %v7411_v13 = vmul.f32 %v18386_v15, %v7410_v7 }
 0x501   :  { %21342 = vst [vmem:[#allocation48_spill] sm:$0xff] %v18445_v10  ;;  %v7679_v5 = vmul.f32 -0.5, %v18422_v21  ;;  %12544 = vlog2.f32 %v7694_v20  ;;  %v8063_v57 = vmul.f32 0.01, %v7126_v47  ;;  %vm18455_vm0 = vcmp.lt.f32.partialorder %v7412_v44, 0.0004427343 }
 0x502   :  { %v7396_v23 = vsel %vm7395_vm12, %v7393_v63, %v7390_v6  ;;  %v21345_v50 = vld [vmem:[#allocation22_spill] sm:$0xff]  ;;  %v18462_v53 = vmul.f32 100.0, %v18440_v42  ;;  %v21346_v26 = vld [vmem:[#allocation51_spill] sm:$0xff]  ;;  %v7682_v44 = vand.u32 2147483647, %v18422_v21  ;;  %v7697_v47 = vmul.f32 -0.5, %v18433_v27 }
 0x503   :  { %v7073_v18 = vadd.f32 1.0, %v21345_v50  ;;  %v12533_v12 = vpop.eup %12532  ;;  %v8093_v38 = vmul.f32 0.01, %v7396_v23  ;;  %v18466_v59 = vadd.f32 %v21346_v26, %v21205_v41  ;;  %v18475_v63 = vsel %vm6396_vm2, %v18214_v39, %v8061_v35 }
 0x504   :  { %v18468_v20 = vpop.eup %12534  ;;  %v7408_v6 = vmul.f32 0.6931472, %v12533_v12  ;;  %21347 = vst [vmem:[#allocation57_spill] sm:$0xff] %v18475_v63  ;;  %v7680_v7 = vadd.f32 1.0, %v7679_v5  ;;  %v7076_v23 = vmul.f32 -0.5, %v21345_v50  ;;  %v18486_v12 = vsel %vm6398_vm5, %v18223_v24, %v8063_v57 }
 0x505   :  { %12546 = vlog2.f32 %v7073_v18  ;;  %v18480_v15 = vsel %vm6428_vm7, %v18239_v2, %v8093_v38  ;;  %v12537_v26 = vpop.eup %12536  ;;  %v7700_v9 = vand.u32 2147483647, %v18433_v27  ;;  %v7361_v38 = vadd.f32 1.0, %v18036_v51 }
 0x506   :  { %21348 = vst [vmem:[#allocation17_spill] sm:$0xff] %v18480_v15  ;;  %v7414_v39 = vsel %vm18455_vm0, %v7411_v13, %v7408_v6  ;;  %v18493_v55 = vpop.eup %12538  ;;  %v7964_v35 = vadd.f32 1.0, %v12537_v26  ;;  %v7967_v5 = vmul.f32 -0.5, %v12537_v26  ;;  %vm18496_vm15 = vcmp.lt.f32.partialorder %v7682_v44, 0.0004427343 }
 0x507   :  { %21349 = vst [vmem:[#allocation13_spill] sm:$0xff] %v18493_v55  ;;  %v8095_v2 = vmul.f32 0.01, %v7414_v39  ;;  %v12541_v25 = vpop.eup %12540  ;;  %v7698_v24 = vadd.f32 1.0, %v7697_v47  ;;  %v7079_v57 = vand.u32 2147483647, %v21345_v50  ;;  %v7681_v55 = vmul.f32 %v18422_v21, %v7680_v7 }
 0x508   :  { %v7364_v16 = vmul.f32 -0.5, %v18036_v51  ;;  %12548 = vlog2.f32 %v7964_v35  ;;  %v7970_v39 = vand.u32 2147483647, %v12537_v26  ;;  %v7077_v18 = vadd.f32 1.0, %v7076_v23 }
 0x509   :  { %v12543_v13 = vpop.eup %12542  ;;  %v18505_v6 = vsel %vm6430_vm8, %v18277_v49, %v8095_v2  ;;  %v7982_v63 = vadd.f32 1.0, %v12541_v25  ;;  %v7985_v15 = vmul.f32 -0.5, %v12541_v25  ;;  %vm6460_vm14 = vcmp.gt.f32.partialorder %v18331_v45, 20.0 }
 0x50a   :  { %v7678_v42 = vmul.f32 0.6931472, %v12543_v13  ;;  %vm18511_vm11 = vcmp.lt.f32.partialorder %v7700_v9, 0.0004427343  ;;  %v7968_v49 = vadd.f32 1.0, %v7967_v5  ;;  %12550 = vlog2.f32 %v7361_v38 }
 0x50b   :  { %v12545_v47 = vpop.eup %12544  ;;  %vm6462_vm9 = vcmp.gt.f32.partialorder %v18345_v56, 20.0  ;;  %v7699_v23 = vmul.f32 %v18433_v27, %v7698_v24  ;;  %12552 = vlog2.f32 %v7982_v63  ;;  %v7365_v2 = vadd.f32 1.0, %v7364_v16  ;;  %v18539_v16 = vpop.f32.mrb[208].mxu1 }
 0x50c   :  { %v7696_v48 = vmul.f32 0.6931472, %v12545_v47  ;;  %v7684_v35 = vsel %vm18496_vm15, %v7681_v55, %v7678_v42  ;;  %vm18519_vm13 = vcmp.lt.f32.partialorder %v7970_v39, 0.0004427343  ;;  %v7078_v21 = vmul.f32 %v21345_v50, %v7077_v18  ;;  %21360 = vst [vmem:[#allocation24_spill] sm:$0xff] %v18539_v16 }
 0x50d   :  { %vm18524_vm6 = vcmp.lt.f32.partialorder %v7079_v57, 0.0004427343  ;;  %v7986_v27 = vadd.f32 1.0, %v7985_v15  ;;  %v7988_v63 = vand.u32 2147483647, %v12541_v25  ;;  %v7091_v38 = vadd.f32 1.0, %v17999_v3 }
 0x50e   :  { %v7702_v5 = vsel %vm18511_vm11, %v7699_v23, %v7696_v48  ;;  %vm6393_vm10 = vcmp.gt.f32.partialorder %v21358_v1, 20.0  ;;  %v7969_v42 = vmul.f32 %v12537_v26, %v7968_v49  ;;  %v7367_v24 = vand.u32 2147483647, %v18036_v51  ;;  %v18537_v15 = vpop.f32.mrb[208].mxu0  ;;  %v21361_v48 = vld [vmem:[#allocation4_spill] sm:$0xff] }
 0x50f   :  { %v12547_v9 = vpop.eup %12546  ;;  %v7094_v50 = vmul.f32 -0.5, %v17999_v3  ;;  %v8125_v18 = vmul.f32 0.01, %v7684_v35  ;;  %vm6492_vm3 = vcmp.gt.f32.partialorder %v18389_v29, 20.0  ;;  %v7366_v57 = vmul.f32 %v18036_v51, %v7365_v2  ;;  %21359 = vst [vmem:[#allocation63_spill] sm:$0xff] %v18537_v15  ;;  %v21364_v2 = vld [vmem:[#allocation25_spill] sm:$0xff] }
 0x510   :  { %v7075_v55 = vmul.f32 0.6931472, %v12547_v9  ;;  %12554 = vlog2.f32 %v7091_v38  ;;  %v7379_v10 = vadd.f32 1.0, %v18350_v46  ;;  %v8127_v39 = vmul.f32 0.01, %v7702_v5 }
 0x511   :  { %v7097_v47 = vand.u32 2147483647, %v17999_v3  ;;  %v7382_v49 = vmul.f32 -0.5, %v18350_v46  ;;  %vm6425_vm1 = vcmp.gt.f32.partialorder %v21361_v48, 20.0  ;;  %v7987_v23 = vmul.f32 %v12541_v25, %v7986_v27 }
 0x512   :  { %v7081_v26 = vsel %vm18524_vm6, %v7078_v21, %v7075_v55  ;;  %vm18546_vm2 = vcmp.lt.f32.partialorder %v7988_v63, 0.0004427343  ;;  %12556 = vlog2.f32 %v7379_v10  ;;  %v18552_v35 = vadd.f32 %v21364_v2, %v15737_v61  ;;  %v12549_v9 = vpop.eup %12548 }
 0x513   :  { %vm6494_vm7 = vcmp.gt.f32.partialorder %v18407_v40, 20.0  ;;  %vm18555_vm5 = vcmp.lt.f32.partialorder %v7367_v24, 0.0004427343  ;;  %v7095_v7 = vadd.f32 1.0, %v7094_v50  ;;  %v7385_v5 = vand.u32 2147483647, %v18350_v46 }
 0x514   :  { %v7649_v25 = vadd.f32 1.0, %v18378_v22  ;;  %v18564_v27 = vsel %vm6460_vm14, %v18304_v4, %v8125_v18  ;;  %v7966_v63 = vmul.f32 0.6931472, %v12549_v9  ;;  %v8058_v38 = vmul.f32 0.01, %v7081_v26  ;;  %v12551_v10 = vpop.eup %12550 }
 0x515   :  { %v7937_v55 = vadd.f32 1.0, %v18398_v43  ;;  %v18570_v24 = vsel %vm6462_vm9, %v18312_v0, %v8127_v39  ;;  %vm18572_vm8 = vcmp.lt.f32.partialorder %v7097_v47, 0.0004427343  ;;  %v7383_v2 = vadd.f32 1.0, %v7382_v49  ;;  %v12553_v44 = vpop.eup %12552  ;;  %v21372_v47 = vld [vmem:[#allocation56_spill] sm:$0xff] }
 0x516   :  { %21367 = vst [vmem:[#allocation11_spill] sm:$0xff] %v18570_v24  ;;  %12558 = vlog2.f32 %v7649_v25  ;;  %v7972_v4 = vsel %vm18519_vm13, %v7969_v42, %v7966_v63  ;;  %v7363_v45 = vmul.f32 0.6931472, %v12551_v10  ;;  %v7652_v18 = vmul.f32 -0.5, %v18378_v22  ;;  %v21373_v25 = vld [vmem:[#allocation6_spill] sm:$0xff] }
 0x517   :  { %12560 = vlog2.f32 %v7937_v55  ;;  %v8157_v26 = vmul.f32 0.01, %v7972_v4  ;;  %v7984_v9 = vmul.f32 0.6931472, %v12553_v44  ;;  %v7096_v56 = vmul.f32 %v17999_v3, %v7095_v7  ;;  %v21374_v44 = vld [vmem:[#allocation62_spill] sm:$0xff]  ;;  %v21375_v55 = vld [vmem:[#allocation37_spill] sm:$0xff] }
 0x518   :  { %vm18580_vm12 = vcmp.lt.f32.partialorder %v7385_v5, 0.0004427343  ;;  %v7369_v39 = vsel %vm18555_vm5, %v7366_v57, %v7363_v45  ;;  %v8186_v13 = vsel %vm6393_vm10, %v21372_v47, %v8058_v38  ;;  %v7940_v42 = vmul.f32 -0.5, %v18398_v43 }
 0x519   :  { %v7667_v49 = vadd.f32 1.0, %v18391_v32  ;;  %vm6395_vm0 = vcmp.gt.f32.partialorder %v21373_v25, 20.0  ;;  %vm6427_vm15 = vcmp.gt.f32.partialorder %v21374_v44, 20.0  ;;  %v18596_v3 = vsel %vm6492_vm3, %v18376_v52, %v8157_v26 }
 0x51a   :  { %v7990_v57 = vsel %vm18546_vm2, %v7987_v23, %v7984_v9  ;;  %v8090_v21 = vmul.f32 0.01, %v7369_v39  ;;  %v7655_v1 = vand.u32 2147483647, %v18378_v22  ;;  %v12555_v7 = vpop.eup %12554  ;;  %v7653_v38 = vadd.f32 1.0, %v7652_v18  ;;  %v21384_v39 = vld [vmem:[#allocation29_spill] sm:$0xff] }
 0x51b   :  { %v8159_v63 = vmul.f32 0.01, %v7990_v57  ;;  %12562 = vlog2.f32 %v7667_v49  ;;  %v7093_v29 = vmul.f32 0.6931472, %v12555_v7  ;;  %v7384_v52 = vmul.f32 %v18350_v46, %v7383_v2  ;;  %v21379_v49 = vld [vmem:[#allocation27_spill] sm:$0xff] }
 0x51c   :  { %v8218_v10 = vsel %vm6425_vm1, %v21375_v55, %v8090_v21  ;;  %v7670_v51 = vmul.f32 -0.5, %v18391_v32  ;;  %v12557_v23 = vpop.eup %12556  ;;  %v7941_v26 = vadd.f32 1.0, %v7940_v42  ;;  %v7955_v18 = vadd.f32 1.0, %v18414_v8 }
 0x51d   :  { %v18611_v4 = vsel %vm6494_vm7, %v18384_v33, %v8159_v63  ;;  %v11811_v45 = vpack.c.bf16 %v8218_v10, %v8186_v13  ;;  %vm6457_vm14 = vcmp.gt.f32.partialorder %v17987_v34, 20.0  ;;  %vm6489_vm11 = vcmp.gt.f32.partialorder %v18243_v11, 20.0  ;;  %v21381_v10 = vld [vmem:[#allocation7_spill] sm:$0xff]  ;;  %v21391_v11 = vld [vmem:[#allocation58_spill] sm:$0xff] }
 0x51e   :  { %v7099_v46 = vsel %vm18572_vm8, %v7096_v56, %v7093_v29  ;;  %v7381_v2 = vmul.f32 0.6931472, %v12557_v23  ;;  %v7943_v9 = vand.u32 2147483647, %v18398_v43  ;;  %v7654_v40 = vmul.f32 %v18378_v22, %v7653_v38  ;;  %v21380_v38 = vld [vmem:[#allocation35_spill] sm:$0xff] }
 0x51f   :  { %11812 = vmatprep.subr.bf16.mxu0 %v11811_v45  ;;  %v8060_v33 = vmul.f32 0.01, %v7099_v46  ;;  %vm18622_vm9 = vcmp.lt.f32.partialorder %v7655_v1, 0.0004427343  ;;  %12564 = vlog2.f32 %v7955_v18  ;;  %v21378_v50 = vpack.c.bf16 %v18022_v36, %v18017_v60 }
 0x520   :  { %v12559_v47 = vpop.eup %12558  ;;  %v7387_v13 = vsel %vm18580_vm12, %v7384_v52, %v7381_v2  ;;  %v7671_v56 = vadd.f32 1.0, %v7670_v51  ;;  %v18632_v42 = vmul.f32 100.0, %v18552_v35  ;;  %v18636_v22 = vadd.f32 %v21379_v49, %v15737_v61 }
 0x521   :  { %11814 = vmatpush1.bf16.msra.mxu0 %v21378_v50  ;;  %v12561_v57 = vpop.eup %12560  ;;  %v8092_v21 = vmul.f32 0.01, %v7387_v13  ;;  %v7651_v1 = vmul.f32 0.6931472, %v12559_v47  ;;  %v7942_v7 = vmul.f32 %v18398_v43, %v7941_v26  ;;  %v7673_v0 = vand.u32 2147483647, %v18391_v32 }
 0x522   :  { %v7939_v63 = vmul.f32 0.6931472, %v12561_v57  ;;  %vm7944_vm13 = vcmp.lt.f32.partialorder %v7943_v9, 0.0004427343  ;;  %v7958_v60 = vmul.f32 -0.5, %v18414_v8  ;;  %v6528_v36 = vmin.f32 %v18632_v42, 20.0 }
 0x523   :  { %v8188_v55 = vsel %vm6395_vm0, %v21380_v38, %v8060_v33  ;;  %v8220_v29 = vsel %vm6427_vm15, %v21381_v10, %v8092_v21  ;;  %v7657_v52 = vsel %vm18622_vm9, %v7654_v40, %v7651_v1  ;;  %v18651_v43 = vmul.f32 100.0, %v18636_v22  ;;  %v21385_v47 = vld [vmem:[#allocation18_spill] sm:$0xff]  ;;  %v21388_v57 = vld [vmem:[#allocation8_spill] sm:$0xff] }
 0x524   :  { %v11819_v51 = vpack.c.bf16 %v8220_v29, %v8188_v55  ;;  %v7945_v23 = vsel %vm7944_vm13, %v7942_v7, %v7939_v63  ;;  %v8122_v45 = vmul.f32 0.01, %v7657_v52  ;;  %v6684_v26 = vmul.f32 1.442695, %v6528_v36  ;;  %v21390_v63 = vld [vmem:[#allocation30_spill] sm:$0xff]  ;;  %v21392_v29 = vld [vmem:[#allocation32_spill] sm:$0xff] }
 0x525   :  { %v12563_v18 = vpop.eup %12562  ;;  %v8154_v46 = vmul.f32 0.01, %v7945_v23  ;;  %v7672_v2 = vmul.f32 %v18391_v32, %v7671_v56  ;;  %vm18654_vm6 = vcmp.lt.f32.partialorder %v7673_v0, 0.0004427343  ;;  %v6530_v44 = vmin.f32 %v18651_v43, 20.0  ;;  %v21387_v32 = vld [vmem:[#allocation52_spill] sm:$0xff] }
 0x526   :  { %vm6459_vm10 = vcmp.gt.f32.partialorder %v18200_v37, 20.0  ;;  %vm6491_vm3 = vcmp.gt.f32.partialorder %v18282_v19, 20.0  ;;  %11820 = vmatprep.subr.bf16.mxu1 %v11819_v51  ;;  %v7669_v9 = vmul.f32 0.6931472, %v12563_v18  ;;  %v7959_v33 = vadd.f32 1.0, %v7958_v60 }
 0x527   :  { %v7961_v40 = vand.u32 2147483647, %v18414_v8  ;;  %12566 = vpow2.f32 %v6684_v26  ;;  %v21386_v13 = vpack.c.bf16 %v21384_v39, %v21385_v47  ;;  %v8250_v50 = vsel %vm6457_vm14, %v21387_v32, %v8122_v45  ;;  %v21399_v47 = vld [vmem:[#allocation28_spill] sm:$0xff]  ;;  %v21400_v32 = vld [vmem:[#allocation26_spill] sm:$0xff] }
 0x528   :  { %v8282_v56 = vsel %vm6489_vm11, %v18007_v14, %v8154_v46  ;;  %v6688_v49 = vmul.f32 1.442695, %v6530_v44  ;;  %v18673_v21 = vadd.f32 %v21388_v57, %v15737_v61  ;;  %v6591_v1 = vmin.f32 %v18452_v17, 20.0  ;;  %v21395_v46 = vld [vmem:[#allocation31_spill] sm:$0xff] }
 0x529   :  { %11822 = vmatpush1.bf16.msra.mxu1 %v21386_v13  ;;  %v11815_v7 = vpack.c.bf16 %v8282_v56, %v8250_v50  ;;  %v7675_v0 = vsel %vm18654_vm6, %v7672_v2, %v7669_v9  ;;  %v18680_v60 = vadd.f32 %v21390_v63, %v15783_v58  ;;  %v12565_v34 = vpop.eup %12564  ;;  %v6621_v36 = vmin.f32 %v18462_v53, 20.0 }
 0x52a   :  { %21389 = vst [vmem:[#allocation42_spill] sm:$0xff] %v18673_v21  ;;  %v18684_v14 = vmul.f32 100.0, %v18466_v59  ;;  %12568 = vpow2.f32 %v6688_v49  ;;  %v18688_v38 = vadd.f32 %v21391_v11, %v15783_v58  ;;  %v7957_v55 = vmul.f32 0.6931472, %v12565_v34 }
 0x52b   :  { %11816 = vmatprep.subr.bf16.mxu0 %v11815_v7  ;;  %v7960_v10 = vmul.f32 %v18414_v8, %v7959_v33  ;;  %v18693_v52 = vadd.f32 %v21392_v29, %v15737_v61  ;;  %v18696_v51 = vmul.f32 100.0, %v18680_v60  ;;  %vm7962_vm1 = vcmp.lt.f32.partialorder %v7961_v40, 0.0004427343  ;;  %v21405_v29 = vld [vmem:[#allocation36_spill] sm:$0xff] }
 0x52c   :  { %v8124_v23 = vmul.f32 0.01, %v7675_v0  ;;  %v21394_v45 = vpack.c.bf16 %v18168_v62, %v18121_v30  ;;  %v18702_v26 = vmul.f32 100.0, %v18673_v21  ;;  %v18705_v18 = vmul.f32 100.0, %v18688_v38  ;;  %v21447_v21 = vld [vmem:[#allocation13_spill] sm:$0xff] }
 0x52d   :  { %21393 = vst [vmem:[#allocation16_spill] sm:$0xff] %v18693_v52  ;;  %12570 = vpow2.f32 %v18449_v54  ;;  %v7963_v8 = vsel %vm7962_vm1, %v7960_v10, %v7957_v55  ;;  %v6560_v61 = vmin.f32 %v18696_v51, 20.0  ;;  %v18711_v2 = vadd.f32 %v21395_v46, %v15783_v58  ;;  %v21398_v54 = vld [vmem:[#allocation46_spill] sm:$0xff] }
 0x52e   :  { %11818 = vmatpush1.bf16.msra.mxu0 %v21394_v45  ;;  %v6810_v25 = vmul.f32 1.442695, %v6591_v1  ;;  %v6623_v44 = vmin.f32 %v18684_v14, 20.0  ;;  %v8156_v30 = vmul.f32 0.01, %v7963_v8  ;;  %v6562_v62 = vmin.f32 %v18705_v18, 20.0 }
 0x52f   :  { %21396 = vst [vmem:[#allocation41_spill] sm:$0xff] %v18711_v2  ;;  %v6870_v9 = vmul.f32 1.442695, %v6621_v36  ;;  %v18716_v33 = vmul.f32 100.0, %v18693_v52  ;;  %v6748_v40 = vmul.f32 1.442695, %v6560_v61  ;;  %v18720_v39 = vadd.f32 %v21398_v54, %v15789_v31 }
 0x530   :  { %v8252_v13 = vsel %vm6459_vm10, %v21399_v47, %v8124_v23  ;;  %v8284_v50 = vsel %vm6491_vm3, %v21400_v32, %v8156_v30  ;;  %v6529_v56 = vmin.f32 %v18702_v26, 20.0  ;;  %v6752_v49 = vmul.f32 1.442695, %v6562_v62  ;;  %v21402_v36 = vld [vmem:[#allocation14_spill] sm:$0xff]  ;;  %v21409_v47 = vld [vmem:[#allocation39_spill] sm:$0xff] }
 0x531   :  { %21397 = vst [vmem:[#allocation61_spill] sm:$0xff] %v18716_v33  ;;  %11213 = vmatmul.mubr.msk.f32.vlgmr.msra.gmra.mrb[218].mxu0 %vm8299_vm4, %v18317_v28  ;;  %v21401_v57 = vmov 0.0   ;;  %v12567_v1 = vpop.eup %12566  ;;  %v11823_v7 = vpack.c.bf16 %v8284_v50, %v8252_v13  ;;  %12572 = vpow2.f32 %v6748_v40  ;;  %v18733_v0 = vmul.f32 100.0, %v18711_v2  ;;  %v21404_v10 = vld [vmem:[#allocation10_spill] sm:$0xff] }
 0x532   :  { %9218 = vmatprep.mubr.f32.mxu0 %v21401_v57  ;;  %v18736_v63 = vmul.f32 100.0, %v18720_v39  ;;  %v6874_v37 = vmul.f32 1.442695, %v6623_v44  ;;  %v7136_v34 = vadd.f32 1.0, %v12567_v1  ;;  %12574 = vpow2.f32 %v6752_v49  ;;  %v21411_v50 = vld [vmem:[#allocation38_spill] sm:$0xff] }
 0x533   :  { %12576 = vpow2.f32 %v6810_v25  ;;  %11824 = vmatprep.subr.bf16.mxu1 %v11823_v7  ;;  %v6531_v19 = vmin.f32 %v18716_v33, 20.0  ;;  %v18741_v11 = vadd.f32 %v21402_v36, %v15783_v58  ;;  %v21406_v23 = vpack.c.bf16 %v21404_v10, %v21405_v29  ;;  %v21407_v58 = vld [vmem:[#allocation45_spill] sm:$0xff]  ;;  %v21412_v36 = vld [vmem:[#allocation40_spill] sm:$0xff] }
 0x534   :  { %v18743_v55 = vpop.eup %12568  ;;  %12578 = vlog2.f32 %v7136_v34  ;;  %v6686_v45 = vmul.f32 1.442695, %v6529_v56  ;;  %v6592_v8 = vmin.f32 %v18736_v63, 20.0  ;;  %v6561_v46 = vmin.f32 %v18733_v0, 20.0 }
 0x535   :  { %21403 = vst [vmem:[#allocation49_spill] sm:$0xff] %v18741_v11  ;;  %11826 = vmatpush1.bf16.msra.mxu1 %v21406_v23  ;;  %12580 = vpow2.f32 %v6870_v9  ;;  %v7154_v61 = vadd.f32 1.0, %v18743_v55  ;;  %v7139_v25 = vmul.f32 -0.5, %v12567_v1  ;;  %v18753_v30 = vadd.f32 %v21407_v58, %v15789_v31 }
 0x536   :  { %12582 = vpow2.f32 %v6874_v37  ;;  %v6812_v44 = vmul.f32 1.442695, %v6592_v8  ;;  %v6690_v40 = vmul.f32 1.442695, %v6531_v19  ;;  %v18758_v54 = vmul.f32 100.0, %v18741_v11 }
 0x537   :  { %v18755_v62 = vpop.eup %12570  ;;  %12584 = vlog2.f32 %v7154_v61  ;;  %v18763_v9 = vmul.f32 100.0, %v18753_v30  ;;  %v18767_v13 = vadd.f32 %v21409_v47, %v15789_v31  ;;  %v6750_v32 = vmul.f32 1.442695, %v6561_v46 }
 0x538   :  { %21408 = vst [vmem:[#allocation47_spill] sm:$0xff] %v18758_v54  ;;  %11214 = vmatmul.mubr.msk.f32.vlgmr.msra.gmra.mrb[218].mxu1 %vm8299_vm4, %v18317_v28  ;;  %12586 = vpow2.f32 %v6686_v45  ;;  %v18772_v56 = vadd.f32 %v21411_v50, %v21205_v41  ;;  %v7140_v49 = vadd.f32 1.0, %v7139_v25  ;;  %v7142_v7 = vand.u32 2147483647, %v12567_v1 }
 0x539   :  { %21410 = vst [vmem:[#allocation5_spill] sm:$0xff] %v18767_v13  ;;  %9289 = vmatprep.mubr.f32.mxu1 %v21401_v57  ;;  %12588 = vpow2.f32 %v6812_v44  ;;  %v7157_v28 = vmul.f32 -0.5, %v18743_v55  ;;  %v6594_v37 = vmin.f32 %v18763_v9, 20.0  ;;  %v6563_v19 = vmin.f32 %v18758_v54, 20.0  ;;  %v21414_v44 = vld [vmem:[#allocation9_spill] sm:$0xff] }
 0x53a   :  { %12590 = vpow2.f32 %v6690_v40  ;;  %v18779_v10 = vadd.f32 %v21412_v36, %v21205_v41  ;;  %v7160_v23 = vand.u32 2147483647, %v18743_v55  ;;  %v18785_v61 = vmul.f32 100.0, %v18767_v13 }
 0x53b   :  { %v12573_v34 = vpop.eup %12572  ;;  %v6816_v8 = vmul.f32 1.442695, %v6594_v37  ;;  %12592 = vpow2.f32 %v6750_v32  ;;  %v18792_v58 = vadd.f32 %v21414_v44, %v15789_v31  ;;  %v18795_v40 = vmul.f32 100.0, %v18772_v56 }
 0x53c   :  { %v18781_v29 = vpop.eup %12574  ;;  %v7424_v45 = vadd.f32 1.0, %v12573_v34  ;;  %21413 = vst [vmem:[#allocation50_spill] sm:$0xff] %v18785_v61  ;;  %v7141_v50 = vmul.f32 %v12567_v1, %v7140_v49  ;;  %vm18797_vm2 = vcmp.lt.f32.partialorder %v7142_v7, 0.0004427343  ;;  %v7158_v37 = vadd.f32 1.0, %v7157_v28 }
 0x53d   :  { %v18787_v46 = vpop.eup %12576  ;;  %v7442_v25 = vadd.f32 1.0, %v18781_v29  ;;  %21415 = vst [vmem:[#allocation2_spill] sm:$0xff] %v18792_v58  ;;  %v7427_v16 = vmul.f32 -0.5, %v12573_v34  ;;  %v18804_v32 = vmul.f32 100.0, %v18779_v10  ;;  %v7445_v44 = vmul.f32 -0.5, %v18781_v29 }
 0x53e   :  { %v12579_v47 = vpop.eup %12578  ;;  %12594 = vlog2.f32 %v7424_v45  ;;  %v6754_v15 = vmul.f32 1.442695, %v6563_v19  ;;  %v6593_v1 = vmin.f32 %v18785_v61, 20.0  ;;  %vm6400_vm7 = vcmp.gt.f32.partialorder %v18632_v42, 20.0 }
 0x53f   :  { %v18801_v48 = vpop.eup %12580  ;;  %v7138_v5 = vmul.f32 0.6931472, %v12579_v47  ;;  %12596 = vlog2.f32 %v7442_v25  ;;  %vm18811_vm5 = vcmp.lt.f32.partialorder %v7160_v23, 0.0004427343  ;;  %v18816_v28 = vmul.f32 100.0, %v18792_v58  ;;  %v21421_v25 = vld [vmem:[#allocation34_spill] sm:$0xff] }
 0x540   :  { %v18806_v31 = vpop.eup %12582  ;;  %12598 = vpow2.f32 %v6816_v8  ;;  %v6624_v45 = vmin.f32 %v18795_v40, 20.0  ;;  %v18821_v47 = vadd.f32 %v21421_v25, %v21205_v41  ;;  %v7159_v13 = vmul.f32 %v18743_v55, %v7158_v37 }
 0x541   :  { %v12585_v49 = vpop.eup %12584  ;;  %21420 = vst [vmem:[#allocation22_spill] sm:$0xff] %v18816_v28  ;;  %v7430_v61 = vand.u32 2147483647, %v12573_v34  ;;  %v7448_v23 = vand.u32 2147483647, %v18781_v29  ;;  %v7144_v58 = vsel %vm18797_vm2, %v7141_v50, %v7138_v5  ;;  %vm6402_vm8 = vcmp.gt.f32.partialorder %v18651_v43, 20.0 }
 0x542   :  { %21422 = vst [vmem:[#allocation51_spill] sm:$0xff] %v18821_v47  ;;  %v18823_v19 = vpop.eup %12586  ;;  %v7156_v8 = vmul.f32 0.6931472, %v12585_v49  ;;  %v7428_v52 = vadd.f32 1.0, %v7427_v16  ;;  %v6876_v54 = vmul.f32 1.442695, %v6624_v45  ;;  %12600 = vpow2.f32 %v6754_v15 }
 0x543   :  { %v18827_v11 = vpop.eup %12588  ;;  %v6626_v25 = vmin.f32 %v18804_v32, 20.0  ;;  %v7446_v33 = vadd.f32 1.0, %v7445_v44  ;;  %v6814_v2 = vmul.f32 1.442695, %v6593_v1  ;;  %vm6432_vm12 = vcmp.gt.f32.partialorder %v18696_v51, 20.0  ;;  %v21424_v16 = vld [vmem:[#allocation23_spill] sm:$0xff] }
 0x544   :  { %v7712_v49 = vadd.f32 1.0, %v18827_v11  ;;  %v18834_v55 = vpop.eup %12590  ;;  %v7162_v37 = vsel %vm18811_vm5, %v7159_v13, %v7156_v8  ;;  %v18840_v5 = vmul.f32 100.0, %v18821_v47  ;;  %v18844_v50 = vadd.f32 %v21424_v16, %v21205_v41 }
 0x545   :  { %v6880_v36 = vmul.f32 1.442695, %v6626_v25  ;;  %v8065_v44 = vmul.f32 0.01, %v7144_v58  ;;  %vm18846_vm0 = vcmp.lt.f32.partialorder %v7430_v61, 0.0004427343  ;;  %v18852_v1 = vpop.eup %12592  ;;  %v7429_v7 = vmul.f32 %v12573_v34, %v7428_v52 }
 0x546   :  { %21423 = vst [vmem:[#allocation60_spill] sm:$0xff] %v18840_v5  ;;  %21425 = vst [vmem:[#allocation4_spill] sm:$0xff] %v18844_v50  ;;  %vm6434_vm15 = vcmp.gt.f32.partialorder %v18705_v18, 20.0  ;;  %12602 = vlog2.f32 %v7712_v49  ;;  %v6595_v13 = vmin.f32 %v18816_v28, 20.0  ;;  %vm18854_vm14 = vcmp.lt.f32.partialorder %v7448_v23, 0.0004427343 }
 0x547   :  { %v7715_v41 = vmul.f32 -0.5, %v18827_v11  ;;  %12604 = vpow2.f32 %v6876_v54  ;;  %v8067_v61 = vmul.f32 0.01, %v7162_v37  ;;  %v7447_v8 = vmul.f32 %v18781_v29, %v7446_v33  ;;  %v21430_v25 = vld [vmem:[#allocation21_spill] sm:$0xff] }
 0x548   :  { %v12595_v58 = vpop.eup %12594  ;;  %12606 = vpow2.f32 %v6880_v36  ;;  %v7109_v16 = vadd.f32 1.0, %v21430_v25  ;;  %v6625_v28 = vmin.f32 %v18840_v5, 20.0  ;;  %v18863_v52 = vmul.f32 100.0, %v18844_v50 }
 0x549   :  { %v12597_v49 = vpop.eup %12596  ;;  %v7426_v47 = vmul.f32 0.6931472, %v12595_v58  ;;  %12608 = vpow2.f32 %v6814_v2  ;;  %v18868_v54 = vsel %vm6400_vm7, %v18552_v35, %v8065_v44  ;;  %v7718_v33 = vand.u32 2147483647, %v18827_v11 }
 0x54a   :  { %21431 = vst [vmem:[#allocation25_spill] sm:$0xff] %v18863_v52  ;;  %v12599_v34 = vpop.eup %12598  ;;  %21432 = vst [vmem:[#allocation56_spill] sm:$0xff] %v18868_v54  ;;  %v7444_v23 = vmul.f32 0.6931472, %v12597_v49  ;;  %v6818_v29 = vmul.f32 1.442695, %v6595_v13  ;;  %v18877_v50 = vsel %vm6402_vm8, %v18636_v22, %v8067_v61  ;;  %12610 = vlog2.f32 %v7109_v16 }
 0x54b   :  { %v7432_v37 = vsel %vm18846_vm0, %v7429_v7, %v7426_v47  ;;  %v7716_v36 = vadd.f32 1.0, %v7715_v41  ;;  %v7730_v2 = vadd.f32 1.0, %v12599_v34  ;;  %v7397_v58 = vadd.f32 1.0, %v18468_v20  ;;  %21433 = vst [vmem:[#allocation6_spill] sm:$0xff] %v18877_v50  ;;  %v21444_v50 = vld [vmem:[#allocation54_spill] sm:$0xff] }
 0x54c   :  { %v8097_v5 = vmul.f32 0.01, %v7432_v37  ;;  %v7450_v35 = vsel %vm18854_vm14, %v7447_v8, %v7444_v23  ;;  %v6878_v44 = vmul.f32 1.442695, %v6625_v28  ;;  %v6627_v15 = vmin.f32 %v18863_v52, 20.0  ;;  %v18882_v47 = vpop.eup %12600 }
 0x54d   :  { %v8099_v42 = vmul.f32 0.01, %v7450_v35  ;;  %12612 = vlog2.f32 %v7730_v2  ;;  %v7733_v43 = vmul.f32 -0.5, %v12599_v34  ;;  %v7736_v22 = vand.u32 2147483647, %v12599_v34 }
 0x54e   :  { %v18887_v13 = vsel %vm6432_vm12, %v18680_v60, %v8097_v5  ;;  %v7112_v7 = vmul.f32 -0.5, %v21430_v25  ;;  %v7115_v41 = vand.u32 2147483647, %v21430_v25  ;;  %12614 = vlog2.f32 %v7397_v58 }
 0x54f   :  { %21434 = vst [vmem:[#allocation62_spill] sm:$0xff] %v18887_v13  ;;  %v18895_v28 = vsel %vm6434_vm15, %v18688_v38, %v8099_v42  ;;  %v7717_v51 = vmul.f32 %v18827_v11, %v7716_v36  ;;  %vm18901_vm11 = vcmp.lt.f32.partialorder %v7718_v33, 0.0004427343  ;;  %12616 = vpow2.f32 %v6818_v29  ;;  %v21440_v33 = vld [vmem:[#allocation48_spill] sm:$0xff] }
 0x550   :  { %21435 = vst [vmem:[#allocation37_spill] sm:$0xff] %v18895_v28  ;;  %v12603_v61 = vpop.eup %12602  ;;  %12618 = vpow2.f32 %v6878_v44  ;;  %v18905_v18 = vmul.f32 1.442695, %v6627_v15  ;;  %v7400_v38 = vmul.f32 -0.5, %v18468_v20  ;;  %vm6464_vm9 = vcmp.gt.f32.partialorder %v18736_v63, 20.0 }
 0x551   :  { %v12605_v8 = vpop.eup %12604  ;;  %v7714_v16 = vmul.f32 0.6931472, %v12603_v61  ;;  %v7734_v23 = vadd.f32 1.0, %v7733_v43  ;;  %vm18909_vm13 = vcmp.lt.f32.partialorder %v7736_v22, 0.0004427343  ;;  %v7127_v36 = vadd.f32 1.0, %v21440_v33 }
 0x552   :  { %v12607_v49 = vpop.eup %12606  ;;  %v8000_v11 = vadd.f32 1.0, %v12605_v8  ;;  %v8003_v29 = vmul.f32 -0.5, %v12605_v8  ;;  %v7113_v35 = vadd.f32 1.0, %v7112_v7  ;;  %vm18916_vm6 = vcmp.lt.f32.partialorder %v7115_v41, 0.0004427343  ;;  %v21443_v22 = vld [vmem:[#allocation43_spill] sm:$0xff] }
 0x553   :  { %v18914_v2 = vpop.eup %12608  ;;  %v8018_v58 = vadd.f32 1.0, %v12607_v49  ;;  %v7720_v44 = vsel %vm18901_vm11, %v7717_v51, %v7714_v16  ;;  %v8006_v15 = vand.u32 2147483647, %v12605_v8  ;;  %v8021_v43 = vmul.f32 -0.5, %v12607_v49 }
 0x554   :  { %12620 = vlog2.f32 %v8000_v11  ;;  %vm6397_vm10 = vcmp.gt.f32.partialorder %v21443_v22, 20.0  ;;  %v8024_v61 = vand.u32 2147483647, %v12607_v49  ;;  %v7401_v60 = vadd.f32 1.0, %v7400_v38  ;;  %v12611_v52 = vpop.eup %12610 }
 0x555   :  { %12622 = vlog2.f32 %v8018_v58  ;;  %v7130_v45 = vmul.f32 -0.5, %v21440_v33  ;;  %vm6429_vm3 = vcmp.gt.f32.partialorder %v21444_v50, 20.0  ;;  %v7735_v7 = vmul.f32 %v12599_v34, %v7734_v23 }
 0x556   :  { %v7403_v41 = vand.u32 2147483647, %v18468_v20  ;;  %12624 = vlog2.f32 %v7127_v36  ;;  %v7133_v5 = vand.u32 2147483647, %v21440_v33  ;;  %v8129_v16 = vmul.f32 0.01, %v7720_v44 }
 0x557   :  { %v12613_v51 = vpop.eup %12612  ;;  %v8004_v11 = vadd.f32 1.0, %v8003_v29  ;;  %v7111_v28 = vmul.f32 0.6931472, %v12611_v52  ;;  %v7114_v54 = vmul.f32 %v21430_v25, %v7113_v35  ;;  %vm18928_vm1 = vcmp.lt.f32.partialorder %v8006_v15, 0.0004427343 }
 0x558   :  { %v7732_v58 = vmul.f32 0.6931472, %v12613_v51  ;;  %v8022_v13 = vadd.f32 1.0, %v8021_v43  ;;  %v7415_v24 = vadd.f32 1.0, %v21447_v21  ;;  %v12615_v34 = vpop.eup %12614  ;;  %vm6466_vm2 = vcmp.gt.f32.partialorder %v18763_v9, 20.0 }
 0x559   :  { %vm18934_vm7 = vcmp.lt.f32.partialorder %v8024_v61, 0.0004427343  ;;  %v7117_v52 = vsel %vm18916_vm6, %v7114_v54, %v7111_v28  ;;  %v7402_v25 = vmul.f32 %v18468_v20, %v7401_v60  ;;  %v7131_v36 = vadd.f32 1.0, %v7130_v45  ;;  %v18942_v35 = vpop.eup %12616 }
 0x55a   :  { %v7685_v29 = vadd.f32 1.0, %v18755_v62  ;;  %v7399_v44 = vmul.f32 0.6931472, %v12615_v34  ;;  %v8062_v15 = vmul.f32 0.01, %v7117_v52  ;;  %12626 = vlog2.f32 %v7415_v24  ;;  %v18945_v51 = vpop.eup %12618  ;;  %v21453_v52 = vld [vmem:[#allocation33_spill] sm:$0xff] }
 0x55b   :  { %v7418_v43 = vmul.f32 -0.5, %v21447_v21  ;;  %v18950_v61 = vsel %vm6464_vm9, %v18720_v39, %v8129_v16  ;;  %v7738_v20 = vsel %vm18909_vm13, %v7735_v7, %v7732_v58  ;;  %vm6496_vm5 = vcmp.gt.f32.partialorder %v18795_v40, 20.0  ;;  %v21461_v40 = vld [vmem:[#allocation59_spill] sm:$0xff] }
 0x55c   :  { %vm7404_vm8 = vcmp.lt.f32.partialorder %v7403_v41, 0.0004427343  ;;  %12628 = vlog2.f32 %v7685_v29  ;;  %v8005_v54 = vmul.f32 %v12605_v8, %v8004_v11  ;;  %vm6498_vm12 = vcmp.gt.f32.partialorder %v18804_v32, 20.0  ;;  %v21452_v41 = vld [vmem:[#allocation44_spill] sm:$0xff] }
 0x55d   :  { %v7405_v24 = vsel %vm7404_vm8, %v7402_v25, %v7399_v44  ;;  %v7421_v45 = vand.u32 2147483647, %v21447_v21  ;;  %v7688_v28 = vmul.f32 -0.5, %v18755_v62  ;;  %v8023_v60 = vmul.f32 %v12607_v49, %v8022_v13 }
 0x55e   :  { %v8094_v42 = vmul.f32 0.01, %v7405_v24  ;;  %vm18958_vm0 = vcmp.lt.f32.partialorder %v7133_v5, 0.0004427343  ;;  %v7973_v63 = vadd.f32 1.0, %v18801_v48  ;;  %v12621_v37 = vpop.eup %12620  ;;  %v8190_v8 = vsel %vm6397_vm10, %v21452_v41, %v8062_v15  ;;  %v21456_v15 = vld [vmem:[#allocation12_spill] sm:$0xff] }
 0x55f   :  { %v8131_v7 = vmul.f32 0.01, %v7738_v20  ;;  %v7132_v16 = vmul.f32 %v21440_v33, %v7131_v36  ;;  %v7419_v11 = vadd.f32 1.0, %v7418_v43  ;;  %v12623_v58 = vpop.eup %12622  ;;  %v8002_v34 = vmul.f32 0.6931472, %v12621_v37  ;;  %v21457_v33 = vld [vmem:[#allocation19_spill] sm:$0xff] }
 0x560   :  { %v8222_v13 = vsel %vm6429_vm3, %v21453_v52, %v8094_v42  ;;  %12630 = vlog2.f32 %v7973_v63  ;;  %v7703_v49 = vadd.f32 1.0, %v18787_v46  ;;  %v12625_v5 = vpop.eup %12624  ;;  %v8020_v25 = vmul.f32 0.6931472, %v12623_v58  ;;  %v21459_v63 = vld [vmem:[#allocation57_spill] sm:$0xff] }
 0x561   :  { %v11827_v29 = vpack.c.bf16 %v8222_v13, %v8190_v8  ;;  %vm18971_vm15 = vcmp.lt.f32.partialorder %v7421_v45, 0.0004427343  ;;  %v7689_v22 = vadd.f32 1.0, %v7688_v28  ;;  %vm6399_vm14 = vcmp.gt.f32.partialorder %v21456_v15, 20.0 }
 0x562   :  { %vm6431_vm11 = vcmp.gt.f32.partialorder %v21457_v33, 20.0  ;;  %v8008_v36 = vsel %vm18928_vm1, %v8005_v54, %v8002_v34  ;;  %v7129_v50 = vmul.f32 0.6931472, %v12625_v5  ;;  %v7976_v43 = vmul.f32 -0.5, %v18801_v48  ;;  %v21458_v54 = vld [vmem:[#allocation17_spill] sm:$0xff] }
 0x563   :  { %12632 = vlog2.f32 %v7703_v49  ;;  %v18983_v20 = vsel %vm6466_vm2, %v18753_v30, %v8131_v7  ;;  %v8161_v24 = vmul.f32 0.01, %v8008_v36  ;;  %v8026_v45 = vsel %vm18934_vm7, %v8023_v60, %v8020_v25  ;;  %11828 = vmatprep.subr.bf16.mxu0 %v11827_v29 }
 0x564   :  { %v7691_v28 = vand.u32 2147483647, %v18755_v62  ;;  %v8163_v42 = vmul.f32 0.01, %v8026_v45  ;;  %v7135_v38 = vsel %vm18958_vm0, %v7132_v16, %v7129_v50  ;;  %v21460_v37 = vpack.c.bf16 %v21458_v54, %v21459_v63  ;;  %v12627_v9 = vpop.eup %12626  ;;  %v21466_v50 = vld [vmem:[#allocation55_spill] sm:$0xff] }
 0x565   :  { %v7706_v41 = vmul.f32 -0.5, %v18787_v46  ;;  %v7991_v30 = vadd.f32 1.0, %v18806_v31  ;;  %v18998_v23 = vsel %vm6496_vm5, %v18772_v56, %v8161_v24  ;;  %v7420_v60 = vmul.f32 %v21447_v21, %v7419_v11 }
 0x566   :  { %11830 = vmatpush1.bf16.msra.mxu0 %v21460_v37  ;;  %v7690_v7 = vmul.f32 %v18755_v62, %v7689_v22  ;;  %v7979_v39 = vand.u32 2147483647, %v18801_v48  ;;  %v12629_v8 = vpop.eup %12628  ;;  %v11849_v16 = vpack.c.bf16 %v18998_v23, %v18950_v61  ;;  %v19008_v58 = vsel %vm6498_vm12, %v18779_v10, %v8163_v42 }
 0x567   :  { %v7417_v34 = vmul.f32 0.6931472, %v12627_v9  ;;  %v7977_v52 = vadd.f32 1.0, %v7976_v43  ;;  %vm6461_vm9 = vcmp.gt.f32.partialorder %v21461_v40, 20.0  ;;  %v11857_v21 = vpack.c.bf16 %v19008_v58, %v18983_v20  ;;  %v21467_v43 = vld [vmem:[#allocation53_spill] sm:$0xff] }
 0x568   :  { %v8064_v56 = vmul.f32 0.01, %v7135_v38  ;;  %v7687_v62 = vmul.f32 0.6931472, %v12629_v8  ;;  %12634 = vlog2.f32 %v7991_v30  ;;  %vm19015_vm13 = vcmp.lt.f32.partialorder %v7691_v28, 0.0004427343 }
 0x569   :  { %v7423_v11 = vsel %vm18971_vm15, %v7420_v60, %v7417_v34  ;;  %v7707_v32 = vadd.f32 1.0, %v7706_v41  ;;  %v7145_v10 = vadd.f32 1.0, %v18823_v19  ;;  %12636 = vpow2.f32 %v18905_v18  ;;  %v21471_v8 = vld [vmem:[#allocation15_spill] sm:$0xff] }
 0x56a   :  { %v8096_v49 = vmul.f32 0.01, %v7423_v11  ;;  %v7693_v5 = vsel %vm19015_vm13, %v7690_v7, %v7687_v62  ;;  %v7994_v25 = vmul.f32 -0.5, %v18806_v31  ;;  %v12631_v29 = vpop.eup %12630  ;;  %v7978_v22 = vmul.f32 %v18801_v48, %v7977_v52  ;;  %v21472_v52 = vld [vmem:[#allocation20_spill] sm:$0xff] }
 0x56b   :  { %vm19025_vm6 = vcmp.lt.f32.partialorder %v7979_v39, 0.0004427343  ;;  %v7709_v36 = vand.u32 2147483647, %v18787_v46  ;;  %12638 = vlog2.f32 %v7145_v10  ;;  %v8192_v18 = vsel %vm6399_vm14, %v21466_v50, %v8064_v56 }
 0x56c   :  { %v8224_v24 = vsel %vm6431_vm11, %v21467_v43, %v8096_v49  ;;  %v7975_v45 = vmul.f32 0.6931472, %v12631_v29  ;;  %v7148_v28 = vmul.f32 -0.5, %v18823_v19  ;;  %v8126_v38 = vmul.f32 0.01, %v7693_v5 }
 0x56d   :  { %v12633_v42 = vpop.eup %12632  ;;  %v11835_v48 = vpack.c.bf16 %v8224_v24, %v8192_v18  ;;  %v7708_v54 = vmul.f32 %v18787_v46, %v7707_v32  ;;  %v7433_v63 = vadd.f32 1.0, %v18852_v1  ;;  %v7995_v15 = vadd.f32 1.0, %v7994_v25 }
 0x56e   :  { %v7981_v37 = vsel %vm19025_vm6, %v7978_v22, %v7975_v45  ;;  %v7705_v41 = vmul.f32 0.6931472, %v12633_v42  ;;  %v7997_v30 = vand.u32 2147483647, %v18806_v31  ;;  %v7436_v9 = vmul.f32 -0.5, %v18852_v1 }
 0x56f   :  { %11836 = vmatprep.subr.bf16.mxu1 %v11835_v48  ;;  %v8158_v33 = vmul.f32 0.01, %v7981_v37  ;;  %12640 = vlog2.f32 %v7433_v63  ;;  %v7163_v60 = vadd.f32 1.0, %v18834_v55  ;;  %vm6463_vm10 = vcmp.gt.f32.partialorder %v18452_v17, 20.0 }
 0x570   :  { %vm6493_vm3 = vcmp.gt.f32.partialorder %v18462_v53, 20.0  ;;  %v21468_v46 = vpack.c.bf16 %v18505_v6, %v18486_v12  ;;  %vm19049_vm1 = vcmp.lt.f32.partialorder %v7709_v36, 0.0004427343  ;;  %v7149_v39 = vadd.f32 1.0, %v7148_v28 }
 0x571   :  { %v8254_v34 = vsel %vm6461_vm9, %v21471_v8, %v8126_v38  ;;  %v8286_v56 = vsel %vm6493_vm3, %v21472_v52, %v8158_v33  ;;  %v7711_v62 = vsel %vm19049_vm1, %v7708_v54, %v7705_v41  ;;  %12642 = vlog2.f32 %v7163_v60  ;;  %v19098_v38 = vld [vmem:[%s19829_s1 + $0x88] sm:$0x1f] }
 0x572   :  { %11838 = vmatpush1.bf16.msra.mxu1 %v21468_v46  ;;  %v12635_v53 = vpop.eup %12634  ;;  %v11831_v11 = vpack.c.bf16 %v8286_v56, %v8254_v34  ;;  %vm19059_vm2 = vcmp.lt.f32.partialorder %v7997_v30, 0.0004427343  ;;  %v7151_v6 = vand.u32 2147483647, %v18823_v19  ;;  %v7451_v13 = vadd.f32 1.0, %v18882_v47 }
 0x573   :  { %v7993_v32 = vmul.f32 0.6931472, %v12635_v53  ;;  %v7996_v40 = vmul.f32 %v18806_v31, %v7995_v15  ;;  %v7437_v10 = vadd.f32 1.0, %v7436_v9  ;;  %v7439_v49 = vand.u32 2147483647, %v18852_v1  ;;  %v19067_v5 = vpop.eup %12636 }
 0x574   :  { %11832 = vmatprep.subr.bf16.mxu0 %v11831_v11  ;;  %v8128_v25 = vmul.f32 0.01, %v7711_v62  ;;  %v7166_v29 = vmul.f32 -0.5, %v18834_v55  ;;  %12644 = vlog2.f32 %v7451_v13  ;;  %v7721_v22 = vadd.f32 1.0, %v18914_v2 }
 0x575   :  { %v12639_v44 = vpop.eup %12638  ;;  %vm6495_vm7 = vcmp.gt.f32.partialorder %v18684_v14, 20.0  ;;  %v7999_v36 = vsel %vm19059_vm2, %v7996_v40, %v7993_v32  ;;  %v21475_v31 = vpack.c.bf16 %v18596_v3, %v18564_v27  ;;  %v7150_v50 = vmul.f32 %v18823_v19, %v7149_v39  ;;  %v21480_v19 = vld [vmem:[#allocation3_spill] sm:$0xff]  ;;  %v21485_v32 = vld [vmem:[#allocation42_spill] sm:$0xff]  ;;  %v21486_v40 = vld [vmem:[#allocation41_spill] sm:$0xff] }
 0x576   :  { %v7169_v18 = vand.u32 2147483647, %v18834_v55  ;;  %vm6401_vm5 = vcmp.gt.f32.partialorder %v18702_v26, 20.0  ;;  %v8160_v43 = vmul.f32 0.01, %v7999_v36  ;;  %v7454_v45 = vmul.f32 -0.5, %v18882_v47 }
 0x577   :  { %11834 = vmatpush1.bf16.msra.mxu0 %v21475_v31  ;;  %v7147_v24 = vmul.f32 0.6931472, %v12639_v44  ;;  %12646 = vlog2.f32 %v7721_v22  ;;  %vm19081_vm8 = vcmp.lt.f32.partialorder %v7151_v6, 0.0004427343  ;;  %v7438_v28 = vmul.f32 %v18852_v1, %v7437_v10  ;;  %v21483_v39 = vld [vmem:[#allocation11_spill] sm:$0xff]  ;;  %v21489_v14 = vld [vmem:[#allocation62_spill] sm:$0xff] }
 0x578   :  { %vm19086_vm12 = vcmp.lt.f32.partialorder %v7439_v49, 0.0004427343  ;;  %v8009_v3 = vadd.f32 1.0, %v18945_v51  ;;  %v8256_v42 = vsel %vm6463_vm10, %v21480_v19, %v8128_v25  ;;  %v8288_v48 = vsel %vm6495_vm7, %v18466_v59, %v8160_v43  ;;  %v21488_v43 = vld [vmem:[#allocation47_spill] sm:$0xff] }
 0x579   :  { %v7153_v1 = vsel %vm19081_vm8, %v7150_v50, %v7147_v24  ;;  %v7167_v54 = vadd.f32 1.0, %v7166_v29  ;;  %v12641_v63 = vpop.eup %12640  ;;  %v11839_v37 = vpack.c.bf16 %v8288_v48, %v8256_v42  ;;  %vm19104_vm0 = vcmp.lt.f32.partialorder %v7169_v18, 0.0004427343  ;;  %v21487_v18 = vld [vmem:[#allocation61_spill] sm:$0xff]  ;;  %v21492_v42 = vld [vmem:[#allocation16_spill] sm:$0xff] }
 0x57a   :  { %11215 = vmatmul.mubr.msk.f32.vlgmr.msra.gmra.mrb[220].mxu0 %vm8299_vm4, %v19098_v38  ;;  %v7724_v17 = vmul.f32 -0.5, %v18914_v2  ;;  %12648 = vlog2.f32 %v8009_v3  ;;  %v7435_v59 = vmul.f32 0.6931472, %v12641_v63  ;;  %v7455_v15 = vadd.f32 1.0, %v7454_v45 }
 0x57b   :  { %9360 = vmatprep.mubr.f32.mxu0 %v21401_v57  ;;  %v8012_v30 = vmul.f32 -0.5, %v18945_v51  ;;  %v7739_v33 = vadd.f32 1.0, %v18942_v35  ;;  %v12643_v9 = vpop.eup %12642  ;;  %vm6433_vm15 = vcmp.gt.f32.partialorder %v18733_v0, 20.0  ;;  %11840 = vmatprep.subr.bf16.mxu1 %v11839_v37  ;;  %v8066_v60 = vmul.f32 0.01, %v7153_v1  ;;  %v21493_v1 = vld [vmem:[#allocation49_spill] sm:$0xff] }
 0x57c   :  { %v7457_v46 = vand.u32 2147483647, %v18882_v47  ;;  %v8027_v7 = vadd.f32 1.0, %v19067_v5  ;;  %v21484_v8 = vpack.c.bf16 %v18611_v4, %v21483_v39  ;;  %v7441_v34 = vsel %vm19086_vm12, %v7438_v28, %v7435_v59  ;;  %v21490_v28 = vld [vmem:[#allocation56_spill] sm:$0xff]  ;;  %v21496_v39 = vld [vmem:[#allocation37_spill] sm:$0xff] }
 0x57d   :  { %v7165_v52 = vmul.f32 0.6931472, %v12643_v9  ;;  %v7168_v56 = vmul.f32 %v18834_v55, %v7167_v54  ;;  %12650 = vlog2.f32 %v7739_v33  ;;  %v8098_v62 = vmul.f32 0.01, %v7441_v34  ;;  %v21494_v9 = vld [vmem:[#allocation50_spill] sm:$0xff] }
 0x57e   :  { %11842 = vmatpush1.bf16.msra.mxu1 %v21484_v8  ;;  %v7725_v53 = vadd.f32 1.0, %v7724_v17  ;;  %v7727_v11 = vand.u32 2147483647, %v18914_v2  ;;  %12652 = vlog2.f32 %v8027_v7  ;;  %v12645_v12 = vpop.eup %12644  ;;  %v7456_v13 = vmul.f32 %v18882_v47, %v7455_v15  ;;  %v21495_v7 = vld [vmem:[#allocation60_spill] sm:$0xff]  ;;  %v21497_v8 = vld [vmem:[#allocation6_spill] sm:$0xff] }
 0x57f   :  { %v7171_v6 = vsel %vm19104_vm0, %v7168_v56, %v7165_v52  ;;  %v8013_v4 = vadd.f32 1.0, %v8012_v30  ;;  %v8194_v55 = vsel %vm6401_vm5, %v21485_v32, %v8066_v60  ;;  %v8226_v10 = vsel %vm6433_vm15, %v21486_v40, %v8098_v62  ;;  %v21499_v62 = vld [vmem:[#allocation5_spill] sm:$0xff] }
 0x580   :  { %v7453_v49 = vmul.f32 0.6931472, %v12645_v12  ;;  %v7742_v25 = vmul.f32 -0.5, %v18942_v35  ;;  %v12802_v29 = vmov 32   ;;  %v11843_v44 = vpack.c.bf16 %v8226_v10, %v8194_v55  ;;  %v21501_v55 = vld [vmem:[#allocation22_spill] sm:$0xff]  ;;  %v21502_v40 = vld [vmem:[#allocation25_spill] sm:$0xff] }
 0x581   :  { %11216 = vmatmul.mubr.msk.f32.vlgmr.msra.gmra.mrb[220].mxu1 %vm8299_vm4, %v19098_v38  ;;  %12124 = vset.pattern.permute.xlu1 %v12802_v29  ;;  %v12647_v22 = vpop.eup %12646  ;;  %vm7458_vm14 = vcmp.lt.f32.partialorder %v7457_v46, 0.0004427343  ;;  %v8068_v47 = vmul.f32 0.01, %v7171_v6  ;;  %v8030_v36 = vmul.f32 -0.5, %v19067_v5  ;;  %v7726_v0 = vmul.f32 %v18914_v2, %v7725_v53  ;;  %v21503_v10 = vld [vmem:[#allocation2_spill] sm:$0xff] }
 0x582   :  { %9431 = vmatprep.mubr.f32.mxu1 %v21401_v57  ;;  %8296 = vperm.xlu1 %12124, %v19098_v38   ;;  %v7459_v26 = vsel %vm7458_vm14, %v7456_v13, %v7453_v49  ;;  %v7723_v31 = vmul.f32 0.6931472, %v12647_v22  ;;  %v8015_v50 = vand.u32 2147483647, %v18945_v51  ;;  %vm6403_vm11 = vcmp.gt.f32.partialorder %v21487_v18, 20.0  ;;  %v8370_v22 = vpop.f32.mrb[209].mxu0 }
 0x583   :  { %12125 = vset.pattern.permute.xlu0 %v12802_v29  ;;  %vm6435_vm9 = vcmp.gt.f32.partialorder %v21488_v43, 20.0  ;;  %11844 = vmatprep.subr.bf16.mxu0 %v11843_v44  ;;  %v8100_v24 = vmul.f32 0.01, %v7459_v26  ;;  %vm7728_vm13 = vcmp.lt.f32.partialorder %v7727_v11, 0.0004427343  ;;  %v21491_v57 = vpack.c.bf16 %v21489_v14, %v21490_v28  ;;  %v21500_v11 = vld [vmem:[#allocation51_spill] sm:$0xff] }
 0x584   :  { %v12649_v45 = vpop.eup %12648  ;;  %v7729_v27 = vsel %vm7728_vm13, %v7726_v0, %v7723_v31  ;;  %v8014_v3 = vmul.f32 %v18945_v51, %v8013_v4  ;;  %v7743_v19 = vadd.f32 1.0, %v7742_v25  ;;  %v7745_v2 = vand.u32 2147483647, %v18942_v35  ;;  %v21504_v25 = vld [vmem:[#allocation4_spill] sm:$0xff]  ;;  %v8441_v44 = vpop.f32.mrb[209].mxu1  ;;  %v21505_v14 = vld [vmem:[#allocation63_spill] sm:$0xff] }
 0x585   :  { %11846 = vmatpush1.bf16.msra.mxu0 %v21491_v57  ;;  %v8196_v48 = vsel %vm6403_vm11, %v21492_v42, %v8068_v47  ;;  %v8228_v54 = vsel %vm6435_vm9, %v21493_v1, %v8100_v24  ;;  %v8011_v63 = vmul.f32 0.6931472, %v12649_v45  ;;  %v8031_v37 = vadd.f32 1.0, %v8030_v36  ;;  %v8510_v47 = vpop.f32.mrb[210].mxu0  ;;  %v8581_v36 = vpop.f32.mrb[210].mxu1  ;;  %v21506_v57 = vld [vmem:[#allocation24_spill] sm:$0xff] }
 0x586   :  { %v11851_v41 = vpack.c.bf16 %v8228_v54, %v8196_v48  ;;  %vm8016_vm6 = vcmp.lt.f32.partialorder %v8015_v50, 0.0004427343  ;;  %v8130_v17 = vmul.f32 0.01, %v7729_v27  ;;  %v8033_v59 = vand.u32 2147483647, %v19067_v5 }
 0x587   :  { %v12651_v15 = vpop.eup %12650  ;;  %v8017_v30 = vsel %vm8016_vm6, %v8014_v3, %v8011_v63  ;;  %vm6465_vm10 = vcmp.gt.f32.partialorder %v21494_v9, 20.0  ;;  %v7744_v46 = vmul.f32 %v18942_v35, %v7743_v19  ;;  %vm6497_vm3 = vcmp.gt.f32.partialorder %v21495_v7, 20.0  ;;  %v8512_v26 = vpop.f32.mrb[211].mxu0 }
 0x588   :  { %v12653_v33 = vpop.eup %12652  ;;  %11852 = vmatprep.subr.bf16.mxu1 %v11851_v41  ;;  %v8162_v51 = vmul.f32 0.01, %v8017_v30  ;;  %v7741_v60 = vmul.f32 0.6931472, %v12651_v15  ;;  %v21498_v34 = vpack.c.bf16 %v21496_v39, %v21497_v8  ;;  %vm7746_vm1 = vcmp.lt.f32.partialorder %v7745_v2, 0.0004427343 }
 0x589   :  { %v8029_v52 = vmul.f32 0.6931472, %v12653_v33  ;;  %v8032_v56 = vmul.f32 %v19067_v5, %v8031_v37  ;;  %v8258_v53 = vsel %vm6465_vm10, %v21499_v62, %v8130_v17  ;;  %vm8034_vm2 = vcmp.lt.f32.partialorder %v8033_v59, 0.0004427343  ;;  %v8583_v31 = vpop.f32.mrb[211].mxu1  ;;  %v19172_v61 = vpop.f32.mrb[212].mxu0 }
 0x58a   :  { %11854 = vmatpush1.bf16.msra.mxu1 %v21498_v34  ;;  %v8290_v12 = vsel %vm6497_vm3, %v21500_v11, %v8162_v51  ;;  %v7747_v6 = vsel %vm7746_vm1, %v7744_v46, %v7741_v60  ;;  %vm6467_vm7 = vcmp.gt.f32.partialorder %v21501_v55, 20.0  ;;  %vm6499_vm5 = vcmp.gt.f32.partialorder %v21502_v40, 20.0  ;;  %v19174_v23 = vpop.f32.mrb[212].mxu1 }
 0x58b   :  { %v11847_v13 = vpack.c.bf16 %v8290_v12, %v8258_v53  ;;  %v8035_v4 = vsel %vm8034_vm2, %v8032_v56, %v8029_v52  ;;  %v8132_v32 = vmul.f32 0.01, %v7747_v6  ;;  %v19178_v0 = vpop.f32.mrb[213].mxu1 }
 0x58c   :  { %v8164_v35 = vmul.f32 0.01, %v8035_v4  ;;  %v19182_v20 = vpop.f32.mrb[214].mxu1 }
 0x58d   :  { %11848 = vmatprep.subr.bf16.mxu0 %v11847_v13  ;;  %v8260_v49 = vsel %vm6467_vm7, %v21503_v10, %v8132_v32 }
 0x58e   :  { %v8292_v29 = vsel %vm6499_vm5, %v21504_v25, %v8164_v35  ;;  %11850 = vmatpush1.bf16.msra.mxu0 %v11849_v16  ;;  %v19176_v16 = vpop.f32.mrb[213].mxu0 }
 0x58f   :  { %v11855_v5 = vpack.c.bf16 %v8292_v29, %v8260_v49  ;;  %v19180_v50 = vpop.f32.mrb[214].mxu0 }
 0x590   :  { %v19184_v58 = vpop.f32.mrb[215].mxu0 }
 0x591   :  { %11856 = vmatprep.subr.bf16.mxu1 %v11855_v5  ;;  %11217 = vmatmul.mubr.msk.f32.vlgmr.msra.gmra.mrb[222].mxu0 %vm8299_vm4, %v19098_v38 }
 0x592   :  { %11858 = vmatpush1.bf16.msra.mxu1 %v11857_v21  ;;  %v19186_v21 = vpop.f32.mrb[215].mxu1 }
 0x595   :  { %11218 = vmatmul.mubr.msk.f32.vlgmr.msra.gmra.mrb[222].mxu1 %vm8299_vm4, %v19098_v38  ;;  %vm9438_vm4 = vcmask 1044480  }
 0x5bd   :  { %v19188_v38 = vpop.f32.mrb[216].mxu0 }
 0x5be   :  { %v19192_v43 = vpop.f32.mrb[217].mxu0 }
 0x5c4   :  { %v19190_v18 = vpop.f32.mrb[216].mxu1 }
 0x5c5   :  { %v19194_v24 = vpop.f32.mrb[217].mxu1 }
 0x601   :  { %v19196_v45 = vpop.permute.xlu1 %8296 }
 0x602   :  { %v19200_v28 = vadd.f32 %v21505_v14, %v19196_v45  ;;  %v19204_v27 = vadd.f32 %v21506_v57, %v19196_v45  ;;  %v19207_v3 = vadd.f32 %v8370_v22, %v19196_v45  ;;  %v19210_v19 = vadd.f32 %v8441_v44, %v19196_v45 }
 0x603   :  { %v19213_v2 = vadd.f32 %v8510_v47, %v19196_v45  ;;  %v19216_v42 = vadd.f32 %v8581_v36, %v19196_v45  ;;  %v19219_v48 = vadd.f32 %v8512_v26, %v19196_v45  ;;  %v19222_v1 = vadd.f32 %v8583_v31, %v19196_v45 }
 0x604   :  { %v9439_v54 = vsel %vm9438_vm4, %v19200_v28, -inf  ;;  %v9453_v63 = vsel %vm9438_vm4, %v19204_v27, -inf  ;;  %v10111_v37 = vrot.slane %v19200_v28, 2  ;;  %v10113_v41 = vrot.slane %v19204_v27, 2  ;;  %v19244_v46 = vpop.f32.mrb[218].mxu0 }
 0x605   :  { %v9440_v17 = vrot.slane %v9439_v54, 4  ;;  %v9454_v59 = vrot.slane %v9453_v63, 4  ;;  %v9446_v15 = vsel %vm9438_vm4, %v19207_v3, -inf  ;;  %v10112_v30 = vrot.slane %v19207_v3, 2  ;;  %v19249_v52 = vpop.f32.mrb[219].mxu0 }
 0x606   :  { %10175 = vst [vmem:[%s19830_s2 + $0x100] ss:$-252 sps:$4 sm:$0xc7] %v10111_v37   ;;  %10177 = vst [vmem:[%s19830_s2 + $0x110] ss:$-252 sps:$4 sm:$0xc7] %v10113_v41  }
 0x607   :  { %v9447_v33 = vrot.slane %v9446_v15, 4  ;;  %v9460_v9 = vsel %vm9438_vm4, %v19210_v19, -inf  ;;  %v10114_v51 = vrot.slane %v19210_v19, 2  ;;  %v9467_v60 = vsel %vm9438_vm4, %v19213_v2, -inf }
 0x608   :  { %v9441_v7 = vmax.f32 %v9439_v54, %v9440_v17  ;;  %v9455_v39 = vmax.f32 %v9453_v63, %v9454_v59  ;;  %10176 = vst [vmem:[%s19830_s2 + $0x108] ss:$-252 sps:$4 sm:$0xc7] %v10112_v30   ;;  %v9461_v8 = vrot.slane %v9460_v9, 4  ;;  %v9468_v34 = vrot.slane %v9467_v60, 4 }
 0x609   :  { %v9448_v56 = vmax.f32 %v9446_v15, %v9447_v33  ;;  %10178 = vst [vmem:[%s19830_s2 + $0x118] ss:$-252 sps:$4 sm:$0xc7] %v10114_v51   ;;  %v10115_v62 = vrot.slane %v19213_v2, 2  ;;  %v9481_v53 = vsel %vm9438_vm4, %v19216_v42, -inf  ;;  %v10117_v11 = vrot.slane %v19216_v42, 2 }
 0x60a   :  { %v9442_v12 = vrot.slane %v9441_v7, 2  ;;  %v9456_v6 = vrot.slane %v9455_v39, 2  ;;  %v9462_v13 = vmax.f32 %v9460_v9, %v9461_v8  ;;  %v9469_v4 = vmax.f32 %v9467_v60, %v9468_v34 }
 0x60b   :  { %v9449_v32 = vrot.slane %v9448_v56, 2  ;;  %10179 = vst [vmem:[%s19830_s2 + $0x120] ss:$-252 sps:$4 sm:$0xc7] %v10115_v62   ;;  %v9482_v35 = vrot.slane %v9481_v53, 4  ;;  %v9474_v55 = vsel %vm9438_vm4, %v19219_v48, -inf }
 0x60c   :  { %10181 = vst [vmem:[%s19830_s2 + $0x130] ss:$-252 sps:$4 sm:$0xc7] %v10117_v11   ;;  %v10116_v40 = vrot.slane %v19219_v48, 2  ;;  %v9443_v10 = vmax.f32 %v9441_v7, %v9442_v12  ;;  %v9457_v49 = vmax.f32 %v9455_v39, %v9456_v6  ;;  %v9463_v25 = vrot.slane %v9462_v13, 2  ;;  %v19272_v41 = vpop.f32.mrb[218].mxu1 }
 0x60d   :  { %v9470_v29 = vrot.slane %v9469_v4, 2  ;;  %v9450_v5 = vmax.f32 %v9448_v56, %v9449_v32  ;;  %v9483_v22 = vmax.f32 %v9481_v53, %v9482_v35  ;;  %v9475_v44 = vrot.slane %v9474_v55, 4  ;;  %v19274_v33 = vpop.f32.mrb[219].mxu1 }
 0x60e   :  { %10180 = vst [vmem:[%s19830_s2 + $0x128] ss:$-252 sps:$4 sm:$0xc7] %v10116_v40   ;;  %v9488_v47 = vsel %vm9438_vm4, %v19222_v1, -inf  ;;  %v9444_v36 = vrot.slane %v9443_v10, 1  ;;  %v9458_v26 = vrot.slane %v9457_v49, 1  ;;  %v9464_v31 = vmax.f32 %v9462_v13, %v9463_v25 }
 0x60f   :  { %v9471_v14 = vmax.f32 %v9469_v4, %v9470_v29  ;;  %v9451_v57 = vrot.slane %v9450_v5, 1  ;;  %v9484_v54 = vrot.slane %v9483_v22, 2  ;;  %v9476_v63 = vmax.f32 %v9474_v55, %v9475_v44 }
 0x610   :  { %v9489_v37 = vrot.slane %v9488_v47, 4  ;;  %v9445_v17 = vmax.f32 %v9443_v10, %v9444_v36  ;;  %v9459_v59 = vmax.f32 %v9457_v49, %v9458_v26  ;;  %v9465_v15 = vrot.slane %v9464_v31, 1 }
 0x611   :  { %v9472_v30 = vrot.slane %v9471_v14, 1  ;;  %v9452_v9 = vmax.f32 %v9450_v5, %v9451_v57  ;;  %v9485_v51 = vmax.f32 %v9483_v22, %v9484_v54  ;;  %v9477_v60 = vrot.slane %v9476_v63, 2 }
 0x612   :  { %v9490_v7 = vmax.f32 %v9488_v47, %v9489_v37  ;;  %v9663_v39 = vsub.f32 %v19200_v28, %v9445_v17  ;;  %v9665_v8 = vsub.f32 %v19204_v27, %v9459_v59  ;;  %v9466_v34 = vmax.f32 %v9464_v31, %v9465_v15 }
 0x613   :  { %v9473_v56 = vmax.f32 %v9471_v14, %v9472_v30  ;;  %v9664_v62 = vsub.f32 %v19207_v3, %v9452_v9  ;;  %v9486_v53 = vrot.slane %v9485_v51, 1  ;;  %v9478_v11 = vmax.f32 %v9476_v63, %v9477_v60 }
 0x614   :  { %v9491_v12 = vrot.slane %v9490_v7, 2  ;;  %v9695_v6 = vmul.f32 1.442695, %v9663_v39  ;;  %v9699_v13 = vmul.f32 1.442695, %v9665_v8  ;;  %v9666_v4 = vsub.f32 %v19210_v19, %v9466_v34 }
 0x615   :  { %v9667_v32 = vsub.f32 %v19213_v2, %v9473_v56  ;;  %v9697_v35 = vmul.f32 1.442695, %v9664_v62  ;;  %v9487_v55 = vmax.f32 %v9485_v51, %v9486_v53  ;;  %v9479_v40 = vrot.slane %v9478_v11, 1 }
 0x616   :  { %v9492_v10 = vmax.f32 %v9490_v7, %v9491_v12  ;;  %12654 = vpow2.f32 %v9695_v6  ;;  %v9701_v28 = vmul.f32 1.442695, %v9666_v4  ;;  %v10118_v49 = vrot.slane %v19222_v1, 2 }
 0x617   :  { %v9703_v27 = vmul.f32 1.442695, %v9667_v32  ;;  %12656 = vpow2.f32 %v9699_v13  ;;  %v9669_v3 = vsub.f32 %v19216_v42, %v9487_v55  ;;  %v9480_v25 = vmax.f32 %v9478_v11, %v9479_v40 }
 0x618   :  { %v9493_v29 = vrot.slane %v9492_v10, 1  ;;  %12658 = vpow2.f32 %v9697_v35  ;;  %10182 = vst [vmem:[%s19830_s2 + $0x138] ss:$-252 sps:$4 sm:$0xc7] %v10118_v49   ;;  %v19288_v19 = vadd.f32 %v19172_v61, %v19196_v45  ;;  %v19292_v2 = vadd.f32 %v19174_v23, %v19196_v45 }
 0x619   :  { %v19296_v5 = vadd.f32 %v19176_v16, %v19196_v45  ;;  %12660 = vpow2.f32 %v9701_v28  ;;  %v9707_v42 = vmul.f32 1.442695, %v9669_v3  ;;  %v9668_v22 = vsub.f32 %v19219_v48, %v9480_v25 }
 0x61a   :  { %v9494_v44 = vmax.f32 %v9492_v10, %v9493_v29  ;;  %12662 = vpow2.f32 %v9703_v27  ;;  %v9495_v47 = vsel %vm9438_vm4, %v19288_v19, -inf  ;;  %v10119_v61 = vrot.slane %v19288_v19, 2 }
 0x61b   :  { %v9509_v36 = vsel %vm9438_vm4, %v19292_v2, -inf  ;;  %12664 = vpow2.f32 %v9707_v42  ;;  %v9705_v23 = vmul.f32 1.442695, %v9668_v22  ;;  %v9496_v16 = vrot.slane %v9495_v47, 4 }
 0x61c   :  { %v9670_v26 = vsub.f32 %v19222_v1, %v9494_v44  ;;  %10183 = vst [vmem:[%s19830_s2 + $0x140] ss:$-252 sps:$4 sm:$0xc7] %v10119_v61   ;;  %v9510_v48 = vrot.slane %v9509_v36, 4  ;;  %v10121_v31 = vrot.slane %v19292_v2, 2  ;;  %v9502_v14 = vsel %vm9438_vm4, %v19296_v5, -inf }
 0x61d   :  { %v10120_v57 = vrot.slane %v19296_v5, 2  ;;  %12666 = vpow2.f32 %v9705_v23  ;;  %v9497_v63 = vmax.f32 %v9495_v47, %v9496_v16  ;;  %v9503_v37 = vrot.slane %v9502_v14, 4 }
 0x61e   :  { %v9709_v54 = vmul.f32 1.442695, %v9670_v26  ;;  %v9511_v17 = vmax.f32 %v9509_v36, %v9510_v48  ;;  %10185 = vst [vmem:[%s19830_s2 + $0x150] ss:$-252 sps:$4 sm:$0xc7] %v10121_v31   ;;  %v19320_v1 = vadd.f32 %v19178_v0, %v19196_v45  ;;  %v19324_v59 = vadd.f32 %v19180_v50, %v19196_v45 }
 0x61f   :  { %10184 = vst [vmem:[%s19830_s2 + $0x148] ss:$-252 sps:$4 sm:$0xc7] %v10120_v57   ;;  %v19328_v15 = vadd.f32 %v19182_v20, %v19196_v45  ;;  %v9498_v30 = vrot.slane %v9497_v63, 2  ;;  %v9504_v9 = vmax.f32 %v9502_v14, %v9503_v37  ;;  %v19332_v51 = vadd.f32 %v19184_v58, %v19196_v45 }
 0x620   :  { %12668 = vpow2.f32 %v9709_v54  ;;  %v19334_v60 = vpop.eup %12654  ;;  %v9512_v7 = vrot.slane %v9511_v17, 2  ;;  %v19338_v0 = vsel %vm9438_vm4, %v19320_v1, -inf  ;;  %v10122_v50 = vrot.slane %v19320_v1, 2 }
 0x621   :  { %v19343_v20 = vsel %vm9438_vm4, %v19324_v59, -inf  ;;  %v19345_v39 = vpop.eup %12656  ;;  %v9759_v8 = vsel %vm9438_vm4, %v19334_v60, 0.0  ;;  %v9499_v58 = vmax.f32 %v9497_v63, %v9498_v30  ;;  %v9505_v34 = vrot.slane %v9504_v9, 2 }
 0x622   :  { %v9517_v56 = vrot.slane %v19338_v0, 4  ;;  %v19350_v62 = vpop.eup %12658  ;;  %v9760_v53 = vrot.slane %v9759_v8, 4  ;;  %v9773_v11 = vsel %vm9438_vm4, %v19345_v39, 0.0  ;;  %v19354_v12 = vmax.f32 %v9511_v17, %v9512_v7  ;;  %10186 = vst [vmem:[%s19830_s2 + $0x158] ss:$-252 sps:$4 sm:$0xc7] %v10122_v50  }
 0x623   :  { %v9524_v6 = vrot.slane %v19343_v20, 4  ;;  %v19360_v13 = vpop.eup %12660  ;;  %v9774_v4 = vrot.slane %v9773_v11, 4  ;;  %v9766_v32 = vsel %vm9438_vm4, %v19350_v62, 0.0  ;;  %v9500_v35 = vrot.slane %v9499_v58, 1 }
 0x624   :  { %v19364_v55 = vmax.f32 %v9504_v9, %v9505_v34  ;;  %v19366_v40 = vpop.eup %12662  ;;  %v9761_v10 = vadd.f32 %v9760_v53, %v9759_v8  ;;  %v9767_v28 = vrot.slane %v9766_v32, 4  ;;  %v9780_v27 = vsel %vm9438_vm4, %v19360_v13, 0.0 }
 0x625   :  { %v9514_v49 = vrot.slane %v19354_v12, 1  ;;  %v19371_v3 = vpop.eup %12664  ;;  %v9775_v25 = vadd.f32 %v9774_v4, %v9773_v11  ;;  %v9781_v29 = vrot.slane %v9780_v27, 4  ;;  %v9787_v42 = vsel %vm9438_vm4, %v19366_v40, 0.0 }
 0x626   :  { %v9501_v22 = vmax.f32 %v9499_v58, %v9500_v35  ;;  %v9762_v44 = vrot.slane %v9761_v10, 2  ;;  %v9768_v47 = vadd.f32 %v9767_v28, %v9766_v32  ;;  %v9788_v61 = vrot.slane %v9787_v42, 4 }
 0x627   :  { %v9801_v36 = vsel %vm9438_vm4, %v19371_v3, 0.0  ;;  %v19377_v23 = vpop.eup %12666  ;;  %v9776_v26 = vrot.slane %v9775_v25, 2  ;;  %v9782_v16 = vadd.f32 %v9781_v29, %v9780_v27 }
 0x628   :  { %v9802_v48 = vrot.slane %v9801_v36, 4  ;;  %v9671_v31 = vsub.f32 %v19288_v19, %v9501_v22  ;;  %v9763_v14 = vadd.f32 %v9762_v44, %v9761_v10  ;;  %v9769_v57 = vrot.slane %v9768_v47, 2 }
 0x629   :  { %v9789_v54 = vadd.f32 %v9788_v61, %v9787_v42  ;;  %v9794_v63 = vsel %vm9438_vm4, %v19377_v23, 0.0  ;;  %v9777_v17 = vadd.f32 %v9776_v26, %v9775_v25  ;;  %v9783_v30 = vrot.slane %v9782_v16, 2 }
 0x62a   :  { %v19382_v37 = vpop.eup %12668  ;;  %v9803_v9 = vadd.f32 %v9802_v48, %v9801_v36  ;;  %v9795_v7 = vrot.slane %v9794_v63, 4  ;;  %v9764_v50 = vrot.slane %v9763_v14, 1  ;;  %v9770_v8 = vadd.f32 %v9769_v57, %v9768_v47 }
 0x62b   :  { %v9790_v58 = vrot.slane %v9789_v54, 2  ;;  %v9808_v34 = vsel %vm9438_vm4, %v19382_v37, 0.0  ;;  %v9778_v53 = vrot.slane %v9777_v17, 1  ;;  %v9784_v19 = vadd.f32 %v9783_v30, %v9782_v16 }
 0x62c   :  { %v9804_v11 = vrot.slane %v9803_v9, 2  ;;  %v9796_v4 = vadd.f32 %v9795_v7, %v9794_v63  ;;  %v9765_v32 = vadd.f32 %v9764_v50, %v9763_v14  ;;  %v9771_v35 = vrot.slane %v9770_v8, 1 }
 0x62d   :  { %v9791_v10 = vadd.f32 %v9790_v58, %v9789_v54  ;;  %v9809_v28 = vrot.slane %v9808_v34, 4  ;;  %v9779_v27 = vadd.f32 %v9778_v53, %v9777_v17  ;;  %v9785_v29 = vrot.slane %v9784_v19, 1 }
 0x62e   :  { %v9805_v25 = vadd.f32 %v9804_v11, %v9803_v9  ;;  %v9797_v42 = vrot.slane %v9796_v4, 2  ;;  %12670 = vrcp.f32 %v9765_v32  ;;  %v9772_v22 = vadd.f32 %v9771_v35, %v9770_v8 }
 0x62f   :  { %v9792_v44 = vrot.slane %v9791_v10, 1  ;;  %v9810_v47 = vadd.f32 %v9809_v28, %v9808_v34  ;;  %12672 = vrcp.f32 %v9779_v27  ;;  %v9786_v61 = vadd.f32 %v9785_v29, %v9784_v19 }
 0x630   :  { %v9806_v36 = vrot.slane %v9805_v25, 1  ;;  %v9798_v26 = vadd.f32 %v9797_v42, %v9796_v4  ;;  %12674 = vrcp.f32 %v9772_v22  ;;  %v9711_v57 = vmul.f32 1.442695, %v9671_v31 }
 0x631   :  { %v9793_v16 = vadd.f32 %v9792_v44, %v9791_v10  ;;  %v9811_v48 = vrot.slane %v9810_v47, 2  ;;  %12676 = vrcp.f32 %v9786_v61  ;;  %v9515_v63 = vmax.f32 %v19354_v12, %v9514_v49 }
 0x632   :  { %v9807_v14 = vadd.f32 %v9806_v36, %v9805_v25  ;;  %v9799_v54 = vrot.slane %v9798_v26, 1  ;;  %v9507_v30 = vrot.slane %v19364_v55, 1  ;;  %v9518_v9 = vmax.f32 %v19338_v0, %v9517_v56 }
 0x633   :  { %12678 = vrcp.f32 %v9793_v16  ;;  %v9812_v17 = vadd.f32 %v9811_v48, %v9810_v47  ;;  %v9673_v50 = vsub.f32 %v19292_v2, %v9515_v63  ;;  %v9525_v31 = vmax.f32 %v19343_v20, %v9524_v6 }
 0x634   :  { %12680 = vrcp.f32 %v9807_v14  ;;  %v9800_v7 = vadd.f32 %v9799_v54, %v9798_v26  ;;  %v9508_v12 = vmax.f32 %v19364_v55, %v9507_v30  ;;  %v9519_v49 = vrot.slane %v9518_v9, 2 }
 0x635   :  { %v9813_v8 = vrot.slane %v9812_v17, 1  ;;  %12682 = vpow2.f32 %v9711_v57  ;;  %v9715_v58 = vmul.f32 1.442695, %v9673_v50  ;;  %v9526_v34 = vrot.slane %v9525_v31, 2 }
 0x636   :  { %12684 = vrcp.f32 %v9800_v7  ;;  %v10123_v53 = vrot.slane %v19324_v59, 2  ;;  %v9672_v0 = vsub.f32 %v19296_v5, %v9508_v12  ;;  %v9520_v56 = vmax.f32 %v9518_v9, %v9519_v49 }
 0x637   :  { %v9814_v19 = vadd.f32 %v9813_v8, %v9812_v17  ;;  %v9537_v2 = vsel %vm9438_vm4, %v19328_v15, -inf  ;;  %12686 = vpow2.f32 %v9715_v58  ;;  %v9527_v11 = vmax.f32 %v9525_v31, %v9526_v34 }
 0x638   :  { %10187 = vst [vmem:[%s19830_s2 + $0x160] ss:$-252 sps:$4 sm:$0xc7] %v10123_v53   ;;  %v9538_v20 = vrot.slane %v9537_v2, 4  ;;  %v10125_v6 = vrot.slane %v19328_v15, 2  ;;  %v12671_v55 = vpop.eup %12670  ;;  %v9521_v32 = vrot.slane %v9520_v56, 1 }
 0x639   :  { %12688 = vrcp.f32 %v9814_v19  ;;  %v9713_v4 = vmul.f32 1.442695, %v9672_v0  ;;  %v9530_v5 = vsel %vm9438_vm4, %v19332_v51, -inf  ;;  %v12673_v35 = vpop.eup %12672  ;;  %v10015_v10 = vmul.f32 %v12671_v55, %v19334_v60 }
 0x63a   :  { %v9528_v28 = vrot.slane %v9527_v11, 1  ;;  %v9539_v27 = vmax.f32 %v9537_v2, %v9538_v20  ;;  %10189 = vst [vmem:[%s19830_s2 + $0x170] ss:$-252 sps:$4 sm:$0xc7] %v10125_v6   ;;  %v9531_v29 = vrot.slane %v9530_v5, 4  ;;  %v12675_v25 = vpop.eup %12674  ;;  %v10017_v42 = vmul.f32 %v12673_v35, %v19345_v39 }
 0x63b   :  { %12690 = vpow2.f32 %v9713_v4  ;;  %v9522_v22 = vmax.f32 %v9520_v56, %v9521_v32  ;;  %v10124_v44 = vrot.slane %v19332_v51, 2  ;;  %v12677_v47 = vpop.eup %12676  ;;  %v10271_v61 = vrot.slane %v10015_v10, 5 }
 0x63c   :  { %v10016_v36 = vmul.f32 %v12675_v25, %v19350_v62  ;;  %v9529_v26 = vmax.f32 %v9527_v11, %v9528_v28  ;;  %v9540_v60 = vrot.slane %v9539_v27, 2  ;;  %v10273_v48 = vrot.slane %v10017_v42, 5 }
 0x63d   :  { %v12679_v16 = vpop.eup %12678  ;;  %v10018_v57 = vmul.f32 %v12677_v47, %v19360_v13  ;;  %v9674_v14 = vsub.f32 %v19320_v1, %v9522_v22  ;;  %v9532_v54 = vmax.f32 %v9530_v5, %v9531_v29  ;;  %10188 = vst [vmem:[%s19830_s2 + $0x168] ss:$-252 sps:$4 sm:$0xc7] %v10124_v44   ;;  %10335 = vst [vmem:[%s19830_s2 + $0x100] sm:$0xf8] %v10271_v61 }
 0x63e   :  { %v12681_v39 = vpop.eup %12680  ;;  %v10272_v63 = vrot.slane %v10016_v36, 5  ;;  %v10019_v62 = vmul.f32 %v12679_v16, %v19366_v40  ;;  %v9675_v17 = vsub.f32 %v19324_v59, %v9529_v26  ;;  %v9541_v30 = vmax.f32 %v9539_v27, %v9540_v60  ;;  %10337 = vst [vmem:[%s19830_s2 + $0x110] sm:$0xf8] %v10273_v48 }
 0x63f   :  { %v19423_v9 = vpop.eup %12682  ;;  %v10274_v1 = vrot.slane %v10018_v57, 5  ;;  %v10021_v13 = vmul.f32 %v12681_v39, %v19371_v3  ;;  %v9717_v7 = vmul.f32 1.442695, %v9674_v14  ;;  %v9533_v50 = vrot.slane %v9532_v54, 2 }
 0x640   :  { %v12685_v31 = vpop.eup %12684  ;;  %10336 = vst [vmem:[%s19830_s2 + $0x108] sm:$0xf8] %v10272_v63  ;;  %v10275_v40 = vrot.slane %v10019_v62, 5  ;;  %v9815_v59 = vsel %vm9438_vm4, %v19423_v9, 0.0  ;;  %v9719_v8 = vmul.f32 1.442695, %v9675_v17  ;;  %v19445_v0 = vadd.f32 %v19186_v21, %v19196_v45 }
 0x641   :  { %v9542_v12 = vrot.slane %v9541_v30, 1  ;;  %10338 = vst [vmem:[%s19830_s2 + $0x118] sm:$0xf8] %v10274_v1  ;;  %v10277_v49 = vrot.slane %v10021_v13, 5  ;;  %v10020_v3 = vmul.f32 %v12685_v31, %v19377_v23  ;;  %v9816_v58 = vrot.slane %v9815_v59, 4  ;;  %v19438_v34 = vpop.eup %12686 }
 0x642   :  { %12692 = vpow2.f32 %v9717_v7  ;;  %10339 = vst [vmem:[%s19830_s2 + $0x120] sm:$0xf8] %v10275_v40  ;;  %v9534_v19 = vmax.f32 %v9532_v54, %v9533_v50  ;;  %v9829_v11 = vsel %vm9438_vm4, %v19438_v34, 0.0  ;;  %v19454_v20 = vadd.f32 %v19188_v38, %v19196_v45 }
 0x643   :  { %12694 = vpow2.f32 %v9719_v8  ;;  %v9543_v53 = vmax.f32 %v9541_v30, %v9542_v12  ;;  %v12689_v56 = vpop.eup %12688  ;;  %10341 = vst [vmem:[%s19830_s2 + $0x130] sm:$0xf8] %v10277_v49  ;;  %v10276_v23 = vrot.slane %v10020_v3, 5  ;;  %v9817_v2 = vadd.f32 %v9816_v58, %v9815_v59 }
 0x644   :  { %v10022_v6 = vmul.f32 %v12689_v56, %v19382_v37  ;;  %v9830_v55 = vrot.slane %v9829_v11, 4  ;;  %v9535_v4 = vrot.slane %v9534_v19, 1  ;;  %v9544_v35 = vsel %vm9438_vm4, %v19445_v0, -inf }
 0x645   :  { %v9677_v21 = vsub.f32 %v19328_v15, %v9543_v53  ;;  %v19458_v32 = vpop.eup %12690  ;;  %10340 = vst [vmem:[%s19830_s2 + $0x128] sm:$0xf8] %v10276_v23  ;;  %v9818_v5 = vrot.slane %v9817_v2, 2  ;;  %v10126_v10 = vrot.slane %v19445_v0, 2  ;;  %v9551_v38 = vsel %vm9438_vm4, %v19454_v20, -inf }
 0x646   :  { %v10278_v37 = vrot.slane %v10022_v6, 5  ;;  %v9831_v28 = vadd.f32 %v9830_v55, %v9829_v11  ;;  %v9822_v15 = vsel %vm9438_vm4, %v19458_v32, 0.0  ;;  %v9536_v42 = vmax.f32 %v9534_v19, %v9535_v4 }
 0x647   :  { %v9723_v27 = vmul.f32 1.442695, %v9677_v21  ;;  %v9819_v29 = vadd.f32 %v9818_v5, %v9817_v2  ;;  %v9823_v25 = vrot.slane %v9822_v15, 4  ;;  %v9545_v22 = vrot.slane %v9544_v35, 4 }
 0x648   :  { %10190 = vst [vmem:[%s19830_s2 + $0x178] ss:$-252 sps:$4 sm:$0xc7] %v10126_v10   ;;  %10342 = vst [vmem:[%s19830_s2 + $0x138] sm:$0xf8] %v10278_v37  ;;  %v9832_v44 = vrot.slane %v9831_v28, 2  ;;  %v9676_v60 = vsub.f32 %v19332_v51, %v9536_v42  ;;  %v19483_v14 = vadd.f32 %v19190_v18, %v19196_v45  ;;  %v19487_v54 = vadd.f32 %v19192_v43, %v19196_v45 }
 0x649   :  { %12696 = vpow2.f32 %v9723_v27  ;;  %v9552_v47 = vrot.slane %v9551_v38, 4  ;;  %v10127_v61 = vrot.slane %v19454_v20, 2  ;;  %v9820_v36 = vrot.slane %v9819_v29, 1 }
 0x64a   :  { %v9824_v26 = vadd.f32 %v9823_v25, %v9822_v15  ;;  %v9546_v16 = vmax.f32 %v9544_v35, %v9545_v22  ;;  %v9833_v48 = vadd.f32 %v9832_v44, %v9831_v28  ;;  %v9721_v51 = vmul.f32 1.442695, %v9676_v60 }
 0x64b   :  { %v9553_v57 = vmax.f32 %v9551_v38, %v9552_v47  ;;  %10191 = vst [vmem:[%s19830_s2 + $0x180] ss:$-252 sps:$4 sm:$0xc7] %v10127_v61   ;;  %v9821_v63 = vadd.f32 %v9820_v36, %v9819_v29  ;;  %v9565_v18 = vsel %vm9438_vm4, %v19483_v14, -inf  ;;  %v10129_v23 = vrot.slane %v19483_v14, 2 }
 0x64c   :  { %v19489_v39 = vpop.eup %12692  ;;  %v9825_v62 = vrot.slane %v9824_v26, 2  ;;  %v9547_v17 = vrot.slane %v9546_v16, 2  ;;  %v9834_v1 = vrot.slane %v9833_v48, 1  ;;  %v9566_v58 = vrot.slane %v9565_v18, 4 }
 0x64d   :  { %v19491_v30 = vpop.eup %12694  ;;  %v9836_v13 = vsel %vm9438_vm4, %v19489_v39, 0.0  ;;  %v9554_v7 = vrot.slane %v9553_v57, 2  ;;  %12698 = vrcp.f32 %v9821_v63  ;;  %v19499_v53 = vpop.f32.mrb[220].mxu0  ;;  %10193 = vst [vmem:[%s19830_s2 + $0x190] ss:$-252 sps:$4 sm:$0xc7] %v10129_v23   ;;  %v19521_v61 = vadd.f32 %v19194_v24, %v19196_v45 }
 0x64e   :  { %v9826_v50 = vadd.f32 %v9825_v62, %v9824_v26  ;;  %v9837_v43 = vrot.slane %v9836_v13, 4  ;;  %v9843_v31 = vsel %vm9438_vm4, %v19491_v30, 0.0  ;;  %v9835_v40 = vadd.f32 %v9834_v1, %v9833_v48  ;;  %v19502_v2 = vpop.f32.mrb[221].mxu0 }
 0x64f   :  { %v9844_v59 = vrot.slane %v9843_v31, 4  ;;  %12700 = vpow2.f32 %v9721_v51  ;;  %v9548_v8 = vmax.f32 %v9546_v16, %v9547_v17  ;;  %v9555_v3 = vmax.f32 %v9553_v57, %v9554_v7 }
 0x650   :  { %v9827_v12 = vrot.slane %v9826_v50, 1  ;;  %v9838_v49 = vadd.f32 %v9837_v43, %v9836_v13  ;;  %12702 = vrcp.f32 %v9835_v40  ;;  %v9567_v21 = vmax.f32 %v9565_v18, %v9566_v58 }
 0x651   :  { %v9845_v19 = vadd.f32 %v9844_v59, %v9843_v31  ;;  %v9549_v56 = vrot.slane %v9548_v8, 1  ;;  %v9556_v55 = vrot.slane %v9555_v3, 1  ;;  %v9558_v10 = vsel %vm9438_vm4, %v19487_v54, -inf }
 0x652   :  { %v9828_v11 = vadd.f32 %v9827_v12, %v9826_v50  ;;  %v9839_v6 = vrot.slane %v9838_v49, 2  ;;  %v10128_v38 = vrot.slane %v19487_v54, 2  ;;  %v9568_v42 = vrot.slane %v9567_v21, 2 }
 0x653   :  { %v19504_v4 = vpop.eup %12696  ;;  %v9846_v5 = vrot.slane %v9845_v19, 2  ;;  %v9550_v35 = vmax.f32 %v9548_v8, %v9549_v56  ;;  %v9557_v15 = vmax.f32 %v9555_v3, %v9556_v55  ;;  %v9559_v47 = vrot.slane %v9558_v10, 4 }
 0x654   :  { %12704 = vrcp.f32 %v9828_v11  ;;  %v9840_v37 = vadd.f32 %v9839_v6, %v9838_v49  ;;  %v9857_v28 = vsel %vm9438_vm4, %v19504_v4, 0.0  ;;  %10192 = vst [vmem:[%s19830_s2 + $0x188] ss:$-252 sps:$4 sm:$0xc7] %v10128_v38   ;;  %v9569_v16 = vmax.f32 %v9567_v21, %v9568_v42  ;;  %v19523_v48 = vpop.f32.mrb[220].mxu1 }
 0x655   :  { %v9847_v27 = vadd.f32 %v9846_v5, %v9845_v19  ;;  %v9858_v29 = vrot.slane %v9857_v28, 4  ;;  %v9678_v25 = vsub.f32 %v19445_v0, %v9550_v35  ;;  %v9679_v44 = vsub.f32 %v19454_v20, %v9557_v15  ;;  %v19527_v17 = vpop.f32.mrb[221].mxu1 }
 0x656   :  { %v9841_v22 = vrot.slane %v9840_v37, 1  ;;  %v9560_v62 = vmax.f32 %v9558_v10, %v9559_v47  ;;  %v9572_v51 = vsel %vm9438_vm4, %v19521_v61, -inf  ;;  %v9570_v18 = vrot.slane %v9569_v16, 1 }
 0x657   :  { %v9848_v36 = vrot.slane %v9847_v27, 1  ;;  %v9859_v26 = vadd.f32 %v9858_v29, %v9857_v28  ;;  %v9725_v60 = vmul.f32 1.442695, %v9678_v25  ;;  %v12699_v0 = vpop.eup %12698  ;;  %v9727_v63 = vmul.f32 1.442695, %v9679_v44 }
 0x658   :  { %v9842_v57 = vadd.f32 %v9841_v22, %v9840_v37  ;;  %v10023_v24 = vmul.f32 %v12699_v0, %v19423_v9  ;;  %v9561_v50 = vrot.slane %v9560_v62, 2  ;;  %v9571_v12 = vmax.f32 %v9569_v16, %v9570_v18 }
 0x659   :  { %v19529_v20 = vpop.eup %12700  ;;  %v9849_v1 = vadd.f32 %v9848_v36, %v9847_v27  ;;  %v9860_v13 = vrot.slane %v9859_v26, 2  ;;  %12706 = vpow2.f32 %v9725_v60  ;;  %v9573_v58 = vrot.slane %v9572_v51, 4 }
 0x65a   :  { %12708 = vrcp.f32 %v9842_v57  ;;  %v9850_v7 = vsel %vm9438_vm4, %v19529_v20, 0.0  ;;  %v12703_v43 = vpop.eup %12702  ;;  %v10279_v31 = vrot.slane %v10023_v24, 5  ;;  %v9562_v49 = vmax.f32 %v9560_v62, %v9561_v50 }
 0x65b   :  { %12710 = vrcp.f32 %v9849_v1  ;;  %v9861_v40 = vadd.f32 %v9860_v13, %v9859_v26  ;;  %v9851_v59 = vrot.slane %v9850_v7, 4  ;;  %v10025_v8 = vmul.f32 %v12703_v43, %v19438_v34 }
 0x65c   :  { %12712 = vpow2.f32 %v9727_v63  ;;  %10343 = vst [vmem:[%s19830_s2 + $0x140] sm:$0xf8] %v10279_v31  ;;  %v10130_v19 = vrot.slane %v19521_v61, 2  ;;  %v9681_v11 = vsub.f32 %v19483_v14, %v9571_v12  ;;  %v9563_v6 = vrot.slane %v9562_v49, 1 }
 0x65d   :  { %v9862_v9 = vrot.slane %v9861_v40, 1  ;;  %v9852_v3 = vadd.f32 %v9851_v59, %v9850_v7  ;;  %v10281_v23 = vrot.slane %v10025_v8, 5  ;;  %v19542_v34 = vadd.f32 %v19244_v46, %v19196_v45 }
 0x65e   :  { %v12705_v56 = vpop.eup %12704  ;;  %v9574_v35 = vmax.f32 %v9572_v51, %v9573_v58  ;;  %10194 = vst [vmem:[%s19830_s2 + $0x198] ss:$-252 sps:$4 sm:$0xc7] %v10130_v19   ;;  %v9731_v10 = vmul.f32 1.442695, %v9681_v11  ;;  %v9564_v14 = vmax.f32 %v9562_v49, %v9563_v6  ;;  %v19560_v29 = vadd.f32 %v19272_v41, %v19196_v45 }
 0x65f   :  { %v10024_v55 = vmul.f32 %v12705_v56, %v19458_v32  ;;  %v9863_v21 = vadd.f32 %v9862_v9, %v9861_v40  ;;  %v9853_v5 = vrot.slane %v9852_v3, 2  ;;  %10345 = vst [vmem:[%s19830_s2 + $0x150] sm:$0xf8] %v10281_v23  ;;  %v9579_v38 = vsel %vm9438_vm4, %v19542_v34, -inf }
 0x660   :  { %v10131_v46 = vrot.slane %v19542_v34, 2  ;;  %v9575_v28 = vrot.slane %v9574_v35, 2  ;;  %v9680_v15 = vsub.f32 %v19487_v54, %v9564_v14  ;;  %v9580_v27 = vrot.slane %v9579_v38, 4 }
 0x661   :  { %v10280_v37 = vrot.slane %v10024_v55, 5  ;;  %12714 = vrcp.f32 %v9863_v21  ;;  %v9854_v32 = vadd.f32 %v9853_v5, %v9852_v3  ;;  %v19569_v54 = vadd.f32 %v19249_v52, %v19196_v45 }
 0x662   :  { %12716 = vpow2.f32 %v9731_v10  ;;  %10195 = vst [vmem:[%s19830_s2 + $0x1a0] ss:$-252 sps:$4 sm:$0xc7] %v10131_v46   ;;  %v9576_v22 = vmax.f32 %v9574_v35, %v9575_v28  ;;  %v19573_v44 = vadd.f32 %v19274_v33, %v19196_v45  ;;  %v9729_v36 = vmul.f32 1.442695, %v9680_v15 }
 0x663   :  { %v19562_v25 = vpop.eup %12706  ;;  %10344 = vst [vmem:[%s19830_s2 + $0x148] sm:$0xf8] %v10280_v37  ;;  %v9855_v42 = vrot.slane %v9854_v32, 1  ;;  %v9581_v26 = vmax.f32 %v9579_v38, %v9580_v27  ;;  %v9593_v60 = vsel %vm9438_vm4, %v19560_v29, -inf  ;;  %v10133_v59 = vrot.slane %v19560_v29, 2 }
 0x664   :  { %v12709_v47 = vpop.eup %12708  ;;  %v9864_v41 = vsel %vm9438_vm4, %v19562_v25, 0.0  ;;  %v9577_v52 = vrot.slane %v9576_v22, 1  ;;  %12718 = vpow2.f32 %v9729_v36  ;;  %v9594_v24 = vrot.slane %v9593_v60, 4  ;;  %v19585_v31 = vpop.f32.mrb[222].mxu0 }
 0x665   :  { %v12711_v16 = vpop.eup %12710  ;;  %v10026_v0 = vmul.f32 %v12709_v47, %v19489_v39  ;;  %v9856_v57 = vadd.f32 %v9855_v42, %v9854_v32  ;;  %v9865_v63 = vrot.slane %v9864_v41, 4  ;;  %v9582_v51 = vrot.slane %v9581_v26, 2  ;;  %v19593_v12 = vpop.f32.mrb[223].mxu0  ;;  %10197 = vst [vmem:[%s19830_s2 + $0x1b0] ss:$-252 sps:$4 sm:$0xc7] %v10133_v59  }
 0x666   :  { %v19580_v62 = vpop.eup %12712  ;;  %v10027_v33 = vmul.f32 %v12711_v16, %v19491_v30  ;;  %v9578_v43 = vmax.f32 %v9576_v22, %v9577_v52  ;;  %v9595_v40 = vmax.f32 %v9593_v60, %v9594_v24  ;;  %v9586_v8 = vsel %vm9438_vm4, %v19569_v54, -inf }
 0x667   :  { %v10282_v1 = vrot.slane %v10026_v0, 5  ;;  %12720 = vrcp.f32 %v9856_v57  ;;  %v9866_v13 = vadd.f32 %v9865_v63, %v9864_v41  ;;  %v9871_v7 = vsel %vm9438_vm4, %v19580_v62, 0.0 }
 0x668   :  { %v10283_v18 = vrot.slane %v10027_v33, 5  ;;  %v9872_v50 = vrot.slane %v9871_v7, 4  ;;  %v9583_v39 = vmax.f32 %v9581_v26, %v9582_v51  ;;  %v9682_v9 = vsub.f32 %v19521_v61, %v9578_v43  ;;  %v19608_v10 = vpop.f32.mrb[222].mxu1 }
 0x669   :  { %10346 = vst [vmem:[%s19830_s2 + $0x158] sm:$0xf8] %v10282_v1  ;;  %v9867_v30 = vrot.slane %v9866_v13, 2  ;;  %v9587_v58 = vrot.slane %v9586_v8, 4  ;;  %v9596_v23 = vrot.slane %v9595_v40, 2  ;;  %v10132_v11 = vrot.slane %v19569_v54, 2 }
 0x66a   :  { %10347 = vst [vmem:[%s19830_s2 + $0x160] sm:$0xf8] %v10283_v18  ;;  %v9873_v49 = vadd.f32 %v9872_v50, %v9871_v7  ;;  %v9584_v3 = vrot.slane %v9583_v39, 1  ;;  %v9600_v6 = vsel %vm9438_vm4, %v19573_v44, -inf  ;;  %v9733_v61 = vmul.f32 1.442695, %v9682_v9 }
 0x66b   :  { %v12715_v19 = vpop.eup %12714  ;;  %v9868_v56 = vadd.f32 %v9867_v30, %v9866_v13  ;;  %v9597_v46 = vmax.f32 %v9595_v40, %v9596_v23  ;;  %v9588_v37 = vmax.f32 %v9586_v8, %v9587_v58  ;;  %10196 = vst [vmem:[%s19830_s2 + $0x1a8] ss:$-252 sps:$4 sm:$0xc7] %v10132_v11   ;;  %v19615_v32 = vpop.f32.mrb[223].mxu1  ;;  %v9601_v60 = vrot.slane %v9600_v6, 4 }
 0x66c   :  { %v19605_v55 = vpop.eup %12716  ;;  %v10029_v21 = vmul.f32 %v12715_v19, %v19504_v4  ;;  %v9874_v5 = vrot.slane %v9873_v49, 2  ;;  %v9585_v35 = vmax.f32 %v9583_v39, %v9584_v3  ;;  %12722 = vpow2.f32 %v9733_v61 }
 0x66d   :  { %v9869_v14 = vrot.slane %v9868_v56, 1  ;;  %v9885_v38 = vsel %vm9438_vm4, %v19605_v55, 0.0  ;;  %v9598_v22 = vrot.slane %v9597_v46, 1  ;;  %v9589_v47 = vrot.slane %v9588_v37, 2 }
 0x66e   :  { %v10285_v28 = vrot.slane %v10029_v21, 5  ;;  %v9875_v15 = vadd.f32 %v9874_v5, %v9873_v49  ;;  %v9886_v4 = vrot.slane %v9885_v38, 4  ;;  %v9683_v42 = vsub.f32 %v19542_v34, %v9585_v35  ;;  %v19618_v41 = vpop.eup %12718 }
 0x66f   :  { %v9870_v27 = vadd.f32 %v9869_v14, %v9868_v56  ;;  %v10134_v16 = vrot.slane %v19573_v44, 2  ;;  %v9878_v57 = vsel %vm9438_vm4, %v19618_v41, 0.0  ;;  %v9599_v34 = vmax.f32 %v9597_v46, %v9598_v22 }
 0x670   :  { %10349 = vst [vmem:[%s19830_s2 + $0x170] sm:$0xf8] %v10285_v28  ;;  %v9876_v36 = vrot.slane %v9875_v15, 1  ;;  %v9887_v26 = vadd.f32 %v9886_v4, %v9885_v38  ;;  %v9735_v63 = vmul.f32 1.442695, %v9683_v42  ;;  %v9879_v24 = vrot.slane %v9878_v57, 4 }
 0x671   :  { %v12721_v0 = vpop.eup %12720  ;;  %12724 = vrcp.f32 %v9870_v27  ;;  %10198 = vst [vmem:[%s19830_s2 + $0x1b8] ss:$-252 sps:$4 sm:$0xc7] %v10134_v16   ;;  %v9685_v1 = vsub.f32 %v19560_v29, %v9599_v34  ;;  %v9590_v13 = vmax.f32 %v9588_v37, %v9589_v47  ;;  %v9602_v7 = vmax.f32 %v9600_v6, %v9601_v60 }
 0x672   :  { %v10028_v52 = vmul.f32 %v12721_v0, %v19529_v20  ;;  %v9877_v33 = vadd.f32 %v9876_v36, %v9875_v15  ;;  %v9888_v51 = vrot.slane %v9887_v26, 2  ;;  %12726 = vpow2.f32 %v9735_v63 }
 0x673   :  { %v9880_v43 = vadd.f32 %v9879_v24, %v9878_v57  ;;  %v9739_v39 = vmul.f32 1.442695, %v9685_v1  ;;  %v9591_v30 = vrot.slane %v9590_v13, 1  ;;  %v9603_v40 = vrot.slane %v9602_v7, 2 }
 0x674   :  { %v10284_v18 = vrot.slane %v10028_v52, 5  ;;  %12728 = vrcp.f32 %v9877_v33  ;;  %v9889_v50 = vadd.f32 %v9888_v51, %v9887_v26  ;;  %v19633_v20 = vadd.f32 %v19499_v53, %v19196_v45 }
 0x675   :  { %v9881_v8 = vrot.slane %v9880_v43, 2  ;;  %v19640_v29 = vadd.f32 %v19523_v48, %v19196_v45  ;;  %v19644_v49 = vadd.f32 %v19502_v2, %v19196_v45  ;;  %12730 = vpow2.f32 %v9739_v39 }
 0x676   :  { %10348 = vst [vmem:[%s19830_s2 + $0x168] sm:$0xf8] %v10284_v18  ;;  %v9890_v59 = vrot.slane %v9889_v50, 1  ;;  %v9592_v9 = vmax.f32 %v9590_v13, %v9591_v30  ;;  %v9604_v3 = vmax.f32 %v9602_v7, %v9603_v40  ;;  %v9607_v53 = vsel %vm9438_vm4, %v19633_v20, -inf  ;;  %v19648_v58 = vpop.eup %12722 }
 0x677   :  { %v9882_v56 = vadd.f32 %v9881_v8, %v9880_v43  ;;  %v9608_v23 = vrot.slane %v9607_v53, 4  ;;  %v10135_v11 = vrot.slane %v19633_v20, 2  ;;  %v9892_v48 = vsel %vm9438_vm4, %v19648_v58, 0.0 }
 0x678   :  { %v9891_v19 = vadd.f32 %v9890_v59, %v9889_v50  ;;  %v9684_v6 = vsub.f32 %v19569_v54, %v9592_v9  ;;  %v9605_v2 = vrot.slane %v9604_v3, 1  ;;  %v9621_v21 = vsel %vm9438_vm4, %v19640_v29, -inf }
 0x679   :  { %v9883_v5 = vrot.slane %v9882_v56, 1  ;;  %v9893_v61 = vrot.slane %v9892_v48, 4  ;;  %v9609_v35 = vmax.f32 %v9607_v53, %v9608_v23  ;;  %10199 = vst [vmem:[%s19830_s2 + $0x1c0] ss:$-252 sps:$4 sm:$0xc7] %v10135_v11   ;;  %v9622_v37 = vrot.slane %v9621_v21, 4 }
 0x67a   :  { %12732 = vrcp.f32 %v9891_v19  ;;  %v9737_v38 = vmul.f32 1.442695, %v9684_v6  ;;  %v9606_v46 = vmax.f32 %v9604_v3, %v9605_v2  ;;  %v10137_v28 = vrot.slane %v19640_v29, 2 }
 0x67b   :  { %v12725_v14 = vpop.eup %12724  ;;  %v9884_v15 = vadd.f32 %v9883_v5, %v9882_v56  ;;  %v9894_v4 = vadd.f32 %v9893_v61, %v9892_v48  ;;  %v9610_v27 = vrot.slane %v9609_v35, 2  ;;  %v9623_v47 = vmax.f32 %v9621_v21, %v9622_v37 }
 0x67c   :  { %v10030_v54 = vmul.f32 %v12725_v14, %v19562_v25  ;;  %v19661_v42 = vpop.eup %12726  ;;  %12734 = vpow2.f32 %v9737_v38  ;;  %v9686_v22 = vsub.f32 %v19573_v44, %v9606_v46  ;;  %10201 = vst [vmem:[%s19830_s2 + $0x1d0] ss:$-252 sps:$4 sm:$0xc7] %v10137_v28   ;;  %v9614_v36 = vsel %vm9438_vm4, %v19644_v49, -inf }
 0x67d   :  { %12736 = vrcp.f32 %v9884_v15  ;;  %v9895_v25 = vrot.slane %v9894_v4, 2  ;;  %v9899_v16 = vsel %vm9438_vm4, %v19661_v42, 0.0  ;;  %v9611_v44 = vmax.f32 %v9609_v35, %v9610_v27 }
 0x67e   :  { %v12729_v26 = vpop.eup %12728  ;;  %v10286_v60 = vrot.slane %v10030_v54, 5  ;;  %v9900_v57 = vrot.slane %v9899_v16, 4  ;;  %v9741_v63 = vmul.f32 1.442695, %v9686_v22  ;;  %v9624_v52 = vrot.slane %v9623_v47, 2 }
 0x67f   :  { %v10031_v0 = vmul.f32 %v12729_v26, %v19580_v62  ;;  %v9896_v34 = vadd.f32 %v9895_v25, %v9894_v4  ;;  %v9615_v33 = vrot.slane %v9614_v36, 4  ;;  %v10136_v51 = vrot.slane %v19644_v49, 2  ;;  %v19676_v24 = vpop.eup %12730 }
 0x680   :  { %10350 = vst [vmem:[%s19830_s2 + $0x178] sm:$0xf8] %v10286_v60  ;;  %v9901_v13 = vadd.f32 %v9900_v57, %v9899_v16  ;;  %12738 = vpow2.f32 %v9741_v63  ;;  %v9612_v7 = vrot.slane %v9611_v44, 1  ;;  %v9913_v62 = vsel %vm9438_vm4, %v19676_v24, 0.0 }
 0x681   :  { %v10287_v1 = vrot.slane %v10031_v0, 5  ;;  %v9897_v18 = vrot.slane %v9896_v34, 1  ;;  %v9625_v50 = vmax.f32 %v9623_v47, %v9624_v52  ;;  %v9616_v43 = vmax.f32 %v9614_v36, %v9615_v33  ;;  %10200 = vst [vmem:[%s19830_s2 + $0x1c8] ss:$-252 sps:$4 sm:$0xc7] %v10136_v51  }
 0x682   :  { %v9902_v39 = vrot.slane %v9901_v13, 2  ;;  %v9914_v30 = vrot.slane %v9913_v62, 4  ;;  %v9613_v40 = vmax.f32 %v9611_v44, %v9612_v7  ;;  %v19688_v59 = vadd.f32 %v19527_v17, %v19196_v45 }
 0x683   :  { %10351 = vst [vmem:[%s19830_s2 + $0x180] sm:$0xf8] %v10287_v1  ;;  %v9898_v9 = vadd.f32 %v9897_v18, %v9896_v34  ;;  %v9626_v3 = vrot.slane %v9625_v50, 1  ;;  %v9617_v53 = vrot.slane %v9616_v43, 2  ;;  %v19692_v19 = vadd.f32 %v19585_v31, %v19196_v45 }
 0x684   :  { %v12733_v8 = vpop.eup %12732  ;;  %v9903_v23 = vadd.f32 %v9902_v39, %v9901_v13  ;;  %v9915_v11 = vadd.f32 %v9914_v30, %v9913_v62  ;;  %v9687_v48 = vsub.f32 %v19633_v20, %v9613_v40  ;;  %v9628_v17 = vsel %vm9438_vm4, %v19688_v59, -inf }
 0x685   :  { %v10033_v56 = vmul.f32 %v12733_v8, %v19605_v55  ;;  %12740 = vrcp.f32 %v9898_v9  ;;  %v9627_v6 = vmax.f32 %v9625_v50, %v9626_v3  ;;  %v9618_v2 = vmax.f32 %v9616_v43, %v9617_v53 }
 0x686   :  { %v19698_v21 = vpop.eup %12734  ;;  %v9904_v61 = vrot.slane %v9903_v23, 1  ;;  %v9916_v35 = vrot.slane %v9915_v11, 2  ;;  %v9743_v14 = vmul.f32 1.442695, %v9687_v48  ;;  %v9629_v20 = vrot.slane %v9628_v17, 4 }
 0x687   :  { %v10289_v5 = vrot.slane %v10033_v56, 5  ;;  %v12737_v31 = vpop.eup %12736  ;;  %v9906_v55 = vsel %vm9438_vm4, %v19698_v21, 0.0  ;;  %v9689_v38 = vsub.f32 %v19640_v29, %v9627_v6  ;;  %v9619_v46 = vrot.slane %v9618_v2, 1 }
 0x688   :  { %v10032_v37 = vmul.f32 %v12737_v31, %v19618_v41  ;;  %v9905_v28 = vadd.f32 %v9904_v61, %v9903_v23  ;;  %v9917_v54 = vadd.f32 %v9916_v35, %v9915_v11  ;;  %v9907_v15 = vrot.slane %v9906_v55, 4 }
 0x689   :  { %10353 = vst [vmem:[%s19830_s2 + $0x190] sm:$0xf8] %v10289_v5  ;;  %12742 = vpow2.f32 %v9743_v14  ;;  %v9747_v4 = vmul.f32 1.442695, %v9689_v38  ;;  %v9620_v27 = vmax.f32 %v9618_v2, %v9619_v46  ;;  %v9630_v22 = vmax.f32 %v9628_v17, %v9629_v20 }
 0x68a   :  { %v19707_v47 = vpop.eup %12738  ;;  %v10288_v36 = vrot.slane %v10032_v37, 5  ;;  %12744 = vrcp.f32 %v9905_v28  ;;  %v9918_v29 = vrot.slane %v9917_v54, 1  ;;  %v9908_v26 = vadd.f32 %v9907_v15, %v9906_v55 }
 0x68b   :  { %v9920_v60 = vsel %vm9438_vm4, %v19707_v47, 0.0  ;;  %12746 = vpow2.f32 %v9747_v4  ;;  %v9688_v25 = vsub.f32 %v19644_v49, %v9620_v27  ;;  %v9631_v41 = vrot.slane %v9630_v22, 2 }
 0x68c   :  { %10352 = vst [vmem:[%s19830_s2 + $0x188] sm:$0xf8] %v10288_v36  ;;  %v9919_v16 = vadd.f32 %v9918_v29, %v9917_v54  ;;  %v9909_v0 = vrot.slane %v9908_v26, 2  ;;  %v9921_v57 = vrot.slane %v9920_v60, 4  ;;  %v10138_v63 = vrot.slane %v19688_v59, 2 }
 0x68d   :  { %v9745_v44 = vmul.f32 1.442695, %v9688_v25  ;;  %v9632_v34 = vmax.f32 %v9630_v22, %v9631_v41  ;;  %v9635_v52 = vsel %vm9438_vm4, %v19692_v19, -inf  ;;  %v10139_v33 = vrot.slane %v19692_v19, 2 }
 0x68e   :  { %12748 = vrcp.f32 %v9919_v16  ;;  %v9910_v51 = vadd.f32 %v9909_v0, %v9908_v26  ;;  %v9922_v49 = vadd.f32 %v9921_v57, %v9920_v60  ;;  %10202 = vst [vmem:[%s19830_s2 + $0x1d8] ss:$-252 sps:$4 sm:$0xc7] %v10138_v63   ;;  %v9636_v1 = vrot.slane %v9635_v52, 4 }
 0x68f   :  { %v12741_v13 = vpop.eup %12740  ;;  %12750 = vpow2.f32 %v9745_v44  ;;  %v9633_v7 = vrot.slane %v9632_v34, 1  ;;  %10203 = vst [vmem:[%s19830_s2 + $0x1e0] ss:$-252 sps:$4 sm:$0xc7] %v10139_v33   ;;  %v19727_v18 = vadd.f32 %v19608_v10, %v19196_v45  ;;  %v19731_v62 = vadd.f32 %v19593_v12, %v19196_v45 }
 0x690   :  { %v10034_v50 = vmul.f32 %v12741_v13, %v19648_v58  ;;  %v9911_v43 = vrot.slane %v9910_v51, 1  ;;  %v9923_v39 = vrot.slane %v9922_v49, 2  ;;  %v9637_v30 = vmax.f32 %v9635_v52, %v9636_v1 }
 0x691   :  { %v9634_v40 = vmax.f32 %v9632_v34, %v9633_v7  ;;  %v9649_v8 = vsel %vm9438_vm4, %v19727_v18, -inf  ;;  %v10141_v9 = vrot.slane %v19727_v18, 2  ;;  %v9642_v3 = vsel %vm9438_vm4, %v19731_v62, -inf }
 0x692   :  { %v10290_v10 = vrot.slane %v10034_v50, 5  ;;  %v9912_v53 = vadd.f32 %v9911_v43, %v9910_v51  ;;  %v9924_v56 = vadd.f32 %v9923_v39, %v9922_v49  ;;  %v9638_v23 = vrot.slane %v9637_v30, 2 }
 0x693   :  { %v19739_v12 = vpop.eup %12742  ;;  %v9690_v58 = vsub.f32 %v19688_v59, %v9634_v40  ;;  %v9650_v11 = vrot.slane %v9649_v8, 4  ;;  %10205 = vst [vmem:[%s19830_s2 + $0x1f0] ss:$-252 sps:$4 sm:$0xc7] %v10141_v9   ;;  %v9643_v48 = vrot.slane %v9642_v3, 4  ;;  %v10140_v6 = vrot.slane %v19731_v62, 2 }
 0x694   :  { %v12745_v2 = vpop.eup %12744  ;;  %10354 = vst [vmem:[%s19830_s2 + $0x198] sm:$0xf8] %v10290_v10  ;;  %12752 = vrcp.f32 %v9912_v53  ;;  %v9925_v17 = vrot.slane %v9924_v56, 1  ;;  %v9927_v5 = vsel %vm9438_vm4, %v19739_v12, 0.0  ;;  %v9639_v61 = vmax.f32 %v9637_v30, %v9638_v23 }
 0x695   :  { %v19751_v59 = vpop.eup %12746  ;;  %v10035_v35 = vmul.f32 %v12745_v2, %v19661_v42  ;;  %v9928_v14 = vrot.slane %v9927_v5, 4  ;;  %v9749_v31 = vmul.f32 1.442695, %v9690_v58  ;;  %v9651_v55 = vmax.f32 %v9649_v8, %v9650_v11  ;;  %10204 = vst [vmem:[%s19830_s2 + $0x1e8] ss:$-252 sps:$4 sm:$0xc7] %v10140_v6  }
 0x696   :  { %v9926_v38 = vadd.f32 %v9925_v17, %v9924_v56  ;;  %v9941_v46 = vsel %vm9438_vm4, %v19751_v59, 0.0  ;;  %v9640_v20 = vrot.slane %v9639_v61, 1  ;;  %v9644_v37 = vmax.f32 %v9642_v3, %v9643_v48 }
 0x697   :  { %v10291_v28 = vrot.slane %v10035_v35, 5  ;;  %v9929_v54 = vadd.f32 %v9928_v14, %v9927_v5  ;;  %v9942_v15 = vrot.slane %v9941_v46, 4  ;;  %12754 = vpow2.f32 %v9749_v31 }
 0x698   :  { %v12749_v4 = vpop.eup %12748  ;;  %12756 = vrcp.f32 %v9926_v38  ;;  %v9641_v42 = vmax.f32 %v9639_v61, %v9640_v20  ;;  %v9652_v27 = vrot.slane %v9651_v55, 2  ;;  %v9645_v22 = vrot.slane %v9644_v37, 2 }
 0x699   :  { %v19759_v36 = vpop.eup %12750  ;;  %10355 = vst [vmem:[%s19830_s2 + $0x1a0] sm:$0xf8] %v10291_v28  ;;  %v10037_v29 = vmul.f32 %v12749_v4, %v19676_v24  ;;  %v9930_v26 = vrot.slane %v9929_v54, 2  ;;  %v9943_v60 = vadd.f32 %v9942_v15, %v9941_v46  ;;  %v19767_v25 = vadd.f32 %v19615_v32, %v19196_v45 }
 0x69a   :  { %v9934_v41 = vsel %vm9438_vm4, %v19759_v36, 0.0  ;;  %v9691_v16 = vsub.f32 %v19692_v19, %v9641_v42  ;;  %v9653_v0 = vmax.f32 %v9651_v55, %v9652_v27  ;;  %v9646_v57 = vmax.f32 %v9644_v37, %v9645_v22 }
 0x69b   :  { %v10293_v63 = vrot.slane %v10037_v29, 5  ;;  %v9931_v44 = vadd.f32 %v9930_v26, %v9929_v54  ;;  %v9944_v34 = vrot.slane %v9943_v60, 2  ;;  %v9935_v52 = vrot.slane %v9934_v41, 4 }
 0x69c   :  { %v9751_v33 = vmul.f32 1.442695, %v9691_v16  ;;  %v9654_v51 = vrot.slane %v9653_v0, 1  ;;  %v9647_v24 = vrot.slane %v9646_v57, 1  ;;  %v9656_v49 = vsel %vm9438_vm4, %v19767_v25, -inf }
 0x69d   :  { %10357 = vst [vmem:[%s19830_s2 + $0x1b0] sm:$0xf8] %v10293_v63  ;;  %v9932_v45 = vrot.slane %v9931_v44, 1  ;;  %v9945_v32 = vadd.f32 %v9944_v34, %v9943_v60  ;;  %v9936_v1 = vadd.f32 %v9935_v52, %v9934_v41  ;;  %v9657_v19 = vrot.slane %v9656_v49, 4 }
 0x69e   :  { %v12753_v13 = vpop.eup %12752  ;;  %12758 = vpow2.f32 %v9751_v33  ;;  %v9655_v7 = vmax.f32 %v9653_v0, %v9654_v51  ;;  %v9648_v50 = vmax.f32 %v9646_v57, %v9647_v24  ;;  %v10142_v43 = vrot.slane %v19767_v25, 2 }
 0x69f   :  { %v10036_v39 = vmul.f32 %v12753_v13, %v19698_v21  ;;  %v9933_v30 = vadd.f32 %v9932_v45, %v9931_v44  ;;  %v9946_v40 = vrot.slane %v9945_v32, 1  ;;  %v9937_v8 = vrot.slane %v9936_v1, 2 }
 0x6a0   :  { %v9693_v9 = vsub.f32 %v19727_v18, %v9655_v7  ;;  %v9692_v3 = vsub.f32 %v19731_v62, %v9648_v50  ;;  %v9658_v10 = vmax.f32 %v9656_v49, %v9657_v19  ;;  %10206 = vst [vmem:[%s19830_s2 + $0x1f8] ss:$-252 sps:$4 sm:$0xc7] %v10142_v43  }
 0x6a1   :  { %v19784_v53 = vpop.eup %12754  ;;  %v10292_v56 = vrot.slane %v10036_v39, 5  ;;  %12760 = vrcp.f32 %v9933_v30  ;;  %v9947_v23 = vadd.f32 %v9946_v40, %v9945_v32  ;;  %v9938_v58 = vadd.f32 %v9937_v8, %v9936_v1 }
 0x6a2   :  { %v12757_v11 = vpop.eup %12756  ;;  %v9948_v21 = vsel %vm9438_vm4, %v19784_v53, 0.0  ;;  %v9755_v48 = vmul.f32 1.442695, %v9693_v9  ;;  %v9753_v6 = vmul.f32 1.442695, %v9692_v3  ;;  %v9659_v18 = vrot.slane %v9658_v10, 2 }
 0x6a3   :  { %10356 = vst [vmem:[%s19830_s2 + $0x1a8] sm:$0xf8] %v10292_v56  ;;  %v10038_v62 = vmul.f32 %v12757_v11, %v19707_v47  ;;  %12762 = vrcp.f32 %v9947_v23  ;;  %v9939_v2 = vrot.slane %v9938_v58, 1  ;;  %v9949_v17 = vrot.slane %v9948_v21, 4 }
 0x6a4   :  { %12764 = vpow2.f32 %v9755_v48  ;;  %v9660_v5 = vmax.f32 %v9658_v10, %v9659_v18 }
 0x6a5   :  { %v10294_v61 = vrot.slane %v10038_v62, 5  ;;  %v9940_v35 = vadd.f32 %v9939_v2, %v9938_v58  ;;  %v9950_v14 = vadd.f32 %v9949_v17, %v9948_v21  ;;  %12766 = vpow2.f32 %v9753_v6 }
 0x6a6   :  { %v9661_v31 = vrot.slane %v9660_v5, 1 }
 0x6a7   :  { %10358 = vst [vmem:[%s19830_s2 + $0x1b8] sm:$0xf8] %v10294_v61  ;;  %12768 = vrcp.f32 %v9940_v35  ;;  %v9951_v55 = vrot.slane %v9950_v14, 2 }
 0x6a8   :  { %v12759_v38 = vpop.eup %12758  ;;  %v9662_v46 = vmax.f32 %v9660_v5, %v9661_v31 }
 0x6a9   :  { %v9952_v20 = vadd.f32 %v9951_v55, %v9950_v14  ;;  %v9955_v47 = vsel %vm9438_vm4, %v12759_v38, 0.0 }
 0x6aa   :  { %v9956_v37 = vrot.slane %v9955_v47, 4  ;;  %v9694_v28 = vsub.f32 %v19767_v25, %v9662_v46 }
 0x6ab   :  { %v12761_v54 = vpop.eup %12760  ;;  %v9953_v15 = vrot.slane %v9952_v20, 1 }
 0x6ac   :  { %v10039_v4 = vmul.f32 %v12761_v54, %v19739_v12  ;;  %v9957_v42 = vadd.f32 %v9956_v37, %v9955_v47  ;;  %v9757_v27 = vmul.f32 1.442695, %v9694_v28 }
 0x6ad   :  { %v12763_v22 = vpop.eup %12762  ;;  %v9954_v29 = vadd.f32 %v9953_v15, %v9952_v20 }
 0x6ae   :  { %v12765_v26 = vpop.eup %12764  ;;  %v10295_v60 = vrot.slane %v10039_v4, 5  ;;  %v10041_v41 = vmul.f32 %v12763_v22, %v19751_v59  ;;  %v9958_v16 = vrot.slane %v9957_v42, 2  ;;  %12770 = vpow2.f32 %v9757_v27 }
 0x6af   :  { %v12767_v0 = vpop.eup %12766  ;;  %12772 = vrcp.f32 %v9954_v29  ;;  %v9969_v57 = vsel %vm9438_vm4, %v12765_v26, 0.0 }
 0x6b0   :  { %10359 = vst [vmem:[%s19830_s2 + $0x1c0] sm:$0xf8] %v10295_v60  ;;  %v10297_v25 = vrot.slane %v10041_v41, 5  ;;  %v9959_v12 = vadd.f32 %v9958_v16, %v9957_v42  ;;  %v9970_v63 = vrot.slane %v9969_v57, 4  ;;  %v9962_v44 = vsel %vm9438_vm4, %v12767_v0, 0.0 }
 0x6b1   :  { %v12769_v34 = vpop.eup %12768  ;;  %v9963_v52 = vrot.slane %v9962_v44, 4 }
 0x6b2   :  { %10361 = vst [vmem:[%s19830_s2 + $0x1d0] sm:$0xf8] %v10297_v25  ;;  %v10040_v59 = vmul.f32 %v12769_v34, %v19759_v36  ;;  %v9960_v33 = vrot.slane %v9959_v12, 1  ;;  %v9971_v51 = vadd.f32 %v9970_v63, %v9969_v57 }
 0x6b3   :  { %v9964_v24 = vadd.f32 %v9963_v52, %v9962_v44 }
 0x6b4   :  { %v10296_v49 = vrot.slane %v10040_v59, 5  ;;  %v9961_v45 = vadd.f32 %v9960_v33, %v9959_v12  ;;  %v9972_v32 = vrot.slane %v9971_v51, 2 }
 0x6b5   :  { %v9965_v1 = vrot.slane %v9964_v24, 2 }
 0x6b6   :  { %10360 = vst [vmem:[%s19830_s2 + $0x1c8] sm:$0xf8] %v10296_v49  ;;  %12774 = vrcp.f32 %v9961_v45  ;;  %v9973_v19 = vadd.f32 %v9972_v32, %v9971_v51 }
 0x6b7   :  { %v9966_v13 = vadd.f32 %v9965_v1, %v9964_v24 }
 0x6b8   :  { %v12771_v7 = vpop.eup %12770  ;;  %v9974_v50 = vrot.slane %v9973_v19, 1 }
 0x6b9   :  { %v12773_v43 = vpop.eup %12772  ;;  %v9967_v39 = vrot.slane %v9966_v13, 1  ;;  %v9976_v36 = vsel %vm9438_vm4, %v12771_v7, 0.0 }
 0x6ba   :  { %v10042_v30 = vmul.f32 %v12773_v43, %v19784_v53  ;;  %v9975_v40 = vadd.f32 %v9974_v50, %v9973_v19  ;;  %v9977_v8 = vrot.slane %v9976_v36, 4 }
 0x6bb   :  { %v9968_v9 = vadd.f32 %v9967_v39, %v9966_v13 }
 0x6bc   :  { %v10298_v3 = vrot.slane %v10042_v30, 5  ;;  %12776 = vrcp.f32 %v9975_v40  ;;  %v9978_v10 = vadd.f32 %v9977_v8, %v9976_v36 }
 0x6bd   :  { %12778 = vrcp.f32 %v9968_v9 }
 0x6be   :  { %10362 = vst [vmem:[%s19830_s2 + $0x1d8] sm:$0xf8] %v10298_v3  ;;  %v9979_v56 = vrot.slane %v9978_v10, 2 }
 0x6c0   :  { %v12775_v23 = vpop.eup %12774  ;;  %v9980_v58 = vadd.f32 %v9979_v56, %v9978_v10 }
 0x6c1   :  { %v10043_v11 = vmul.f32 %v12775_v23, %v12759_v38 }
 0x6c2   :  { %v9981_v21 = vrot.slane %v9980_v58, 1 }
 0x6c3   :  { %v10299_v48 = vrot.slane %v10043_v11, 5 }
 0x6c4   :  { %v9982_v6 = vadd.f32 %v9981_v21, %v9980_v58 }
 0x6c5   :  { %10363 = vst [vmem:[%s19830_s2 + $0x1e0] sm:$0xf8] %v10299_v48 }
 0x6c6   :  { %v12777_v53 = vpop.eup %12776  ;;  %12780 = vrcp.f32 %v9982_v6 }
 0x6c7   :  { %v12779_v18 = vpop.eup %12778  ;;  %v10045_v62 = vmul.f32 %v12777_v53, %v12765_v26 }
 0x6c8   :  { %v10044_v2 = vmul.f32 %v12779_v18, %v12767_v0 }
 0x6c9   :  { %v10301_v17 = vrot.slane %v10045_v62, 5 }
 0x6ca   :  { %v10300_v5 = vrot.slane %v10044_v2, 5 }
 0x6cb   :  { %10365 = vst [vmem:[%s19830_s2 + $0x1f0] sm:$0xf8] %v10301_v17 }
 0x6cc   :  { %10364 = vst [vmem:[%s19830_s2 + $0x1e8] sm:$0xf8] %v10300_v5 }
 0x6d0   :  { %v12781_v61 = vpop.eup %12780 }
 0x6d1   :  { %v10046_v35 = vmul.f32 %v12781_v61, %v12771_v7 }
 0x6d3   :  { %v10302_v14 = vrot.slane %v10046_v35, 5 }
 0x6d5   :  { %10366 = vst [vmem:[%s19830_s2 + $0x1f8] sm:$0xf8] %v10302_v14 }

</bundles_post_ra>
